<compile_context>
chip_gen: v6e
topology: v6e:2x2x1
jax: 0.10.0
libtpu: 0.0.40
codegen_flags: <defaults>
</compile_context>

<pallas_src>
import jax
import jax.numpy as jnp
from jax.experimental import pallas as pl
from jax.experimental.pallas import tpu as pltpu

NUM_CLASSES = 37
HIDDEN = 128
FC1 = 64
OUT_PAD = 128  # lane-dense padded logits width; sliced back to NUM_CLASSES in the wrapper

# f32 MXU operands keep the kernel numerically aligned with the f32 reference and
# follow the v5e guidance. On v6e/v7x set this to jnp.bfloat16 for a further ~3x
# reduction in MXU passes (accumulation stays f32 via preferred_element_type).
MATMUL_DTYPE = jnp.float32


def _make_kernel(T, B):
    H = HIDDEN

    def kernel(xf_ref,       # (T*B, C)   time-major, flattened input
               wih1_ref,     # (C, 4H)
               whh1_ref,     # (H, 4H)
               b1_ref,       # (1, 4H)    b_ih + b_hh (layer 1)
               w2_ref,       # (2H, 4H)   [wih2; whh2] fused
               b2_ref,       # (1, 4H)    b_ih + b_hh (layer 2)
               wfc1_ref,     # (H, FC1)
               bfc1_ref,     # (1, FC1)
               wfc2_ref,     # (FC1, OUT_PAD)  zero-padded columns
               bfc2_ref,     # (1, OUT_PAD)
               out_ref):     # (B, OUT_PAD)
        # ---- Hoisted non-recurrent input projection for LSTM layer 1:
        # one (T*B, C) x (C, 4H) matmul instead of T tiny M=B matmuls.
        # Layer-1 bias is folded here, so there is no per-step bias add below.
        g1_in = (
            jnp.dot(xf_ref[...].astype(MATMUL_DTYPE),
                    wih1_ref[...].astype(MATMUL_DTYPE),
                    preferred_element_type=jnp.float32)
            + b1_ref[...]
        )  # (T*B, 4H)

        whh1 = whh1_ref[...].astype(MATMUL_DTYPE)          # (H, 4H)
        w2 = w2_ref[...].astype(MATMUL_DTYPE)               # (2H, 4H)
        b2 = jnp.broadcast_to(b2_ref[...], (B, 4 * H))      # hoisted bias broadcast

        h1 = jnp.zeros((B, H), jnp.float32)
        c1 = jnp.zeros((B, H), jnp.float32)
        h2 = jnp.zeros((B, H), jnp.float32)
        c2 = jnp.zeros((B, H), jnp.float32)

        # T is small and static -> fully unrolled straight-line recurrence
        # (2 MXU matmuls per step on the serial path).
        for t in range(T):
            # ---- LSTM layer 1 (PyTorch gate order: i, f, g, o) ----
            g1 = g1_in[t * B:(t + 1) * B, :] + jnp.dot(
                h1.astype(MATMUL_DTYPE), whh1, preferred_element_type=jnp.float32)
            i1 = jax.nn.sigmoid(g1[:, 0 * H:1 * H])
            f1 = jax.nn.sigmoid(g1[:, 1 * H:2 * H])
            gg1 = jnp.tanh(g1[:, 2 * H:3 * H])
            o1 = jax.nn.sigmoid(g1[:, 3 * H:4 * H])
            c1 = f1 * c1 + i1 * gg1
            h1 = o1 * jnp.tanh(c1)

            # ---- LSTM layer 2: single fused (B, 2H) x (2H, 4H) matmul ----
            hcat = jnp.concatenate([h1, h2], axis=1).astype(MATMUL_DTYPE)
            g2 = jnp.dot(hcat, w2, preferred_element_type=jnp.float32) + b2
            i2 = jax.nn.sigmoid(g2[:, 0 * H:1 * H])
            f2 = jax.nn.sigmoid(g2[:, 1 * H:2 * H])
            gg2 = jnp.tanh(g2[:, 2 * H:3 * H])
            o2 = jax.nn.sigmoid(g2[:, 3 * H:4 * H])
            c2 = f2 * c2 + i2 * gg2
            h2 = o2 * jnp.tanh(c2)

        # ---- FC head on the last time step (dropout = identity in eval mode) ----
        y = jnp.dot(h2, wfc1_ref[...], preferred_element_type=jnp.float32) + bfc1_ref[...]
        y = jnp.maximum(y, 0.0)
        logits = jnp.dot(y, wfc2_ref[...], preferred_element_type=jnp.float32) + bfc2_ref[...]
        out_ref[...] = logits.astype(out_ref.dtype)

    return kernel


def lstm_model_forward(x, params):
    """x: (B, T, NUM_CLASSES) float32 (batch_first) -> (B, NUM_CLASSES) float32."""
    B, T, C = x.shape

    # time-major, flattened to (T*B, C): rows for step t are contiguous, so the whole
    # non-recurrent input projection becomes one matmul inside the kernel.
    x_flat = jnp.transpose(x, (1, 0, 2)).reshape(T * B, C)

    # fuse layer-2's x@Wih + h@Whh into a single (B, 2H) x (2H, 4H) matmul
    w2_cat = jnp.concatenate([params["wih2"], params["whh2"]], axis=0)

    # lane-dense output: pad the final projection to 128 columns, slice back after
    wfc2_p = jnp.zeros((FC1, OUT_PAD), jnp.float32).at[:, :C].set(params["wfc2"])
    bfc2_p = jnp.zeros((1, OUT_PAD), jnp.float32).at[:, :C].set(params["bfc2"])

    vmem_spec = pl.BlockSpec(memory_space=pltpu.MemorySpace.VMEM)
    out = pl.pallas_call(
        _make_kernel(T, B),
        out_shape=jax.ShapeDtypeStruct((B, OUT_PAD), jnp.float32),
        in_specs=[vmem_spec] * 10,
        out_specs=vmem_spec,
    )(
        x_flat,
        params["wih1"], params["whh1"], params["b1"],
        w2_cat, params["b2"],
        params["wfc1"], params["bfc1"], wfc2_p, bfc2_p,
    )
    return out[:, :NUM_CLASSES]


# ---------------- pure-JAX reference (for correctness check) ----------------
def reference_forward(x, params):
    H = HIDDEN
    B = x.shape[0]
    x_t = jnp.transpose(x, (1, 0, 2))  # (T, B, C)

    def lstm_layer(xs, wih, whh, b):
        def step(carry, xt):
            h, c = carry
            g = xt @ wih + h @ whh + b
            i = jax.nn.sigmoid(g[:, 0 * H:1 * H])
            f = jax.nn.sigmoid(g[:, 1 * H:2 * H])
            gg = jnp.tanh(g[:, 2 * H:3 * H])
            o = jax.nn.sigmoid(g[:, 3 * H:4 * H])
            c = f * c + i * gg
            h = o * jnp.tanh(c)
            return (h, c), h

        h0 = jnp.zeros((B, H), jnp.float32)
        c0 = jnp.zeros((B, H), jnp.float32)
        _, hs = jax.lax.scan(step, (h0, c0), xs)
        return hs

    h1_seq = lstm_layer(x_t, params["wih1"], params["whh1"], params["b1"])
    h2_seq = lstm_layer(h1_seq, params["wih2"], params["whh2"], params["b2"])
    last = h2_seq[-1]  # (B, H)
    y = jnp.maximum(last @ params["wfc1"] + params["bfc1"], 0.0)
    return y @ params["wfc2"] + params["bfc2"]


def init_params(key):
    H = HIDDEN
    C = NUM_CLASSES
    ks = jax.random.split(key, 12)
    u = lambda k, shape, s=0.08: jax.random.uniform(k, shape, jnp.float32, -s, s)
    return {
        # layer 1
        "wih1": u(ks[0], (C, 4 * H)),
        "whh1": u(ks[1], (H, 4 * H)),
        "b1": u(ks[2], (1, 4 * H)),      # b_ih + b_hh folded together
        # layer 2
        "wih2": u(ks[3], (H, 4 * H)),
        "whh2": u(ks[4], (H, 4 * H)),
        "b2": u(ks[5], (1, 4 * H)),
        # head
        "wfc1": u(ks[6], (H, FC1)),
        "bfc1": u(ks[7], (1, FC1)),
        "wfc2": u(ks[8], (FC1, C)),
        "bfc2": u(ks[9], (1, C)),
    }


if __name__ == "__main__":
    key = jax.random.PRNGKey(0)
    k_x, k_p = jax.random.split(key)

    B, T = 2, 8
    x = jax.random.normal(k_x, (B, T, NUM_CLASSES), jnp.float32)
    params = init_params(k_p)

    out = jax.block_until_ready(lstm_model_forward(x, params))
    ref = jax.block_until_ready(reference_forward(x, params))

    assert out.shape == (B, NUM_CLASSES)
    assert jnp.allclose(out, ref, atol=1e-2, rtol=1e-2), (
        f"mismatch: max abs err {jnp.max(jnp.abs(out - ref))}"
    )
    print("KERNEL_OK")
</pallas_src>

<mosaic_0001>
module attributes {stable_mosaic.version = 11 : i64} {
  func.func @kernel(%arg0: memref<16x37xf32, #tpu.memory_space<vmem>>, %arg1: memref<37x512xf32, #tpu.memory_space<vmem>>, %arg2: memref<128x512xf32, #tpu.memory_space<vmem>>, %arg3: memref<1x512xf32, #tpu.memory_space<vmem>>, %arg4: memref<256x512xf32, #tpu.memory_space<vmem>>, %arg5: memref<1x512xf32, #tpu.memory_space<vmem>>, %arg6: memref<128x64xf32, #tpu.memory_space<vmem>>, %arg7: memref<1x64xf32, #tpu.memory_space<vmem>>, %arg8: memref<64x128xf32, #tpu.memory_space<vmem>>, %arg9: memref<1x128xf32, #tpu.memory_space<vmem>>, %arg10: memref<2x128xf32, #tpu.memory_space<vmem>>) attributes {dimension_semantics = [], scalar_prefetch = 0 : i64, scratch_operands = 0 : i64, tpu.core_type = #tpu.core_type<tc>} {
    %c0 = arith.constant 0 : index
    %c0_0 = arith.constant 0 : index
    %0 = vector.load %arg0[%c0, %c0_0] : memref<16x37xf32, #tpu.memory_space<vmem>>, vector<16x37xf32>
    %c0_1 = arith.constant 0 : index
    %c0_2 = arith.constant 0 : index
    %1 = vector.load %arg1[%c0_1, %c0_2] : memref<37x512xf32, #tpu.memory_space<vmem>>, vector<37x512xf32>
    %cst = arith.constant dense<0.000000e+00> : vector<16x512xf32>
    %2 = tpu.matmul %0, %1, %cst {dimension_numbers = #tpu.dot_dimension_numbers<[1], [0], [0], [1], [0, 0, 1, 1], [], []>} : vector<16x37xf32>, vector<37x512xf32>, vector<16x512xf32> -> vector<16x512xf32>
    %c0_3 = arith.constant 0 : index
    %c0_4 = arith.constant 0 : index
    %3 = vector.load %arg3[%c0_3, %c0_4] : memref<1x512xf32, #tpu.memory_space<vmem>>, vector<1x512xf32>
    %4 = vector.broadcast %3 : vector<1x512xf32> to vector<16x512xf32>
    %5 = arith.addf %2, %4 : vector<16x512xf32>
    %c0_5 = arith.constant 0 : index
    %c0_6 = arith.constant 0 : index
    %6 = vector.load %arg2[%c0_5, %c0_6] : memref<128x512xf32, #tpu.memory_space<vmem>>, vector<128x512xf32>
    %c0_7 = arith.constant 0 : index
    %c0_8 = arith.constant 0 : index
    %7 = vector.load %arg4[%c0_7, %c0_8] : memref<256x512xf32, #tpu.memory_space<vmem>>, vector<256x512xf32>
    %c0_9 = arith.constant 0 : index
    %c0_10 = arith.constant 0 : index
    %8 = vector.load %arg5[%c0_9, %c0_10] : memref<1x512xf32, #tpu.memory_space<vmem>>, vector<1x512xf32>
    %9 = vector.shape_cast %8 : vector<1x512xf32> to vector<1x512xf32>
    %10 = vector.broadcast %9 : vector<1x512xf32> to vector<2x512xf32>
    %cst_11 = arith.constant 0.000000e+00 : f32
    %11 = vector.broadcast %cst_11 : f32 to vector<2x128xf32>
    %cst_12 = arith.constant 0.000000e+00 : f32
    %12 = vector.broadcast %cst_12 : f32 to vector<2x128xf32>
    %cst_13 = arith.constant 0.000000e+00 : f32
    %13 = vector.broadcast %cst_13 : f32 to vector<2x128xf32>
    %cst_14 = arith.constant 0.000000e+00 : f32
    %14 = vector.broadcast %cst_14 : f32 to vector<2x128xf32>
    %15 = vector.extract_strided_slice %5 {offsets = [0, 0], sizes = [2, 512], strides = [1, 1]} : vector<16x512xf32> to vector<2x512xf32>
    %cst_15 = arith.constant dense<0.000000e+00> : vector<2x512xf32>
    %16 = tpu.matmul %11, %6, %cst_15 {dimension_numbers = #tpu.dot_dimension_numbers<[1], [0], [0], [1], [0, 0, 1, 1], [], []>} : vector<2x128xf32>, vector<128x512xf32>, vector<2x512xf32> -> vector<2x512xf32>
    %17 = arith.addf %15, %16 : vector<2x512xf32>
    %18 = vector.extract_strided_slice %17 {offsets = [0, 0], sizes = [2, 128], strides = [1, 1]} : vector<2x512xf32> to vector<2x128xf32>
    %19 = arith.negf %18 : vector<2x128xf32>
    %20 = math.exp %19 : vector<2x128xf32>
    %cst_16 = arith.constant 1.000000e+00 : f32
    %21 = vector.broadcast %cst_16 : f32 to vector<2x128xf32>
    %22 = arith.addf %21, %20 : vector<2x128xf32>
    %23 = arith.divf %21, %22 : vector<2x128xf32>
    %24 = vector.extract_strided_slice %17 {offsets = [0, 128], sizes = [2, 128], strides = [1, 1]} : vector<2x512xf32> to vector<2x128xf32>
    %25 = arith.negf %24 : vector<2x128xf32>
    %26 = math.exp %25 : vector<2x128xf32>
    %cst_17 = arith.constant 1.000000e+00 : f32
    %27 = vector.broadcast %cst_17 : f32 to vector<2x128xf32>
    %28 = arith.addf %27, %26 : vector<2x128xf32>
    %29 = arith.divf %27, %28 : vector<2x128xf32>
    %30 = vector.extract_strided_slice %17 {offsets = [0, 256], sizes = [2, 128], strides = [1, 1]} : vector<2x512xf32> to vector<2x128xf32>
    %31 = math.tanh %30 : vector<2x128xf32>
    %32 = vector.extract_strided_slice %17 {offsets = [0, 384], sizes = [2, 128], strides = [1, 1]} : vector<2x512xf32> to vector<2x128xf32>
    %33 = arith.negf %32 : vector<2x128xf32>
    %34 = math.exp %33 : vector<2x128xf32>
    %cst_18 = arith.constant 1.000000e+00 : f32
    %35 = vector.broadcast %cst_18 : f32 to vector<2x128xf32>
    %36 = arith.addf %35, %34 : vector<2x128xf32>
    %37 = arith.divf %35, %36 : vector<2x128xf32>
    %38 = arith.mulf %29, %12 : vector<2x128xf32>
    %39 = arith.mulf %23, %31 : vector<2x128xf32>
    %40 = arith.addf %38, %39 : vector<2x128xf32>
    %41 = math.tanh %40 : vector<2x128xf32>
    %42 = arith.mulf %37, %41 : vector<2x128xf32>
    %43 = tpu.concatenate %42, %13 in 1 : vector<2x128xf32>, vector<2x128xf32> -> vector<2x256xf32>
    %cst_19 = arith.constant dense<0.000000e+00> : vector<2x512xf32>
    %44 = tpu.matmul %43, %7, %cst_19 {dimension_numbers = #tpu.dot_dimension_numbers<[1], [0], [0], [1], [0, 0, 1, 1], [], []>} : vector<2x256xf32>, vector<256x512xf32>, vector<2x512xf32> -> vector<2x512xf32>
    %45 = arith.addf %44, %10 : vector<2x512xf32>
    %46 = vector.extract_strided_slice %45 {offsets = [0, 0], sizes = [2, 128], strides = [1, 1]} : vector<2x512xf32> to vector<2x128xf32>
    %47 = arith.negf %46 : vector<2x128xf32>
    %48 = math.exp %47 : vector<2x128xf32>
    %cst_20 = arith.constant 1.000000e+00 : f32
    %49 = vector.broadcast %cst_20 : f32 to vector<2x128xf32>
    %50 = arith.addf %49, %48 : vector<2x128xf32>
    %51 = arith.divf %49, %50 : vector<2x128xf32>
    %52 = vector.extract_strided_slice %45 {offsets = [0, 128], sizes = [2, 128], strides = [1, 1]} : vector<2x512xf32> to vector<2x128xf32>
    %53 = arith.negf %52 : vector<2x128xf32>
    %54 = math.exp %53 : vector<2x128xf32>
    %cst_21 = arith.constant 1.000000e+00 : f32
    %55 = vector.broadcast %cst_21 : f32 to vector<2x128xf32>
    %56 = arith.addf %55, %54 : vector<2x128xf32>
    %57 = arith.divf %55, %56 : vector<2x128xf32>
    %58 = vector.extract_strided_slice %45 {offsets = [0, 256], sizes = [2, 128], strides = [1, 1]} : vector<2x512xf32> to vector<2x128xf32>
    %59 = math.tanh %58 : vector<2x128xf32>
    %60 = vector.extract_strided_slice %45 {offsets = [0, 384], sizes = [2, 128], strides = [1, 1]} : vector<2x512xf32> to vector<2x128xf32>
    %61 = arith.negf %60 : vector<2x128xf32>
    %62 = math.exp %61 : vector<2x128xf32>
    %cst_22 = arith.constant 1.000000e+00 : f32
    %63 = vector.broadcast %cst_22 : f32 to vector<2x128xf32>
    %64 = arith.addf %63, %62 : vector<2x128xf32>
    %65 = arith.divf %63, %64 : vector<2x128xf32>
    %66 = arith.mulf %57, %14 : vector<2x128xf32>
    %67 = arith.mulf %51, %59 : vector<2x128xf32>
    %68 = arith.addf %66, %67 : vector<2x128xf32>
    %69 = math.tanh %68 : vector<2x128xf32>
    %70 = arith.mulf %65, %69 : vector<2x128xf32>
    %71 = vector.extract_strided_slice %5 {offsets = [2, 0], sizes = [2, 512], strides = [1, 1]} : vector<16x512xf32> to vector<2x512xf32>
    %cst_23 = arith.constant dense<0.000000e+00> : vector<2x512xf32>
    %72 = tpu.matmul %42, %6, %cst_23 {dimension_numbers = #tpu.dot_dimension_numbers<[1], [0], [0], [1], [0, 0, 1, 1], [], []>} : vector<2x128xf32>, vector<128x512xf32>, vector<2x512xf32> -> vector<2x512xf32>
    %73 = arith.addf %71, %72 : vector<2x512xf32>
    %74 = vector.extract_strided_slice %73 {offsets = [0, 0], sizes = [2, 128], strides = [1, 1]} : vector<2x512xf32> to vector<2x128xf32>
    %75 = arith.negf %74 : vector<2x128xf32>
    %76 = math.exp %75 : vector<2x128xf32>
    %cst_24 = arith.constant 1.000000e+00 : f32
    %77 = vector.broadcast %cst_24 : f32 to vector<2x128xf32>
    %78 = arith.addf %77, %76 : vector<2x128xf32>
    %79 = arith.divf %77, %78 : vector<2x128xf32>
    %80 = vector.extract_strided_slice %73 {offsets = [0, 128], sizes = [2, 128], strides = [1, 1]} : vector<2x512xf32> to vector<2x128xf32>
    %81 = arith.negf %80 : vector<2x128xf32>
    %82 = math.exp %81 : vector<2x128xf32>
    %cst_25 = arith.constant 1.000000e+00 : f32
    %83 = vector.broadcast %cst_25 : f32 to vector<2x128xf32>
    %84 = arith.addf %83, %82 : vector<2x128xf32>
    %85 = arith.divf %83, %84 : vector<2x128xf32>
    %86 = vector.extract_strided_slice %73 {offsets = [0, 256], sizes = [2, 128], strides = [1, 1]} : vector<2x512xf32> to vector<2x128xf32>
    %87 = math.tanh %86 : vector<2x128xf32>
    %88 = vector.extract_strided_slice %73 {offsets = [0, 384], sizes = [2, 128], strides = [1, 1]} : vector<2x512xf32> to vector<2x128xf32>
    %89 = arith.negf %88 : vector<2x128xf32>
    %90 = math.exp %89 : vector<2x128xf32>
    %cst_26 = arith.constant 1.000000e+00 : f32
    %91 = vector.broadcast %cst_26 : f32 to vector<2x128xf32>
    %92 = arith.addf %91, %90 : vector<2x128xf32>
    %93 = arith.divf %91, %92 : vector<2x128xf32>
    %94 = arith.mulf %85, %40 : vector<2x128xf32>
    %95 = arith.mulf %79, %87 : vector<2x128xf32>
    %96 = arith.addf %94, %95 : vector<2x128xf32>
    %97 = math.tanh %96 : vector<2x128xf32>
    %98 = arith.mulf %93, %97 : vector<2x128xf32>
    %99 = tpu.concatenate %98, %70 in 1 : vector<2x128xf32>, vector<2x128xf32> -> vector<2x256xf32>
    %cst_27 = arith.constant dense<0.000000e+00> : vector<2x512xf32>
    %100 = tpu.matmul %99, %7, %cst_27 {dimension_numbers = #tpu.dot_dimension_numbers<[1], [0], [0], [1], [0, 0, 1, 1], [], []>} : vector<2x256xf32>, vector<256x512xf32>, vector<2x512xf32> -> vector<2x512xf32>
    %101 = arith.addf %100, %10 : vector<2x512xf32>
    %102 = vector.extract_strided_slice %101 {offsets = [0, 0], sizes = [2, 128], strides = [1, 1]} : vector<2x512xf32> to vector<2x128xf32>
    %103 = arith.negf %102 : vector<2x128xf32>
    %104 = math.exp %103 : vector<2x128xf32>
    %cst_28 = arith.constant 1.000000e+00 : f32
    %105 = vector.broadcast %cst_28 : f32 to vector<2x128xf32>
    %106 = arith.addf %105, %104 : vector<2x128xf32>
    %107 = arith.divf %105, %106 : vector<2x128xf32>
    %108 = vector.extract_strided_slice %101 {offsets = [0, 128], sizes = [2, 128], strides = [1, 1]} : vector<2x512xf32> to vector<2x128xf32>
    %109 = arith.negf %108 : vector<2x128xf32>
    %110 = math.exp %109 : vector<2x128xf32>
    %cst_29 = arith.constant 1.000000e+00 : f32
    %111 = vector.broadcast %cst_29 : f32 to vector<2x128xf32>
    %112 = arith.addf %111, %110 : vector<2x128xf32>
    %113 = arith.divf %111, %112 : vector<2x128xf32>
    %114 = vector.extract_strided_slice %101 {offsets = [0, 256], sizes = [2, 128], strides = [1, 1]} : vector<2x512xf32> to vector<2x128xf32>
    %115 = math.tanh %114 : vector<2x128xf32>
    %116 = vector.extract_strided_slice %101 {offsets = [0, 384], sizes = [2, 128], strides = [1, 1]} : vector<2x512xf32> to vector<2x128xf32>
    %117 = arith.negf %116 : vector<2x128xf32>
    %118 = math.exp %117 : vector<2x128xf32>
    %cst_30 = arith.constant 1.000000e+00 : f32
    %119 = vector.broadcast %cst_30 : f32 to vector<2x128xf32>
    %120 = arith.addf %119, %118 : vector<2x128xf32>
    %121 = arith.divf %119, %120 : vector<2x128xf32>
    %122 = arith.mulf %113, %68 : vector<2x128xf32>
    %123 = arith.mulf %107, %115 : vector<2x128xf32>
    %124 = arith.addf %122, %123 : vector<2x128xf32>
    %125 = math.tanh %124 : vector<2x128xf32>
    %126 = arith.mulf %121, %125 : vector<2x128xf32>
    %127 = vector.extract_strided_slice %5 {offsets = [4, 0], sizes = [2, 512], strides = [1, 1]} : vector<16x512xf32> to vector<2x512xf32>
    %cst_31 = arith.constant dense<0.000000e+00> : vector<2x512xf32>
    %128 = tpu.matmul %98, %6, %cst_31 {dimension_numbers = #tpu.dot_dimension_numbers<[1], [0], [0], [1], [0, 0, 1, 1], [], []>} : vector<2x128xf32>, vector<128x512xf32>, vector<2x512xf32> -> vector<2x512xf32>
    %129 = arith.addf %127, %128 : vector<2x512xf32>
    %130 = vector.extract_strided_slice %129 {offsets = [0, 0], sizes = [2, 128], strides = [1, 1]} : vector<2x512xf32> to vector<2x128xf32>
    %131 = arith.negf %130 : vector<2x128xf32>
    %132 = math.exp %131 : vector<2x128xf32>
    %cst_32 = arith.constant 1.000000e+00 : f32
    %133 = vector.broadcast %cst_32 : f32 to vector<2x128xf32>
    %134 = arith.addf %133, %132 : vector<2x128xf32>
    %135 = arith.divf %133, %134 : vector<2x128xf32>
    %136 = vector.extract_strided_slice %129 {offsets = [0, 128], sizes = [2, 128], strides = [1, 1]} : vector<2x512xf32> to vector<2x128xf32>
    %137 = arith.negf %136 : vector<2x128xf32>
    %138 = math.exp %137 : vector<2x128xf32>
    %cst_33 = arith.constant 1.000000e+00 : f32
    %139 = vector.broadcast %cst_33 : f32 to vector<2x128xf32>
    %140 = arith.addf %139, %138 : vector<2x128xf32>
    %141 = arith.divf %139, %140 : vector<2x128xf32>
    %142 = vector.extract_strided_slice %129 {offsets = [0, 256], sizes = [2, 128], strides = [1, 1]} : vector<2x512xf32> to vector<2x128xf32>
    %143 = math.tanh %142 : vector<2x128xf32>
    %144 = vector.extract_strided_slice %129 {offsets = [0, 384], sizes = [2, 128], strides = [1, 1]} : vector<2x512xf32> to vector<2x128xf32>
    %145 = arith.negf %144 : vector<2x128xf32>
    %146 = math.exp %145 : vector<2x128xf32>
    %cst_34 = arith.constant 1.000000e+00 : f32
    %147 = vector.broadcast %cst_34 : f32 to vector<2x128xf32>
    %148 = arith.addf %147, %146 : vector<2x128xf32>
    %149 = arith.divf %147, %148 : vector<2x128xf32>
    %150 = arith.mulf %141, %96 : vector<2x128xf32>
    %151 = arith.mulf %135, %143 : vector<2x128xf32>
    %152 = arith.addf %150, %151 : vector<2x128xf32>
    %153 = math.tanh %152 : vector<2x128xf32>
    %154 = arith.mulf %149, %153 : vector<2x128xf32>
    %155 = tpu.concatenate %154, %126 in 1 : vector<2x128xf32>, vector<2x128xf32> -> vector<2x256xf32>
    %cst_35 = arith.constant dense<0.000000e+00> : vector<2x512xf32>
    %156 = tpu.matmul %155, %7, %cst_35 {dimension_numbers = #tpu.dot_dimension_numbers<[1], [0], [0], [1], [0, 0, 1, 1], [], []>} : vector<2x256xf32>, vector<256x512xf32>, vector<2x512xf32> -> vector<2x512xf32>
    %157 = arith.addf %156, %10 : vector<2x512xf32>
    %158 = vector.extract_strided_slice %157 {offsets = [0, 0], sizes = [2, 128], strides = [1, 1]} : vector<2x512xf32> to vector<2x128xf32>
    %159 = arith.negf %158 : vector<2x128xf32>
    %160 = math.exp %159 : vector<2x128xf32>
    %cst_36 = arith.constant 1.000000e+00 : f32
    %161 = vector.broadcast %cst_36 : f32 to vector<2x128xf32>
    %162 = arith.addf %161, %160 : vector<2x128xf32>
    %163 = arith.divf %161, %162 : vector<2x128xf32>
    %164 = vector.extract_strided_slice %157 {offsets = [0, 128], sizes = [2, 128], strides = [1, 1]} : vector<2x512xf32> to vector<2x128xf32>
    %165 = arith.negf %164 : vector<2x128xf32>
    %166 = math.exp %165 : vector<2x128xf32>
    %cst_37 = arith.constant 1.000000e+00 : f32
    %167 = vector.broadcast %cst_37 : f32 to vector<2x128xf32>
    %168 = arith.addf %167, %166 : vector<2x128xf32>
    %169 = arith.divf %167, %168 : vector<2x128xf32>
    %170 = vector.extract_strided_slice %157 {offsets = [0, 256], sizes = [2, 128], strides = [1, 1]} : vector<2x512xf32> to vector<2x128xf32>
    %171 = math.tanh %170 : vector<2x128xf32>
    %172 = vector.extract_strided_slice %157 {offsets = [0, 384], sizes = [2, 128], strides = [1, 1]} : vector<2x512xf32> to vector<2x128xf32>
    %173 = arith.negf %172 : vector<2x128xf32>
    %174 = math.exp %173 : vector<2x128xf32>
    %cst_38 = arith.constant 1.000000e+00 : f32
    %175 = vector.broadcast %cst_38 : f32 to vector<2x128xf32>
    %176 = arith.addf %175, %174 : vector<2x128xf32>
    %177 = arith.divf %175, %176 : vector<2x128xf32>
    %178 = arith.mulf %169, %124 : vector<2x128xf32>
    %179 = arith.mulf %163, %171 : vector<2x128xf32>
    %180 = arith.addf %178, %179 : vector<2x128xf32>
    %181 = math.tanh %180 : vector<2x128xf32>
    %182 = arith.mulf %177, %181 : vector<2x128xf32>
    %183 = vector.extract_strided_slice %5 {offsets = [6, 0], sizes = [2, 512], strides = [1, 1]} : vector<16x512xf32> to vector<2x512xf32>
    %cst_39 = arith.constant dense<0.000000e+00> : vector<2x512xf32>
    %184 = tpu.matmul %154, %6, %cst_39 {dimension_numbers = #tpu.dot_dimension_numbers<[1], [0], [0], [1], [0, 0, 1, 1], [], []>} : vector<2x128xf32>, vector<128x512xf32>, vector<2x512xf32> -> vector<2x512xf32>
    %185 = arith.addf %183, %184 : vector<2x512xf32>
    %186 = vector.extract_strided_slice %185 {offsets = [0, 0], sizes = [2, 128], strides = [1, 1]} : vector<2x512xf32> to vector<2x128xf32>
    %187 = arith.negf %186 : vector<2x128xf32>
    %188 = math.exp %187 : vector<2x128xf32>
    %cst_40 = arith.constant 1.000000e+00 : f32
    %189 = vector.broadcast %cst_40 : f32 to vector<2x128xf32>
    %190 = arith.addf %189, %188 : vector<2x128xf32>
    %191 = arith.divf %189, %190 : vector<2x128xf32>
    %192 = vector.extract_strided_slice %185 {offsets = [0, 128], sizes = [2, 128], strides = [1, 1]} : vector<2x512xf32> to vector<2x128xf32>
    %193 = arith.negf %192 : vector<2x128xf32>
    %194 = math.exp %193 : vector<2x128xf32>
    %cst_41 = arith.constant 1.000000e+00 : f32
    %195 = vector.broadcast %cst_41 : f32 to vector<2x128xf32>
    %196 = arith.addf %195, %194 : vector<2x128xf32>
    %197 = arith.divf %195, %196 : vector<2x128xf32>
    %198 = vector.extract_strided_slice %185 {offsets = [0, 256], sizes = [2, 128], strides = [1, 1]} : vector<2x512xf32> to vector<2x128xf32>
    %199 = math.tanh %198 : vector<2x128xf32>
    %200 = vector.extract_strided_slice %185 {offsets = [0, 384], sizes = [2, 128], strides = [1, 1]} : vector<2x512xf32> to vector<2x128xf32>
    %201 = arith.negf %200 : vector<2x128xf32>
    %202 = math.exp %201 : vector<2x128xf32>
    %cst_42 = arith.constant 1.000000e+00 : f32
    %203 = vector.broadcast %cst_42 : f32 to vector<2x128xf32>
    %204 = arith.addf %203, %202 : vector<2x128xf32>
    %205 = arith.divf %203, %204 : vector<2x128xf32>
    %206 = arith.mulf %197, %152 : vector<2x128xf32>
    %207 = arith.mulf %191, %199 : vector<2x128xf32>
    %208 = arith.addf %206, %207 : vector<2x128xf32>
    %209 = math.tanh %208 : vector<2x128xf32>
    %210 = arith.mulf %205, %209 : vector<2x128xf32>
    %211 = tpu.concatenate %210, %182 in 1 : vector<2x128xf32>, vector<2x128xf32> -> vector<2x256xf32>
    %cst_43 = arith.constant dense<0.000000e+00> : vector<2x512xf32>
    %212 = tpu.matmul %211, %7, %cst_43 {dimension_numbers = #tpu.dot_dimension_numbers<[1], [0], [0], [1], [0, 0, 1, 1], [], []>} : vector<2x256xf32>, vector<256x512xf32>, vector<2x512xf32> -> vector<2x512xf32>
    %213 = arith.addf %212, %10 : vector<2x512xf32>
    %214 = vector.extract_strided_slice %213 {offsets = [0, 0], sizes = [2, 128], strides = [1, 1]} : vector<2x512xf32> to vector<2x128xf32>
    %215 = arith.negf %214 : vector<2x128xf32>
    %216 = math.exp %215 : vector<2x128xf32>
    %cst_44 = arith.constant 1.000000e+00 : f32
    %217 = vector.broadcast %cst_44 : f32 to vector<2x128xf32>
    %218 = arith.addf %217, %216 : vector<2x128xf32>
    %219 = arith.divf %217, %218 : vector<2x128xf32>
    %220 = vector.extract_strided_slice %213 {offsets = [0, 128], sizes = [2, 128], strides = [1, 1]} : vector<2x512xf32> to vector<2x128xf32>
    %221 = arith.negf %220 : vector<2x128xf32>
    %222 = math.exp %221 : vector<2x128xf32>
    %cst_45 = arith.constant 1.000000e+00 : f32
    %223 = vector.broadcast %cst_45 : f32 to vector<2x128xf32>
    %224 = arith.addf %223, %222 : vector<2x128xf32>
    %225 = arith.divf %223, %224 : vector<2x128xf32>
    %226 = vector.extract_strided_slice %213 {offsets = [0, 256], sizes = [2, 128], strides = [1, 1]} : vector<2x512xf32> to vector<2x128xf32>
    %227 = math.tanh %226 : vector<2x128xf32>
    %228 = vector.extract_strided_slice %213 {offsets = [0, 384], sizes = [2, 128], strides = [1, 1]} : vector<2x512xf32> to vector<2x128xf32>
    %229 = arith.negf %228 : vector<2x128xf32>
    %230 = math.exp %229 : vector<2x128xf32>
    %cst_46 = arith.constant 1.000000e+00 : f32
    %231 = vector.broadcast %cst_46 : f32 to vector<2x128xf32>
    %232 = arith.addf %231, %230 : vector<2x128xf32>
    %233 = arith.divf %231, %232 : vector<2x128xf32>
    %234 = arith.mulf %225, %180 : vector<2x128xf32>
    %235 = arith.mulf %219, %227 : vector<2x128xf32>
    %236 = arith.addf %234, %235 : vector<2x128xf32>
    %237 = math.tanh %236 : vector<2x128xf32>
    %238 = arith.mulf %233, %237 : vector<2x128xf32>
    %239 = vector.extract_strided_slice %5 {offsets = [8, 0], sizes = [2, 512], strides = [1, 1]} : vector<16x512xf32> to vector<2x512xf32>
    %cst_47 = arith.constant dense<0.000000e+00> : vector<2x512xf32>
    %240 = tpu.matmul %210, %6, %cst_47 {dimension_numbers = #tpu.dot_dimension_numbers<[1], [0], [0], [1], [0, 0, 1, 1], [], []>} : vector<2x128xf32>, vector<128x512xf32>, vector<2x512xf32> -> vector<2x512xf32>
    %241 = arith.addf %239, %240 : vector<2x512xf32>
    %242 = vector.extract_strided_slice %241 {offsets = [0, 0], sizes = [2, 128], strides = [1, 1]} : vector<2x512xf32> to vector<2x128xf32>
    %243 = arith.negf %242 : vector<2x128xf32>
    %244 = math.exp %243 : vector<2x128xf32>
    %cst_48 = arith.constant 1.000000e+00 : f32
    %245 = vector.broadcast %cst_48 : f32 to vector<2x128xf32>
    %246 = arith.addf %245, %244 : vector<2x128xf32>
    %247 = arith.divf %245, %246 : vector<2x128xf32>
    %248 = vector.extract_strided_slice %241 {offsets = [0, 128], sizes = [2, 128], strides = [1, 1]} : vector<2x512xf32> to vector<2x128xf32>
    %249 = arith.negf %248 : vector<2x128xf32>
    %250 = math.exp %249 : vector<2x128xf32>
    %cst_49 = arith.constant 1.000000e+00 : f32
    %251 = vector.broadcast %cst_49 : f32 to vector<2x128xf32>
    %252 = arith.addf %251, %250 : vector<2x128xf32>
    %253 = arith.divf %251, %252 : vector<2x128xf32>
    %254 = vector.extract_strided_slice %241 {offsets = [0, 256], sizes = [2, 128], strides = [1, 1]} : vector<2x512xf32> to vector<2x128xf32>
    %255 = math.tanh %254 : vector<2x128xf32>
    %256 = vector.extract_strided_slice %241 {offsets = [0, 384], sizes = [2, 128], strides = [1, 1]} : vector<2x512xf32> to vector<2x128xf32>
    %257 = arith.negf %256 : vector<2x128xf32>
    %258 = math.exp %257 : vector<2x128xf32>
    %cst_50 = arith.constant 1.000000e+00 : f32
    %259 = vector.broadcast %cst_50 : f32 to vector<2x128xf32>
    %260 = arith.addf %259, %258 : vector<2x128xf32>
    %261 = arith.divf %259, %260 : vector<2x128xf32>
    %262 = arith.mulf %253, %208 : vector<2x128xf32>
    %263 = arith.mulf %247, %255 : vector<2x128xf32>
    %264 = arith.addf %262, %263 : vector<2x128xf32>
    %265 = math.tanh %264 : vector<2x128xf32>
    %266 = arith.mulf %261, %265 : vector<2x128xf32>
    %267 = tpu.concatenate %266, %238 in 1 : vector<2x128xf32>, vector<2x128xf32> -> vector<2x256xf32>
    %cst_51 = arith.constant dense<0.000000e+00> : vector<2x512xf32>
    %268 = tpu.matmul %267, %7, %cst_51 {dimension_numbers = #tpu.dot_dimension_numbers<[1], [0], [0], [1], [0, 0, 1, 1], [], []>} : vector<2x256xf32>, vector<256x512xf32>, vector<2x512xf32> -> vector<2x512xf32>
    %269 = arith.addf %268, %10 : vector<2x512xf32>
    %270 = vector.extract_strided_slice %269 {offsets = [0, 0], sizes = [2, 128], strides = [1, 1]} : vector<2x512xf32> to vector<2x128xf32>
    %271 = arith.negf %270 : vector<2x128xf32>
    %272 = math.exp %271 : vector<2x128xf32>
    %cst_52 = arith.constant 1.000000e+00 : f32
    %273 = vector.broadcast %cst_52 : f32 to vector<2x128xf32>
    %274 = arith.addf %273, %272 : vector<2x128xf32>
    %275 = arith.divf %273, %274 : vector<2x128xf32>
    %276 = vector.extract_strided_slice %269 {offsets = [0, 128], sizes = [2, 128], strides = [1, 1]} : vector<2x512xf32> to vector<2x128xf32>
    %277 = arith.negf %276 : vector<2x128xf32>
    %278 = math.exp %277 : vector<2x128xf32>
    %cst_53 = arith.constant 1.000000e+00 : f32
    %279 = vector.broadcast %cst_53 : f32 to vector<2x128xf32>
    %280 = arith.addf %279, %278 : vector<2x128xf32>
    %281 = arith.divf %279, %280 : vector<2x128xf32>
    %282 = vector.extract_strided_slice %269 {offsets = [0, 256], sizes = [2, 128], strides = [1, 1]} : vector<2x512xf32> to vector<2x128xf32>
    %283 = math.tanh %282 : vector<2x128xf32>
    %284 = vector.extract_strided_slice %269 {offsets = [0, 384], sizes = [2, 128], strides = [1, 1]} : vector<2x512xf32> to vector<2x128xf32>
    %285 = arith.negf %284 : vector<2x128xf32>
    %286 = math.exp %285 : vector<2x128xf32>
    %cst_54 = arith.constant 1.000000e+00 : f32
    %287 = vector.broadcast %cst_54 : f32 to vector<2x128xf32>
    %288 = arith.addf %287, %286 : vector<2x128xf32>
    %289 = arith.divf %287, %288 : vector<2x128xf32>
    %290 = arith.mulf %281, %236 : vector<2x128xf32>
    %291 = arith.mulf %275, %283 : vector<2x128xf32>
    %292 = arith.addf %290, %291 : vector<2x128xf32>
    %293 = math.tanh %292 : vector<2x128xf32>
    %294 = arith.mulf %289, %293 : vector<2x128xf32>
    %295 = vector.extract_strided_slice %5 {offsets = [10, 0], sizes = [2, 512], strides = [1, 1]} : vector<16x512xf32> to vector<2x512xf32>
    %cst_55 = arith.constant dense<0.000000e+00> : vector<2x512xf32>
    %296 = tpu.matmul %266, %6, %cst_55 {dimension_numbers = #tpu.dot_dimension_numbers<[1], [0], [0], [1], [0, 0, 1, 1], [], []>} : vector<2x128xf32>, vector<128x512xf32>, vector<2x512xf32> -> vector<2x512xf32>
    %297 = arith.addf %295, %296 : vector<2x512xf32>
    %298 = vector.extract_strided_slice %297 {offsets = [0, 0], sizes = [2, 128], strides = [1, 1]} : vector<2x512xf32> to vector<2x128xf32>
    %299 = arith.negf %298 : vector<2x128xf32>
    %300 = math.exp %299 : vector<2x128xf32>
    %cst_56 = arith.constant 1.000000e+00 : f32
    %301 = vector.broadcast %cst_56 : f32 to vector<2x128xf32>
    %302 = arith.addf %301, %300 : vector<2x128xf32>
    %303 = arith.divf %301, %302 : vector<2x128xf32>
    %304 = vector.extract_strided_slice %297 {offsets = [0, 128], sizes = [2, 128], strides = [1, 1]} : vector<2x512xf32> to vector<2x128xf32>
    %305 = arith.negf %304 : vector<2x128xf32>
    %306 = math.exp %305 : vector<2x128xf32>
    %cst_57 = arith.constant 1.000000e+00 : f32
    %307 = vector.broadcast %cst_57 : f32 to vector<2x128xf32>
    %308 = arith.addf %307, %306 : vector<2x128xf32>
    %309 = arith.divf %307, %308 : vector<2x128xf32>
    %310 = vector.extract_strided_slice %297 {offsets = [0, 256], sizes = [2, 128], strides = [1, 1]} : vector<2x512xf32> to vector<2x128xf32>
    %311 = math.tanh %310 : vector<2x128xf32>
    %312 = vector.extract_strided_slice %297 {offsets = [0, 384], sizes = [2, 128], strides = [1, 1]} : vector<2x512xf32> to vector<2x128xf32>
    %313 = arith.negf %312 : vector<2x128xf32>
    %314 = math.exp %313 : vector<2x128xf32>
    %cst_58 = arith.constant 1.000000e+00 : f32
    %315 = vector.broadcast %cst_58 : f32 to vector<2x128xf32>
    %316 = arith.addf %315, %314 : vector<2x128xf32>
    %317 = arith.divf %315, %316 : vector<2x128xf32>
    %318 = arith.mulf %309, %264 : vector<2x128xf32>
    %319 = arith.mulf %303, %311 : vector<2x128xf32>
    %320 = arith.addf %318, %319 : vector<2x128xf32>
    %321 = math.tanh %320 : vector<2x128xf32>
    %322 = arith.mulf %317, %321 : vector<2x128xf32>
    %323 = tpu.concatenate %322, %294 in 1 : vector<2x128xf32>, vector<2x128xf32> -> vector<2x256xf32>
    %cst_59 = arith.constant dense<0.000000e+00> : vector<2x512xf32>
    %324 = tpu.matmul %323, %7, %cst_59 {dimension_numbers = #tpu.dot_dimension_numbers<[1], [0], [0], [1], [0, 0, 1, 1], [], []>} : vector<2x256xf32>, vector<256x512xf32>, vector<2x512xf32> -> vector<2x512xf32>
    %325 = arith.addf %324, %10 : vector<2x512xf32>
    %326 = vector.extract_strided_slice %325 {offsets = [0, 0], sizes = [2, 128], strides = [1, 1]} : vector<2x512xf32> to vector<2x128xf32>
    %327 = arith.negf %326 : vector<2x128xf32>
    %328 = math.exp %327 : vector<2x128xf32>
    %cst_60 = arith.constant 1.000000e+00 : f32
    %329 = vector.broadcast %cst_60 : f32 to vector<2x128xf32>
    %330 = arith.addf %329, %328 : vector<2x128xf32>
    %331 = arith.divf %329, %330 : vector<2x128xf32>
    %332 = vector.extract_strided_slice %325 {offsets = [0, 128], sizes = [2, 128], strides = [1, 1]} : vector<2x512xf32> to vector<2x128xf32>
    %333 = arith.negf %332 : vector<2x128xf32>
    %334 = math.exp %333 : vector<2x128xf32>
    %cst_61 = arith.constant 1.000000e+00 : f32
    %335 = vector.broadcast %cst_61 : f32 to vector<2x128xf32>
    %336 = arith.addf %335, %334 : vector<2x128xf32>
    %337 = arith.divf %335, %336 : vector<2x128xf32>
    %338 = vector.extract_strided_slice %325 {offsets = [0, 256], sizes = [2, 128], strides = [1, 1]} : vector<2x512xf32> to vector<2x128xf32>
    %339 = math.tanh %338 : vector<2x128xf32>
    %340 = vector.extract_strided_slice %325 {offsets = [0, 384], sizes = [2, 128], strides = [1, 1]} : vector<2x512xf32> to vector<2x128xf32>
    %341 = arith.negf %340 : vector<2x128xf32>
    %342 = math.exp %341 : vector<2x128xf32>
    %cst_62 = arith.constant 1.000000e+00 : f32
    %343 = vector.broadcast %cst_62 : f32 to vector<2x128xf32>
    %344 = arith.addf %343, %342 : vector<2x128xf32>
    %345 = arith.divf %343, %344 : vector<2x128xf32>
    %346 = arith.mulf %337, %292 : vector<2x128xf32>
    %347 = arith.mulf %331, %339 : vector<2x128xf32>
    %348 = arith.addf %346, %347 : vector<2x128xf32>
    %349 = math.tanh %348 : vector<2x128xf32>
    %350 = arith.mulf %345, %349 : vector<2x128xf32>
    %351 = vector.extract_strided_slice %5 {offsets = [12, 0], sizes = [2, 512], strides = [1, 1]} : vector<16x512xf32> to vector<2x512xf32>
    %cst_63 = arith.constant dense<0.000000e+00> : vector<2x512xf32>
    %352 = tpu.matmul %322, %6, %cst_63 {dimension_numbers = #tpu.dot_dimension_numbers<[1], [0], [0], [1], [0, 0, 1, 1], [], []>} : vector<2x128xf32>, vector<128x512xf32>, vector<2x512xf32> -> vector<2x512xf32>
    %353 = arith.addf %351, %352 : vector<2x512xf32>
    %354 = vector.extract_strided_slice %353 {offsets = [0, 0], sizes = [2, 128], strides = [1, 1]} : vector<2x512xf32> to vector<2x128xf32>
    %355 = arith.negf %354 : vector<2x128xf32>
    %356 = math.exp %355 : vector<2x128xf32>
    %cst_64 = arith.constant 1.000000e+00 : f32
    %357 = vector.broadcast %cst_64 : f32 to vector<2x128xf32>
    %358 = arith.addf %357, %356 : vector<2x128xf32>
    %359 = arith.divf %357, %358 : vector<2x128xf32>
    %360 = vector.extract_strided_slice %353 {offsets = [0, 128], sizes = [2, 128], strides = [1, 1]} : vector<2x512xf32> to vector<2x128xf32>
    %361 = arith.negf %360 : vector<2x128xf32>
    %362 = math.exp %361 : vector<2x128xf32>
    %cst_65 = arith.constant 1.000000e+00 : f32
    %363 = vector.broadcast %cst_65 : f32 to vector<2x128xf32>
    %364 = arith.addf %363, %362 : vector<2x128xf32>
    %365 = arith.divf %363, %364 : vector<2x128xf32>
    %366 = vector.extract_strided_slice %353 {offsets = [0, 256], sizes = [2, 128], strides = [1, 1]} : vector<2x512xf32> to vector<2x128xf32>
    %367 = math.tanh %366 : vector<2x128xf32>
    %368 = vector.extract_strided_slice %353 {offsets = [0, 384], sizes = [2, 128], strides = [1, 1]} : vector<2x512xf32> to vector<2x128xf32>
    %369 = arith.negf %368 : vector<2x128xf32>
    %370 = math.exp %369 : vector<2x128xf32>
    %cst_66 = arith.constant 1.000000e+00 : f32
    %371 = vector.broadcast %cst_66 : f32 to vector<2x128xf32>
    %372 = arith.addf %371, %370 : vector<2x128xf32>
    %373 = arith.divf %371, %372 : vector<2x128xf32>
    %374 = arith.mulf %365, %320 : vector<2x128xf32>
    %375 = arith.mulf %359, %367 : vector<2x128xf32>
    %376 = arith.addf %374, %375 : vector<2x128xf32>
    %377 = math.tanh %376 : vector<2x128xf32>
    %378 = arith.mulf %373, %377 : vector<2x128xf32>
    %379 = tpu.concatenate %378, %350 in 1 : vector<2x128xf32>, vector<2x128xf32> -> vector<2x256xf32>
    %cst_67 = arith.constant dense<0.000000e+00> : vector<2x512xf32>
    %380 = tpu.matmul %379, %7, %cst_67 {dimension_numbers = #tpu.dot_dimension_numbers<[1], [0], [0], [1], [0, 0, 1, 1], [], []>} : vector<2x256xf32>, vector<256x512xf32>, vector<2x512xf32> -> vector<2x512xf32>
    %381 = arith.addf %380, %10 : vector<2x512xf32>
    %382 = vector.extract_strided_slice %381 {offsets = [0, 0], sizes = [2, 128], strides = [1, 1]} : vector<2x512xf32> to vector<2x128xf32>
    %383 = arith.negf %382 : vector<2x128xf32>
    %384 = math.exp %383 : vector<2x128xf32>
    %cst_68 = arith.constant 1.000000e+00 : f32
    %385 = vector.broadcast %cst_68 : f32 to vector<2x128xf32>
    %386 = arith.addf %385, %384 : vector<2x128xf32>
    %387 = arith.divf %385, %386 : vector<2x128xf32>
    %388 = vector.extract_strided_slice %381 {offsets = [0, 128], sizes = [2, 128], strides = [1, 1]} : vector<2x512xf32> to vector<2x128xf32>
    %389 = arith.negf %388 : vector<2x128xf32>
    %390 = math.exp %389 : vector<2x128xf32>
    %cst_69 = arith.constant 1.000000e+00 : f32
    %391 = vector.broadcast %cst_69 : f32 to vector<2x128xf32>
    %392 = arith.addf %391, %390 : vector<2x128xf32>
    %393 = arith.divf %391, %392 : vector<2x128xf32>
    %394 = vector.extract_strided_slice %381 {offsets = [0, 256], sizes = [2, 128], strides = [1, 1]} : vector<2x512xf32> to vector<2x128xf32>
    %395 = math.tanh %394 : vector<2x128xf32>
    %396 = vector.extract_strided_slice %381 {offsets = [0, 384], sizes = [2, 128], strides = [1, 1]} : vector<2x512xf32> to vector<2x128xf32>
    %397 = arith.negf %396 : vector<2x128xf32>
    %398 = math.exp %397 : vector<2x128xf32>
    %cst_70 = arith.constant 1.000000e+00 : f32
    %399 = vector.broadcast %cst_70 : f32 to vector<2x128xf32>
    %400 = arith.addf %399, %398 : vector<2x128xf32>
    %401 = arith.divf %399, %400 : vector<2x128xf32>
    %402 = arith.mulf %393, %348 : vector<2x128xf32>
    %403 = arith.mulf %387, %395 : vector<2x128xf32>
    %404 = arith.addf %402, %403 : vector<2x128xf32>
    %405 = math.tanh %404 : vector<2x128xf32>
    %406 = arith.mulf %401, %405 : vector<2x128xf32>
    %407 = vector.extract_strided_slice %5 {offsets = [14, 0], sizes = [2, 512], strides = [1, 1]} : vector<16x512xf32> to vector<2x512xf32>
    %cst_71 = arith.constant dense<0.000000e+00> : vector<2x512xf32>
    %408 = tpu.matmul %378, %6, %cst_71 {dimension_numbers = #tpu.dot_dimension_numbers<[1], [0], [0], [1], [0, 0, 1, 1], [], []>} : vector<2x128xf32>, vector<128x512xf32>, vector<2x512xf32> -> vector<2x512xf32>
    %409 = arith.addf %407, %408 : vector<2x512xf32>
    %410 = vector.extract_strided_slice %409 {offsets = [0, 0], sizes = [2, 128], strides = [1, 1]} : vector<2x512xf32> to vector<2x128xf32>
    %411 = arith.negf %410 : vector<2x128xf32>
    %412 = math.exp %411 : vector<2x128xf32>
    %cst_72 = arith.constant 1.000000e+00 : f32
    %413 = vector.broadcast %cst_72 : f32 to vector<2x128xf32>
    %414 = arith.addf %413, %412 : vector<2x128xf32>
    %415 = arith.divf %413, %414 : vector<2x128xf32>
    %416 = vector.extract_strided_slice %409 {offsets = [0, 128], sizes = [2, 128], strides = [1, 1]} : vector<2x512xf32> to vector<2x128xf32>
    %417 = arith.negf %416 : vector<2x128xf32>
    %418 = math.exp %417 : vector<2x128xf32>
    %cst_73 = arith.constant 1.000000e+00 : f32
    %419 = vector.broadcast %cst_73 : f32 to vector<2x128xf32>
    %420 = arith.addf %419, %418 : vector<2x128xf32>
    %421 = arith.divf %419, %420 : vector<2x128xf32>
    %422 = vector.extract_strided_slice %409 {offsets = [0, 256], sizes = [2, 128], strides = [1, 1]} : vector<2x512xf32> to vector<2x128xf32>
    %423 = math.tanh %422 : vector<2x128xf32>
    %424 = vector.extract_strided_slice %409 {offsets = [0, 384], sizes = [2, 128], strides = [1, 1]} : vector<2x512xf32> to vector<2x128xf32>
    %425 = arith.negf %424 : vector<2x128xf32>
    %426 = math.exp %425 : vector<2x128xf32>
    %cst_74 = arith.constant 1.000000e+00 : f32
    %427 = vector.broadcast %cst_74 : f32 to vector<2x128xf32>
    %428 = arith.addf %427, %426 : vector<2x128xf32>
    %429 = arith.divf %427, %428 : vector<2x128xf32>
    %430 = arith.mulf %421, %376 : vector<2x128xf32>
    %431 = arith.mulf %415, %423 : vector<2x128xf32>
    %432 = arith.addf %430, %431 : vector<2x128xf32>
    %433 = math.tanh %432 : vector<2x128xf32>
    %434 = arith.mulf %429, %433 : vector<2x128xf32>
    %435 = tpu.concatenate %434, %406 in 1 : vector<2x128xf32>, vector<2x128xf32> -> vector<2x256xf32>
    %cst_75 = arith.constant dense<0.000000e+00> : vector<2x512xf32>
    %436 = tpu.matmul %435, %7, %cst_75 {dimension_numbers = #tpu.dot_dimension_numbers<[1], [0], [0], [1], [0, 0, 1, 1], [], []>} : vector<2x256xf32>, vector<256x512xf32>, vector<2x512xf32> -> vector<2x512xf32>
    %437 = arith.addf %436, %10 : vector<2x512xf32>
    %438 = vector.extract_strided_slice %437 {offsets = [0, 0], sizes = [2, 128], strides = [1, 1]} : vector<2x512xf32> to vector<2x128xf32>
    %439 = arith.negf %438 : vector<2x128xf32>
    %440 = math.exp %439 : vector<2x128xf32>
    %cst_76 = arith.constant 1.000000e+00 : f32
    %441 = vector.broadcast %cst_76 : f32 to vector<2x128xf32>
    %442 = arith.addf %441, %440 : vector<2x128xf32>
    %443 = arith.divf %441, %442 : vector<2x128xf32>
    %444 = vector.extract_strided_slice %437 {offsets = [0, 128], sizes = [2, 128], strides = [1, 1]} : vector<2x512xf32> to vector<2x128xf32>
    %445 = arith.negf %444 : vector<2x128xf32>
    %446 = math.exp %445 : vector<2x128xf32>
    %cst_77 = arith.constant 1.000000e+00 : f32
    %447 = vector.broadcast %cst_77 : f32 to vector<2x128xf32>
    %448 = arith.addf %447, %446 : vector<2x128xf32>
    %449 = arith.divf %447, %448 : vector<2x128xf32>
    %450 = vector.extract_strided_slice %437 {offsets = [0, 256], sizes = [2, 128], strides = [1, 1]} : vector<2x512xf32> to vector<2x128xf32>
    %451 = math.tanh %450 : vector<2x128xf32>
    %452 = vector.extract_strided_slice %437 {offsets = [0, 384], sizes = [2, 128], strides = [1, 1]} : vector<2x512xf32> to vector<2x128xf32>
    %453 = arith.negf %452 : vector<2x128xf32>
    %454 = math.exp %453 : vector<2x128xf32>
    %cst_78 = arith.constant 1.000000e+00 : f32
    %455 = vector.broadcast %cst_78 : f32 to vector<2x128xf32>
    %456 = arith.addf %455, %454 : vector<2x128xf32>
    %457 = arith.divf %455, %456 : vector<2x128xf32>
    %458 = arith.mulf %449, %404 : vector<2x128xf32>
    %459 = arith.mulf %443, %451 : vector<2x128xf32>
    %460 = arith.addf %458, %459 : vector<2x128xf32>
    %461 = math.tanh %460 : vector<2x128xf32>
    %462 = arith.mulf %457, %461 : vector<2x128xf32>
    %c0_79 = arith.constant 0 : index
    %c0_80 = arith.constant 0 : index
    %463 = vector.load %arg6[%c0_79, %c0_80] : memref<128x64xf32, #tpu.memory_space<vmem>>, vector<128x64xf32>
    %cst_81 = arith.constant dense<0.000000e+00> : vector<2x64xf32>
    %464 = tpu.matmul %462, %463, %cst_81 {dimension_numbers = #tpu.dot_dimension_numbers<[1], [0], [0], [1], [0, 0, 1, 1], [], []>} : vector<2x128xf32>, vector<128x64xf32>, vector<2x64xf32> -> vector<2x64xf32>
    %c0_82 = arith.constant 0 : index
    %c0_83 = arith.constant 0 : index
    %465 = vector.load %arg7[%c0_82, %c0_83] : memref<1x64xf32, #tpu.memory_space<vmem>>, vector<1x64xf32>
    %466 = vector.broadcast %465 : vector<1x64xf32> to vector<2x64xf32>
    %467 = arith.addf %464, %466 : vector<2x64xf32>
    %cst_84 = arith.constant 0.000000e+00 : f32
    %468 = vector.broadcast %cst_84 : f32 to vector<2x64xf32>
    %469 = arith.maximumf %467, %468 : vector<2x64xf32>
    %c0_85 = arith.constant 0 : index
    %c0_86 = arith.constant 0 : index
    %470 = vector.load %arg8[%c0_85, %c0_86] : memref<64x128xf32, #tpu.memory_space<vmem>>, vector<64x128xf32>
    %cst_87 = arith.constant dense<0.000000e+00> : vector<2x128xf32>
    %471 = tpu.matmul %469, %470, %cst_87 {dimension_numbers = #tpu.dot_dimension_numbers<[1], [0], [0], [1], [0, 0, 1, 1], [], []>} : vector<2x64xf32>, vector<64x128xf32>, vector<2x128xf32> -> vector<2x128xf32>
    %c0_88 = arith.constant 0 : index
    %c0_89 = arith.constant 0 : index
    %472 = vector.load %arg9[%c0_88, %c0_89] : memref<1x128xf32, #tpu.memory_space<vmem>>, vector<1x128xf32>
    %473 = vector.broadcast %472 : vector<1x128xf32> to vector<2x128xf32>
    %474 = arith.addf %471, %473 : vector<2x128xf32>
    %c0_90 = arith.constant 0 : index
    %c0_91 = arith.constant 0 : index
    %475 = vector.load %arg10[%c0_90, %c0_91] : memref<2x128xf32, #tpu.memory_space<vmem>>, vector<2x128xf32>
    tpu.vector_store %arg10[%c0_90, %c0_91], %474 {strides = array<i32>} : memref<2x128xf32, #tpu.memory_space<vmem>>, vector<2x128xf32>,
    return
  }
}

</mosaic_0001>

<bundles_post_ra>
// kernel: tpu_custom_call.1
= control target key start
LH: loop header
LB: loop body
LE: loop exit
PB: predicated region body
PF: predicated region fallthrough
CT: control target
= control target key end

     0   :  { %15 = vsyncpa [#allocation3], 0  ;;  %s8144_s0 = inlined_call_operand.vmem [shape: f32[16,37], index: 0, kind: input, shape index: {}]   ;;  %s8145_s1 = inlined_call_operand.vmem [shape: f32[37,512], index: 1, kind: input, shape index: {}]   ;;  %s8146_s2 = inlined_call_operand.hbm [shape: f32[128,512], index: 2, kind: input, shape index: {}]   ;;  %s8147_s3 = inlined_call_operand.vmem [shape: f32[1,512], index: 3, kind: input, shape index: {}]   ;;  %s8148_s4 = inlined_call_operand.hbm [shape: f32[256,512], index: 4, kind: input, shape index: {}]   ;;  %s8149_s5 = inlined_call_operand.vmem [shape: f32[1,512], index: 5, kind: input, shape index: {}]   ;;  %s8150_s6 = inlined_call_operand.vmem [shape: f32[128,64], index: 6, kind: input, shape index: {}]   ;;  %s8151_s7 = inlined_call_operand.vmem [shape: f32[1,64], index: 7, kind: input, shape index: {}]   ;;  %s8152_s8 = inlined_call_operand.hbm [shape: f32[64,128], index: 8, kind: input, shape index: {}]   ;;  %s8153_s9 = inlined_call_operand.vmem [shape: f32[1,128], index: 9, kind: input, shape index: {}]   ;;  %s8154_s10 = inlined_call_operand.hbm [shape: f32[2,128], index: 10, kind: output, shape index: {}]  }
   0x1   :  { %16 = vsyncpa [#allocation6], 0 }
   0x2   :  { %17 = vsyncpa [#allocation4], 0  ;;  %s4599_s13 = smov [#allocation5]   ;;  %s4600_s15 = smov [#allocation2]  }
   0x3   :  { %s41_s14 = sshll.u32 %s4599_s13, 4  ;;  %s27_s16 = sshll.u32 %s4600_s15, 4  ;;  %s42_s14 = int_to_ptr.vmem [resolvable:$true] %s41_s14  ;;  %s28_s16 = int_to_ptr.vmem [resolvable:$true] %s27_s16 }
   0x4   :  { %s4521_s17 = scalar_lea.vmem %s42_s14, 16384  ;;  %p4526_p1 = scmp.lt.s32.totalorder %s42_s14, %s42_s14 }
   0x5   :  { %p4522_p0 = scmp.ne.s32.totalorder %s42_s14, %s4521_s17  ;;  %p4527_p2 = scmp.lt.s32.totalorder %s4521_s17, %s4521_s17 }
   0x7   :  { %p4528_p3 = por %p4527_p2, %p4526_p1 }
   0x9   :  { %p4529_p4 = pnand %p4528_p3, %p4522_p0 }
   0xb   :  { %4532 = shalt.err (!%p4529_p4)
}
   0xc   :  { %s4601_s18 = smov 512   ;;  %s4602_s19 = smov 32  }
   0xd   :  { %47 = dma.hbm_to_vmem [thread:$0]  %s8148_s4, 16384, %s42_s14, [#allocation6], %s4601_s18, %s4601_s18, %s4602_s19  }
   0xe   :  { %s4541_s22 = scalar_lea.vmem %s28_s16, 8192  ;;  %p4546_p6 = scmp.lt.s32.totalorder %s28_s16, %s28_s16 }
   0xf   :  { %p4542_p5 = scmp.ne.s32.totalorder %s28_s16, %s4541_s22  ;;  %p4547_p7 = scmp.lt.s32.totalorder %s4541_s22, %s4541_s22 }
  0x11   :  { %p4548_p8 = por %p4547_p7, %p4546_p6 }
  0x13   :  { %p4549_p9 = pnand %p4548_p8, %p4542_p5 }
  0x15   :  { %4552 = shalt.err (!%p4549_p9)
}
  0x16   :  { %33 = dma.hbm_to_vmem [thread:$0]  %s8146_s2, 8192, %s28_s16, [#allocation3], %s4601_s18, %s4601_s18, %s4602_s19  }
  0x17   :  { %s4603_s25 = smov [#allocation7]  }
  0x18   :  { %s59_s26 = sshll.u32 %s4603_s25, 4  ;;  %s60_s26 = int_to_ptr.vmem [resolvable:$true] %s59_s26 }
  0x19   :  { %s4561_s27 = scalar_lea.vmem %s60_s26, 1024  ;;  %p4566_p11 = scmp.lt.s32.totalorder %s60_s26, %s60_s26 }
  0x1a   :  { %p4562_p10 = scmp.ne.s32.totalorder %s60_s26, %s4561_s27  ;;  %p4567_p12 = scmp.lt.s32.totalorder %s4561_s27, %s4561_s27 }
  0x1c   :  { %p4568_p13 = por %p4567_p12, %p4566_p11 }
  0x1e   :  { %p4569_p0 = pnand %p4568_p13, %p4562_p10 }
  0x20   :  { %4572 = shalt.err (!%p4569_p0)
}
  0x21   :  { %s4604_s4 = smov 128   ;;  %s4605_s28 = smov 8  }
  0x22   :  { %65 = dma.hbm_to_vmem [thread:$0]  %s8152_s8, 1024, %s60_s26, [#allocation6], %s4604_s4, %s4604_s4, %s4605_s28  }
  0x23   :  { %4593 = dma.done.wait [#allocation3], 8192  }
  0x24   :  { %4594 = vsyncadd [#allocation3], 4294959104 }
  0x25   :  { %4595 = dma.done.wait [#allocation6], 17408  }
  0x26   :  { %4596 = vsyncadd [#allocation6], 4294949888  ;;  %v8155_v0 = vmov 0.0   ;;  %vm128_vm0 = vcmask 1044480   ;;  %v96_v1 = vld [vmem:[%s8145_s1 + $0x88] sm:$0x1f] }
  0x27   :  { %205 = vmatprep.mubr.f32.mxu1 %v8155_v0  ;;  %573 = vmatprep.mubr.f32.mxu0 %v8155_v0  ;;  %v4678_v2 = vld [vmem:[#allocation2 + $0x1e8] sm:$0xff]  ;;  %v95_v3 = vld [vmem:[%s8145_s1 + $0x80] sm:$0x1f]  ;;  %vm121_vm1 = vcmask 302080   ;;  %v98_v22 = vld [vmem:[%s8145_s1 + $0x98] sm:$0x1f] }
  0x28   :  { %3532 = vmatprep.subr.msk.mxu1 %vm128_vm0, %v96_v1  ;;  %509 = vmatprep.subr.mxu0 %v4678_v2  ;;  %v4685_v4 = vld [vmem:[#allocation2 + $0x1e0] sm:$0xff]  ;;  %v92_v5 = vld [vmem:[%s8145_s1 + $0x68] sm:$0xff]  ;;  %v97_v24 = vld [vmem:[%s8145_s1 + $0x90] sm:$0x1f]  ;;  %vm4607_vm2 = vmmov 0   ;;  %vm3441_vm3 = vcmask 523264  }
  0x29   :  { %v4690_v6 = vld [vmem:[#allocation2 + $0x1c8] sm:$0xff]  ;;  %3533 = vmatpush1.msk.msra.mxu1 %vm128_vm0, %v95_v3  ;;  %510 = vmatpush1.msra.mxu0 %v4685_v4  ;;  %v91_v7 = vld [vmem:[%s8145_s1 + $0x60] sm:$0xff]  ;;  %v94_v26 = vld [vmem:[%s8145_s1 + $0x78] sm:$0xff]  ;;  %s4608_s15 = smov [#allocation8]  }
  0x2a   :  { %v4697_v8 = vld [vmem:[#allocation2 + $0x1c0] sm:$0xff]  ;;  %v88_v9 = vld [vmem:[%s8145_s1 + $0x48] sm:$0xff]  ;;  %165 = vmatprep.subr.mxu1 %v92_v5  ;;  %511 = vmatprep.subr.mxu0 %v4690_v6  ;;  %v93_v28 = vld [vmem:[%s8145_s1 + $0x70] sm:$0xff]  ;;  %s3522_s16 = sshll.u32 %s4608_s15, 4  ;;  %s3523_s16 = int_to_ptr.vmem [resolvable:$true] %s3522_s16 }
  0x2b   :  { %v4703_v10 = vld [vmem:[#allocation2 + $0x1a8] sm:$0xff]  ;;  %v87_v11 = vld [vmem:[%s8145_s1 + $0x40] sm:$0xff]  ;;  %166 = vmatpush1.msra.mxu1 %v91_v7  ;;  %512 = vmatpush1.msra.mxu0 %v4697_v8  ;;  %v90_v30 = vld [vmem:[%s8145_s1 + $0x58] sm:$0xff]  ;;  %s4573_s17 = scalar_lea.vmem %s3523_s16, 32  ;;  %p4578_p2 = scmp.lt.s32.totalorder %s3523_s16, %s3523_s16 }
  0x2c   :  { %v4708_v12 = vld [vmem:[#allocation2 + $0x1a0] sm:$0xff]  ;;  %v84_v13 = vld [vmem:[%s8145_s1 + $0x28] sm:$0xff]  ;;  %167 = vmatprep.subr.mxu1 %v88_v9  ;;  %513 = vmatprep.subr.mxu0 %v4703_v10  ;;  %v89_v34 = vld [vmem:[%s8145_s1 + $0x50] sm:$0xff]  ;;  %p4574_p1 = scmp.ne.s32.totalorder %s3523_s16, %s4573_s17  ;;  %p4579_p3 = scmp.lt.s32.totalorder %s4573_s17, %s4573_s17 }
  0x2d   :  { %v4714_v14 = vld [vmem:[#allocation2 + $0x188] sm:$0xff]  ;;  %v83_v15 = vld [vmem:[%s8145_s1 + $0x20] sm:$0xff]  ;;  %168 = vmatpush1.msra.mxu1 %v87_v11  ;;  %514 = vmatpush1.msra.mxu0 %v4708_v12  ;;  %v86_v36 = vld [vmem:[%s8145_s1 + $0x38] sm:$0xff] }
  0x2e   :  { %v4720_v16 = vld [vmem:[#allocation2 + $0x180] sm:$0xff]  ;;  %v80_v17 = vld [vmem:[%s8145_s1 + $0x8] sm:$0xff]  ;;  %169 = vmatprep.subr.mxu1 %v84_v13  ;;  %515 = vmatprep.subr.mxu0 %v4714_v14  ;;  %v85_v38 = vld [vmem:[%s8145_s1 + $0x30] sm:$0xff]  ;;  %p4580_p4 = por %p4579_p3, %p4578_p2 }
  0x2f   :  { %v4726_v18 = vld [vmem:[#allocation2 + $0x168] sm:$0xff]  ;;  %v79_v19 = vld [vmem:[%s8145_s1] sm:$0xff]  ;;  %170 = vmatpush1.msra.mxu1 %v83_v15  ;;  %516 = vmatpush1.msra.mxu0 %v4720_v16  ;;  %v82_v40 = vld [vmem:[%s8145_s1 + $0x18] sm:$0xff] }
  0x30   :  { %v4732_v20 = vld [vmem:[#allocation2 + $0x160] sm:$0xff]  ;;  %171 = vmatprep.subr.mxu1 %v80_v17  ;;  %517 = vmatprep.subr.mxu0 %v4726_v18  ;;  %v4742_v23 = vld [vmem:[#allocation2 + $0x148] sm:$0xff]  ;;  %v81_v41 = vld [vmem:[%s8145_s1 + $0x10] sm:$0xff]  ;;  %p4581_p5 = pnand %p4580_p4, %p4574_p1 }
  0x31   :  { %v77_v21 = vld [vmem:[%s8144_s0] sm:$0xff]  ;;  %172 = vmatpush1.msra.mxu1 %v79_v19  ;;  %518 = vmatpush1.msra.mxu0 %v4732_v20  ;;  %v4755_v27 = vld [vmem:[#allocation2 + $0x128] sm:$0xff]  ;;  %v4813_v44 = vld [vmem:[#allocation2 + $0x1f8] sm:$0xff] }
  0x32   :  { %v4748_v25 = vld [vmem:[#allocation2 + $0x140] sm:$0xff]  ;;  %3534 = vmatmul.mubr.msk.f32.vlgmr.msra.gmra.mxu1 %vm121_vm1, %v77_v21  ;;  %3536 = vmatprep.subr.msk.mxu1 %vm128_vm0, %v98_v22  ;;  %v4768_v31 = vld [vmem:[#allocation2 + $0x108] sm:$0xff]  ;;  %v4818_v46 = vld [vmem:[#allocation2 + $0x1f0] sm:$0xff] }
  0x33   :  { %519 = vmatprep.subr.mxu0 %v4742_v23  ;;  %3537 = vmatpush1.msk.msra.mxu1 %vm128_vm0, %v97_v24  ;;  %v4762_v29 = vld [vmem:[#allocation2 + $0x120] sm:$0xff]  ;;  %v4774_v32 = vld [vmem:[%s8144_s0 + $0x8] sm:$0xff]  ;;  %v4824_v48 = vld [vmem:[#allocation2 + $0x1d8] sm:$0xff] }
  0x34   :  { %520 = vmatpush1.msra.mxu0 %v4748_v25  ;;  %242 = vmatprep.subr.mxu1 %v94_v26  ;;  %v4776_v33 = vld [vmem:[#allocation2 + $0x100] sm:$0xff]  ;;  %v4783_v35 = vld [vmem:[#allocation2 + $0xe8] sm:$0xff]  ;;  %v4830_v50 = vld [vmem:[#allocation2 + $0x1d0] sm:$0xff] }
  0x35   :  { %521 = vmatprep.subr.mxu0 %v4755_v27  ;;  %243 = vmatpush1.msra.mxu1 %v93_v28  ;;  %v4789_v37 = vld [vmem:[#allocation2 + $0xe0] sm:$0xff]  ;;  %v4797_v39 = vld [vmem:[#allocation2 + $0xc8] sm:$0xff]  ;;  %v4836_v52 = vld [vmem:[#allocation2 + $0x1b8] sm:$0xff] }
  0x36   :  { %522 = vmatpush1.msra.mxu0 %v4762_v29  ;;  %211 = vmatprep.mubr.f32.mxu1 %v8155_v0  ;;  %v4807_v42 = vld [vmem:[#allocation2 + $0xc0] sm:$0xff]  ;;  %v4810_v43 = vld [vmem:[#allocation2 + $0xa8] sm:$0xff]  ;;  %v4842_v54 = vld [vmem:[#allocation2 + $0x1b0] sm:$0xff] }
  0x37   :  { %244 = vmatprep.subr.mxu1 %v90_v30  ;;  %523 = vmatprep.subr.mxu0 %v4768_v31  ;;  %v4815_v45 = vld [vmem:[#allocation2 + $0xa0] sm:$0xff]  ;;  %v4820_v47 = vld [vmem:[#allocation2 + $0x88] sm:$0xff]  ;;  %v4848_v56 = vld [vmem:[#allocation2 + $0x198] sm:$0xff] }
  0x38   :  { %3535 = vmatmul.mubr.msk.f32.gmra.mxu1 %vm121_vm1, %v4774_v32  ;;  %524 = vmatpush1.msra.mxu0 %v4776_v33  ;;  %8785 = vst [vmem:[#allocation12_spill] sm:$0xff] %v4820_v47  ;;  %v4826_v49 = vld [vmem:[#allocation2 + $0x80] sm:$0xff]  ;;  %v4832_v51 = vld [vmem:[#allocation2 + $0x68] sm:$0xff]  ;;  %v4854_v58 = vld [vmem:[#allocation2 + $0x190] sm:$0xff] }
  0x39   :  { %245 = vmatpush1.msra.mxu1 %v89_v34  ;;  %525 = vmatprep.subr.mxu0 %v4783_v35  ;;  %8786 = vst [vmem:[#allocation13_spill] sm:$0xff] %v4826_v49  ;;  %8787 = vst [vmem:[#allocation14_spill] sm:$0xff] %v4832_v51  ;;  %v4838_v53 = vld [vmem:[#allocation2 + $0x60] sm:$0xff]  ;;  %v4844_v55 = vld [vmem:[#allocation2 + $0x48] sm:$0xff] }
  0x3a   :  { %246 = vmatprep.subr.mxu1 %v86_v36  ;;  %526 = vmatpush1.msra.mxu0 %v4789_v37  ;;  %8788 = vst [vmem:[#allocation15_spill] sm:$0xff] %v4838_v53  ;;  %8789 = vst [vmem:[#allocation16_spill] sm:$0xff] %v4844_v55  ;;  %v4850_v57 = vld [vmem:[#allocation2 + $0x40] sm:$0xff]  ;;  %v4856_v59 = vld [vmem:[#allocation2 + $0x28] sm:$0xff] }
  0x3b   :  { %247 = vmatpush1.msra.mxu1 %v85_v38  ;;  %527 = vmatprep.subr.mxu0 %v4797_v39  ;;  %8790 = vst [vmem:[#allocation17_spill] sm:$0xff] %v4850_v57  ;;  %8791 = vst [vmem:[#allocation18_spill] sm:$0xff] %v4856_v59  ;;  %v4860_v60 = vld [vmem:[#allocation2 + $0x178] sm:$0xff]  ;;  %v4862_v61 = vld [vmem:[#allocation2 + $0x20] sm:$0xff] }
  0x3c   :  { %248 = vmatprep.subr.mxu1 %v82_v40  ;;  %282 = vmatprep.mubr.f32.mxu1 %v8155_v0  ;;  %8792 = vst [vmem:[#allocation19_spill] sm:$0xff] %v4862_v61  ;;  %v4866_v62 = vld [vmem:[#allocation2 + $0x170] sm:$0xff]  ;;  %v4868_v63 = vld [vmem:[#allocation2 + $0x8] sm:$0xff]  ;;  %v4872_v1 = vld [vmem:[#allocation2 + $0x158] sm:$0xff] }
  0x3d   :  { %249 = vmatpush1.msra.mxu1 %v81_v41  ;;  %528 = vmatpush1.msra.mxu0 %v4807_v42  ;;  %8793 = vst [vmem:[#allocation20_spill] sm:$0xff] %v4868_v63  ;;  %v4874_v3 = vld [vmem:[#allocation2] sm:$0xff]  ;;  %v4878_v5 = vld [vmem:[#allocation2 + $0x150] sm:$0xff]  ;;  %v4882_v7 = vld [vmem:[#allocation2 + $0x138] sm:$0xff] }
  0x3e   :  { %3538 = vmatmul.mubr.msk.f32.vlgmr.msra.gmra.mxu1 %vm121_vm1, %v77_v21  ;;  %529 = vmatprep.subr.mxu0 %v4810_v43  ;;  %8794 = vst [vmem:[#allocation21_spill] sm:$0xff] %v4874_v3  ;;  %v4886_v9 = vld [vmem:[#allocation2 + $0x130] sm:$0xff]  ;;  %v4890_v11 = vld [vmem:[#allocation2 + $0x118] sm:$0xff] }
  0x3f   :  { %580 = vmatprep.subr.mxu1 %v4813_v44  ;;  %530 = vmatpush1.msra.mxu0 %v4815_v45  ;;  %v4893_v13 = vld [vmem:[#allocation2 + $0x110] sm:$0xff]  ;;  %v4897_v15 = vld [vmem:[#allocation2 + $0xf8] sm:$0xff] }
  0x40   :  { %581 = vmatpush1.msra.mxu1 %v4818_v46  ;;  %531 = vmatprep.subr.mxu0 %v4820_v47  ;;  %v4901_v17 = vld [vmem:[#allocation2 + $0xf0] sm:$0xff]  ;;  %v4906_v19 = vld [vmem:[#allocation2 + $0xd8] sm:$0xff] }
  0x41   :  { %582 = vmatprep.subr.mxu1 %v4824_v48  ;;  %532 = vmatpush1.msra.mxu0 %v4826_v49  ;;  %v4910_v21 = vld [vmem:[#allocation2 + $0xd0] sm:$0xff]  ;;  %v4913_v22 = vld [vmem:[#allocation2 + $0xb8] sm:$0xff] }
  0x42   :  { %583 = vmatpush1.msra.mxu1 %v4830_v50  ;;  %533 = vmatprep.subr.mxu0 %v4832_v51  ;;  %v4916_v24 = vld [vmem:[#allocation2 + $0xb0] sm:$0xff]  ;;  %v4919_v26 = vld [vmem:[#allocation2 + $0x98] sm:$0xff] }
  0x43   :  { %584 = vmatprep.subr.mxu1 %v4836_v52  ;;  %534 = vmatpush1.msra.mxu0 %v4838_v53  ;;  %8795 = vst [vmem:[#allocation22_spill] sm:$0xff] %v4919_v26  ;;  %v4922_v28 = vld [vmem:[#allocation2 + $0x90] sm:$0xff]  ;;  %v4925_v30 = vld [vmem:[#allocation2 + $0x78] sm:$0xff] }
  0x44   :  { %585 = vmatpush1.msra.mxu1 %v4842_v54  ;;  %535 = vmatprep.subr.mxu0 %v4844_v55  ;;  %8796 = vst [vmem:[#allocation23_spill] sm:$0xff] %v4922_v28  ;;  %8797 = vst [vmem:[#allocation24_spill] sm:$0xff] %v4925_v30  ;;  %v4931_v34 = vld [vmem:[#allocation2 + $0x58] sm:$0xff]  ;;  %v4934_v36 = vld [vmem:[#allocation2 + $0x50] sm:$0xff] }
  0x45   :  { %586 = vmatprep.subr.mxu1 %v4848_v56  ;;  %536 = vmatpush1.msra.mxu0 %v4850_v57  ;;  %8799 = vst [vmem:[#allocation26_spill] sm:$0xff] %v4931_v34  ;;  %8800 = vst [vmem:[#allocation27_spill] sm:$0xff] %v4934_v36  ;;  %v4937_v38 = vld [vmem:[#allocation2 + $0x38] sm:$0xff]  ;;  %v4940_v40 = vld [vmem:[#allocation2 + $0x30] sm:$0xff] }
  0x46   :  { %587 = vmatpush1.msra.mxu1 %v4854_v58  ;;  %537 = vmatprep.subr.mxu0 %v4856_v59  ;;  %8801 = vst [vmem:[#allocation28_spill] sm:$0xff] %v4937_v38  ;;  %8802 = vst [vmem:[#allocation29_spill] sm:$0xff] %v4940_v40  ;;  %v4943_v41 = vld [vmem:[#allocation2 + $0x18] sm:$0xff]  ;;  %v4957_v59 = vld [vmem:[#allocation5 + $0x1e0] sm:$0xff] }
  0x47   :  { %588 = vmatprep.subr.mxu1 %v4860_v60  ;;  %538 = vmatpush1.msra.mxu0 %v4862_v61  ;;  %8803 = vst [vmem:[#allocation30_spill] sm:$0xff] %v4943_v41  ;;  %v4955_v61 = vld [vmem:[#allocation5 + $0x1f8] sm:$0xff]  ;;  %8808 = vst [vmem:[#allocation34_spill] sm:$0xff] %v4957_v59  ;;  %v4981_v57 = vld [vmem:[#allocation5 + $0x1b0] sm:$0xff] }
  0x48   :  { %589 = vmatpush1.msra.mxu1 %v4866_v62  ;;  %539 = vmatprep.subr.mxu0 %v4868_v63  ;;  %v4953_v63 = vld [vmem:[#allocation5 + $0x1e8] sm:$0xff]  ;;  %8807 = vst [vmem:[#allocation33_spill] sm:$0xff] %v4955_v61  ;;  %8817 = vst [vmem:[#allocation43_spill] sm:$0xff] %v4981_v57 }
  0x49   :  { %590 = vmatprep.subr.mxu1 %v4872_v1  ;;  %540 = vmatpush1.msra.mxu0 %v4874_v3  ;;  %v8805_v3 = vmov 0.0   ;;  %8806 = vst [vmem:[#allocation32_spill] sm:$0xff] %v4953_v63 }
  0x4a   :  { %591 = vmatpush1.msra.mxu1 %v4878_v5  ;;  %574 = vmatmul.mubr.f32.vlgmr.msra.gmra.mxu0 %v8155_v0 }
  0x4b   :  { %592 = vmatprep.subr.mxu1 %v4882_v7  ;;  %288 = vmatprep.mubr.f32.mxu1 %v8155_v0 }
  0x4c   :  { %593 = vmatpush1.msra.mxu1 %v4886_v9  ;;  %743 = vmatprep.mubr.f32.mxu0 %v8155_v0 }
  0x4d   :  { %594 = vmatprep.subr.mxu1 %v4890_v11  ;;  %3539 = vmatmul.mubr.msk.f32.gmra.mxu1 %vm121_vm1, %v4774_v32  ;;  %v4928_v32 = vld [vmem:[#allocation2 + $0x70] sm:$0xff] }
  0x4e   :  { %595 = vmatpush1.msra.mxu1 %v4893_v13  ;;  %644 = vmatprep.mubr.f32.mxu1 %v8155_v0  ;;  %8798 = vst [vmem:[#allocation25_spill] sm:$0xff] %v4928_v32  ;;  %v4946_v0 = vld [vmem:[#allocation2 + $0x10] sm:$0xff] }
  0x4f   :  { %596 = vmatprep.subr.mxu1 %v4897_v15  ;;  %8804 = vst [vmem:[#allocation31_spill] sm:$0xff] %v4946_v0  ;;  %679 = vmatprep.subr.mxu0 %v4953_v63  ;;  %v4979_v63 = vld [vmem:[#allocation5 + $0x1a0] sm:$0xff] }
  0x50   :  { %597 = vmatpush1.msra.mxu1 %v4901_v17  ;;  %680 = vmatpush1.msra.mxu0 %v4957_v59  ;;  %8816 = vst [vmem:[#allocation42_spill] sm:$0xff] %v4979_v63  ;;  %v5281_v59 = vld [vmem:[#allocation5 + $0x290] sm:$0xff] }
  0x51   :  { %598 = vmatprep.subr.mxu1 %v4906_v19  ;;  %8917 = vst [vmem:[#allocation143_spill] sm:$0xff] %v5281_v59 }
  0x52   :  { %599 = vmatpush1.msra.mxu1 %v4910_v21 }
  0x53   :  { %600 = vmatprep.subr.mxu1 %v4913_v22 }
  0x54   :  { %601 = vmatpush1.msra.mxu1 %v4916_v24 }
  0x55   :  { %602 = vmatprep.subr.mxu1 %v4919_v26 }
  0x56   :  { %603 = vmatpush1.msra.mxu1 %v4922_v28 }
  0x57   :  { %604 = vmatprep.subr.mxu1 %v4925_v30 }
  0x58   :  { %605 = vmatpush1.msra.mxu1 %v4928_v32 }
  0x59   :  { %606 = vmatprep.subr.mxu1 %v4931_v34  ;;  %v5297_v34 = vld [vmem:[#allocation5 + $0x248] sm:$0xff] }
  0x5a   :  { %607 = vmatpush1.msra.mxu1 %v4934_v36  ;;  %v4973_v36 = vld [vmem:[#allocation5 + $0x1a8] sm:$0xff]  ;;  %8922 = vst [vmem:[#allocation148_spill] sm:$0xff] %v5297_v34 }
  0x5b   :  { %608 = vmatprep.subr.mxu1 %v4937_v38  ;;  %v4961_v38 = vld [vmem:[#allocation5 + $0x1f0] sm:$0xff]  ;;  %8814 = vst [vmem:[#allocation40_spill] sm:$0xff] %v4973_v36 }
  0x5c   :  { %609 = vmatpush1.msra.mxu1 %v4940_v40  ;;  %8809 = vst [vmem:[#allocation35_spill] sm:$0xff] %v4961_v38  ;;  %v4963_v40 = vld [vmem:[#allocation5 + $0x1c8] sm:$0xff] }
  0x5d   :  { %610 = vmatprep.subr.mxu1 %v4943_v41  ;;  %8810 = vst [vmem:[#allocation36_spill] sm:$0xff] %v4963_v40  ;;  %v4965_v41 = vld [vmem:[#allocation5 + $0x1d8] sm:$0xff]  ;;  %681 = vmatprep.subr.mxu0 %v4963_v40  ;;  %v4989_v40 = vld [vmem:[#allocation5 + $0x188] sm:$0xff] }
  0x5e   :  { %611 = vmatpush1.msra.mxu1 %v4946_v0  ;;  %8811 = vst [vmem:[#allocation37_spill] sm:$0xff] %v4965_v41  ;;  %v4969_v0 = vld [vmem:[#allocation5 + $0x1c0] sm:$0xff]  ;;  %8818 = vst [vmem:[#allocation44_spill] sm:$0xff] %v4989_v40 }
  0x5f   :  { %645 = vmatmul.mubr.f32.vlgmr.msra.gmra.mxu1 %v8805_v3  ;;  %750 = vmatprep.subr.mxu1 %v4955_v61  ;;  %8812 = vst [vmem:[#allocation38_spill] sm:$0xff] %v4969_v0  ;;  %v4977_v61 = vld [vmem:[#allocation5 + $0x1b8] sm:$0xff] }
  0x60   :  { %814 = vmatprep.mubr.f32.mxu1 %v8805_v3  ;;  %751 = vmatpush1.msra.mxu1 %v4961_v38  ;;  %v4971_v3 = vld [vmem:[#allocation5 + $0x1d0] sm:$0xff]  ;;  %8815 = vst [vmem:[#allocation41_spill] sm:$0xff] %v4977_v61  ;;  %v4995_v38 = vld [vmem:[#allocation5 + $0x180] sm:$0xff] }
  0x61   :  { %8813 = vst [vmem:[#allocation39_spill] sm:$0xff] %v4971_v3  ;;  %752 = vmatprep.subr.mxu1 %v4965_v41  ;;  %682 = vmatpush1.msra.mxu0 %v4969_v0  ;;  %v4991_v41 = vld [vmem:[#allocation5 + $0x198] sm:$0xff]  ;;  %8820 = vst [vmem:[#allocation46_spill] sm:$0xff] %v4995_v38  ;;  %v4997_v0 = vld [vmem:[#allocation5 + $0x190] sm:$0xff] }
  0x62   :  { %753 = vmatpush1.msra.mxu1 %v4971_v3  ;;  %683 = vmatprep.subr.mxu0 %v4973_v36  ;;  %8819 = vst [vmem:[#allocation45_spill] sm:$0xff] %v4991_v41  ;;  %8821 = vst [vmem:[#allocation47_spill] sm:$0xff] %v4997_v0  ;;  %v5265_v36 = vld [vmem:[#allocation5 + $0x2b8] sm:$0xff]  ;;  %v5273_v3 = vld [vmem:[#allocation5 + $0x288] sm:$0xff] }
  0x63   :  { %754 = vmatprep.subr.mxu1 %v4977_v61  ;;  %684 = vmatpush1.msra.mxu0 %v4979_v63  ;;  %v5001_v61 = vld [vmem:[#allocation5 + $0x168] sm:$0xff]  ;;  %v5003_v63 = vld [vmem:[#allocation5 + $0x178] sm:$0xff]  ;;  %8911 = vst [vmem:[#allocation137_spill] sm:$0xff] %v5265_v36  ;;  %8914 = vst [vmem:[#allocation140_spill] sm:$0xff] %v5273_v3 }
  0x64   :  { %755 = vmatpush1.msra.mxu1 %v4981_v57  ;;  %685 = vmatprep.subr.mxu0 %v4989_v40  ;;  %8822 = vst [vmem:[#allocation48_spill] sm:$0xff] %v5001_v61  ;;  %8823 = vst [vmem:[#allocation49_spill] sm:$0xff] %v5003_v63  ;;  %v5007_v57 = vld [vmem:[#allocation5 + $0x160] sm:$0xff]  ;;  %v5009_v40 = vld [vmem:[#allocation5 + $0x170] sm:$0xff] }
  0x65   :  { %756 = vmatprep.subr.mxu1 %v4991_v41  ;;  %686 = vmatpush1.msra.mxu0 %v4995_v38  ;;  %8824 = vst [vmem:[#allocation50_spill] sm:$0xff] %v5007_v57  ;;  %8825 = vst [vmem:[#allocation51_spill] sm:$0xff] %v5009_v40  ;;  %v5013_v41 = vld [vmem:[#allocation5 + $0x148] sm:$0xff]  ;;  %v5015_v38 = vld [vmem:[#allocation5 + $0x158] sm:$0xff] }
  0x66   :  { %757 = vmatpush1.msra.mxu1 %v4997_v0  ;;  %687 = vmatprep.subr.mxu0 %v5001_v61  ;;  %8826 = vst [vmem:[#allocation52_spill] sm:$0xff] %v5013_v41  ;;  %8827 = vst [vmem:[#allocation53_spill] sm:$0xff] %v5015_v38  ;;  %v5019_v0 = vld [vmem:[#allocation5 + $0x140] sm:$0xff]  ;;  %v5021_v61 = vld [vmem:[#allocation5 + $0x150] sm:$0xff] }
  0x67   :  { %758 = vmatprep.subr.mxu1 %v5003_v63  ;;  %688 = vmatpush1.msra.mxu0 %v5007_v57  ;;  %8828 = vst [vmem:[#allocation54_spill] sm:$0xff] %v5019_v0  ;;  %8829 = vst [vmem:[#allocation55_spill] sm:$0xff] %v5021_v61  ;;  %v5025_v63 = vld [vmem:[#allocation5 + $0x128] sm:$0xff]  ;;  %v5027_v57 = vld [vmem:[#allocation5 + $0x138] sm:$0xff] }
  0x68   :  { %759 = vmatpush1.msra.mxu1 %v5009_v40  ;;  %689 = vmatprep.subr.mxu0 %v5013_v41  ;;  %8830 = vst [vmem:[#allocation56_spill] sm:$0xff] %v5025_v63  ;;  %8831 = vst [vmem:[#allocation57_spill] sm:$0xff] %v5027_v57  ;;  %v5031_v40 = vld [vmem:[#allocation5 + $0x120] sm:$0xff]  ;;  %v5033_v41 = vld [vmem:[#allocation5 + $0x130] sm:$0xff] }
  0x69   :  { %760 = vmatprep.subr.mxu1 %v5015_v38  ;;  %690 = vmatpush1.msra.mxu0 %v5019_v0  ;;  %8832 = vst [vmem:[#allocation58_spill] sm:$0xff] %v5031_v40  ;;  %8833 = vst [vmem:[#allocation59_spill] sm:$0xff] %v5033_v41  ;;  %v5037_v38 = vld [vmem:[#allocation5 + $0x108] sm:$0xff]  ;;  %v5039_v0 = vld [vmem:[#allocation5 + $0x118] sm:$0xff] }
  0x6a   :  { %761 = vmatpush1.msra.mxu1 %v5021_v61  ;;  %691 = vmatprep.subr.mxu0 %v5025_v63  ;;  %8834 = vst [vmem:[#allocation60_spill] sm:$0xff] %v5037_v38  ;;  %8835 = vst [vmem:[#allocation61_spill] sm:$0xff] %v5039_v0  ;;  %v5043_v61 = vld [vmem:[#allocation5 + $0x100] sm:$0xff]  ;;  %v5045_v63 = vld [vmem:[#allocation5 + $0x110] sm:$0xff] }
  0x6b   :  { %762 = vmatprep.subr.mxu1 %v5027_v57  ;;  %692 = vmatpush1.msra.mxu0 %v5031_v40  ;;  %8836 = vst [vmem:[#allocation62_spill] sm:$0xff] %v5043_v61  ;;  %8837 = vst [vmem:[#allocation63_spill] sm:$0xff] %v5045_v63  ;;  %v5049_v57 = vld [vmem:[#allocation5 + $0xe8] sm:$0xff]  ;;  %v5051_v40 = vld [vmem:[#allocation5 + $0xf8] sm:$0xff] }
  0x6c   :  { %763 = vmatpush1.msra.mxu1 %v5033_v41  ;;  %693 = vmatprep.subr.mxu0 %v5037_v38  ;;  %8838 = vst [vmem:[#allocation64_spill] sm:$0xff] %v5049_v57  ;;  %8839 = vst [vmem:[#allocation65_spill] sm:$0xff] %v5051_v40  ;;  %v5055_v41 = vld [vmem:[#allocation5 + $0xe0] sm:$0xff]  ;;  %v5057_v38 = vld [vmem:[#allocation5 + $0xf0] sm:$0xff] }
  0x6d   :  { %764 = vmatprep.subr.mxu1 %v5039_v0  ;;  %694 = vmatpush1.msra.mxu0 %v5043_v61  ;;  %8840 = vst [vmem:[#allocation66_spill] sm:$0xff] %v5055_v41  ;;  %8841 = vst [vmem:[#allocation67_spill] sm:$0xff] %v5057_v38  ;;  %v5061_v0 = vld [vmem:[#allocation5 + $0xc8] sm:$0xff]  ;;  %v5063_v61 = vld [vmem:[#allocation5 + $0xd8] sm:$0xff] }
  0x6e   :  { %765 = vmatpush1.msra.mxu1 %v5045_v63  ;;  %695 = vmatprep.subr.mxu0 %v5049_v57  ;;  %8842 = vst [vmem:[#allocation68_spill] sm:$0xff] %v5061_v0  ;;  %8843 = vst [vmem:[#allocation69_spill] sm:$0xff] %v5063_v61  ;;  %v5067_v63 = vld [vmem:[#allocation5 + $0xc0] sm:$0xff]  ;;  %v5069_v57 = vld [vmem:[#allocation5 + $0xd0] sm:$0xff] }
  0x6f   :  { %766 = vmatprep.subr.mxu1 %v5051_v40  ;;  %696 = vmatpush1.msra.mxu0 %v5055_v41  ;;  %8844 = vst [vmem:[#allocation70_spill] sm:$0xff] %v5067_v63  ;;  %8845 = vst [vmem:[#allocation71_spill] sm:$0xff] %v5069_v57  ;;  %v5073_v40 = vld [vmem:[#allocation5 + $0xa8] sm:$0xff]  ;;  %v5075_v41 = vld [vmem:[#allocation5 + $0xb8] sm:$0xff] }
  0x70   :  { %767 = vmatpush1.msra.mxu1 %v5057_v38  ;;  %697 = vmatprep.subr.mxu0 %v5061_v0  ;;  %8846 = vst [vmem:[#allocation72_spill] sm:$0xff] %v5073_v40  ;;  %8847 = vst [vmem:[#allocation73_spill] sm:$0xff] %v5075_v41  ;;  %v5079_v38 = vld [vmem:[#allocation5 + $0xa0] sm:$0xff]  ;;  %v5081_v0 = vld [vmem:[#allocation5 + $0xb0] sm:$0xff] }
  0x71   :  { %768 = vmatprep.subr.mxu1 %v5063_v61  ;;  %698 = vmatpush1.msra.mxu0 %v5067_v63  ;;  %8848 = vst [vmem:[#allocation74_spill] sm:$0xff] %v5079_v38  ;;  %8849 = vst [vmem:[#allocation75_spill] sm:$0xff] %v5081_v0  ;;  %v5085_v61 = vld [vmem:[#allocation5 + $0x88] sm:$0xff]  ;;  %v5087_v63 = vld [vmem:[#allocation5 + $0x98] sm:$0xff] }
  0x72   :  { %769 = vmatpush1.msra.mxu1 %v5069_v57  ;;  %699 = vmatprep.subr.mxu0 %v5073_v40  ;;  %8850 = vst [vmem:[#allocation76_spill] sm:$0xff] %v5085_v61  ;;  %8851 = vst [vmem:[#allocation77_spill] sm:$0xff] %v5087_v63  ;;  %v5091_v57 = vld [vmem:[#allocation5 + $0x80] sm:$0xff]  ;;  %v5093_v40 = vld [vmem:[#allocation5 + $0x90] sm:$0xff] }
  0x73   :  { %770 = vmatprep.subr.mxu1 %v5075_v41  ;;  %700 = vmatpush1.msra.mxu0 %v5079_v38  ;;  %8852 = vst [vmem:[#allocation78_spill] sm:$0xff] %v5091_v57  ;;  %8853 = vst [vmem:[#allocation79_spill] sm:$0xff] %v5093_v40  ;;  %v5097_v41 = vld [vmem:[#allocation5 + $0x68] sm:$0xff]  ;;  %v5099_v38 = vld [vmem:[#allocation5 + $0x78] sm:$0xff] }
  0x74   :  { %771 = vmatpush1.msra.mxu1 %v5081_v0  ;;  %701 = vmatprep.subr.mxu0 %v5085_v61  ;;  %8854 = vst [vmem:[#allocation80_spill] sm:$0xff] %v5097_v41  ;;  %8855 = vst [vmem:[#allocation81_spill] sm:$0xff] %v5099_v38  ;;  %v5103_v0 = vld [vmem:[#allocation5 + $0x60] sm:$0xff]  ;;  %v5105_v61 = vld [vmem:[#allocation5 + $0x70] sm:$0xff] }
  0x75   :  { %772 = vmatprep.subr.mxu1 %v5087_v63  ;;  %702 = vmatpush1.msra.mxu0 %v5091_v57  ;;  %8856 = vst [vmem:[#allocation82_spill] sm:$0xff] %v5103_v0  ;;  %8857 = vst [vmem:[#allocation83_spill] sm:$0xff] %v5105_v61  ;;  %v5109_v63 = vld [vmem:[#allocation5 + $0x48] sm:$0xff]  ;;  %v5111_v57 = vld [vmem:[#allocation5 + $0x58] sm:$0xff] }
  0x76   :  { %773 = vmatpush1.msra.mxu1 %v5093_v40  ;;  %703 = vmatprep.subr.mxu0 %v5097_v41  ;;  %8858 = vst [vmem:[#allocation84_spill] sm:$0xff] %v5109_v63  ;;  %8859 = vst [vmem:[#allocation85_spill] sm:$0xff] %v5111_v57  ;;  %v5115_v40 = vld [vmem:[#allocation5 + $0x40] sm:$0xff]  ;;  %v5117_v41 = vld [vmem:[#allocation5 + $0x50] sm:$0xff] }
  0x77   :  { %774 = vmatprep.subr.mxu1 %v5099_v38  ;;  %704 = vmatpush1.msra.mxu0 %v5103_v0  ;;  %8860 = vst [vmem:[#allocation86_spill] sm:$0xff] %v5115_v40  ;;  %8861 = vst [vmem:[#allocation87_spill] sm:$0xff] %v5117_v41  ;;  %v5121_v38 = vld [vmem:[#allocation5 + $0x28] sm:$0xff]  ;;  %v5123_v0 = vld [vmem:[#allocation5 + $0x38] sm:$0xff] }
  0x78   :  { %775 = vmatpush1.msra.mxu1 %v5105_v61  ;;  %705 = vmatprep.subr.mxu0 %v5109_v63  ;;  %8862 = vst [vmem:[#allocation88_spill] sm:$0xff] %v5121_v38  ;;  %8863 = vst [vmem:[#allocation89_spill] sm:$0xff] %v5123_v0  ;;  %v5127_v61 = vld [vmem:[#allocation5 + $0x20] sm:$0xff]  ;;  %v5129_v63 = vld [vmem:[#allocation5 + $0x30] sm:$0xff] }
  0x79   :  { %776 = vmatprep.subr.mxu1 %v5111_v57  ;;  %706 = vmatpush1.msra.mxu0 %v5115_v40  ;;  %8864 = vst [vmem:[#allocation90_spill] sm:$0xff] %v5127_v61  ;;  %8865 = vst [vmem:[#allocation91_spill] sm:$0xff] %v5129_v63  ;;  %v5133_v57 = vld [vmem:[#allocation5 + $0x8] sm:$0xff]  ;;  %v5135_v40 = vld [vmem:[#allocation5 + $0x18] sm:$0xff] }
  0x7a   :  { %777 = vmatpush1.msra.mxu1 %v5117_v41  ;;  %707 = vmatprep.subr.mxu0 %v5121_v38  ;;  %8866 = vst [vmem:[#allocation92_spill] sm:$0xff] %v5133_v57  ;;  %8867 = vst [vmem:[#allocation93_spill] sm:$0xff] %v5135_v40  ;;  %v5139_v41 = vld [vmem:[#allocation5] sm:$0xff]  ;;  %v5141_v38 = vld [vmem:[#allocation5 + $0x10] sm:$0xff] }
  0x7b   :  { %778 = vmatprep.subr.mxu1 %v5123_v0  ;;  %708 = vmatpush1.msra.mxu0 %v5127_v61  ;;  %8868 = vst [vmem:[#allocation94_spill] sm:$0xff] %v5139_v41  ;;  %8869 = vst [vmem:[#allocation95_spill] sm:$0xff] %v5141_v38  ;;  %v5145_v0 = vld [vmem:[#allocation5 + $0x3e8] sm:$0xff]  ;;  %v5147_v61 = vld [vmem:[#allocation5 + $0x3f8] sm:$0xff] }
  0x7c   :  { %779 = vmatpush1.msra.mxu1 %v5129_v63  ;;  %709 = vmatprep.subr.mxu0 %v5133_v57  ;;  %8870 = vst [vmem:[#allocation96_spill] sm:$0xff] %v5145_v0  ;;  %8871 = vst [vmem:[#allocation97_spill] sm:$0xff] %v5147_v61  ;;  %v5151_v63 = vld [vmem:[#allocation5 + $0x3e0] sm:$0xff]  ;;  %v5153_v57 = vld [vmem:[#allocation5 + $0x3f0] sm:$0xff] }
  0x7d   :  { %780 = vmatprep.subr.mxu1 %v5135_v40  ;;  %710 = vmatpush1.msra.mxu0 %v5139_v41  ;;  %8872 = vst [vmem:[#allocation98_spill] sm:$0xff] %v5151_v63  ;;  %8873 = vst [vmem:[#allocation99_spill] sm:$0xff] %v5153_v57  ;;  %v5157_v40 = vld [vmem:[#allocation5 + $0x3c8] sm:$0xff]  ;;  %v5159_v41 = vld [vmem:[#allocation5 + $0x3d8] sm:$0xff] }
  0x7e   :  { %781 = vmatpush1.msra.mxu1 %v5141_v38  ;;  %711 = vmatprep.subr.mxu0 %v5145_v0  ;;  %8874 = vst [vmem:[#allocation100_spill] sm:$0xff] %v5157_v40  ;;  %8875 = vst [vmem:[#allocation101_spill] sm:$0xff] %v5159_v41  ;;  %v5163_v38 = vld [vmem:[#allocation5 + $0x3c0] sm:$0xff]  ;;  %v5165_v0 = vld [vmem:[#allocation5 + $0x3d0] sm:$0xff] }
  0x7f   :  { %782 = vmatprep.subr.mxu1 %v5147_v61  ;;  %712 = vmatpush2.msra.mxu0 %v5151_v63  ;;  %8876 = vst [vmem:[#allocation102_spill] sm:$0xff] %v5163_v38  ;;  %8877 = vst [vmem:[#allocation103_spill] sm:$0xff] %v5165_v0  ;;  %v5169_v61 = vld [vmem:[#allocation5 + $0x3a8] sm:$0xff]  ;;  %v5171_v63 = vld [vmem:[#allocation5 + $0x3b8] sm:$0xff] }
  0x80   :  { %783 = vmatpush2.msra.mxu1 %v5153_v57  ;;  %713 = vmatprep.subr.mxu0 %v5157_v40  ;;  %8878 = vst [vmem:[#allocation104_spill] sm:$0xff] %v5169_v61  ;;  %8879 = vst [vmem:[#allocation105_spill] sm:$0xff] %v5171_v63  ;;  %v5175_v57 = vld [vmem:[#allocation5 + $0x3a0] sm:$0xff]  ;;  %v5177_v40 = vld [vmem:[#allocation5 + $0x3b0] sm:$0xff] }
  0x81   :  { %784 = vmatprep.subr.mxu1 %v5159_v41  ;;  %714 = vmatpush2.msra.mxu0 %v5163_v38  ;;  %8880 = vst [vmem:[#allocation106_spill] sm:$0xff] %v5175_v57  ;;  %8881 = vst [vmem:[#allocation107_spill] sm:$0xff] %v5177_v40  ;;  %v5181_v41 = vld [vmem:[#allocation5 + $0x388] sm:$0xff]  ;;  %v5183_v38 = vld [vmem:[#allocation5 + $0x398] sm:$0xff] }
  0x82   :  { %785 = vmatpush2.msra.mxu1 %v5165_v0  ;;  %715 = vmatprep.subr.mxu0 %v5169_v61  ;;  %8882 = vst [vmem:[#allocation108_spill] sm:$0xff] %v5181_v41  ;;  %8883 = vst [vmem:[#allocation109_spill] sm:$0xff] %v5183_v38  ;;  %v5187_v0 = vld [vmem:[#allocation5 + $0x380] sm:$0xff]  ;;  %v5189_v61 = vld [vmem:[#allocation5 + $0x390] sm:$0xff] }
  0x83   :  { %786 = vmatprep.subr.mxu1 %v5171_v63  ;;  %716 = vmatpush2.msra.mxu0 %v5175_v57  ;;  %8884 = vst [vmem:[#allocation110_spill] sm:$0xff] %v5187_v0  ;;  %8885 = vst [vmem:[#allocation111_spill] sm:$0xff] %v5189_v61  ;;  %v5193_v63 = vld [vmem:[#allocation5 + $0x368] sm:$0xff]  ;;  %v5195_v57 = vld [vmem:[#allocation5 + $0x378] sm:$0xff] }
  0x84   :  { %787 = vmatpush2.msra.mxu1 %v5177_v40  ;;  %717 = vmatprep.subr.mxu0 %v5181_v41  ;;  %8886 = vst [vmem:[#allocation112_spill] sm:$0xff] %v5193_v63  ;;  %8887 = vst [vmem:[#allocation113_spill] sm:$0xff] %v5195_v57  ;;  %v5199_v40 = vld [vmem:[#allocation5 + $0x360] sm:$0xff]  ;;  %v5201_v41 = vld [vmem:[#allocation5 + $0x370] sm:$0xff] }
  0x85   :  { %788 = vmatprep.subr.mxu1 %v5183_v38  ;;  %718 = vmatpush2.msra.mxu0 %v5187_v0  ;;  %8888 = vst [vmem:[#allocation114_spill] sm:$0xff] %v5199_v40  ;;  %8889 = vst [vmem:[#allocation115_spill] sm:$0xff] %v5201_v41  ;;  %v5205_v38 = vld [vmem:[#allocation5 + $0x348] sm:$0xff]  ;;  %v5207_v0 = vld [vmem:[#allocation5 + $0x358] sm:$0xff] }
  0x86   :  { %789 = vmatpush2.msra.mxu1 %v5189_v61  ;;  %719 = vmatprep.subr.mxu0 %v5193_v63  ;;  %8890 = vst [vmem:[#allocation116_spill] sm:$0xff] %v5205_v38  ;;  %8891 = vst [vmem:[#allocation117_spill] sm:$0xff] %v5207_v0  ;;  %v5211_v61 = vld [vmem:[#allocation5 + $0x340] sm:$0xff]  ;;  %v5213_v63 = vld [vmem:[#allocation5 + $0x350] sm:$0xff] }
  0x87   :  { %790 = vmatprep.subr.mxu1 %v5195_v57  ;;  %720 = vmatpush2.msra.mxu0 %v5199_v40  ;;  %8892 = vst [vmem:[#allocation118_spill] sm:$0xff] %v5211_v61  ;;  %8893 = vst [vmem:[#allocation119_spill] sm:$0xff] %v5213_v63  ;;  %v5217_v57 = vld [vmem:[#allocation5 + $0x328] sm:$0xff]  ;;  %v5219_v40 = vld [vmem:[#allocation5 + $0x338] sm:$0xff] }
  0x88   :  { %791 = vmatpush2.msra.mxu1 %v5201_v41  ;;  %721 = vmatprep.subr.mxu0 %v5205_v38  ;;  %8894 = vst [vmem:[#allocation120_spill] sm:$0xff] %v5217_v57  ;;  %8895 = vst [vmem:[#allocation121_spill] sm:$0xff] %v5219_v40  ;;  %v5223_v41 = vld [vmem:[#allocation5 + $0x320] sm:$0xff]  ;;  %v5225_v38 = vld [vmem:[#allocation5 + $0x330] sm:$0xff] }
  0x89   :  { %792 = vmatprep.subr.mxu1 %v5207_v0  ;;  %722 = vmatpush2.msra.mxu0 %v5211_v61  ;;  %8896 = vst [vmem:[#allocation122_spill] sm:$0xff] %v5223_v41  ;;  %8897 = vst [vmem:[#allocation123_spill] sm:$0xff] %v5225_v38  ;;  %v5229_v0 = vld [vmem:[#allocation5 + $0x308] sm:$0xff]  ;;  %v5231_v61 = vld [vmem:[#allocation5 + $0x318] sm:$0xff] }
  0x8a   :  { %793 = vmatpush2.msra.mxu1 %v5213_v63  ;;  %723 = vmatprep.subr.mxu0 %v5217_v57  ;;  %8898 = vst [vmem:[#allocation124_spill] sm:$0xff] %v5229_v0  ;;  %8899 = vst [vmem:[#allocation125_spill] sm:$0xff] %v5231_v61  ;;  %v5235_v63 = vld [vmem:[#allocation5 + $0x300] sm:$0xff]  ;;  %v5237_v57 = vld [vmem:[#allocation5 + $0x310] sm:$0xff] }
  0x8b   :  { %794 = vmatprep.subr.mxu1 %v5219_v40  ;;  %724 = vmatpush2.msra.mxu0 %v5223_v41  ;;  %8900 = vst [vmem:[#allocation126_spill] sm:$0xff] %v5235_v63  ;;  %8901 = vst [vmem:[#allocation127_spill] sm:$0xff] %v5237_v57  ;;  %v5241_v40 = vld [vmem:[#allocation5 + $0x2e8] sm:$0xff]  ;;  %v5243_v41 = vld [vmem:[#allocation5 + $0x2f8] sm:$0xff] }
  0x8c   :  { %795 = vmatpush2.msra.mxu1 %v5225_v38  ;;  %725 = vmatprep.subr.mxu0 %v5229_v0  ;;  %8902 = vst [vmem:[#allocation128_spill] sm:$0xff] %v5241_v40  ;;  %8903 = vst [vmem:[#allocation129_spill] sm:$0xff] %v5243_v41  ;;  %v5247_v38 = vld [vmem:[#allocation5 + $0x2e0] sm:$0xff]  ;;  %v5249_v0 = vld [vmem:[#allocation5 + $0x2f0] sm:$0xff] }
  0x8d   :  { %796 = vmatprep.subr.mxu1 %v5231_v61  ;;  %726 = vmatpush2.msra.mxu0 %v5235_v63  ;;  %8904 = vst [vmem:[#allocation130_spill] sm:$0xff] %v5247_v38  ;;  %8905 = vst [vmem:[#allocation131_spill] sm:$0xff] %v5249_v0  ;;  %v5253_v61 = vld [vmem:[#allocation5 + $0x2c8] sm:$0xff]  ;;  %v5255_v63 = vld [vmem:[#allocation5 + $0x2d8] sm:$0xff] }
  0x8e   :  { %797 = vmatpush2.msra.mxu1 %v5237_v57  ;;  %727 = vmatprep.subr.mxu0 %v5241_v40  ;;  %8906 = vst [vmem:[#allocation132_spill] sm:$0xff] %v5253_v61  ;;  %8907 = vst [vmem:[#allocation133_spill] sm:$0xff] %v5255_v63  ;;  %v5257_v57 = vld [vmem:[#allocation5 + $0x2c0] sm:$0xff]  ;;  %v5261_v40 = vld [vmem:[#allocation5 + $0x2d0] sm:$0xff] }
  0x8f   :  { %798 = vmatprep.subr.mxu1 %v5243_v41  ;;  %728 = vmatpush2.msra.mxu0 %v5247_v38  ;;  %8908 = vst [vmem:[#allocation134_spill] sm:$0xff] %v5257_v57  ;;  %8909 = vst [vmem:[#allocation135_spill] sm:$0xff] %v5261_v40  ;;  %v5263_v41 = vld [vmem:[#allocation5 + $0x2a8] sm:$0xff]  ;;  %v5271_v38 = vld [vmem:[#allocation5 + $0x2b0] sm:$0xff] }
  0x90   :  { %799 = vmatpush2.msra.mxu1 %v5249_v0  ;;  %729 = vmatprep.subr.mxu0 %v5253_v61  ;;  %8910 = vst [vmem:[#allocation136_spill] sm:$0xff] %v5263_v41  ;;  %v5269_v0 = vld [vmem:[#allocation5 + $0x2a0] sm:$0xff]  ;;  %8913 = vst [vmem:[#allocation139_spill] sm:$0xff] %v5271_v38 }
  0x91   :  { %800 = vmatprep.subr.mxu1 %v5255_v63  ;;  %730 = vmatpush2.msra.mxu0 %v5257_v57  ;;  %8912 = vst [vmem:[#allocation138_spill] sm:$0xff] %v5269_v0  ;;  %v5277_v63 = vld [vmem:[#allocation5 + $0x298] sm:$0xff]  ;;  %v5279_v61 = vld [vmem:[#allocation5 + $0x280] sm:$0xff] }
  0x92   :  { %801 = vmatpush2.msra.mxu1 %v5261_v40  ;;  %731 = vmatprep.subr.mxu0 %v5263_v41  ;;  %8915 = vst [vmem:[#allocation141_spill] sm:$0xff] %v5277_v63  ;;  %8916 = vst [vmem:[#allocation142_spill] sm:$0xff] %v5279_v61  ;;  %v5285_v40 = vld [vmem:[#allocation5 + $0x268] sm:$0xff]  ;;  %v5287_v57 = vld [vmem:[#allocation5 + $0x278] sm:$0xff] }
  0x93   :  { %802 = vmatprep.subr.mxu1 %v5265_v36  ;;  %732 = vmatpush2.msra.mxu0 %v5269_v0  ;;  %8918 = vst [vmem:[#allocation144_spill] sm:$0xff] %v5285_v40  ;;  %8919 = vst [vmem:[#allocation145_spill] sm:$0xff] %v5287_v57  ;;  %v5291_v41 = vld [vmem:[#allocation5 + $0x260] sm:$0xff]  ;;  %v5293_v36 = vld [vmem:[#allocation5 + $0x270] sm:$0xff] }
  0x94   :  { %803 = vmatpush2.msra.mxu1 %v5271_v38  ;;  %733 = vmatprep.subr.mxu0 %v5273_v3  ;;  %8920 = vst [vmem:[#allocation146_spill] sm:$0xff] %v5291_v41  ;;  %8921 = vst [vmem:[#allocation147_spill] sm:$0xff] %v5293_v36  ;;  %v5299_v0 = vld [vmem:[#allocation5 + $0x258] sm:$0xff]  ;;  %v5303_v38 = vld [vmem:[#allocation5 + $0x240] sm:$0xff] }
  0x95   :  { %804 = vmatprep.subr.mxu1 %v5277_v63  ;;  %734 = vmatpush2.msra.mxu0 %v5279_v61  ;;  %8923 = vst [vmem:[#allocation149_spill] sm:$0xff] %v5299_v0  ;;  %8924 = vst [vmem:[#allocation150_spill] sm:$0xff] %v5303_v38  ;;  %v5305_v3 = vld [vmem:[#allocation5 + $0x250] sm:$0xff]  ;;  %v5309_v63 = vld [vmem:[#allocation5 + $0x228] sm:$0xff] }
  0x96   :  { %805 = vmatpush2.msra.mxu1 %v5281_v59  ;;  %735 = vmatprep.subr.mxu0 %v5285_v40  ;;  %8925 = vst [vmem:[#allocation151_spill] sm:$0xff] %v5305_v3  ;;  %8926 = vst [vmem:[#allocation152_spill] sm:$0xff] %v5309_v63  ;;  %v5311_v61 = vld [vmem:[#allocation5 + $0x238] sm:$0xff]  ;;  %v5315_v59 = vld [vmem:[#allocation5 + $0x220] sm:$0xff] }
  0x97   :  { %806 = vmatprep.subr.mxu1 %v5287_v57  ;;  %736 = vmatpush2.msra.mxu0 %v5291_v41  ;;  %8927 = vst [vmem:[#allocation153_spill] sm:$0xff] %v5311_v61  ;;  %8928 = vst [vmem:[#allocation154_spill] sm:$0xff] %v5315_v59  ;;  %v5317_v40 = vld [vmem:[#allocation5 + $0x230] sm:$0xff]  ;;  %v5321_v57 = vld [vmem:[#allocation5 + $0x208] sm:$0xff] }
  0x98   :  { %807 = vmatpush2.msra.mxu1 %v5293_v36  ;;  %737 = vmatprep.subr.mxu0 %v5297_v34  ;;  %8929 = vst [vmem:[#allocation155_spill] sm:$0xff] %v5317_v40  ;;  %8930 = vst [vmem:[#allocation156_spill] sm:$0xff] %v5321_v57  ;;  %v5323_v41 = vld [vmem:[#allocation5 + $0x218] sm:$0xff]  ;;  %v5327_v36 = vld [vmem:[#allocation5 + $0x200] sm:$0xff] }
  0x99   :  { %808 = vmatprep.subr.mxu1 %v5299_v0  ;;  %738 = vmatpush2.msra.mxu0 %v5303_v38  ;;  %8931 = vst [vmem:[#allocation157_spill] sm:$0xff] %v5323_v41  ;;  %8932 = vst [vmem:[#allocation158_spill] sm:$0xff] %v5327_v36  ;;  %v5329_v34 = vld [vmem:[#allocation5 + $0x210] sm:$0xff] }
  0x9a   :  { %809 = vmatpush2.msra.mxu1 %v5305_v3  ;;  %739 = vmatprep.subr.mxu0 %v5309_v63  ;;  %8933 = vst [vmem:[#allocation159_spill] sm:$0xff] %v5329_v34 }
  0x9b   :  { %810 = vmatprep.subr.mxu1 %v5311_v61  ;;  %740 = vmatpush2.msra.mxu0 %v5315_v59  ;;  %v101_v61 = vlaneseq }
  0x9c   :  { %811 = vmatpush2.msra.mxu1 %v5317_v40  ;;  %741 = vmatprep.subr.mxu0 %v5321_v57  ;;  %v99_v57 = vld [vmem:[%s8147_s3] sm:$0xf] }
  0x9d   :  { %812 = vmatprep.subr.mxu1 %v5323_v41  ;;  %742 = vmatpush2.msra.mxu0 %v5327_v36  ;;  %v5339_v63 = vshrl.u32 %v101_v61, 7 }
  0x9e   :  { %813 = vmatpush2.msra.mxu1 %v5329_v34  ;;  %845 = vmatprep.subr.mxu0 %v4678_v2 }
  0x9f   :  { %916 = vmatprep.subr.mxu1 %v4813_v44  ;;  %v8302_v59 = vsub.s32 0, %v5339_v63  ;;  %v8304_v41 = vsub.s32 1, %v5339_v63  ;;  %v8311_v55 = vsub.s32 2, %v5339_v63  ;;  %v8313_v53 = vsub.s32 3, %v5339_v63 }
  0xa1   :  { %v104_v34 = vrot.slane %v99_v57, %v8302_v59  ;;  %v108_v2 = vrot.slane %v99_v57, %v8304_v41 }
  0xf2   :  { %v207_v3 = vpop.f32.mrf.mxu1 }
  0xf3   :  { %v5355_v32 = vadd.f32 %v207_v3, %v104_v34  ;;  %v116_v3 = vrot.slane %v99_v57, %v8313_v53 }
  0xf4   :  { %v209_v40 = vpop.f32.mrf.mxu1 }
  0xf5   :  { %8936 = vst [vmem:[#allocation162_spill] sm:$0xff] %v5355_v32  ;;  %v5358_v51 = vadd.f32 %v209_v40, %v108_v2 }
  0xf8   :  { %v213_v36 = vpop.f32.mrf.mxu1 }
  0xf9   :  { %v5350_v44 = vadd.f32 %v213_v36, %v104_v34  ;;  %v112_v36 = vrot.slane %v99_v57, %v8311_v55 }
  0xfa   :  { %v215_v61 = vpop.f32.mrf.mxu1 }
  0xfb   :  { %8934 = vst [vmem:[#allocation160_spill] sm:$0xff] %v5350_v44  ;;  %v5352_v38 = vadd.f32 %v215_v61, %v108_v2 }
  0xfd   :  { %8935 = vst [vmem:[#allocation161_spill] sm:$0xff] %v5352_v38 }
  0xfe   :  { %v284_v0 = vpop.f32.mrf.mxu1 }
  0xff   :  { %v5370_v55 = vadd.f32 %v284_v0, %v112_v36 }
 0x100   :  { %v286_v59 = vpop.f32.mrf.mxu1 }
 0x101   :  { %8939 = vst [vmem:[#allocation165_spill] sm:$0xff] %v5370_v55 }
 0x10a   :  { %v575_v30 = vpop.f32.mrf.mxu0 }
 0x10b   :  { %v651_v28 = vadd.f32 %v575_v30, %v5355_v32 }
 0x10c   :  { %v577_v41 = vpop.f32.mrf.mxu0 }
 0x10d   :  { %v3540_v44 = vmul.f32 -1.442695, %v651_v28  ;;  %v652_v61 = vadd.f32 %v577_v41, %v5358_v51  ;;  %v290_v38 = vpop.f32.mrf.mxu1  ;;  %v5372_v41 = vadd.f32 %v286_v59, %v116_v3 }
 0x10e   :  { %v5366_v34 = vadd.f32 %v290_v38, %v112_v36 }
 0x10f   :  { %3681 = vpow2.f32 %v3540_v44  ;;  %v3541_v49 = vmul.f32 -1.442695, %v652_v61  ;;  %v292_v40 = vpop.f32.mrf.mxu1 }
 0x110   :  { %8937 = vst [vmem:[#allocation163_spill] sm:$0xff] %v5366_v34  ;;  %v5368_v2 = vadd.f32 %v292_v40, %v116_v3  ;;  %v5765_v34 = vld [vmem:[#allocation2 + $0x60] sm:$0xff] }
 0x111   :  { %3683 = vpow2.f32 %v3541_v49 }
 0x112   :  { %8938 = vst [vmem:[#allocation164_spill] sm:$0xff] %v5368_v2  ;;  %v5768_v2 = vld [vmem:[#allocation2 + $0x70] sm:$0xff] }
 0x11c   :  { %v3682_v30 = vpop.eup %3681 }
 0x11d   :  { %v658_v32 = vadd.f32 1.0, %v3682_v30 }
 0x11e   :  { %v3684_v26 = vpop.eup %3683 }
 0x11f   :  { %v664_v28 = vadd.f32 1.0, %v3684_v26  ;;  %v646_v47 = vpop.f32.mrf.mxu1  ;;  %3685 = vrcp.f32 %v658_v32 }
 0x120   :  { %v653_v57 = vadd.f32 %v646_v47, %v5370_v55 }
 0x121   :  { %3687 = vrcp.f32 %v664_v28  ;;  %v648_v38 = vpop.f32.mrf.mxu1  ;;  %v8983_v28 = vld [vmem:[#allocation54_spill] sm:$0xff] }
 0x122   :  { %3689 = vtanh.f32 %v653_v57  ;;  %v654_v44 = vadd.f32 %v648_v38, %v5372_v41  ;;  %v8984_v57 = vld [vmem:[#allocation55_spill] sm:$0xff]  ;;  %v8985_v38 = vld [vmem:[#allocation56_spill] sm:$0xff] }
 0x124   :  { %v3542_v61 = vmul.f32 -1.442695, %v654_v44  ;;  %v8986_v44 = vld [vmem:[#allocation57_spill] sm:$0xff] }
 0x126   :  { %3691 = vpow2.f32 %v3542_v61  ;;  %v8987_v61 = vld [vmem:[#allocation58_spill] sm:$0xff] }
 0x12c   :  { %v3686_v49 = vpop.eup %3685 }
 0x12e   :  { %v3688_v40 = vpop.eup %3687 }
 0x12f   :  { %v3690_v30 = vpop.eup %3689  ;;  %v674_v53 = vmul.f32 0.0, %v3688_v40  ;;  %v8989_v40 = vld [vmem:[#allocation60_spill] sm:$0xff] }
 0x130   :  { %v675_v0 = vmul.f32 %v3690_v30, %v3686_v49  ;;  %v8988_v49 = vld [vmem:[#allocation59_spill] sm:$0xff]  ;;  %v8990_v30 = vld [vmem:[#allocation61_spill] sm:$0xff] }
 0x132   :  { %v5376_v36 = vadd.f32 %v675_v0, %v674_v53  ;;  %v8965_v53 = vld [vmem:[#allocation36_spill] sm:$0xff]  ;;  %v8991_v0 = vld [vmem:[#allocation62_spill] sm:$0xff] }
 0x133   :  { %v3692_v26 = vpop.eup %3691 }
 0x134   :  { %v671_v59 = vadd.f32 1.0, %v3692_v26  ;;  %3693 = vtanh.f32 %v5376_v36  ;;  %v8992_v26 = vld [vmem:[#allocation63_spill] sm:$0xff] }
 0x136   :  { %3695 = vrcp.f32 %v671_v59  ;;  %v8993_v59 = vld [vmem:[#allocation64_spill] sm:$0xff] }
 0x141   :  { %v3694_v47 = vpop.eup %3693 }
 0x143   :  { %v3696_v32 = vpop.eup %3695 }
 0x144   :  { %v5379_v3 = vmul.f32 %v3696_v32, %v3694_v47  ;;  %v8994_v47 = vld [vmem:[#allocation65_spill] sm:$0xff]  ;;  %v8995_v32 = vld [vmem:[#allocation66_spill] sm:$0xff] }
 0x146   :  { %744 = vmatmul.mubr.f32.vlgmr.msra.gmra.mxu0 %v5379_v3  ;;  %815 = vmatmul.mubr.f32.vlgmr.msra.gmra.mxu1 %v5379_v3 }
 0x147   :  { %846 = vmatpush1.msra.mxu0 %v4685_v4  ;;  %917 = vmatpush1.msra.mxu1 %v4818_v46  ;;  %v8940_v4 = vld [vmem:[#allocation12_spill] sm:$0xff] }
 0x148   :  { %847 = vmatprep.subr.mxu0 %v4690_v6  ;;  %918 = vmatprep.subr.mxu1 %v4824_v48  ;;  %v8941_v6 = vld [vmem:[#allocation22_spill] sm:$0xff]  ;;  %v8961_v46 = vld [vmem:[#allocation32_spill] sm:$0xff]  ;;  %v8962_v48 = vld [vmem:[#allocation33_spill] sm:$0xff] }
 0x149   :  { %848 = vmatpush1.msra.mxu0 %v4697_v8  ;;  %919 = vmatpush1.msra.mxu1 %v4830_v50  ;;  %v8942_v8 = vld [vmem:[#allocation13_spill] sm:$0xff]  ;;  %v8963_v50 = vld [vmem:[#allocation34_spill] sm:$0xff] }
 0x14a   :  { %849 = vmatprep.subr.mxu0 %v4703_v10  ;;  %920 = vmatprep.subr.mxu1 %v4836_v52  ;;  %v8943_v10 = vld [vmem:[#allocation23_spill] sm:$0xff] }
 0x14b   :  { %850 = vmatpush1.msra.mxu0 %v4708_v12  ;;  %921 = vmatpush1.msra.mxu1 %v4842_v54  ;;  %v8944_v12 = vld [vmem:[#allocation14_spill] sm:$0xff]  ;;  %v8964_v52 = vld [vmem:[#allocation35_spill] sm:$0xff]  ;;  %v8966_v54 = vld [vmem:[#allocation37_spill] sm:$0xff] }
 0x14c   :  { %851 = vmatprep.subr.mxu0 %v4714_v14  ;;  %922 = vmatprep.subr.mxu1 %v4848_v56  ;;  %v8945_v14 = vld [vmem:[#allocation24_spill] sm:$0xff]  ;;  %v8967_v56 = vld [vmem:[#allocation38_spill] sm:$0xff] }
 0x14d   :  { %852 = vmatpush1.msra.mxu0 %v4720_v16  ;;  %923 = vmatpush1.msra.mxu1 %v4854_v58  ;;  %v8946_v16 = vld [vmem:[#allocation15_spill] sm:$0xff] }
 0x14e   :  { %853 = vmatprep.subr.mxu0 %v4726_v18  ;;  %924 = vmatprep.subr.mxu1 %v4860_v60  ;;  %v8947_v18 = vld [vmem:[#allocation25_spill] sm:$0xff]  ;;  %v8968_v58 = vld [vmem:[#allocation39_spill] sm:$0xff]  ;;  %v8969_v60 = vld [vmem:[#allocation40_spill] sm:$0xff] }
 0x14f   :  { %854 = vmatpush1.msra.mxu0 %v4732_v20  ;;  %925 = vmatpush1.msra.mxu1 %v4866_v62  ;;  %v8948_v20 = vld [vmem:[#allocation16_spill] sm:$0xff]  ;;  %v8970_v62 = vld [vmem:[#allocation41_spill] sm:$0xff] }
 0x150   :  { %855 = vmatprep.subr.mxu0 %v4742_v23  ;;  %926 = vmatprep.subr.mxu1 %v4872_v1  ;;  %v8949_v23 = vld [vmem:[#allocation26_spill] sm:$0xff] }
 0x151   :  { %856 = vmatpush1.msra.mxu0 %v4748_v25  ;;  %927 = vmatpush1.msra.mxu1 %v4878_v5  ;;  %v8950_v25 = vld [vmem:[#allocation17_spill] sm:$0xff]  ;;  %v8971_v1 = vld [vmem:[#allocation42_spill] sm:$0xff]  ;;  %v8972_v5 = vld [vmem:[#allocation43_spill] sm:$0xff] }
 0x152   :  { %857 = vmatprep.subr.mxu0 %v4755_v27  ;;  %928 = vmatprep.subr.mxu1 %v4882_v7  ;;  %v8951_v27 = vld [vmem:[#allocation27_spill] sm:$0xff]  ;;  %v8973_v7 = vld [vmem:[#allocation44_spill] sm:$0xff] }
 0x153   :  { %858 = vmatpush1.msra.mxu0 %v4762_v29  ;;  %929 = vmatpush1.msra.mxu1 %v4886_v9  ;;  %v8952_v29 = vld [vmem:[#allocation18_spill] sm:$0xff]  ;;  %v8974_v9 = vld [vmem:[#allocation45_spill] sm:$0xff] }
 0x154   :  { %859 = vmatprep.subr.mxu0 %v4768_v31  ;;  %930 = vmatprep.subr.mxu1 %v4890_v11  ;;  %v8953_v31 = vld [vmem:[#allocation28_spill] sm:$0xff]  ;;  %v8975_v11 = vld [vmem:[#allocation46_spill] sm:$0xff] }
 0x155   :  { %860 = vmatpush1.msra.mxu0 %v4776_v33  ;;  %931 = vmatpush1.msra.mxu1 %v4893_v13  ;;  %v8954_v33 = vld [vmem:[#allocation19_spill] sm:$0xff]  ;;  %9107 = vst [vmem:[#allocation28_spill] sm:$0xff] %v5765_v34 }
 0x156   :  { %861 = vmatprep.subr.mxu0 %v4783_v35  ;;  %932 = vmatprep.subr.mxu1 %v4897_v15  ;;  %v8955_v35 = vld [vmem:[#allocation29_spill] sm:$0xff]  ;;  %v8976_v13 = vld [vmem:[#allocation47_spill] sm:$0xff]  ;;  %v8977_v15 = vld [vmem:[#allocation48_spill] sm:$0xff]  ;;  %9108 = vst [vmem:[#allocation19_spill] sm:$0xff] %v5768_v2 }
 0x157   :  { %862 = vmatpush1.msra.mxu0 %v4789_v37  ;;  %933 = vmatpush1.msra.mxu1 %v4901_v17  ;;  %v8956_v37 = vld [vmem:[#allocation20_spill] sm:$0xff]  ;;  %v8978_v17 = vld [vmem:[#allocation49_spill] sm:$0xff] }
 0x158   :  { %863 = vmatprep.subr.mxu0 %v4797_v39  ;;  %934 = vmatprep.subr.mxu1 %v4906_v19  ;;  %v8957_v39 = vld [vmem:[#allocation30_spill] sm:$0xff] }
 0x159   :  { %864 = vmatpush1.msra.mxu0 %v4807_v42  ;;  %935 = vmatpush1.msra.mxu1 %v4910_v21  ;;  %v8958_v42 = vld [vmem:[#allocation21_spill] sm:$0xff]  ;;  %v8979_v19 = vld [vmem:[#allocation50_spill] sm:$0xff]  ;;  %v8980_v21 = vld [vmem:[#allocation51_spill] sm:$0xff] }
 0x15a   :  { %865 = vmatprep.subr.mxu0 %v4810_v43  ;;  %936 = vmatprep.subr.mxu1 %v4913_v22  ;;  %v8959_v43 = vmov 0.0   ;;  %v8981_v22 = vld [vmem:[#allocation52_spill] sm:$0xff] }
 0x15b   :  { %866 = vmatpush1.msra.mxu0 %v4815_v45  ;;  %937 = vmatpush1.msra.mxu1 %v4916_v24  ;;  %v8960_v45 = vld [vmem:[#allocation31_spill] sm:$0xff]  ;;  %v8982_v24 = vld [vmem:[#allocation53_spill] sm:$0xff] }
 0x15c   :  { %867 = vmatprep.subr.mxu0 %v8940_v4  ;;  %938 = vmatprep.subr.mxu1 %v8941_v6  ;;  %v8997_v4 = vld [vmem:[#allocation68_spill] sm:$0xff]  ;;  %v8998_v6 = vld [vmem:[#allocation69_spill] sm:$0xff] }
 0x15d   :  { %868 = vmatpush1.msra.mxu0 %v8942_v8  ;;  %939 = vmatpush1.msra.mxu1 %v8943_v10  ;;  %v8999_v8 = vld [vmem:[#allocation70_spill] sm:$0xff]  ;;  %v9000_v10 = vld [vmem:[#allocation71_spill] sm:$0xff] }
 0x15e   :  { %869 = vmatprep.subr.mxu0 %v8944_v12  ;;  %940 = vmatprep.subr.mxu1 %v8945_v14  ;;  %v9001_v12 = vld [vmem:[#allocation72_spill] sm:$0xff]  ;;  %v9002_v14 = vld [vmem:[#allocation73_spill] sm:$0xff] }
 0x15f   :  { %870 = vmatpush1.msra.mxu0 %v8946_v16  ;;  %941 = vmatpush1.msra.mxu1 %v8947_v18  ;;  %v9003_v16 = vld [vmem:[#allocation74_spill] sm:$0xff]  ;;  %v9004_v18 = vld [vmem:[#allocation75_spill] sm:$0xff] }
 0x160   :  { %871 = vmatprep.subr.mxu0 %v8948_v20  ;;  %942 = vmatprep.subr.mxu1 %v8949_v23  ;;  %v9005_v20 = vld [vmem:[#allocation76_spill] sm:$0xff]  ;;  %v9006_v23 = vld [vmem:[#allocation77_spill] sm:$0xff] }
 0x161   :  { %872 = vmatpush1.msra.mxu0 %v8950_v25  ;;  %943 = vmatpush1.msra.mxu1 %v8951_v27  ;;  %v9007_v25 = vld [vmem:[#allocation78_spill] sm:$0xff]  ;;  %v9008_v27 = vld [vmem:[#allocation79_spill] sm:$0xff] }
 0x162   :  { %873 = vmatprep.subr.mxu0 %v8952_v29  ;;  %944 = vmatprep.subr.mxu1 %v8953_v31  ;;  %v9009_v29 = vld [vmem:[#allocation80_spill] sm:$0xff]  ;;  %v9010_v31 = vld [vmem:[#allocation81_spill] sm:$0xff] }
 0x163   :  { %874 = vmatpush1.msra.mxu0 %v8954_v33  ;;  %945 = vmatpush1.msra.mxu1 %v8955_v35  ;;  %v9011_v33 = vld [vmem:[#allocation82_spill] sm:$0xff]  ;;  %v9012_v35 = vld [vmem:[#allocation83_spill] sm:$0xff] }
 0x164   :  { %875 = vmatprep.subr.mxu0 %v8956_v37  ;;  %946 = vmatprep.subr.mxu1 %v8957_v39  ;;  %v9013_v37 = vld [vmem:[#allocation84_spill] sm:$0xff]  ;;  %v9014_v39 = vld [vmem:[#allocation85_spill] sm:$0xff] }
 0x165   :  { %876 = vmatpush1.msra.mxu0 %v8958_v42  ;;  %909 = vmatprep.mubr.f32.mxu0 %v8959_v43  ;;  %v9015_v42 = vld [vmem:[#allocation86_spill] sm:$0xff] }
 0x166   :  { %947 = vmatpush1.msra.mxu1 %v8960_v45  ;;  %980 = vmatprep.mubr.f32.mxu1 %v8959_v43  ;;  %v9016_v45 = vld [vmem:[#allocation87_spill] sm:$0xff] }
 0x167   :  { %910 = vmatmul.mubr.f32.vlgmr.msra.gmra.mxu0 %v5379_v3  ;;  %981 = vmatmul.mubr.f32.vlgmr.msra.gmra.mxu1 %v5379_v3  ;;  %v8996_v3 = vld [vmem:[#allocation67_spill] sm:$0xff] }
 0x168   :  { %1037 = vmatprep.subr.mxu0 %v8961_v46  ;;  %1108 = vmatprep.subr.mxu1 %v8962_v48  ;;  %v9017_v46 = vld [vmem:[#allocation88_spill] sm:$0xff]  ;;  %v9018_v48 = vld [vmem:[#allocation89_spill] sm:$0xff] }
 0x169   :  { %1038 = vmatpush1.msra.mxu0 %v8963_v50  ;;  %1109 = vmatpush1.msra.mxu1 %v8964_v52  ;;  %v9019_v50 = vld [vmem:[#allocation90_spill] sm:$0xff]  ;;  %v9020_v52 = vld [vmem:[#allocation91_spill] sm:$0xff] }
 0x16a   :  { %1039 = vmatprep.subr.mxu0 %v8965_v53  ;;  %1110 = vmatprep.subr.mxu1 %v8966_v54  ;;  %v9021_v53 = vld [vmem:[#allocation92_spill] sm:$0xff]  ;;  %v9022_v54 = vld [vmem:[#allocation93_spill] sm:$0xff] }
 0x16b   :  { %1040 = vmatpush1.msra.mxu0 %v8967_v56  ;;  %1111 = vmatpush1.msra.mxu1 %v8968_v58  ;;  %v9023_v56 = vld [vmem:[#allocation94_spill] sm:$0xff]  ;;  %v9024_v58 = vld [vmem:[#allocation95_spill] sm:$0xff] }
 0x16c   :  { %1041 = vmatprep.subr.mxu0 %v8969_v60  ;;  %1112 = vmatprep.subr.mxu1 %v8970_v62  ;;  %v9025_v60 = vld [vmem:[#allocation96_spill] sm:$0xff]  ;;  %v9026_v62 = vld [vmem:[#allocation97_spill] sm:$0xff] }
 0x16d   :  { %1042 = vmatpush1.msra.mxu0 %v8971_v1  ;;  %1113 = vmatpush1.msra.mxu1 %v8972_v5  ;;  %v9027_v1 = vld [vmem:[#allocation98_spill] sm:$0xff]  ;;  %v9028_v5 = vld [vmem:[#allocation99_spill] sm:$0xff] }
 0x16e   :  { %1043 = vmatprep.subr.mxu0 %v8973_v7  ;;  %1114 = vmatprep.subr.mxu1 %v8974_v9  ;;  %v9029_v7 = vld [vmem:[#allocation100_spill] sm:$0xff]  ;;  %v9030_v9 = vld [vmem:[#allocation101_spill] sm:$0xff] }
 0x16f   :  { %1044 = vmatpush1.msra.mxu0 %v8975_v11  ;;  %1115 = vmatpush1.msra.mxu1 %v8976_v13  ;;  %v9031_v11 = vld [vmem:[#allocation102_spill] sm:$0xff]  ;;  %v9032_v13 = vld [vmem:[#allocation103_spill] sm:$0xff] }
 0x170   :  { %1045 = vmatprep.subr.mxu0 %v8977_v15  ;;  %1116 = vmatprep.subr.mxu1 %v8978_v17  ;;  %v9033_v15 = vld [vmem:[#allocation104_spill] sm:$0xff]  ;;  %v9034_v17 = vld [vmem:[#allocation105_spill] sm:$0xff] }
 0x171   :  { %1046 = vmatpush1.msra.mxu0 %v8979_v19  ;;  %1117 = vmatpush1.msra.mxu1 %v8980_v21  ;;  %v9035_v19 = vld [vmem:[#allocation106_spill] sm:$0xff]  ;;  %v9036_v21 = vld [vmem:[#allocation107_spill] sm:$0xff] }
 0x172   :  { %1047 = vmatprep.subr.mxu0 %v8981_v22  ;;  %1118 = vmatprep.subr.mxu1 %v8982_v24  ;;  %v9037_v22 = vld [vmem:[#allocation108_spill] sm:$0xff]  ;;  %v9038_v24 = vld [vmem:[#allocation109_spill] sm:$0xff] }
 0x173   :  { %1048 = vmatpush1.msra.mxu0 %v8983_v28  ;;  %1119 = vmatpush1.msra.mxu1 %v8984_v57  ;;  %v9039_v28 = vld [vmem:[#allocation110_spill] sm:$0xff]  ;;  %v9040_v57 = vld [vmem:[#allocation111_spill] sm:$0xff] }
 0x174   :  { %1049 = vmatprep.subr.mxu0 %v8985_v38  ;;  %1120 = vmatprep.subr.mxu1 %v8986_v44  ;;  %v9041_v38 = vld [vmem:[#allocation112_spill] sm:$0xff]  ;;  %v9042_v44 = vld [vmem:[#allocation113_spill] sm:$0xff] }
 0x175   :  { %1050 = vmatpush1.msra.mxu0 %v8987_v61  ;;  %1121 = vmatpush1.msra.mxu1 %v8988_v49  ;;  %v9043_v61 = vld [vmem:[#allocation114_spill] sm:$0xff]  ;;  %v9044_v49 = vld [vmem:[#allocation115_spill] sm:$0xff] }
 0x176   :  { %1051 = vmatprep.subr.mxu0 %v8989_v40  ;;  %1122 = vmatprep.subr.mxu1 %v8990_v30  ;;  %v9045_v40 = vld [vmem:[#allocation116_spill] sm:$0xff]  ;;  %v9046_v30 = vld [vmem:[#allocation117_spill] sm:$0xff] }
 0x177   :  { %1052 = vmatpush1.msra.mxu0 %v8991_v0  ;;  %1123 = vmatpush1.msra.mxu1 %v8992_v26  ;;  %v9047_v0 = vld [vmem:[#allocation118_spill] sm:$0xff]  ;;  %v9048_v26 = vld [vmem:[#allocation119_spill] sm:$0xff] }
 0x178   :  { %1053 = vmatprep.subr.mxu0 %v8993_v59  ;;  %1124 = vmatprep.subr.mxu1 %v8994_v47  ;;  %v9049_v59 = vld [vmem:[#allocation120_spill] sm:$0xff]  ;;  %v9050_v47 = vld [vmem:[#allocation121_spill] sm:$0xff] }
 0x179   :  { %1054 = vmatpush1.msra.mxu0 %v8995_v32  ;;  %1125 = vmatpush1.msra.mxu1 %v8996_v3  ;;  %v9051_v32 = vld [vmem:[#allocation122_spill] sm:$0xff]  ;;  %v9052_v3 = vld [vmem:[#allocation123_spill] sm:$0xff] }
 0x17a   :  { %1055 = vmatprep.subr.mxu0 %v8997_v4  ;;  %1126 = vmatprep.subr.mxu1 %v8998_v6  ;;  %v9053_v4 = vld [vmem:[#allocation124_spill] sm:$0xff]  ;;  %v9054_v6 = vld [vmem:[#allocation125_spill] sm:$0xff] }
 0x17b   :  { %1056 = vmatpush1.msra.mxu0 %v8999_v8  ;;  %1127 = vmatpush1.msra.mxu1 %v9000_v10  ;;  %v9055_v8 = vld [vmem:[#allocation126_spill] sm:$0xff]  ;;  %v9056_v10 = vld [vmem:[#allocation127_spill] sm:$0xff] }
 0x17c   :  { %1057 = vmatprep.subr.mxu0 %v9001_v12  ;;  %1128 = vmatprep.subr.mxu1 %v9002_v14  ;;  %v9057_v12 = vld [vmem:[#allocation128_spill] sm:$0xff]  ;;  %v9058_v14 = vld [vmem:[#allocation129_spill] sm:$0xff] }
 0x17d   :  { %1058 = vmatpush1.msra.mxu0 %v9003_v16  ;;  %1129 = vmatpush1.msra.mxu1 %v9004_v18  ;;  %v9059_v16 = vld [vmem:[#allocation130_spill] sm:$0xff]  ;;  %v9060_v18 = vld [vmem:[#allocation131_spill] sm:$0xff] }
 0x17e   :  { %1059 = vmatprep.subr.mxu0 %v9005_v20  ;;  %1130 = vmatprep.subr.mxu1 %v9006_v23  ;;  %v9061_v20 = vld [vmem:[#allocation132_spill] sm:$0xff]  ;;  %v9062_v23 = vld [vmem:[#allocation133_spill] sm:$0xff] }
 0x17f   :  { %1060 = vmatpush1.msra.mxu0 %v9007_v25  ;;  %1131 = vmatpush1.msra.mxu1 %v9008_v27  ;;  %v9063_v25 = vld [vmem:[#allocation134_spill] sm:$0xff]  ;;  %v9064_v27 = vld [vmem:[#allocation135_spill] sm:$0xff] }
 0x180   :  { %1061 = vmatprep.subr.mxu0 %v9009_v29  ;;  %1132 = vmatprep.subr.mxu1 %v9010_v31  ;;  %v9065_v29 = vld [vmem:[#allocation136_spill] sm:$0xff]  ;;  %v9066_v31 = vld [vmem:[#allocation137_spill] sm:$0xff] }
 0x181   :  { %1062 = vmatpush1.msra.mxu0 %v9011_v33  ;;  %1133 = vmatpush1.msra.mxu1 %v9012_v35  ;;  %v9067_v33 = vld [vmem:[#allocation138_spill] sm:$0xff]  ;;  %v9068_v35 = vld [vmem:[#allocation139_spill] sm:$0xff] }
 0x182   :  { %1063 = vmatprep.subr.mxu0 %v9013_v37  ;;  %1134 = vmatprep.subr.mxu1 %v9014_v39  ;;  %v9069_v37 = vld [vmem:[#allocation140_spill] sm:$0xff]  ;;  %v9070_v39 = vld [vmem:[#allocation141_spill] sm:$0xff] }
 0x183   :  { %1064 = vmatpush1.msra.mxu0 %v9015_v42  ;;  %1135 = vmatpush1.msra.mxu1 %v9016_v45  ;;  %v9071_v42 = vld [vmem:[#allocation142_spill] sm:$0xff]  ;;  %v9072_v45 = vld [vmem:[#allocation143_spill] sm:$0xff] }
 0x184   :  { %1065 = vmatprep.subr.mxu0 %v9017_v46  ;;  %1136 = vmatprep.subr.mxu1 %v9018_v48  ;;  %v9073_v46 = vld [vmem:[#allocation144_spill] sm:$0xff]  ;;  %v9074_v48 = vld [vmem:[#allocation145_spill] sm:$0xff] }
 0x185   :  { %1066 = vmatpush1.msra.mxu0 %v9019_v50  ;;  %1137 = vmatpush1.msra.mxu1 %v9020_v52  ;;  %v9075_v50 = vld [vmem:[#allocation146_spill] sm:$0xff]  ;;  %v9076_v52 = vld [vmem:[#allocation147_spill] sm:$0xff] }
 0x186   :  { %1067 = vmatprep.subr.mxu0 %v9021_v53  ;;  %1138 = vmatprep.subr.mxu1 %v9022_v54  ;;  %v9077_v53 = vld [vmem:[#allocation148_spill] sm:$0xff]  ;;  %v9078_v54 = vld [vmem:[#allocation149_spill] sm:$0xff] }
 0x187   :  { %1068 = vmatpush1.msra.mxu0 %v9023_v56  ;;  %1139 = vmatpush1.msra.mxu1 %v9024_v58  ;;  %v9079_v56 = vld [vmem:[#allocation150_spill] sm:$0xff]  ;;  %v9080_v58 = vld [vmem:[#allocation151_spill] sm:$0xff] }
 0x188   :  { %1069 = vmatprep.subr.mxu0 %v9025_v60  ;;  %1140 = vmatprep.subr.mxu1 %v9026_v62  ;;  %v9081_v60 = vld [vmem:[#allocation152_spill] sm:$0xff]  ;;  %v9082_v62 = vld [vmem:[#allocation153_spill] sm:$0xff] }
 0x189   :  { %1070 = vmatpush2.msra.mxu0 %v9027_v1  ;;  %1141 = vmatpush2.msra.mxu1 %v9028_v5  ;;  %v9083_v1 = vld [vmem:[#allocation154_spill] sm:$0xff]  ;;  %v9084_v5 = vld [vmem:[#allocation155_spill] sm:$0xff] }
 0x18a   :  { %1071 = vmatprep.subr.mxu0 %v9029_v7  ;;  %1142 = vmatprep.subr.mxu1 %v9030_v9  ;;  %v9085_v7 = vld [vmem:[#allocation156_spill] sm:$0xff]  ;;  %v9086_v9 = vld [vmem:[#allocation157_spill] sm:$0xff] }
 0x18b   :  { %1072 = vmatpush2.msra.mxu0 %v9031_v11  ;;  %1143 = vmatpush2.msra.mxu1 %v9032_v13  ;;  %v9087_v11 = vld [vmem:[#allocation158_spill] sm:$0xff]  ;;  %v9088_v13 = vld [vmem:[#allocation159_spill] sm:$0xff] }
 0x18c   :  { %1073 = vmatprep.subr.mxu0 %v9033_v15  ;;  %1144 = vmatprep.subr.mxu1 %v9034_v17  ;;  %v5577_v15 = vld [vmem:[#allocation2 + $0x1e8] sm:$0xff]  ;;  %v5580_v17 = vld [vmem:[#allocation2 + $0x1f8] sm:$0xff] }
 0x18d   :  { %1074 = vmatpush2.msra.mxu0 %v9035_v19  ;;  %1145 = vmatpush2.msra.mxu1 %v9036_v21  ;;  %v487_v19 = vld [vmem:[%s8149_s5] sm:$0xf]  ;;  %v9089_v21 = vsub.s32 0, %v5339_v63 }
 0x18e   :  { %1075 = vmatprep.subr.mxu0 %v9037_v22  ;;  %1146 = vmatprep.subr.mxu1 %v9038_v24  ;;  %v9091_v24 = vsub.s32 1, %v5339_v63 }
 0x18f   :  { %1076 = vmatpush2.msra.mxu0 %v9039_v28  ;;  %1147 = vmatpush2.msra.mxu1 %v9040_v57  ;;  %v5588_v22 = vrot.slane %v487_v19, %v9089_v21 }
 0x190   :  { %1077 = vmatprep.subr.mxu0 %v9041_v38  ;;  %1148 = vmatprep.subr.mxu1 %v9042_v44  ;;  %v5592_v28 = vrot.slane %v487_v19, %v9091_v24 }
 0x191   :  { %1078 = vmatpush2.msra.mxu0 %v9043_v61  ;;  %1149 = vmatpush2.msra.mxu1 %v9044_v49  ;;  %9090 = vst [vmem:[#allocation12_spill] sm:$0xff] %v5588_v22 }
 0x192   :  { %1079 = vmatprep.subr.mxu0 %v9045_v40  ;;  %1150 = vmatprep.subr.mxu1 %v9046_v30  ;;  %9092 = vst [vmem:[#allocation22_spill] sm:$0xff] %v5592_v28 }
 0x193   :  { %1080 = vmatpush2.msra.mxu0 %v9047_v0  ;;  %1151 = vmatpush2.msra.mxu1 %v9048_v26  ;;  %v9093_v0 = vsub.s32 3, %v5339_v63 }
 0x194   :  { %1081 = vmatprep.subr.mxu0 %v9049_v59  ;;  %1152 = vmatprep.subr.mxu1 %v9050_v47 }
 0x195   :  { %1082 = vmatpush2.msra.mxu0 %v9051_v32  ;;  %1153 = vmatpush2.msra.mxu1 %v9052_v3  ;;  %v5598_v26 = vrot.slane %v487_v19, %v9093_v0  ;;  %v9095_v32 = vsub.s32 2, %v5339_v63 }
 0x196   :  { %1083 = vmatprep.subr.mxu0 %v9053_v4  ;;  %1154 = vmatprep.subr.mxu1 %v9054_v6 }
 0x197   :  { %1084 = vmatpush2.msra.mxu0 %v9055_v8  ;;  %1155 = vmatpush2.msra.mxu1 %v9056_v10  ;;  %9094 = vst [vmem:[#allocation13_spill] sm:$0xff] %v5598_v26  ;;  %v5603_v3 = vrot.slane %v487_v19, %v9095_v32 }
 0x198   :  { %1085 = vmatprep.subr.mxu0 %v9057_v12  ;;  %1156 = vmatprep.subr.mxu1 %v9058_v14 }
 0x199   :  { %1086 = vmatpush2.msra.mxu0 %v9059_v16  ;;  %1157 = vmatpush2.msra.mxu1 %v9060_v18  ;;  %9096 = vst [vmem:[#allocation23_spill] sm:$0xff] %v5603_v3 }
 0x19a   :  { %1087 = vmatprep.subr.mxu0 %v9061_v20  ;;  %1158 = vmatprep.subr.mxu1 %v9062_v23 }
 0x19b   :  { %1088 = vmatpush2.msra.mxu0 %v9063_v25  ;;  %1159 = vmatpush2.msra.mxu1 %v9064_v27 }
 0x19c   :  { %1089 = vmatprep.subr.mxu0 %v9065_v29  ;;  %1160 = vmatprep.subr.mxu1 %v9066_v31  ;;  %v9097_v31 = vld [vmem:[#allocation162_spill] sm:$0xff] }
 0x19d   :  { %1090 = vmatpush2.msra.mxu0 %v9067_v33  ;;  %1161 = vmatpush2.msra.mxu1 %v9068_v35 }
 0x19e   :  { %1091 = vmatprep.subr.mxu0 %v9069_v37  ;;  %1162 = vmatprep.subr.mxu1 %v9070_v39 }
 0x19f   :  { %1092 = vmatpush2.msra.mxu0 %v9071_v42  ;;  %1163 = vmatpush2.msra.mxu1 %v9072_v45 }
 0x1a0   :  { %1093 = vmatprep.subr.mxu0 %v9073_v46  ;;  %1164 = vmatprep.subr.mxu1 %v9074_v48 }
 0x1a1   :  { %1094 = vmatpush2.msra.mxu0 %v9075_v50  ;;  %1165 = vmatpush2.msra.mxu1 %v9076_v52 }
 0x1a2   :  { %1095 = vmatprep.subr.mxu0 %v9077_v53  ;;  %1166 = vmatprep.subr.mxu1 %v9078_v54 }
 0x1a3   :  { %1096 = vmatpush2.msra.mxu0 %v9079_v56  ;;  %1167 = vmatpush2.msra.mxu1 %v9080_v58 }
 0x1a4   :  { %1097 = vmatprep.subr.mxu0 %v9081_v60  ;;  %1168 = vmatprep.subr.mxu1 %v9082_v62 }
 0x1a5   :  { %1098 = vmatpush2.msra.mxu0 %v9083_v1  ;;  %1169 = vmatpush2.msra.mxu1 %v9084_v5 }
 0x1a6   :  { %1099 = vmatprep.subr.mxu0 %v9085_v7  ;;  %1170 = vmatprep.subr.mxu1 %v9086_v9 }
 0x1a7   :  { %1100 = vmatpush2.msra.mxu0 %v9087_v11  ;;  %1171 = vmatpush2.msra.mxu1 %v9088_v13 }
 0x1a8   :  { %1203 = vmatprep.subr.mxu0 %v5577_v15  ;;  %1274 = vmatprep.subr.mxu1 %v5580_v17 }
 0x206   :  { %v745_v57 = vpop.f32.mrf.mxu0  ;;  %v816_v40 = vpop.f32.mrf.mxu1 }
 0x207   :  { %v746_v38 = vadd.f32 %v745_v57, %v5588_v22  ;;  %v817_v8 = vadd.f32 %v816_v40, %v5603_v3 }
 0x208   :  { %v747_v44 = vpop.f32.mrf.mxu0  ;;  %v818_v59 = vpop.f32.mrf.mxu1 }
 0x209   :  { %v3543_v61 = vmul.f32 -1.442695, %v746_v38  ;;  %v748_v49 = vadd.f32 %v747_v44, %v5592_v28  ;;  %v819_v47 = vadd.f32 %v818_v59, %v5598_v26  ;;  %v1023_v44 = vrot.slane %v5376_v36, 6  ;;  %v5624_v36 = vld [vmem:[#allocation2 + $0x1f0] sm:$0xff] }
 0x20b   :  { %3697 = vpow2.f32 %v3543_v61  ;;  %v3544_v30 = vmul.f32 -1.442695, %v748_v49  ;;  %v3545_v4 = vmul.f32 -1.442695, %v819_v47 }
 0x20d   :  { %3699 = vpow2.f32 %v3544_v30 }
 0x20e   :  { %3701 = vpow2.f32 %v3545_v4 }
 0x218   :  { %v3698_v6 = vpop.eup %3697 }
 0x219   :  { %v824_v10 = vadd.f32 1.0, %v3698_v6  ;;  %v5621_v6 = vld [vmem:[#allocation2 + $0x1e0] sm:$0xff] }
 0x21a   :  { %v3700_v12 = vpop.eup %3699 }
 0x21b   :  { %3703 = vrcp.f32 %v824_v10  ;;  %v830_v14 = vadd.f32 1.0, %v3700_v12  ;;  %v3702_v16 = vpop.eup %3701  ;;  %v5630_v10 = vld [vmem:[#allocation2 + $0x1d8] sm:$0xff]  ;;  %v5633_v12 = vld [vmem:[#allocation2 + $0x1c0] sm:$0xff] }
 0x21c   :  { %3705 = vtanh.f32 %v817_v8  ;;  %v837_v27 = vadd.f32 1.0, %v3702_v16  ;;  %v5627_v8 = vld [vmem:[#allocation2 + $0x1c8] sm:$0xff] }
 0x21d   :  { %3707 = vrcp.f32 %v830_v14  ;;  %v5636_v14 = vld [vmem:[#allocation2 + $0x1d0] sm:$0xff]  ;;  %v5639_v16 = vld [vmem:[#allocation2 + $0x1a8] sm:$0xff] }
 0x21e   :  { %3709 = vrcp.f32 %v837_v27  ;;  %v5654_v27 = vld [vmem:[#allocation2 + $0x198] sm:$0xff] }
 0x227   :  { %v911_v18 = vpop.f32.mrf.mxu0  ;;  %v982_v35 = vpop.f32.mrf.mxu1 }
 0x228   :  { %v3704_v20 = vpop.eup %3703  ;;  %v991_v23 = vrot.slane %v911_v18, 6  ;;  %v993_v56 = vrot.slane %v982_v35, 6  ;;  %v5642_v18 = vld [vmem:[#allocation2 + $0x1b8] sm:$0xff] }
 0x229   :  { %v3706_v25 = vpop.eup %3705  ;;  %v913_v63 = vpop.f32.mrf.mxu0  ;;  %v5666_v35 = vld [vmem:[#allocation2 + $0x178] sm:$0xff] }
 0x22a   :  { %v3708_v29 = vpop.eup %3707  ;;  %v999_v33 = vadd.f32 %v991_v23, %v9097_v31  ;;  %v992_v37 = vrot.slane %v913_v63, 6  ;;  %v841_v42 = vmul.f32 %v3706_v25, %v3704_v20  ;;  %v984_v52 = vpop.f32.mrf.mxu1  ;;  %v1001_v1 = vadd.f32 %v993_v56, %v5370_v55  ;;  %v5645_v20 = vld [vmem:[#allocation2 + $0x1a0] sm:$0xff]  ;;  %v5648_v23 = vld [vmem:[#allocation2 + $0x1b0] sm:$0xff]  ;;  %v5651_v25 = vld [vmem:[#allocation2 + $0x188] sm:$0xff] }
 0x22b   :  { %v840_v39 = vmul.f32 0.0, %v3708_v29  ;;  %v994_v53 = vrot.slane %v984_v52, 6  ;;  %v3710_v60 = vpop.eup %3709  ;;  %v5657_v63 = vld [vmem:[#allocation2 + $0x180] sm:$0xff]  ;;  %v5660_v29 = vld [vmem:[#allocation2 + $0x190] sm:$0xff]  ;;  %v5687_v52 = vld [vmem:[#allocation2 + $0x128] sm:$0xff] }
 0x22c   :  { %v3546_v45 = vmul.f32 -1.442695, %v999_v33  ;;  %v1000_v46 = vadd.f32 %v992_v37, %v5358_v51  ;;  %v5663_v33 = vld [vmem:[#allocation2 + $0x168] sm:$0xff]  ;;  %v5669_v37 = vld [vmem:[#allocation2 + $0x160] sm:$0xff]  ;;  %v5696_v56 = vld [vmem:[#allocation2 + $0x130] sm:$0xff] }
 0x22d   :  { %v5608_v48 = vadd.f32 %v841_v42, %v840_v39  ;;  %v1002_v54 = vadd.f32 %v994_v53, %v5372_v41  ;;  %v5672_v39 = vld [vmem:[#allocation2 + $0x170] sm:$0xff]  ;;  %v5675_v42 = vld [vmem:[#allocation2 + $0x148] sm:$0xff]  ;;  %v5690_v53 = vld [vmem:[#allocation2 + $0x138] sm:$0xff] }
 0x22e   :  { %3711 = vpow2.f32 %v3546_v45  ;;  %v3547_v50 = vmul.f32 -1.442695, %v1000_v46  ;;  %v5678_v45 = vld [vmem:[#allocation2 + $0x158] sm:$0xff]  ;;  %v5681_v46 = vld [vmem:[#allocation2 + $0x140] sm:$0xff] }
 0x22f   :  { %3713 = vtanh.f32 %v5608_v48  ;;  %v3548_v58 = vmul.f32 -1.442695, %v1002_v54  ;;  %v5693_v54 = vld [vmem:[#allocation2 + $0x120] sm:$0xff] }
 0x230   :  { %3715 = vpow2.f32 %v3547_v50  ;;  %v5684_v50 = vld [vmem:[#allocation2 + $0x150] sm:$0xff] }
 0x231   :  { %3717 = vpow2.f32 %v3548_v58  ;;  %v5699_v58 = vld [vmem:[#allocation2 + $0x108] sm:$0xff] }
 0x23b   :  { %v3712_v62 = vpop.eup %3711 }
 0x23c   :  { %v3714_v5 = vpop.eup %3713  ;;  %v1006_v7 = vadd.f32 1.0, %v3712_v62  ;;  %v5705_v62 = vld [vmem:[#allocation2 + $0x100] sm:$0xff] }
 0x23d   :  { %v3716_v9 = vpop.eup %3715  ;;  %v844_v11 = vmul.f32 %v3714_v5, %v3710_v60  ;;  %v5702_v60 = vld [vmem:[#allocation2 + $0x118] sm:$0xff]  ;;  %v5711_v5 = vld [vmem:[#allocation2 + $0xe8] sm:$0xff] }
 0x23e   :  { %3719 = vrcp.f32 %v1006_v7  ;;  %v1012_v13 = vadd.f32 1.0, %v3716_v9  ;;  %v3718_v24 = vpop.eup %3717  ;;  %v5714_v7 = vld [vmem:[#allocation2 + $0xf8] sm:$0xff]  ;;  %v5717_v9 = vld [vmem:[#allocation2 + $0xe0] sm:$0xff] }
 0x23f   :  { %3721 = vtanh.f32 %v1001_v1  ;;  %v1031_v19 = vrot.slane %v844_v11, 6  ;;  %v1019_v49 = vadd.f32 1.0, %v3718_v24  ;;  %v5708_v1 = vld [vmem:[#allocation2 + $0x110] sm:$0xff] }
 0x240   :  { %3723 = vrcp.f32 %v1012_v13  ;;  %v5720_v11 = vld [vmem:[#allocation2 + $0xf0] sm:$0xff]  ;;  %v5723_v13 = vld [vmem:[#allocation2 + $0xc8] sm:$0xff] }
 0x241   :  { %v1034_v21 = vrot.slane %v1031_v19, 2  ;;  %3725 = vrcp.f32 %v1019_v49  ;;  %v5726_v19 = vld [vmem:[#allocation2 + $0xd8] sm:$0xff]  ;;  %v5732_v24 = vld [vmem:[#allocation2 + $0xd0] sm:$0xff]  ;;  %v5747_v49 = vld [vmem:[#allocation2 + $0x88] sm:$0xff] }
 0x242   :  { %9101 = vst [vmem:[#allocation25_spill] sm:$0xff] %v5747_v49 }
 0x243   :  { %1101 = vmatprep.mubr.f32.mxu0 %v1034_v21  ;;  %1172 = vmatprep.mubr.f32.mxu1 %v1034_v21  ;;  %v5729_v21 = vld [vmem:[#allocation2 + $0xc0] sm:$0xff] }
 0x24b   :  { %v3720_v57 = vpop.eup %3719 }
 0x24c   :  { %v3722_v38 = vpop.eup %3721 }
 0x24d   :  { %v3724_v61 = vpop.eup %3723  ;;  %v1026_v40 = vmul.f32 %v3722_v38, %v3720_v57  ;;  %v5735_v57 = vld [vmem:[#allocation2 + $0xa8] sm:$0xff]  ;;  %v5738_v38 = vld [vmem:[#allocation2 + $0xb8] sm:$0xff] }
 0x24e   :  { %v1025_v30 = vmul.f32 %v3724_v61, %v1023_v44  ;;  %v3726_v59 = vpop.eup %3725  ;;  %9098 = vst [vmem:[#allocation14_spill] sm:$0xff] %v5738_v38  ;;  %v5741_v44 = vld [vmem:[#allocation2 + $0xa0] sm:$0xff]  ;;  %v5744_v61 = vld [vmem:[#allocation2 + $0xb0] sm:$0xff] }
 0x24f   :  { %9099 = vst [vmem:[#allocation24_spill] sm:$0xff] %v5741_v44  ;;  %9100 = vst [vmem:[#allocation15_spill] sm:$0xff] %v5744_v61 }
 0x250   :  { %v5614_v0 = vadd.f32 %v1026_v40, %v1025_v30  ;;  %v5750_v40 = vld [vmem:[#allocation2 + $0x98] sm:$0xff]  ;;  %v5753_v30 = vld [vmem:[#allocation2 + $0x80] sm:$0xff] }
 0x251   :  { %9102 = vst [vmem:[#allocation16_spill] sm:$0xff] %v5750_v40  ;;  %9103 = vst [vmem:[#allocation26_spill] sm:$0xff] %v5753_v30 }
 0x252   :  { %3727 = vtanh.f32 %v5614_v0 }
 0x25f   :  { %v3728_v47 = vpop.eup %3727 }
 0x260   :  { %v1029_v32 = vmul.f32 %v3728_v47, %v3726_v59  ;;  %v5756_v59 = vld [vmem:[#allocation2 + $0x90] sm:$0xff]  ;;  %v5759_v47 = vld [vmem:[#allocation2 + $0x68] sm:$0xff] }
 0x261   :  { %9104 = vst [vmem:[#allocation17_spill] sm:$0xff] %v5756_v59  ;;  %9105 = vst [vmem:[#allocation27_spill] sm:$0xff] %v5759_v47 }
 0x262   :  { %v5617_v4 = vrot.slane %v1029_v32, 2  ;;  %v5762_v32 = vld [vmem:[#allocation2 + $0x78] sm:$0xff] }
 0x263   :  { %9106 = vst [vmem:[#allocation18_spill] sm:$0xff] %v5762_v32 }
 0x264   :  { %1102 = vmatmul.mubr.f32.vlgmr.msra.gmra.mxu0 %v5617_v4  ;;  %1173 = vmatmul.mubr.f32.vlgmr.msra.gmra.mxu1 %v5617_v4 }
 0x265   :  { %1204 = vmatpush1.msra.mxu0 %v5621_v6  ;;  %1275 = vmatpush1.msra.mxu1 %v5624_v36 }
 0x266   :  { %1205 = vmatprep.subr.mxu0 %v5627_v8  ;;  %1276 = vmatprep.subr.mxu1 %v5630_v10 }
 0x267   :  { %1206 = vmatpush1.msra.mxu0 %v5633_v12  ;;  %1277 = vmatpush1.msra.mxu1 %v5636_v14 }
 0x268   :  { %1207 = vmatprep.subr.mxu0 %v5639_v16  ;;  %1278 = vmatprep.subr.mxu1 %v5642_v18 }
 0x269   :  { %1208 = vmatpush1.msra.mxu0 %v5645_v20  ;;  %1279 = vmatpush1.msra.mxu1 %v5648_v23 }
 0x26a   :  { %1209 = vmatprep.subr.mxu0 %v5651_v25  ;;  %1280 = vmatprep.subr.mxu1 %v5654_v27 }
 0x26b   :  { %1210 = vmatpush1.msra.mxu0 %v5657_v63  ;;  %1281 = vmatpush1.msra.mxu1 %v5660_v29 }
 0x26c   :  { %1211 = vmatprep.subr.mxu0 %v5663_v33  ;;  %1282 = vmatprep.subr.mxu1 %v5666_v35 }
 0x26d   :  { %1212 = vmatpush1.msra.mxu0 %v5669_v37  ;;  %1283 = vmatpush1.msra.mxu1 %v5672_v39 }
 0x26e   :  { %1213 = vmatprep.subr.mxu0 %v5675_v42  ;;  %1284 = vmatprep.subr.mxu1 %v5678_v45 }
 0x26f   :  { %1214 = vmatpush1.msra.mxu0 %v5681_v46  ;;  %1285 = vmatpush1.msra.mxu1 %v5684_v50 }
 0x270   :  { %1215 = vmatprep.subr.mxu0 %v5687_v52  ;;  %1286 = vmatprep.subr.mxu1 %v5690_v53 }
 0x271   :  { %1216 = vmatpush1.msra.mxu0 %v5693_v54  ;;  %1287 = vmatpush1.msra.mxu1 %v5696_v56 }
 0x272   :  { %1217 = vmatprep.subr.mxu0 %v5699_v58  ;;  %1288 = vmatprep.subr.mxu1 %v5702_v60 }
 0x273   :  { %1218 = vmatpush1.msra.mxu0 %v5705_v62  ;;  %1289 = vmatpush1.msra.mxu1 %v5708_v1 }
 0x274   :  { %1219 = vmatprep.subr.mxu0 %v5711_v5  ;;  %1290 = vmatprep.subr.mxu1 %v5714_v7 }
 0x275   :  { %1220 = vmatpush1.msra.mxu0 %v5717_v9  ;;  %1291 = vmatpush1.msra.mxu1 %v5720_v11 }
 0x276   :  { %1221 = vmatprep.subr.mxu0 %v5723_v13  ;;  %1292 = vmatprep.subr.mxu1 %v5726_v19 }
 0x277   :  { %1222 = vmatpush1.msra.mxu0 %v5729_v21  ;;  %1293 = vmatpush1.msra.mxu1 %v5732_v24 }
 0x278   :  { %1223 = vmatprep.subr.mxu0 %v5735_v57  ;;  %1294 = vmatprep.subr.mxu1 %v5738_v38 }
 0x279   :  { %1224 = vmatpush1.msra.mxu0 %v5741_v44  ;;  %1295 = vmatpush1.msra.mxu1 %v5744_v61 }
 0x27a   :  { %1225 = vmatprep.subr.mxu0 %v5747_v49  ;;  %1296 = vmatprep.subr.mxu1 %v5750_v40 }
 0x27b   :  { %1226 = vmatpush1.msra.mxu0 %v5753_v30  ;;  %1297 = vmatpush1.msra.mxu1 %v5756_v59  ;;  %v5771_v30 = vld [vmem:[#allocation2 + $0x48] sm:$0xff]  ;;  %v5774_v59 = vld [vmem:[#allocation2 + $0x58] sm:$0xff] }
 0x27c   :  { %1227 = vmatprep.subr.mxu0 %v5759_v47  ;;  %1298 = vmatprep.subr.mxu1 %v5762_v32  ;;  %9109 = vst [vmem:[#allocation29_spill] sm:$0xff] %v5771_v30  ;;  %9110 = vst [vmem:[#allocation20_spill] sm:$0xff] %v5774_v59  ;;  %v5777_v47 = vld [vmem:[#allocation2 + $0x40] sm:$0xff]  ;;  %v5780_v32 = vld [vmem:[#allocation2 + $0x50] sm:$0xff] }
 0x27d   :  { %1228 = vmatpush1.msra.mxu0 %v5765_v34  ;;  %1299 = vmatpush1.msra.mxu1 %v5768_v2  ;;  %9111 = vst [vmem:[#allocation30_spill] sm:$0xff] %v5777_v47  ;;  %9112 = vst [vmem:[#allocation21_spill] sm:$0xff] %v5780_v32  ;;  %v5783_v34 = vld [vmem:[#allocation2 + $0x28] sm:$0xff]  ;;  %v5786_v2 = vld [vmem:[#allocation2 + $0x38] sm:$0xff] }
 0x27e   :  { %1229 = vmatprep.subr.mxu0 %v5771_v30  ;;  %1300 = vmatprep.subr.mxu1 %v5774_v59  ;;  %9113 = vst [vmem:[#allocation31_spill] sm:$0xff] %v5783_v34  ;;  %9114 = vst [vmem:[#allocation32_spill] sm:$0xff] %v5786_v2  ;;  %v5789_v30 = vld [vmem:[#allocation2 + $0x20] sm:$0xff]  ;;  %v5792_v59 = vld [vmem:[#allocation2 + $0x30] sm:$0xff] }
 0x27f   :  { %1230 = vmatpush1.msra.mxu0 %v5777_v47  ;;  %1301 = vmatpush1.msra.mxu1 %v5780_v32  ;;  %9115 = vst [vmem:[#allocation33_spill] sm:$0xff] %v5789_v30  ;;  %9116 = vst [vmem:[#allocation34_spill] sm:$0xff] %v5792_v59  ;;  %v5795_v47 = vld [vmem:[#allocation2 + $0x8] sm:$0xff]  ;;  %v5798_v32 = vld [vmem:[#allocation2 + $0x18] sm:$0xff] }
 0x280   :  { %1231 = vmatprep.subr.mxu0 %v5783_v34  ;;  %1302 = vmatprep.subr.mxu1 %v5786_v2  ;;  %9117 = vst [vmem:[#allocation35_spill] sm:$0xff] %v5795_v47  ;;  %9118 = vst [vmem:[#allocation36_spill] sm:$0xff] %v5798_v32  ;;  %v5801_v34 = vld [vmem:[#allocation2] sm:$0xff]  ;;  %v5805_v2 = vld [vmem:[#allocation2 + $0x10] sm:$0xff] }
 0x281   :  { %1232 = vmatpush1.msra.mxu0 %v5789_v30  ;;  %1303 = vmatpush1.msra.mxu1 %v5792_v59  ;;  %9119 = vst [vmem:[#allocation37_spill] sm:$0xff] %v5801_v34  ;;  %9120 = vst [vmem:[#allocation38_spill] sm:$0xff] %v5805_v2  ;;  %v5820_v59 = vld [vmem:[#allocation5 + $0x1f0] sm:$0xff] }
 0x282   :  { %1233 = vmatprep.subr.mxu0 %v5795_v47  ;;  %1304 = vmatprep.subr.mxu1 %v5798_v32  ;;  %v5811_v47 = vld [vmem:[#allocation5 + $0x1e8] sm:$0xff]  ;;  %v5814_v32 = vld [vmem:[#allocation5 + $0x1f8] sm:$0xff]  ;;  %9124 = vst [vmem:[#allocation42_spill] sm:$0xff] %v5820_v59 }
 0x283   :  { %1234 = vmatpush1.msra.mxu0 %v5801_v34  ;;  %1267 = vmatprep.mubr.f32.mxu0 %v8959_v43  ;;  %9121 = vst [vmem:[#allocation39_spill] sm:$0xff] %v5811_v47  ;;  %9122 = vst [vmem:[#allocation40_spill] sm:$0xff] %v5814_v32  ;;  %v5817_v34 = vld [vmem:[#allocation5 + $0x1e0] sm:$0xff] }
 0x284   :  { %1305 = vmatpush1.msra.mxu1 %v5805_v2  ;;  %1338 = vmatprep.mubr.f32.mxu1 %v8959_v43  ;;  %9123 = vst [vmem:[#allocation41_spill] sm:$0xff] %v5817_v34  ;;  %v5823_v2 = vld [vmem:[#allocation5 + $0x1c8] sm:$0xff] }
 0x285   :  { %1268 = vmatmul.mubr.f32.vlgmr.msra.gmra.mxu0 %v5617_v4  ;;  %1339 = vmatmul.mubr.f32.vlgmr.msra.gmra.mxu1 %v5617_v4  ;;  %9125 = vst [vmem:[#allocation43_spill] sm:$0xff] %v5823_v2  ;;  %v5826_v4 = vld [vmem:[#allocation5 + $0x1d8] sm:$0xff] }
 0x286   :  { %1395 = vmatprep.subr.mxu0 %v5811_v47  ;;  %1466 = vmatprep.subr.mxu1 %v5814_v32  ;;  %9126 = vst [vmem:[#allocation44_spill] sm:$0xff] %v5826_v4  ;;  %v5829_v47 = vld [vmem:[#allocation5 + $0x1c0] sm:$0xff]  ;;  %v5832_v32 = vld [vmem:[#allocation5 + $0x1d0] sm:$0xff] }
 0x287   :  { %1396 = vmatpush1.msra.mxu0 %v5817_v34  ;;  %1467 = vmatpush1.msra.mxu1 %v5820_v59  ;;  %9127 = vst [vmem:[#allocation45_spill] sm:$0xff] %v5829_v47  ;;  %9128 = vst [vmem:[#allocation46_spill] sm:$0xff] %v5832_v32  ;;  %v5835_v34 = vld [vmem:[#allocation5 + $0x1a8] sm:$0xff]  ;;  %v5838_v59 = vld [vmem:[#allocation5 + $0x1b8] sm:$0xff] }
 0x288   :  { %1397 = vmatprep.subr.mxu0 %v5823_v2  ;;  %1468 = vmatprep.subr.mxu1 %v5826_v4  ;;  %9129 = vst [vmem:[#allocation47_spill] sm:$0xff] %v5835_v34  ;;  %9130 = vst [vmem:[#allocation48_spill] sm:$0xff] %v5838_v59  ;;  %v5841_v2 = vld [vmem:[#allocation5 + $0x1a0] sm:$0xff]  ;;  %v5844_v4 = vld [vmem:[#allocation5 + $0x1b0] sm:$0xff] }
 0x289   :  { %1398 = vmatpush1.msra.mxu0 %v5829_v47  ;;  %1469 = vmatpush1.msra.mxu1 %v5832_v32  ;;  %9131 = vst [vmem:[#allocation49_spill] sm:$0xff] %v5841_v2  ;;  %9132 = vst [vmem:[#allocation50_spill] sm:$0xff] %v5844_v4  ;;  %v5847_v47 = vld [vmem:[#allocation5 + $0x188] sm:$0xff]  ;;  %v5850_v32 = vld [vmem:[#allocation5 + $0x198] sm:$0xff] }
 0x28a   :  { %1399 = vmatprep.subr.mxu0 %v5835_v34  ;;  %1470 = vmatprep.subr.mxu1 %v5838_v59  ;;  %9133 = vst [vmem:[#allocation51_spill] sm:$0xff] %v5847_v47  ;;  %9134 = vst [vmem:[#allocation52_spill] sm:$0xff] %v5850_v32  ;;  %v5853_v34 = vld [vmem:[#allocation5 + $0x180] sm:$0xff]  ;;  %v5856_v59 = vld [vmem:[#allocation5 + $0x190] sm:$0xff] }
 0x28b   :  { %1400 = vmatpush1.msra.mxu0 %v5841_v2  ;;  %1471 = vmatpush1.msra.mxu1 %v5844_v4  ;;  %9135 = vst [vmem:[#allocation53_spill] sm:$0xff] %v5853_v34  ;;  %9136 = vst [vmem:[#allocation54_spill] sm:$0xff] %v5856_v59  ;;  %v5859_v2 = vld [vmem:[#allocation5 + $0x168] sm:$0xff]  ;;  %v5862_v4 = vld [vmem:[#allocation5 + $0x178] sm:$0xff] }
 0x28c   :  { %1401 = vmatprep.subr.mxu0 %v5847_v47  ;;  %1472 = vmatprep.subr.mxu1 %v5850_v32  ;;  %9137 = vst [vmem:[#allocation55_spill] sm:$0xff] %v5859_v2  ;;  %9138 = vst [vmem:[#allocation56_spill] sm:$0xff] %v5862_v4  ;;  %v5865_v47 = vld [vmem:[#allocation5 + $0x160] sm:$0xff]  ;;  %v5868_v32 = vld [vmem:[#allocation5 + $0x170] sm:$0xff] }
 0x28d   :  { %1402 = vmatpush1.msra.mxu0 %v5853_v34  ;;  %1473 = vmatpush1.msra.mxu1 %v5856_v59  ;;  %9139 = vst [vmem:[#allocation57_spill] sm:$0xff] %v5865_v47  ;;  %9140 = vst [vmem:[#allocation58_spill] sm:$0xff] %v5868_v32  ;;  %v5871_v34 = vld [vmem:[#allocation5 + $0x148] sm:$0xff]  ;;  %v5874_v59 = vld [vmem:[#allocation5 + $0x158] sm:$0xff] }
 0x28e   :  { %1403 = vmatprep.subr.mxu0 %v5859_v2  ;;  %1474 = vmatprep.subr.mxu1 %v5862_v4  ;;  %9141 = vst [vmem:[#allocation59_spill] sm:$0xff] %v5871_v34  ;;  %9142 = vst [vmem:[#allocation60_spill] sm:$0xff] %v5874_v59  ;;  %v5877_v2 = vld [vmem:[#allocation5 + $0x140] sm:$0xff]  ;;  %v5880_v4 = vld [vmem:[#allocation5 + $0x150] sm:$0xff] }
 0x28f   :  { %1404 = vmatpush1.msra.mxu0 %v5865_v47  ;;  %1475 = vmatpush1.msra.mxu1 %v5868_v32  ;;  %9143 = vst [vmem:[#allocation61_spill] sm:$0xff] %v5877_v2  ;;  %9144 = vst [vmem:[#allocation62_spill] sm:$0xff] %v5880_v4  ;;  %v5883_v47 = vld [vmem:[#allocation5 + $0x128] sm:$0xff]  ;;  %v5886_v32 = vld [vmem:[#allocation5 + $0x138] sm:$0xff] }
 0x290   :  { %1405 = vmatprep.subr.mxu0 %v5871_v34  ;;  %1476 = vmatprep.subr.mxu1 %v5874_v59  ;;  %9145 = vst [vmem:[#allocation63_spill] sm:$0xff] %v5883_v47  ;;  %9146 = vst [vmem:[#allocation64_spill] sm:$0xff] %v5886_v32  ;;  %v5889_v34 = vld [vmem:[#allocation5 + $0x120] sm:$0xff]  ;;  %v5892_v59 = vld [vmem:[#allocation5 + $0x130] sm:$0xff] }
 0x291   :  { %1406 = vmatpush1.msra.mxu0 %v5877_v2  ;;  %1477 = vmatpush1.msra.mxu1 %v5880_v4  ;;  %9147 = vst [vmem:[#allocation65_spill] sm:$0xff] %v5889_v34  ;;  %9148 = vst [vmem:[#allocation66_spill] sm:$0xff] %v5892_v59  ;;  %v5895_v2 = vld [vmem:[#allocation5 + $0x108] sm:$0xff]  ;;  %v5898_v4 = vld [vmem:[#allocation5 + $0x118] sm:$0xff] }
 0x292   :  { %1407 = vmatprep.subr.mxu0 %v5883_v47  ;;  %1478 = vmatprep.subr.mxu1 %v5886_v32  ;;  %9149 = vst [vmem:[#allocation67_spill] sm:$0xff] %v5895_v2  ;;  %9150 = vst [vmem:[#allocation68_spill] sm:$0xff] %v5898_v4  ;;  %v5901_v47 = vld [vmem:[#allocation5 + $0x100] sm:$0xff]  ;;  %v5904_v32 = vld [vmem:[#allocation5 + $0x110] sm:$0xff] }
 0x293   :  { %1408 = vmatpush1.msra.mxu0 %v5889_v34  ;;  %1479 = vmatpush1.msra.mxu1 %v5892_v59  ;;  %9151 = vst [vmem:[#allocation69_spill] sm:$0xff] %v5901_v47  ;;  %9152 = vst [vmem:[#allocation70_spill] sm:$0xff] %v5904_v32  ;;  %v5907_v34 = vld [vmem:[#allocation5 + $0xe8] sm:$0xff]  ;;  %v5910_v59 = vld [vmem:[#allocation5 + $0xf8] sm:$0xff] }
 0x294   :  { %1409 = vmatprep.subr.mxu0 %v5895_v2  ;;  %1480 = vmatprep.subr.mxu1 %v5898_v4  ;;  %9153 = vst [vmem:[#allocation71_spill] sm:$0xff] %v5907_v34  ;;  %9154 = vst [vmem:[#allocation72_spill] sm:$0xff] %v5910_v59  ;;  %v5913_v2 = vld [vmem:[#allocation5 + $0xe0] sm:$0xff]  ;;  %v5916_v4 = vld [vmem:[#allocation5 + $0xf0] sm:$0xff] }
 0x295   :  { %1410 = vmatpush1.msra.mxu0 %v5901_v47  ;;  %1481 = vmatpush1.msra.mxu1 %v5904_v32  ;;  %9155 = vst [vmem:[#allocation73_spill] sm:$0xff] %v5913_v2  ;;  %9156 = vst [vmem:[#allocation74_spill] sm:$0xff] %v5916_v4  ;;  %v5919_v47 = vld [vmem:[#allocation5 + $0xc8] sm:$0xff]  ;;  %v5922_v32 = vld [vmem:[#allocation5 + $0xd8] sm:$0xff] }
 0x296   :  { %1411 = vmatprep.subr.mxu0 %v5907_v34  ;;  %1482 = vmatprep.subr.mxu1 %v5910_v59  ;;  %9157 = vst [vmem:[#allocation75_spill] sm:$0xff] %v5919_v47  ;;  %9158 = vst [vmem:[#allocation76_spill] sm:$0xff] %v5922_v32  ;;  %v5925_v34 = vld [vmem:[#allocation5 + $0xc0] sm:$0xff]  ;;  %v5928_v59 = vld [vmem:[#allocation5 + $0xd0] sm:$0xff] }
 0x297   :  { %1412 = vmatpush1.msra.mxu0 %v5913_v2  ;;  %1483 = vmatpush1.msra.mxu1 %v5916_v4  ;;  %9159 = vst [vmem:[#allocation77_spill] sm:$0xff] %v5925_v34  ;;  %9160 = vst [vmem:[#allocation78_spill] sm:$0xff] %v5928_v59  ;;  %v5931_v2 = vld [vmem:[#allocation5 + $0xa8] sm:$0xff]  ;;  %v5934_v4 = vld [vmem:[#allocation5 + $0xb8] sm:$0xff] }
 0x298   :  { %1413 = vmatprep.subr.mxu0 %v5919_v47  ;;  %1484 = vmatprep.subr.mxu1 %v5922_v32  ;;  %9161 = vst [vmem:[#allocation79_spill] sm:$0xff] %v5931_v2  ;;  %9162 = vst [vmem:[#allocation80_spill] sm:$0xff] %v5934_v4  ;;  %v5937_v47 = vld [vmem:[#allocation5 + $0xa0] sm:$0xff]  ;;  %v5940_v32 = vld [vmem:[#allocation5 + $0xb0] sm:$0xff] }
 0x299   :  { %1414 = vmatpush1.msra.mxu0 %v5925_v34  ;;  %1485 = vmatpush1.msra.mxu1 %v5928_v59  ;;  %9163 = vst [vmem:[#allocation81_spill] sm:$0xff] %v5937_v47  ;;  %9164 = vst [vmem:[#allocation82_spill] sm:$0xff] %v5940_v32  ;;  %v5943_v34 = vld [vmem:[#allocation5 + $0x88] sm:$0xff]  ;;  %v5946_v59 = vld [vmem:[#allocation5 + $0x98] sm:$0xff] }
 0x29a   :  { %1415 = vmatprep.subr.mxu0 %v5931_v2  ;;  %1486 = vmatprep.subr.mxu1 %v5934_v4  ;;  %9165 = vst [vmem:[#allocation83_spill] sm:$0xff] %v5943_v34  ;;  %9166 = vst [vmem:[#allocation84_spill] sm:$0xff] %v5946_v59  ;;  %v5949_v2 = vld [vmem:[#allocation5 + $0x80] sm:$0xff]  ;;  %v5952_v4 = vld [vmem:[#allocation5 + $0x90] sm:$0xff] }
 0x29b   :  { %1416 = vmatpush1.msra.mxu0 %v5937_v47  ;;  %1487 = vmatpush1.msra.mxu1 %v5940_v32  ;;  %9167 = vst [vmem:[#allocation85_spill] sm:$0xff] %v5949_v2  ;;  %9168 = vst [vmem:[#allocation86_spill] sm:$0xff] %v5952_v4  ;;  %v5955_v47 = vld [vmem:[#allocation5 + $0x68] sm:$0xff]  ;;  %v5958_v32 = vld [vmem:[#allocation5 + $0x78] sm:$0xff] }
 0x29c   :  { %1417 = vmatprep.subr.mxu0 %v5943_v34  ;;  %1488 = vmatprep.subr.mxu1 %v5946_v59  ;;  %9169 = vst [vmem:[#allocation87_spill] sm:$0xff] %v5955_v47  ;;  %9170 = vst [vmem:[#allocation88_spill] sm:$0xff] %v5958_v32  ;;  %v5961_v34 = vld [vmem:[#allocation5 + $0x60] sm:$0xff]  ;;  %v5964_v59 = vld [vmem:[#allocation5 + $0x70] sm:$0xff] }
 0x29d   :  { %1418 = vmatpush1.msra.mxu0 %v5949_v2  ;;  %1489 = vmatpush1.msra.mxu1 %v5952_v4  ;;  %9171 = vst [vmem:[#allocation89_spill] sm:$0xff] %v5961_v34  ;;  %9172 = vst [vmem:[#allocation90_spill] sm:$0xff] %v5964_v59  ;;  %v5967_v2 = vld [vmem:[#allocation5 + $0x48] sm:$0xff]  ;;  %v5970_v4 = vld [vmem:[#allocation5 + $0x58] sm:$0xff] }
 0x29e   :  { %1419 = vmatprep.subr.mxu0 %v5955_v47  ;;  %1490 = vmatprep.subr.mxu1 %v5958_v32  ;;  %9173 = vst [vmem:[#allocation91_spill] sm:$0xff] %v5967_v2  ;;  %9174 = vst [vmem:[#allocation92_spill] sm:$0xff] %v5970_v4  ;;  %v5973_v47 = vld [vmem:[#allocation5 + $0x40] sm:$0xff]  ;;  %v5976_v32 = vld [vmem:[#allocation5 + $0x50] sm:$0xff] }
 0x29f   :  { %1420 = vmatpush1.msra.mxu0 %v5961_v34  ;;  %1491 = vmatpush1.msra.mxu1 %v5964_v59  ;;  %9175 = vst [vmem:[#allocation93_spill] sm:$0xff] %v5973_v47  ;;  %9176 = vst [vmem:[#allocation94_spill] sm:$0xff] %v5976_v32  ;;  %v5979_v34 = vld [vmem:[#allocation5 + $0x28] sm:$0xff]  ;;  %v5982_v59 = vld [vmem:[#allocation5 + $0x38] sm:$0xff] }
 0x2a0   :  { %1421 = vmatprep.subr.mxu0 %v5967_v2  ;;  %1492 = vmatprep.subr.mxu1 %v5970_v4  ;;  %9177 = vst [vmem:[#allocation95_spill] sm:$0xff] %v5979_v34  ;;  %9178 = vst [vmem:[#allocation96_spill] sm:$0xff] %v5982_v59  ;;  %v5985_v2 = vld [vmem:[#allocation5 + $0x20] sm:$0xff]  ;;  %v5988_v4 = vld [vmem:[#allocation5 + $0x30] sm:$0xff] }
 0x2a1   :  { %1422 = vmatpush1.msra.mxu0 %v5973_v47  ;;  %1493 = vmatpush1.msra.mxu1 %v5976_v32  ;;  %9179 = vst [vmem:[#allocation97_spill] sm:$0xff] %v5985_v2  ;;  %9180 = vst [vmem:[#allocation98_spill] sm:$0xff] %v5988_v4  ;;  %v5991_v47 = vld [vmem:[#allocation5 + $0x8] sm:$0xff]  ;;  %v5994_v32 = vld [vmem:[#allocation5 + $0x18] sm:$0xff] }
 0x2a2   :  { %1423 = vmatprep.subr.mxu0 %v5979_v34  ;;  %1494 = vmatprep.subr.mxu1 %v5982_v59  ;;  %9181 = vst [vmem:[#allocation99_spill] sm:$0xff] %v5991_v47  ;;  %9182 = vst [vmem:[#allocation100_spill] sm:$0xff] %v5994_v32  ;;  %v5997_v34 = vld [vmem:[#allocation5] sm:$0xff]  ;;  %v6000_v59 = vld [vmem:[#allocation5 + $0x10] sm:$0xff] }
 0x2a3   :  { %1424 = vmatpush1.msra.mxu0 %v5985_v2  ;;  %1495 = vmatpush1.msra.mxu1 %v5988_v4  ;;  %9183 = vst [vmem:[#allocation101_spill] sm:$0xff] %v5997_v34  ;;  %9184 = vst [vmem:[#allocation102_spill] sm:$0xff] %v6000_v59  ;;  %v6003_v2 = vld [vmem:[#allocation5 + $0x3e8] sm:$0xff]  ;;  %v6006_v4 = vld [vmem:[#allocation5 + $0x3f8] sm:$0xff] }
 0x2a4   :  { %1425 = vmatprep.subr.mxu0 %v5991_v47  ;;  %1496 = vmatprep.subr.mxu1 %v5994_v32  ;;  %9185 = vst [vmem:[#allocation103_spill] sm:$0xff] %v6003_v2  ;;  %9186 = vst [vmem:[#allocation104_spill] sm:$0xff] %v6006_v4  ;;  %v6009_v47 = vld [vmem:[#allocation5 + $0x3e0] sm:$0xff]  ;;  %v6012_v32 = vld [vmem:[#allocation5 + $0x3f0] sm:$0xff] }
 0x2a5   :  { %1426 = vmatpush1.msra.mxu0 %v5997_v34  ;;  %1497 = vmatpush1.msra.mxu1 %v6000_v59  ;;  %9187 = vst [vmem:[#allocation105_spill] sm:$0xff] %v6009_v47  ;;  %9188 = vst [vmem:[#allocation106_spill] sm:$0xff] %v6012_v32  ;;  %v6015_v34 = vld [vmem:[#allocation5 + $0x3c8] sm:$0xff]  ;;  %v6018_v59 = vld [vmem:[#allocation5 + $0x3d8] sm:$0xff] }
 0x2a6   :  { %1427 = vmatprep.subr.mxu0 %v6003_v2  ;;  %1498 = vmatprep.subr.mxu1 %v6006_v4  ;;  %9189 = vst [vmem:[#allocation107_spill] sm:$0xff] %v6015_v34  ;;  %9190 = vst [vmem:[#allocation108_spill] sm:$0xff] %v6018_v59  ;;  %v6021_v2 = vld [vmem:[#allocation5 + $0x3c0] sm:$0xff]  ;;  %v6024_v4 = vld [vmem:[#allocation5 + $0x3d0] sm:$0xff] }
 0x2a7   :  { %1428 = vmatpush2.msra.mxu0 %v6009_v47  ;;  %1499 = vmatpush2.msra.mxu1 %v6012_v32  ;;  %9191 = vst [vmem:[#allocation109_spill] sm:$0xff] %v6021_v2  ;;  %9192 = vst [vmem:[#allocation110_spill] sm:$0xff] %v6024_v4  ;;  %v6027_v47 = vld [vmem:[#allocation5 + $0x3a8] sm:$0xff]  ;;  %v6030_v32 = vld [vmem:[#allocation5 + $0x3b8] sm:$0xff] }
 0x2a8   :  { %1429 = vmatprep.subr.mxu0 %v6015_v34  ;;  %1500 = vmatprep.subr.mxu1 %v6018_v59  ;;  %9193 = vst [vmem:[#allocation111_spill] sm:$0xff] %v6027_v47  ;;  %9194 = vst [vmem:[#allocation112_spill] sm:$0xff] %v6030_v32  ;;  %v6033_v34 = vld [vmem:[#allocation5 + $0x3a0] sm:$0xff]  ;;  %v6036_v59 = vld [vmem:[#allocation5 + $0x3b0] sm:$0xff] }
 0x2a9   :  { %1430 = vmatpush2.msra.mxu0 %v6021_v2  ;;  %1501 = vmatpush2.msra.mxu1 %v6024_v4  ;;  %9195 = vst [vmem:[#allocation113_spill] sm:$0xff] %v6033_v34  ;;  %9196 = vst [vmem:[#allocation114_spill] sm:$0xff] %v6036_v59  ;;  %v6039_v2 = vld [vmem:[#allocation5 + $0x388] sm:$0xff]  ;;  %v6042_v4 = vld [vmem:[#allocation5 + $0x398] sm:$0xff] }
 0x2aa   :  { %1431 = vmatprep.subr.mxu0 %v6027_v47  ;;  %1502 = vmatprep.subr.mxu1 %v6030_v32  ;;  %9197 = vst [vmem:[#allocation115_spill] sm:$0xff] %v6039_v2  ;;  %9198 = vst [vmem:[#allocation116_spill] sm:$0xff] %v6042_v4  ;;  %v6045_v47 = vld [vmem:[#allocation5 + $0x380] sm:$0xff]  ;;  %v6048_v32 = vld [vmem:[#allocation5 + $0x390] sm:$0xff] }
 0x2ab   :  { %1432 = vmatpush2.msra.mxu0 %v6033_v34  ;;  %1503 = vmatpush2.msra.mxu1 %v6036_v59  ;;  %9199 = vst [vmem:[#allocation117_spill] sm:$0xff] %v6045_v47  ;;  %9200 = vst [vmem:[#allocation118_spill] sm:$0xff] %v6048_v32  ;;  %v6051_v34 = vld [vmem:[#allocation5 + $0x368] sm:$0xff]  ;;  %v6054_v59 = vld [vmem:[#allocation5 + $0x378] sm:$0xff] }
 0x2ac   :  { %1433 = vmatprep.subr.mxu0 %v6039_v2  ;;  %1504 = vmatprep.subr.mxu1 %v6042_v4  ;;  %9201 = vst [vmem:[#allocation119_spill] sm:$0xff] %v6051_v34  ;;  %9202 = vst [vmem:[#allocation120_spill] sm:$0xff] %v6054_v59  ;;  %v6057_v2 = vld [vmem:[#allocation5 + $0x360] sm:$0xff]  ;;  %v6060_v4 = vld [vmem:[#allocation5 + $0x370] sm:$0xff] }
 0x2ad   :  { %1434 = vmatpush2.msra.mxu0 %v6045_v47  ;;  %1505 = vmatpush2.msra.mxu1 %v6048_v32  ;;  %9203 = vst [vmem:[#allocation121_spill] sm:$0xff] %v6057_v2  ;;  %9204 = vst [vmem:[#allocation122_spill] sm:$0xff] %v6060_v4  ;;  %v6063_v47 = vld [vmem:[#allocation5 + $0x348] sm:$0xff]  ;;  %v6066_v32 = vld [vmem:[#allocation5 + $0x358] sm:$0xff] }
 0x2ae   :  { %1435 = vmatprep.subr.mxu0 %v6051_v34  ;;  %1506 = vmatprep.subr.mxu1 %v6054_v59  ;;  %9205 = vst [vmem:[#allocation123_spill] sm:$0xff] %v6063_v47  ;;  %9206 = vst [vmem:[#allocation124_spill] sm:$0xff] %v6066_v32  ;;  %v6069_v34 = vld [vmem:[#allocation5 + $0x340] sm:$0xff]  ;;  %v6072_v59 = vld [vmem:[#allocation5 + $0x350] sm:$0xff] }
 0x2af   :  { %1436 = vmatpush2.msra.mxu0 %v6057_v2  ;;  %1507 = vmatpush2.msra.mxu1 %v6060_v4  ;;  %9207 = vst [vmem:[#allocation125_spill] sm:$0xff] %v6069_v34  ;;  %9208 = vst [vmem:[#allocation126_spill] sm:$0xff] %v6072_v59  ;;  %v6075_v2 = vld [vmem:[#allocation5 + $0x328] sm:$0xff]  ;;  %v6078_v4 = vld [vmem:[#allocation5 + $0x338] sm:$0xff] }
 0x2b0   :  { %1437 = vmatprep.subr.mxu0 %v6063_v47  ;;  %1508 = vmatprep.subr.mxu1 %v6066_v32  ;;  %9209 = vst [vmem:[#allocation127_spill] sm:$0xff] %v6075_v2  ;;  %9210 = vst [vmem:[#allocation128_spill] sm:$0xff] %v6078_v4  ;;  %v6081_v47 = vld [vmem:[#allocation5 + $0x320] sm:$0xff]  ;;  %v6084_v32 = vld [vmem:[#allocation5 + $0x330] sm:$0xff] }
 0x2b1   :  { %1438 = vmatpush2.msra.mxu0 %v6069_v34  ;;  %1509 = vmatpush2.msra.mxu1 %v6072_v59  ;;  %9211 = vst [vmem:[#allocation129_spill] sm:$0xff] %v6081_v47  ;;  %9212 = vst [vmem:[#allocation130_spill] sm:$0xff] %v6084_v32  ;;  %v6087_v34 = vld [vmem:[#allocation5 + $0x308] sm:$0xff]  ;;  %v6090_v59 = vld [vmem:[#allocation5 + $0x318] sm:$0xff] }
 0x2b2   :  { %1439 = vmatprep.subr.mxu0 %v6075_v2  ;;  %1510 = vmatprep.subr.mxu1 %v6078_v4  ;;  %9213 = vst [vmem:[#allocation131_spill] sm:$0xff] %v6087_v34  ;;  %9214 = vst [vmem:[#allocation132_spill] sm:$0xff] %v6090_v59  ;;  %v6093_v2 = vld [vmem:[#allocation5 + $0x300] sm:$0xff]  ;;  %v6096_v4 = vld [vmem:[#allocation5 + $0x310] sm:$0xff] }
 0x2b3   :  { %1440 = vmatpush2.msra.mxu0 %v6081_v47  ;;  %1511 = vmatpush2.msra.mxu1 %v6084_v32  ;;  %9215 = vst [vmem:[#allocation133_spill] sm:$0xff] %v6093_v2  ;;  %9216 = vst [vmem:[#allocation134_spill] sm:$0xff] %v6096_v4  ;;  %v6099_v47 = vld [vmem:[#allocation5 + $0x2e8] sm:$0xff]  ;;  %v6102_v32 = vld [vmem:[#allocation5 + $0x2f8] sm:$0xff] }
 0x2b4   :  { %1441 = vmatprep.subr.mxu0 %v6087_v34  ;;  %1512 = vmatprep.subr.mxu1 %v6090_v59  ;;  %9217 = vst [vmem:[#allocation135_spill] sm:$0xff] %v6099_v47  ;;  %9218 = vst [vmem:[#allocation136_spill] sm:$0xff] %v6102_v32  ;;  %v6105_v34 = vld [vmem:[#allocation5 + $0x2e0] sm:$0xff]  ;;  %v6108_v59 = vld [vmem:[#allocation5 + $0x2f0] sm:$0xff] }
 0x2b5   :  { %1442 = vmatpush2.msra.mxu0 %v6093_v2  ;;  %1513 = vmatpush2.msra.mxu1 %v6096_v4  ;;  %9219 = vst [vmem:[#allocation137_spill] sm:$0xff] %v6105_v34  ;;  %9220 = vst [vmem:[#allocation138_spill] sm:$0xff] %v6108_v59  ;;  %v6111_v2 = vld [vmem:[#allocation5 + $0x2c8] sm:$0xff]  ;;  %v6114_v4 = vld [vmem:[#allocation5 + $0x2d8] sm:$0xff] }
 0x2b6   :  { %1443 = vmatprep.subr.mxu0 %v6099_v47  ;;  %1514 = vmatprep.subr.mxu1 %v6102_v32  ;;  %9221 = vst [vmem:[#allocation139_spill] sm:$0xff] %v6111_v2  ;;  %9222 = vst [vmem:[#allocation140_spill] sm:$0xff] %v6114_v4  ;;  %v6117_v47 = vld [vmem:[#allocation5 + $0x2c0] sm:$0xff]  ;;  %v6120_v32 = vld [vmem:[#allocation5 + $0x2d0] sm:$0xff] }
 0x2b7   :  { %1444 = vmatpush2.msra.mxu0 %v6105_v34  ;;  %1515 = vmatpush2.msra.mxu1 %v6108_v59  ;;  %9223 = vst [vmem:[#allocation141_spill] sm:$0xff] %v6117_v47  ;;  %9224 = vst [vmem:[#allocation142_spill] sm:$0xff] %v6120_v32  ;;  %v6123_v34 = vld [vmem:[#allocation5 + $0x2a8] sm:$0xff]  ;;  %v6126_v59 = vld [vmem:[#allocation5 + $0x2b8] sm:$0xff] }
 0x2b8   :  { %1445 = vmatprep.subr.mxu0 %v6111_v2  ;;  %1516 = vmatprep.subr.mxu1 %v6114_v4  ;;  %9225 = vst [vmem:[#allocation143_spill] sm:$0xff] %v6123_v34  ;;  %9226 = vst [vmem:[#allocation144_spill] sm:$0xff] %v6126_v59  ;;  %v6129_v2 = vld [vmem:[#allocation5 + $0x2a0] sm:$0xff]  ;;  %v6132_v4 = vld [vmem:[#allocation5 + $0x2b0] sm:$0xff] }
 0x2b9   :  { %1446 = vmatpush2.msra.mxu0 %v6117_v47  ;;  %1517 = vmatpush2.msra.mxu1 %v6120_v32  ;;  %9227 = vst [vmem:[#allocation145_spill] sm:$0xff] %v6129_v2  ;;  %9228 = vst [vmem:[#allocation146_spill] sm:$0xff] %v6132_v4  ;;  %v6135_v47 = vld [vmem:[#allocation5 + $0x288] sm:$0xff]  ;;  %v6138_v32 = vld [vmem:[#allocation5 + $0x298] sm:$0xff] }
 0x2ba   :  { %1447 = vmatprep.subr.mxu0 %v6123_v34  ;;  %1518 = vmatprep.subr.mxu1 %v6126_v59  ;;  %9229 = vst [vmem:[#allocation147_spill] sm:$0xff] %v6135_v47  ;;  %9230 = vst [vmem:[#allocation148_spill] sm:$0xff] %v6138_v32  ;;  %v6141_v34 = vld [vmem:[#allocation5 + $0x280] sm:$0xff]  ;;  %v6144_v59 = vld [vmem:[#allocation5 + $0x290] sm:$0xff] }
 0x2bb   :  { %1448 = vmatpush2.msra.mxu0 %v6129_v2  ;;  %1519 = vmatpush2.msra.mxu1 %v6132_v4  ;;  %9231 = vst [vmem:[#allocation149_spill] sm:$0xff] %v6141_v34  ;;  %9232 = vst [vmem:[#allocation150_spill] sm:$0xff] %v6144_v59  ;;  %v6147_v2 = vld [vmem:[#allocation5 + $0x268] sm:$0xff]  ;;  %v6150_v4 = vld [vmem:[#allocation5 + $0x278] sm:$0xff] }
 0x2bc   :  { %1449 = vmatprep.subr.mxu0 %v6135_v47  ;;  %1520 = vmatprep.subr.mxu1 %v6138_v32  ;;  %9233 = vst [vmem:[#allocation151_spill] sm:$0xff] %v6147_v2  ;;  %9234 = vst [vmem:[#allocation152_spill] sm:$0xff] %v6150_v4  ;;  %v6153_v47 = vld [vmem:[#allocation5 + $0x260] sm:$0xff]  ;;  %v6156_v32 = vld [vmem:[#allocation5 + $0x270] sm:$0xff] }
 0x2bd   :  { %1450 = vmatpush2.msra.mxu0 %v6141_v34  ;;  %1521 = vmatpush2.msra.mxu1 %v6144_v59  ;;  %9235 = vst [vmem:[#allocation153_spill] sm:$0xff] %v6153_v47  ;;  %9236 = vst [vmem:[#allocation154_spill] sm:$0xff] %v6156_v32  ;;  %v6159_v34 = vld [vmem:[#allocation5 + $0x248] sm:$0xff]  ;;  %v6162_v59 = vld [vmem:[#allocation5 + $0x258] sm:$0xff] }
 0x2be   :  { %1451 = vmatprep.subr.mxu0 %v6147_v2  ;;  %1522 = vmatprep.subr.mxu1 %v6150_v4  ;;  %9237 = vst [vmem:[#allocation155_spill] sm:$0xff] %v6159_v34  ;;  %9238 = vst [vmem:[#allocation156_spill] sm:$0xff] %v6162_v59  ;;  %v6165_v2 = vld [vmem:[#allocation5 + $0x240] sm:$0xff]  ;;  %v6168_v4 = vld [vmem:[#allocation5 + $0x250] sm:$0xff] }
 0x2bf   :  { %1452 = vmatpush2.msra.mxu0 %v6153_v47  ;;  %1523 = vmatpush2.msra.mxu1 %v6156_v32  ;;  %9239 = vst [vmem:[#allocation157_spill] sm:$0xff] %v6165_v2  ;;  %9240 = vst [vmem:[#allocation158_spill] sm:$0xff] %v6168_v4  ;;  %v6171_v47 = vld [vmem:[#allocation5 + $0x228] sm:$0xff]  ;;  %v6174_v32 = vld [vmem:[#allocation5 + $0x238] sm:$0xff] }
 0x2c0   :  { %1453 = vmatprep.subr.mxu0 %v6159_v34  ;;  %1524 = vmatprep.subr.mxu1 %v6162_v59  ;;  %9241 = vst [vmem:[#allocation159_spill] sm:$0xff] %v6171_v47  ;;  %9242 = vst [vmem:[#allocation162_spill] sm:$0xff] %v6174_v32  ;;  %v6177_v34 = vld [vmem:[#allocation5 + $0x220] sm:$0xff]  ;;  %v6180_v59 = vld [vmem:[#allocation5 + $0x230] sm:$0xff] }
 0x2c1   :  { %1454 = vmatpush2.msra.mxu0 %v6165_v2  ;;  %1525 = vmatpush2.msra.mxu1 %v6168_v4  ;;  %9243 = vst [vmem:[#allocation166_spill] sm:$0xff] %v6177_v34  ;;  %9244 = vst [vmem:[#allocation167_spill] sm:$0xff] %v6180_v59  ;;  %v6183_v2 = vld [vmem:[#allocation5 + $0x208] sm:$0xff]  ;;  %v6186_v4 = vld [vmem:[#allocation5 + $0x218] sm:$0xff] }
 0x2c2   :  { %1455 = vmatprep.subr.mxu0 %v6171_v47  ;;  %1526 = vmatprep.subr.mxu1 %v6174_v32  ;;  %9245 = vst [vmem:[#allocation168_spill] sm:$0xff] %v6183_v2  ;;  %9246 = vst [vmem:[#allocation169_spill] sm:$0xff] %v6186_v4  ;;  %v6189_v47 = vld [vmem:[#allocation5 + $0x200] sm:$0xff]  ;;  %v6192_v32 = vld [vmem:[#allocation5 + $0x210] sm:$0xff] }
 0x2c3   :  { %1456 = vmatpush2.msra.mxu0 %v6177_v34  ;;  %1527 = vmatpush2.msra.mxu1 %v6180_v59  ;;  %9247 = vst [vmem:[#allocation170_spill] sm:$0xff] %v6189_v47  ;;  %9248 = vst [vmem:[#allocation171_spill] sm:$0xff] %v6192_v32 }
 0x2c4   :  { %1457 = vmatprep.subr.mxu0 %v6183_v2  ;;  %1528 = vmatprep.subr.mxu1 %v6186_v4 }
 0x2c5   :  { %1458 = vmatpush2.msra.mxu0 %v6189_v47  ;;  %1529 = vmatpush2.msra.mxu1 %v6192_v32 }
 0x2c6   :  { %1561 = vmatprep.subr.mxu0 %v5577_v15  ;;  %1632 = vmatprep.subr.mxu1 %v5580_v17 }
 0x324   :  { %v1103_v59 = vpop.f32.mrf.mxu0  ;;  %v1174_v4 = vpop.f32.mrf.mxu1 }
 0x325   :  { %v1104_v34 = vadd.f32 %v1103_v59, %v5588_v22  ;;  %v1175_v15 = vadd.f32 %v1174_v4, %v5603_v3 }
 0x326   :  { %v1105_v2 = vpop.f32.mrf.mxu0  ;;  %v1176_v47 = vpop.f32.mrf.mxu1 }
 0x327   :  { %v3549_v43 = vmul.f32 -1.442695, %v1104_v34  ;;  %v1106_v30 = vadd.f32 %v1105_v2, %v5592_v28  ;;  %v1177_v49 = vadd.f32 %v1176_v47, %v5598_v26 }
 0x329   :  { %3729 = vpow2.f32 %v3549_v43  ;;  %v3550_v40 = vmul.f32 -1.442695, %v1106_v30  ;;  %v3551_v61 = vmul.f32 -1.442695, %v1177_v49 }
 0x32b   :  { %3731 = vpow2.f32 %v3550_v40 }
 0x32c   :  { %3733 = vpow2.f32 %v3551_v61 }
 0x336   :  { %v3730_v32 = vpop.eup %3729 }
 0x337   :  { %v1182_v44 = vadd.f32 1.0, %v3730_v32 }
 0x338   :  { %v3732_v17 = vpop.eup %3731 }
 0x339   :  { %3735 = vrcp.f32 %v1182_v44  ;;  %v1188_v59 = vadd.f32 1.0, %v3732_v17  ;;  %v3734_v34 = vpop.eup %3733 }
 0x33a   :  { %3737 = vtanh.f32 %v1175_v15  ;;  %v1195_v40 = vadd.f32 1.0, %v3734_v34 }
 0x33b   :  { %3739 = vrcp.f32 %v1188_v59 }
 0x33c   :  { %3741 = vrcp.f32 %v1195_v40 }
 0x345   :  { %v1269_v2 = vpop.f32.mrf.mxu0  ;;  %v1340_v47 = vpop.f32.mrf.mxu1 }
 0x346   :  { %v3736_v28 = vpop.eup %3735  ;;  %v1349_v43 = vrot.slane %v1269_v2, 4 }
 0x347   :  { %v3738_v30 = vpop.eup %3737  ;;  %v1271_v22 = vpop.f32.mrf.mxu0 }
 0x348   :  { %v3740_v38 = vpop.eup %3739  ;;  %v1357_v49 = vadd.f32 %v1349_v43, %v9097_v31  ;;  %v1350_v26 = vrot.slane %v1271_v22, 4  ;;  %v1199_v4 = vmul.f32 %v3738_v30, %v3736_v28  ;;  %v1342_v59 = vpop.f32.mrf.mxu1  ;;  %v1351_v43 = vrot.slane %v1340_v47, 4 }
 0x349   :  { %v1198_v61 = vmul.f32 %v3740_v38, %v5608_v48  ;;  %v1352_v34 = vrot.slane %v1342_v59, 4  ;;  %v3742_v28 = vpop.eup %3741  ;;  %v1381_v59 = vrot.slane %v5614_v0, 6  ;;  %v9249_v0 = vld [vmem:[#allocation14_spill] sm:$0xff] }
 0x34a   :  { %v3552_v32 = vmul.f32 -1.442695, %v1357_v49  ;;  %v1358_v44 = vadd.f32 %v1350_v26, %v5358_v51  ;;  %v1359_v48 = vadd.f32 %v1351_v43, %v5370_v55 }
 0x34b   :  { %v6204_v15 = vadd.f32 %v1199_v4, %v1198_v61  ;;  %v1360_v2 = vadd.f32 %v1352_v34, %v5372_v41 }
 0x34c   :  { %3743 = vpow2.f32 %v3552_v32  ;;  %v3553_v17 = vmul.f32 -1.442695, %v1358_v44 }
 0x34d   :  { %3745 = vtanh.f32 %v6204_v15  ;;  %v3554_v22 = vmul.f32 -1.442695, %v1360_v2 }
 0x34e   :  { %3747 = vpow2.f32 %v3553_v17 }
 0x34f   :  { %3749 = vpow2.f32 %v3554_v22 }
 0x359   :  { %v3744_v30 = vpop.eup %3743 }
 0x35a   :  { %v3746_v38 = vpop.eup %3745  ;;  %v1364_v26 = vadd.f32 1.0, %v3744_v30 }
 0x35b   :  { %v3748_v40 = vpop.eup %3747  ;;  %v1202_v49 = vmul.f32 %v3746_v38, %v3742_v28 }
 0x35c   :  { %3751 = vrcp.f32 %v1364_v26  ;;  %v1370_v4 = vadd.f32 1.0, %v3748_v40  ;;  %v3750_v44 = vpop.eup %3749  ;;  %v9289_v26 = vld [vmem:[#allocation55_spill] sm:$0xff]  ;;  %v9290_v40 = vld [vmem:[#allocation56_spill] sm:$0xff] }
 0x35d   :  { %3753 = vtanh.f32 %v1359_v48  ;;  %v1389_v61 = vrot.slane %v1202_v49, 4  ;;  %v1377_v2 = vadd.f32 1.0, %v3750_v44  ;;  %v9291_v49 = vld [vmem:[#allocation57_spill] sm:$0xff] }
 0x35e   :  { %3755 = vrcp.f32 %v1370_v4  ;;  %v9292_v4 = vld [vmem:[#allocation58_spill] sm:$0xff]  ;;  %v9295_v44 = vld [vmem:[#allocation61_spill] sm:$0xff] }
 0x35f   :  { %v1392_v32 = vrot.slane %v1389_v61, 4  ;;  %3757 = vrcp.f32 %v1377_v2  ;;  %v9293_v61 = vld [vmem:[#allocation59_spill] sm:$0xff]  ;;  %v9300_v2 = vld [vmem:[#allocation66_spill] sm:$0xff] }
 0x361   :  { %1459 = vmatprep.mubr.f32.mxu0 %v1392_v32  ;;  %1530 = vmatprep.mubr.f32.mxu1 %v1392_v32  ;;  %v9294_v32 = vld [vmem:[#allocation60_spill] sm:$0xff] }
 0x369   :  { %v3752_v47 = vpop.eup %3751 }
 0x36a   :  { %v3754_v17 = vpop.eup %3753 }
 0x36b   :  { %v3756_v34 = vpop.eup %3755  ;;  %v1384_v43 = vmul.f32 %v3754_v17, %v3752_v47  ;;  %v9296_v47 = vld [vmem:[#allocation62_spill] sm:$0xff]  ;;  %v9297_v17 = vld [vmem:[#allocation63_spill] sm:$0xff] }
 0x36c   :  { %v1383_v30 = vmul.f32 %v3756_v34, %v1381_v59  ;;  %v3758_v22 = vpop.eup %3757  ;;  %v9298_v59 = vld [vmem:[#allocation64_spill] sm:$0xff]  ;;  %v9299_v34 = vld [vmem:[#allocation65_spill] sm:$0xff] }
 0x36e   :  { %v6210_v55 = vadd.f32 %v1384_v43, %v1383_v30  ;;  %v9301_v43 = vld [vmem:[#allocation67_spill] sm:$0xff]  ;;  %v9302_v30 = vld [vmem:[#allocation68_spill] sm:$0xff] }
 0x370   :  { %3759 = vtanh.f32 %v6210_v55 }
 0x37d   :  { %v3760_v28 = vpop.eup %3759 }
 0x37e   :  { %v1387_v48 = vmul.f32 %v3760_v28, %v3758_v22  ;;  %v9303_v22 = vld [vmem:[#allocation69_spill] sm:$0xff]  ;;  %v9304_v28 = vld [vmem:[#allocation70_spill] sm:$0xff] }
 0x380   :  { %v6213_v38 = vrot.slane %v1387_v48, 4  ;;  %v9305_v48 = vld [vmem:[#allocation71_spill] sm:$0xff] }
 0x382   :  { %1460 = vmatmul.mubr.f32.vlgmr.msra.gmra.mxu0 %v6213_v38  ;;  %1531 = vmatmul.mubr.f32.vlgmr.msra.gmra.mxu1 %v6213_v38 }
 0x383   :  { %1562 = vmatpush1.msra.mxu0 %v5621_v6  ;;  %1633 = vmatpush1.msra.mxu1 %v5624_v36  ;;  %v9250_v6 = vld [vmem:[#allocation24_spill] sm:$0xff]  ;;  %v9251_v36 = vld [vmem:[#allocation15_spill] sm:$0xff] }
 0x384   :  { %1563 = vmatprep.subr.mxu0 %v5627_v8  ;;  %1634 = vmatprep.subr.mxu1 %v5630_v10  ;;  %v9252_v8 = vld [vmem:[#allocation25_spill] sm:$0xff]  ;;  %v9253_v10 = vld [vmem:[#allocation16_spill] sm:$0xff] }
 0x385   :  { %1564 = vmatpush1.msra.mxu0 %v5633_v12  ;;  %1635 = vmatpush1.msra.mxu1 %v5636_v14  ;;  %v9254_v12 = vld [vmem:[#allocation26_spill] sm:$0xff]  ;;  %v9255_v14 = vld [vmem:[#allocation17_spill] sm:$0xff] }
 0x386   :  { %1565 = vmatprep.subr.mxu0 %v5639_v16  ;;  %1636 = vmatprep.subr.mxu1 %v5642_v18  ;;  %v9256_v16 = vld [vmem:[#allocation27_spill] sm:$0xff]  ;;  %v9257_v18 = vld [vmem:[#allocation18_spill] sm:$0xff] }
 0x387   :  { %1566 = vmatpush1.msra.mxu0 %v5645_v20  ;;  %1637 = vmatpush1.msra.mxu1 %v5648_v23  ;;  %v9258_v20 = vld [vmem:[#allocation28_spill] sm:$0xff]  ;;  %v9259_v23 = vld [vmem:[#allocation19_spill] sm:$0xff] }
 0x388   :  { %1567 = vmatprep.subr.mxu0 %v5651_v25  ;;  %1638 = vmatprep.subr.mxu1 %v5654_v27  ;;  %v9260_v25 = vld [vmem:[#allocation29_spill] sm:$0xff]  ;;  %v9261_v27 = vld [vmem:[#allocation20_spill] sm:$0xff] }
 0x389   :  { %1568 = vmatpush1.msra.mxu0 %v5657_v63  ;;  %1639 = vmatpush1.msra.mxu1 %v5660_v29  ;;  %v9262_v63 = vld [vmem:[#allocation30_spill] sm:$0xff]  ;;  %v9263_v29 = vld [vmem:[#allocation21_spill] sm:$0xff] }
 0x38a   :  { %1569 = vmatprep.subr.mxu0 %v5663_v33  ;;  %1640 = vmatprep.subr.mxu1 %v5666_v35  ;;  %v9264_v33 = vld [vmem:[#allocation31_spill] sm:$0xff]  ;;  %v9265_v35 = vld [vmem:[#allocation32_spill] sm:$0xff] }
 0x38b   :  { %1570 = vmatpush1.msra.mxu0 %v5669_v37  ;;  %1641 = vmatpush1.msra.mxu1 %v5672_v39  ;;  %v9266_v37 = vld [vmem:[#allocation33_spill] sm:$0xff]  ;;  %v9267_v39 = vld [vmem:[#allocation34_spill] sm:$0xff] }
 0x38c   :  { %1571 = vmatprep.subr.mxu0 %v5675_v42  ;;  %1642 = vmatprep.subr.mxu1 %v5678_v45  ;;  %v9268_v42 = vld [vmem:[#allocation35_spill] sm:$0xff]  ;;  %v9269_v45 = vld [vmem:[#allocation36_spill] sm:$0xff] }
 0x38d   :  { %1572 = vmatpush1.msra.mxu0 %v5681_v46  ;;  %1643 = vmatpush1.msra.mxu1 %v5684_v50  ;;  %v9270_v46 = vld [vmem:[#allocation37_spill] sm:$0xff]  ;;  %v9271_v50 = vmov 0.0  }
 0x38e   :  { %1573 = vmatprep.subr.mxu0 %v5687_v52  ;;  %1644 = vmatprep.subr.mxu1 %v5690_v53  ;;  %v9272_v52 = vld [vmem:[#allocation38_spill] sm:$0xff]  ;;  %v9273_v53 = vld [vmem:[#allocation39_spill] sm:$0xff] }
 0x38f   :  { %1574 = vmatpush1.msra.mxu0 %v5693_v54  ;;  %1645 = vmatpush1.msra.mxu1 %v5696_v56  ;;  %v9274_v54 = vld [vmem:[#allocation40_spill] sm:$0xff]  ;;  %v9275_v56 = vld [vmem:[#allocation41_spill] sm:$0xff] }
 0x390   :  { %1575 = vmatprep.subr.mxu0 %v5699_v58  ;;  %1646 = vmatprep.subr.mxu1 %v5702_v60  ;;  %v9276_v58 = vld [vmem:[#allocation42_spill] sm:$0xff]  ;;  %v9277_v60 = vld [vmem:[#allocation43_spill] sm:$0xff] }
 0x391   :  { %1576 = vmatpush1.msra.mxu0 %v5705_v62  ;;  %1647 = vmatpush1.msra.mxu1 %v5708_v1  ;;  %v9278_v62 = vld [vmem:[#allocation44_spill] sm:$0xff]  ;;  %v9279_v1 = vld [vmem:[#allocation45_spill] sm:$0xff] }
 0x392   :  { %1577 = vmatprep.subr.mxu0 %v5711_v5  ;;  %1648 = vmatprep.subr.mxu1 %v5714_v7  ;;  %v9280_v5 = vld [vmem:[#allocation46_spill] sm:$0xff]  ;;  %v9281_v7 = vld [vmem:[#allocation47_spill] sm:$0xff] }
 0x393   :  { %1578 = vmatpush1.msra.mxu0 %v5717_v9  ;;  %1649 = vmatpush1.msra.mxu1 %v5720_v11  ;;  %v9282_v9 = vld [vmem:[#allocation48_spill] sm:$0xff]  ;;  %v9283_v11 = vld [vmem:[#allocation49_spill] sm:$0xff] }
 0x394   :  { %1579 = vmatprep.subr.mxu0 %v5723_v13  ;;  %1650 = vmatprep.subr.mxu1 %v5726_v19  ;;  %v9284_v13 = vld [vmem:[#allocation50_spill] sm:$0xff]  ;;  %v9285_v19 = vld [vmem:[#allocation51_spill] sm:$0xff] }
 0x395   :  { %1580 = vmatpush1.msra.mxu0 %v5729_v21  ;;  %1651 = vmatpush1.msra.mxu1 %v5732_v24  ;;  %v9286_v21 = vld [vmem:[#allocation52_spill] sm:$0xff]  ;;  %v9287_v24 = vld [vmem:[#allocation53_spill] sm:$0xff] }
 0x396   :  { %1581 = vmatprep.subr.mxu0 %v5735_v57  ;;  %1652 = vmatprep.subr.mxu1 %v9249_v0  ;;  %v9288_v57 = vld [vmem:[#allocation54_spill] sm:$0xff]  ;;  %v9307_v0 = vld [vmem:[#allocation73_spill] sm:$0xff] }
 0x397   :  { %1582 = vmatpush1.msra.mxu0 %v9250_v6  ;;  %1653 = vmatpush1.msra.mxu1 %v9251_v36  ;;  %v9308_v6 = vld [vmem:[#allocation74_spill] sm:$0xff]  ;;  %v9309_v36 = vld [vmem:[#allocation75_spill] sm:$0xff] }
 0x398   :  { %1583 = vmatprep.subr.mxu0 %v9252_v8  ;;  %1654 = vmatprep.subr.mxu1 %v9253_v10  ;;  %v9310_v8 = vld [vmem:[#allocation76_spill] sm:$0xff]  ;;  %v9311_v10 = vld [vmem:[#allocation77_spill] sm:$0xff] }
 0x399   :  { %1584 = vmatpush1.msra.mxu0 %v9254_v12  ;;  %1655 = vmatpush1.msra.mxu1 %v9255_v14  ;;  %v9312_v12 = vld [vmem:[#allocation78_spill] sm:$0xff]  ;;  %v9313_v14 = vld [vmem:[#allocation79_spill] sm:$0xff] }
 0x39a   :  { %1585 = vmatprep.subr.mxu0 %v9256_v16  ;;  %1656 = vmatprep.subr.mxu1 %v9257_v18  ;;  %v9314_v16 = vld [vmem:[#allocation80_spill] sm:$0xff]  ;;  %v9315_v18 = vld [vmem:[#allocation81_spill] sm:$0xff] }
 0x39b   :  { %1586 = vmatpush1.msra.mxu0 %v9258_v20  ;;  %1657 = vmatpush1.msra.mxu1 %v9259_v23  ;;  %v9316_v20 = vld [vmem:[#allocation82_spill] sm:$0xff]  ;;  %v9317_v23 = vld [vmem:[#allocation83_spill] sm:$0xff] }
 0x39c   :  { %1587 = vmatprep.subr.mxu0 %v9260_v25  ;;  %1658 = vmatprep.subr.mxu1 %v9261_v27  ;;  %v9318_v25 = vld [vmem:[#allocation84_spill] sm:$0xff]  ;;  %v9319_v27 = vld [vmem:[#allocation85_spill] sm:$0xff] }
 0x39d   :  { %1588 = vmatpush1.msra.mxu0 %v9262_v63  ;;  %1659 = vmatpush1.msra.mxu1 %v9263_v29  ;;  %v9320_v63 = vld [vmem:[#allocation86_spill] sm:$0xff]  ;;  %v9321_v29 = vld [vmem:[#allocation87_spill] sm:$0xff] }
 0x39e   :  { %1589 = vmatprep.subr.mxu0 %v9264_v33  ;;  %1660 = vmatprep.subr.mxu1 %v9265_v35  ;;  %v9322_v33 = vld [vmem:[#allocation88_spill] sm:$0xff]  ;;  %v9323_v35 = vld [vmem:[#allocation89_spill] sm:$0xff] }
 0x39f   :  { %1590 = vmatpush1.msra.mxu0 %v9266_v37  ;;  %1661 = vmatpush1.msra.mxu1 %v9267_v39  ;;  %v9324_v37 = vld [vmem:[#allocation90_spill] sm:$0xff]  ;;  %v9325_v39 = vld [vmem:[#allocation91_spill] sm:$0xff] }
 0x3a0   :  { %1591 = vmatprep.subr.mxu0 %v9268_v42  ;;  %1662 = vmatprep.subr.mxu1 %v9269_v45  ;;  %v9326_v42 = vld [vmem:[#allocation92_spill] sm:$0xff]  ;;  %v9327_v45 = vld [vmem:[#allocation93_spill] sm:$0xff] }
 0x3a1   :  { %1592 = vmatpush1.msra.mxu0 %v9270_v46  ;;  %1625 = vmatprep.mubr.f32.mxu0 %v9271_v50  ;;  %v9328_v46 = vld [vmem:[#allocation94_spill] sm:$0xff] }
 0x3a2   :  { %1663 = vmatpush1.msra.mxu1 %v9272_v52  ;;  %1696 = vmatprep.mubr.f32.mxu1 %v9271_v50  ;;  %v9329_v52 = vld [vmem:[#allocation95_spill] sm:$0xff] }
 0x3a3   :  { %1626 = vmatmul.mubr.f32.vlgmr.msra.gmra.mxu0 %v6213_v38  ;;  %1697 = vmatmul.mubr.f32.vlgmr.msra.gmra.mxu1 %v6213_v38  ;;  %v9306_v38 = vld [vmem:[#allocation72_spill] sm:$0xff] }
 0x3a4   :  { %1753 = vmatprep.subr.mxu0 %v9273_v53  ;;  %1824 = vmatprep.subr.mxu1 %v9274_v54  ;;  %v9330_v53 = vld [vmem:[#allocation96_spill] sm:$0xff]  ;;  %v9331_v54 = vld [vmem:[#allocation97_spill] sm:$0xff] }
 0x3a5   :  { %1754 = vmatpush1.msra.mxu0 %v9275_v56  ;;  %1825 = vmatpush1.msra.mxu1 %v9276_v58  ;;  %v9332_v56 = vld [vmem:[#allocation98_spill] sm:$0xff]  ;;  %v9333_v58 = vld [vmem:[#allocation99_spill] sm:$0xff] }
 0x3a6   :  { %1755 = vmatprep.subr.mxu0 %v9277_v60  ;;  %1826 = vmatprep.subr.mxu1 %v9278_v62  ;;  %v9334_v60 = vld [vmem:[#allocation100_spill] sm:$0xff]  ;;  %v9335_v62 = vld [vmem:[#allocation101_spill] sm:$0xff] }
 0x3a7   :  { %1756 = vmatpush1.msra.mxu0 %v9279_v1  ;;  %1827 = vmatpush1.msra.mxu1 %v9280_v5  ;;  %v9336_v1 = vld [vmem:[#allocation102_spill] sm:$0xff]  ;;  %v9337_v5 = vld [vmem:[#allocation103_spill] sm:$0xff] }
 0x3a8   :  { %1757 = vmatprep.subr.mxu0 %v9281_v7  ;;  %1828 = vmatprep.subr.mxu1 %v9282_v9  ;;  %v9338_v7 = vld [vmem:[#allocation104_spill] sm:$0xff]  ;;  %v9339_v9 = vld [vmem:[#allocation105_spill] sm:$0xff] }
 0x3a9   :  { %1758 = vmatpush1.msra.mxu0 %v9283_v11  ;;  %1829 = vmatpush1.msra.mxu1 %v9284_v13  ;;  %v9340_v11 = vld [vmem:[#allocation106_spill] sm:$0xff]  ;;  %v9341_v13 = vld [vmem:[#allocation107_spill] sm:$0xff] }
 0x3aa   :  { %1759 = vmatprep.subr.mxu0 %v9285_v19  ;;  %1830 = vmatprep.subr.mxu1 %v9286_v21  ;;  %v9342_v19 = vld [vmem:[#allocation108_spill] sm:$0xff]  ;;  %v9343_v21 = vld [vmem:[#allocation109_spill] sm:$0xff] }
 0x3ab   :  { %1760 = vmatpush1.msra.mxu0 %v9287_v24  ;;  %1831 = vmatpush1.msra.mxu1 %v9288_v57  ;;  %v9344_v24 = vld [vmem:[#allocation110_spill] sm:$0xff]  ;;  %v9345_v57 = vld [vmem:[#allocation111_spill] sm:$0xff] }
 0x3ac   :  { %1761 = vmatprep.subr.mxu0 %v9289_v26  ;;  %1832 = vmatprep.subr.mxu1 %v9290_v40  ;;  %v9346_v26 = vld [vmem:[#allocation112_spill] sm:$0xff]  ;;  %v9347_v40 = vld [vmem:[#allocation113_spill] sm:$0xff] }
 0x3ad   :  { %1762 = vmatpush1.msra.mxu0 %v9291_v49  ;;  %1833 = vmatpush1.msra.mxu1 %v9292_v4  ;;  %v9348_v49 = vld [vmem:[#allocation114_spill] sm:$0xff]  ;;  %v9349_v4 = vld [vmem:[#allocation115_spill] sm:$0xff] }
 0x3ae   :  { %1763 = vmatprep.subr.mxu0 %v9293_v61  ;;  %1834 = vmatprep.subr.mxu1 %v9294_v32  ;;  %v9350_v61 = vld [vmem:[#allocation116_spill] sm:$0xff]  ;;  %v9351_v32 = vld [vmem:[#allocation117_spill] sm:$0xff] }
 0x3af   :  { %1764 = vmatpush1.msra.mxu0 %v9295_v44  ;;  %1835 = vmatpush1.msra.mxu1 %v9296_v47  ;;  %v9352_v44 = vld [vmem:[#allocation118_spill] sm:$0xff]  ;;  %v9353_v47 = vld [vmem:[#allocation119_spill] sm:$0xff] }
 0x3b0   :  { %1765 = vmatprep.subr.mxu0 %v9297_v17  ;;  %1836 = vmatprep.subr.mxu1 %v9298_v59  ;;  %v9354_v17 = vld [vmem:[#allocation120_spill] sm:$0xff]  ;;  %v9355_v59 = vld [vmem:[#allocation121_spill] sm:$0xff] }
 0x3b1   :  { %1766 = vmatpush1.msra.mxu0 %v9299_v34  ;;  %1837 = vmatpush1.msra.mxu1 %v9300_v2  ;;  %v9356_v34 = vld [vmem:[#allocation122_spill] sm:$0xff]  ;;  %v9357_v2 = vld [vmem:[#allocation123_spill] sm:$0xff] }
 0x3b2   :  { %1767 = vmatprep.subr.mxu0 %v9301_v43  ;;  %1838 = vmatprep.subr.mxu1 %v9302_v30  ;;  %v9358_v43 = vld [vmem:[#allocation124_spill] sm:$0xff]  ;;  %v9359_v30 = vld [vmem:[#allocation125_spill] sm:$0xff] }
 0x3b3   :  { %1768 = vmatpush1.msra.mxu0 %v9303_v22  ;;  %1839 = vmatpush1.msra.mxu1 %v9304_v28  ;;  %v9360_v22 = vld [vmem:[#allocation126_spill] sm:$0xff]  ;;  %v9361_v28 = vld [vmem:[#allocation127_spill] sm:$0xff] }
 0x3b4   :  { %1769 = vmatprep.subr.mxu0 %v9305_v48  ;;  %1840 = vmatprep.subr.mxu1 %v9306_v38  ;;  %v9362_v48 = vld [vmem:[#allocation128_spill] sm:$0xff]  ;;  %v9363_v38 = vld [vmem:[#allocation129_spill] sm:$0xff] }
 0x3b5   :  { %1770 = vmatpush1.msra.mxu0 %v9307_v0  ;;  %1841 = vmatpush1.msra.mxu1 %v9308_v6  ;;  %v9364_v0 = vld [vmem:[#allocation130_spill] sm:$0xff]  ;;  %v9365_v6 = vld [vmem:[#allocation131_spill] sm:$0xff] }
 0x3b6   :  { %1771 = vmatprep.subr.mxu0 %v9309_v36  ;;  %1842 = vmatprep.subr.mxu1 %v9310_v8  ;;  %v9366_v36 = vld [vmem:[#allocation132_spill] sm:$0xff]  ;;  %v9367_v8 = vld [vmem:[#allocation133_spill] sm:$0xff] }
 0x3b7   :  { %1772 = vmatpush1.msra.mxu0 %v9311_v10  ;;  %1843 = vmatpush1.msra.mxu1 %v9312_v12  ;;  %v9368_v10 = vld [vmem:[#allocation134_spill] sm:$0xff]  ;;  %v9369_v12 = vld [vmem:[#allocation135_spill] sm:$0xff] }
 0x3b8   :  { %1773 = vmatprep.subr.mxu0 %v9313_v14  ;;  %1844 = vmatprep.subr.mxu1 %v9314_v16  ;;  %v9370_v14 = vld [vmem:[#allocation136_spill] sm:$0xff]  ;;  %v9371_v16 = vld [vmem:[#allocation137_spill] sm:$0xff] }
 0x3b9   :  { %1774 = vmatpush1.msra.mxu0 %v9315_v18  ;;  %1845 = vmatpush1.msra.mxu1 %v9316_v20  ;;  %v9372_v18 = vld [vmem:[#allocation138_spill] sm:$0xff]  ;;  %v9373_v20 = vld [vmem:[#allocation139_spill] sm:$0xff] }
 0x3ba   :  { %1775 = vmatprep.subr.mxu0 %v9317_v23  ;;  %1846 = vmatprep.subr.mxu1 %v9318_v25  ;;  %v9374_v23 = vld [vmem:[#allocation140_spill] sm:$0xff]  ;;  %v9375_v25 = vld [vmem:[#allocation141_spill] sm:$0xff] }
 0x3bb   :  { %1776 = vmatpush1.msra.mxu0 %v9319_v27  ;;  %1847 = vmatpush1.msra.mxu1 %v9320_v63  ;;  %v9376_v27 = vld [vmem:[#allocation142_spill] sm:$0xff]  ;;  %v9377_v63 = vld [vmem:[#allocation143_spill] sm:$0xff] }
 0x3bc   :  { %1777 = vmatprep.subr.mxu0 %v9321_v29  ;;  %1848 = vmatprep.subr.mxu1 %v9322_v33  ;;  %v9378_v29 = vld [vmem:[#allocation144_spill] sm:$0xff]  ;;  %v9379_v33 = vld [vmem:[#allocation145_spill] sm:$0xff] }
 0x3bd   :  { %1778 = vmatpush1.msra.mxu0 %v9323_v35  ;;  %1849 = vmatpush1.msra.mxu1 %v9324_v37  ;;  %v9380_v35 = vld [vmem:[#allocation146_spill] sm:$0xff]  ;;  %v9381_v37 = vld [vmem:[#allocation147_spill] sm:$0xff] }
 0x3be   :  { %1779 = vmatprep.subr.mxu0 %v9325_v39  ;;  %1850 = vmatprep.subr.mxu1 %v9326_v42  ;;  %v9382_v39 = vld [vmem:[#allocation148_spill] sm:$0xff]  ;;  %v9383_v42 = vld [vmem:[#allocation149_spill] sm:$0xff] }
 0x3bf   :  { %1780 = vmatpush1.msra.mxu0 %v9327_v45  ;;  %1851 = vmatpush1.msra.mxu1 %v9328_v46  ;;  %v9384_v45 = vld [vmem:[#allocation150_spill] sm:$0xff]  ;;  %v9385_v46 = vld [vmem:[#allocation151_spill] sm:$0xff] }
 0x3c0   :  { %1781 = vmatprep.subr.mxu0 %v9329_v52  ;;  %1852 = vmatprep.subr.mxu1 %v9330_v53  ;;  %v9386_v52 = vld [vmem:[#allocation152_spill] sm:$0xff]  ;;  %v9387_v53 = vld [vmem:[#allocation153_spill] sm:$0xff] }
 0x3c1   :  { %1782 = vmatpush1.msra.mxu0 %v9331_v54  ;;  %1853 = vmatpush1.msra.mxu1 %v9332_v56  ;;  %v9388_v54 = vld [vmem:[#allocation154_spill] sm:$0xff]  ;;  %v9389_v56 = vld [vmem:[#allocation155_spill] sm:$0xff] }
 0x3c2   :  { %1783 = vmatprep.subr.mxu0 %v9333_v58  ;;  %1854 = vmatprep.subr.mxu1 %v9334_v60  ;;  %v9390_v58 = vld [vmem:[#allocation156_spill] sm:$0xff]  ;;  %v9391_v60 = vld [vmem:[#allocation157_spill] sm:$0xff] }
 0x3c3   :  { %1784 = vmatpush1.msra.mxu0 %v9335_v62  ;;  %1855 = vmatpush1.msra.mxu1 %v9336_v1  ;;  %v9392_v62 = vld [vmem:[#allocation158_spill] sm:$0xff]  ;;  %v9393_v1 = vld [vmem:[#allocation159_spill] sm:$0xff] }
 0x3c4   :  { %1785 = vmatprep.subr.mxu0 %v9337_v5  ;;  %1856 = vmatprep.subr.mxu1 %v9338_v7  ;;  %v9394_v5 = vld [vmem:[#allocation162_spill] sm:$0xff] }
 0x3c5   :  { %1786 = vmatpush2.msra.mxu0 %v9339_v9  ;;  %1857 = vmatpush2.msra.mxu1 %v9340_v11  ;;  %v9395_v7 = vld [vmem:[#allocation166_spill] sm:$0xff]  ;;  %v9396_v9 = vld [vmem:[#allocation167_spill] sm:$0xff]  ;;  %v9397_v11 = vld [vmem:[#allocation168_spill] sm:$0xff] }
 0x3c6   :  { %1787 = vmatprep.subr.mxu0 %v9341_v13  ;;  %1858 = vmatprep.subr.mxu1 %v9342_v19  ;;  %v9398_v13 = vld [vmem:[#allocation169_spill] sm:$0xff]  ;;  %v9399_v19 = vld [vmem:[#allocation170_spill] sm:$0xff] }
 0x3c7   :  { %1788 = vmatpush2.msra.mxu0 %v9343_v21  ;;  %1859 = vmatpush2.msra.mxu1 %v9344_v24  ;;  %v9400_v21 = vld [vmem:[#allocation171_spill] sm:$0xff]  ;;  %v6411_v24 = vld [vmem:[#allocation2 + $0x1e8] sm:$0xff] }
 0x3c8   :  { %1789 = vmatprep.subr.mxu0 %v9345_v57  ;;  %1860 = vmatprep.subr.mxu1 %v9346_v26  ;;  %v6414_v57 = vld [vmem:[#allocation2 + $0x1f8] sm:$0xff] }
 0x3c9   :  { %1790 = vmatpush2.msra.mxu0 %v9347_v40  ;;  %1861 = vmatpush2.msra.mxu1 %v9348_v49  ;;  %v9401_v40 = vld [vmem:[#allocation12_spill] sm:$0xff] }
 0x3ca   :  { %1791 = vmatprep.subr.mxu0 %v9349_v4  ;;  %1862 = vmatprep.subr.mxu1 %v9350_v61 }
 0x3cb   :  { %1792 = vmatpush2.msra.mxu0 %v9351_v32  ;;  %1863 = vmatpush2.msra.mxu1 %v9352_v44  ;;  %v9402_v32 = vld [vmem:[#allocation22_spill] sm:$0xff] }
 0x3cc   :  { %1793 = vmatprep.subr.mxu0 %v9353_v47  ;;  %1864 = vmatprep.subr.mxu1 %v9354_v17 }
 0x3cd   :  { %1794 = vmatpush2.msra.mxu0 %v9355_v59  ;;  %1865 = vmatpush2.msra.mxu1 %v9356_v34  ;;  %v9403_v34 = vld [vmem:[#allocation13_spill] sm:$0xff] }
 0x3ce   :  { %1795 = vmatprep.subr.mxu0 %v9357_v2  ;;  %1866 = vmatprep.subr.mxu1 %v9358_v43 }
 0x3cf   :  { %1796 = vmatpush2.msra.mxu0 %v9359_v30  ;;  %1867 = vmatpush2.msra.mxu1 %v9360_v22 }
 0x3d0   :  { %1797 = vmatprep.subr.mxu0 %v9361_v28  ;;  %1868 = vmatprep.subr.mxu1 %v9362_v48 }
 0x3d1   :  { %1798 = vmatpush2.msra.mxu0 %v9363_v38  ;;  %1869 = vmatpush2.msra.mxu1 %v9364_v0 }
 0x3d2   :  { %1799 = vmatprep.subr.mxu0 %v9365_v6  ;;  %1870 = vmatprep.subr.mxu1 %v9366_v36 }
 0x3d3   :  { %1800 = vmatpush2.msra.mxu0 %v9367_v8  ;;  %1871 = vmatpush2.msra.mxu1 %v9368_v10 }
 0x3d4   :  { %1801 = vmatprep.subr.mxu0 %v9369_v12  ;;  %1872 = vmatprep.subr.mxu1 %v9370_v14 }
 0x3d5   :  { %1802 = vmatpush2.msra.mxu0 %v9371_v16  ;;  %1873 = vmatpush2.msra.mxu1 %v9372_v18 }
 0x3d6   :  { %1803 = vmatprep.subr.mxu0 %v9373_v20  ;;  %1874 = vmatprep.subr.mxu1 %v9374_v23 }
 0x3d7   :  { %1804 = vmatpush2.msra.mxu0 %v9375_v25  ;;  %1875 = vmatpush2.msra.mxu1 %v9376_v27 }
 0x3d8   :  { %1805 = vmatprep.subr.mxu0 %v9377_v63  ;;  %1876 = vmatprep.subr.mxu1 %v9378_v29 }
 0x3d9   :  { %1806 = vmatpush2.msra.mxu0 %v9379_v33  ;;  %1877 = vmatpush2.msra.mxu1 %v9380_v35 }
 0x3da   :  { %1807 = vmatprep.subr.mxu0 %v9381_v37  ;;  %1878 = vmatprep.subr.mxu1 %v9382_v39 }
 0x3db   :  { %1808 = vmatpush2.msra.mxu0 %v9383_v42  ;;  %1879 = vmatpush2.msra.mxu1 %v9384_v45 }
 0x3dc   :  { %1809 = vmatprep.subr.mxu0 %v9385_v46  ;;  %1880 = vmatprep.subr.mxu1 %v9386_v52 }
 0x3dd   :  { %1810 = vmatpush2.msra.mxu0 %v9387_v53  ;;  %1881 = vmatpush2.msra.mxu1 %v9388_v54 }
 0x3de   :  { %1811 = vmatprep.subr.mxu0 %v9389_v56  ;;  %1882 = vmatprep.subr.mxu1 %v9390_v58 }
 0x3df   :  { %1812 = vmatpush2.msra.mxu0 %v9391_v60  ;;  %1883 = vmatpush2.msra.mxu1 %v9392_v62 }
 0x3e0   :  { %1813 = vmatprep.subr.mxu0 %v9393_v1  ;;  %1884 = vmatprep.subr.mxu1 %v9394_v5 }
 0x3e1   :  { %1814 = vmatpush2.msra.mxu0 %v9395_v7  ;;  %1885 = vmatpush2.msra.mxu1 %v9396_v9  ;;  %v1739_v9 = vrot.slane %v6210_v55, 6  ;;  %v6440_v55 = vld [vmem:[#allocation2 + $0x1f0] sm:$0xff] }
 0x3e2   :  { %1815 = vmatprep.subr.mxu0 %v9397_v11  ;;  %1886 = vmatprep.subr.mxu1 %v9398_v13 }
 0x3e3   :  { %1816 = vmatpush2.msra.mxu0 %v9399_v19  ;;  %1887 = vmatpush2.msra.mxu1 %v9400_v21 }
 0x3e4   :  { %1919 = vmatprep.subr.mxu0 %v6411_v24  ;;  %1990 = vmatprep.subr.mxu1 %v6414_v57 }
 0x442   :  { %v1461_v26 = vpop.f32.mrf.mxu0  ;;  %v1532_v47 = vpop.f32.mrf.mxu1 }
 0x443   :  { %v1462_v49 = vadd.f32 %v1461_v26, %v9401_v40  ;;  %v1533_v22 = vadd.f32 %v1532_v47, %v5603_v3  ;;  %v6437_v47 = vld [vmem:[#allocation2 + $0x1e0] sm:$0xff] }
 0x444   :  { %v1463_v4 = vpop.f32.mrf.mxu0  ;;  %v1534_v59 = vpop.f32.mrf.mxu1 }
 0x445   :  { %v3555_v61 = vmul.f32 -1.442695, %v1462_v49  ;;  %v1464_v44 = vadd.f32 %v1463_v4, %v9402_v32  ;;  %v1535_v2 = vadd.f32 %v1534_v59, %v9403_v34  ;;  %v6446_v59 = vld [vmem:[#allocation2 + $0x1d8] sm:$0xff] }
 0x447   :  { %3761 = vpow2.f32 %v3555_v61  ;;  %v3556_v17 = vmul.f32 -1.442695, %v1464_v44  ;;  %v3557_v43 = vmul.f32 -1.442695, %v1535_v2  ;;  %v6449_v2 = vld [vmem:[#allocation2 + $0x1c0] sm:$0xff] }
 0x449   :  { %3763 = vpow2.f32 %v3556_v17  ;;  %v6443_v17 = vld [vmem:[#allocation2 + $0x1c8] sm:$0xff] }
 0x44a   :  { %3765 = vpow2.f32 %v3557_v43  ;;  %v6452_v43 = vld [vmem:[#allocation2 + $0x1d0] sm:$0xff] }
 0x454   :  { %v3762_v30 = vpop.eup %3761 }
 0x455   :  { %v1540_v28 = vadd.f32 1.0, %v3762_v30  ;;  %v6455_v30 = vld [vmem:[#allocation2 + $0x1a8] sm:$0xff] }
 0x456   :  { %v3764_v48 = vpop.eup %3763 }
 0x457   :  { %3767 = vrcp.f32 %v1540_v28  ;;  %v1546_v38 = vadd.f32 1.0, %v3764_v48  ;;  %v3766_v0 = vpop.eup %3765  ;;  %v6461_v28 = vld [vmem:[#allocation2 + $0x1a0] sm:$0xff]  ;;  %v6464_v48 = vld [vmem:[#allocation2 + $0x1b0] sm:$0xff] }
 0x458   :  { %3769 = vtanh.f32 %v1533_v22  ;;  %v1553_v12 = vadd.f32 1.0, %v3766_v0  ;;  %v6458_v22 = vld [vmem:[#allocation2 + $0x1b8] sm:$0xff] }
 0x459   :  { %3771 = vrcp.f32 %v1546_v38  ;;  %v6467_v38 = vld [vmem:[#allocation2 + $0x188] sm:$0xff]  ;;  %v6470_v0 = vld [vmem:[#allocation2 + $0x198] sm:$0xff] }
 0x45a   :  { %3773 = vrcp.f32 %v1553_v12  ;;  %v6485_v12 = vld [vmem:[#allocation2 + $0x160] sm:$0xff] }
 0x463   :  { %v1627_v6 = vpop.f32.mrf.mxu0  ;;  %v1698_v20 = vpop.f32.mrf.mxu1 }
 0x464   :  { %v3768_v36 = vpop.eup %3767  ;;  %v1707_v8 = vrot.slane %v1627_v6, 2  ;;  %v1709_v42 = vrot.slane %v1698_v20, 2  ;;  %v6473_v6 = vld [vmem:[#allocation2 + $0x180] sm:$0xff] }
 0x465   :  { %v3770_v10 = vpop.eup %3769  ;;  %v1629_v14 = vpop.f32.mrf.mxu0  ;;  %v6497_v20 = vld [vmem:[#allocation2 + $0x140] sm:$0xff] }
 0x466   :  { %v3772_v16 = vpop.eup %3771  ;;  %v1715_v18 = vadd.f32 %v1707_v8, %v9097_v31  ;;  %v1708_v23 = vrot.slane %v1629_v14, 2  ;;  %v1557_v25 = vmul.f32 %v3770_v10, %v3768_v36  ;;  %v1700_v37 = vpop.f32.mrf.mxu1  ;;  %v6476_v36 = vld [vmem:[#allocation2 + $0x190] sm:$0xff]  ;;  %v6479_v8 = vld [vmem:[#allocation2 + $0x168] sm:$0xff]  ;;  %v6482_v10 = vld [vmem:[#allocation2 + $0x178] sm:$0xff] }
 0x467   :  { %v1556_v27 = vmul.f32 %v3772_v16, %v6204_v15  ;;  %v1710_v39 = vrot.slane %v1700_v37, 2  ;;  %v3774_v46 = vpop.eup %3773  ;;  %v9404_v15 = vld [vmem:[#allocation165_spill] sm:$0xff]  ;;  %v6518_v37 = vld [vmem:[#allocation2 + $0x118] sm:$0xff] }
 0x468   :  { %v3558_v63 = vmul.f32 -1.442695, %v1715_v18  ;;  %v1716_v29 = vadd.f32 %v1708_v23, %v5358_v51  ;;  %v1717_v53 = vadd.f32 %v1709_v42, %v9404_v15  ;;  %v6488_v14 = vld [vmem:[#allocation2 + $0x170] sm:$0xff]  ;;  %v6491_v16 = vld [vmem:[#allocation2 + $0x148] sm:$0xff]  ;;  %v6494_v18 = vld [vmem:[#allocation2 + $0x158] sm:$0xff] }
 0x469   :  { %v6424_v33 = vadd.f32 %v1557_v25, %v1556_v27  ;;  %v1718_v31 = vadd.f32 %v1710_v39, %v5372_v41  ;;  %v6500_v23 = vld [vmem:[#allocation2 + $0x150] sm:$0xff]  ;;  %v6503_v25 = vld [vmem:[#allocation2 + $0x128] sm:$0xff]  ;;  %v6506_v27 = vld [vmem:[#allocation2 + $0x138] sm:$0xff] }
 0x46a   :  { %3775 = vpow2.f32 %v3558_v63  ;;  %v3559_v35 = vmul.f32 -1.442695, %v1716_v29  ;;  %v6509_v63 = vld [vmem:[#allocation2 + $0x120] sm:$0xff]  ;;  %v6512_v29 = vld [vmem:[#allocation2 + $0x130] sm:$0xff]  ;;  %v6527_v42 = vld [vmem:[#allocation2 + $0xe8] sm:$0xff] }
 0x46b   :  { %3777 = vtanh.f32 %v6424_v33  ;;  %v3560_v45 = vmul.f32 -1.442695, %v1718_v31  ;;  %v6521_v39 = vld [vmem:[#allocation2 + $0x100] sm:$0xff]  ;;  %v6524_v31 = vld [vmem:[#allocation2 + $0x110] sm:$0xff]  ;;  %v6539_v15 = vld [vmem:[#allocation2 + $0xc8] sm:$0xff] }
 0x46c   :  { %3779 = vpow2.f32 %v3559_v35  ;;  %v6515_v35 = vld [vmem:[#allocation2 + $0x108] sm:$0xff] }
 0x46d   :  { %3781 = vpow2.f32 %v3560_v45  ;;  %v6530_v45 = vld [vmem:[#allocation2 + $0xf8] sm:$0xff] }
 0x477   :  { %v3776_v52 = vpop.eup %3775 }
 0x478   :  { %v3778_v54 = vpop.eup %3777  ;;  %v1722_v51 = vadd.f32 1.0, %v3776_v52  ;;  %v6536_v52 = vld [vmem:[#allocation2 + $0xf0] sm:$0xff] }
 0x479   :  { %v3780_v56 = vpop.eup %3779  ;;  %v1560_v58 = vmul.f32 %v3778_v54, %v3774_v46  ;;  %v6533_v46 = vld [vmem:[#allocation2 + $0xe0] sm:$0xff] }
 0x47a   :  { %3783 = vrcp.f32 %v1722_v51  ;;  %v1728_v60 = vadd.f32 1.0, %v3780_v56  ;;  %v3782_v41 = vpop.eup %3781  ;;  %v6545_v54 = vld [vmem:[#allocation2 + $0xc0] sm:$0xff]  ;;  %v6548_v51 = vld [vmem:[#allocation2 + $0xd0] sm:$0xff]  ;;  %v6551_v56 = vld [vmem:[#allocation2 + $0xa8] sm:$0xff] }
 0x47b   :  { %3785 = vtanh.f32 %v1717_v53  ;;  %v1747_v62 = vrot.slane %v1560_v58, 2  ;;  %v1735_v13 = vadd.f32 1.0, %v3782_v41  ;;  %v6542_v53 = vld [vmem:[#allocation2 + $0xd8] sm:$0xff] }
 0x47c   :  { %3787 = vrcp.f32 %v1728_v60  ;;  %v6554_v58 = vld [vmem:[#allocation2 + $0xb8] sm:$0xff]  ;;  %v6557_v60 = vld [vmem:[#allocation2 + $0xa0] sm:$0xff] }
 0x47d   :  { %v1750_v1 = vrot.slane %v1747_v62, 6  ;;  %3789 = vrcp.f32 %v1735_v13  ;;  %v6560_v62 = vld [vmem:[#allocation2 + $0xb0] sm:$0xff]  ;;  %v6566_v41 = vld [vmem:[#allocation2 + $0x98] sm:$0xff]  ;;  %v6581_v13 = vld [vmem:[#allocation2 + $0x60] sm:$0xff] }
 0x47e   :  { %9406 = vst [vmem:[#allocation24_spill] sm:$0xff] %v6566_v41  ;;  %9411 = vst [vmem:[#allocation17_spill] sm:$0xff] %v6581_v13 }
 0x47f   :  { %1817 = vmatprep.mubr.f32.mxu0 %v1750_v1  ;;  %1888 = vmatprep.mubr.f32.mxu1 %v1750_v1  ;;  %v6563_v1 = vld [vmem:[#allocation2 + $0x88] sm:$0xff] }
 0x480   :  { %9405 = vst [vmem:[#allocation14_spill] sm:$0xff] %v6563_v1 }
 0x487   :  { %v3784_v5 = vpop.eup %3783 }
 0x488   :  { %v3786_v7 = vpop.eup %3785 }
 0x489   :  { %v3788_v11 = vpop.eup %3787  ;;  %v1742_v19 = vmul.f32 %v3786_v7, %v3784_v5  ;;  %v6569_v5 = vld [vmem:[#allocation2 + $0x80] sm:$0xff]  ;;  %v6572_v7 = vld [vmem:[#allocation2 + $0x90] sm:$0xff] }
 0x48a   :  { %v1741_v21 = vmul.f32 %v3788_v11, %v1739_v9  ;;  %v3790_v49 = vpop.eup %3789  ;;  %9407 = vst [vmem:[#allocation15_spill] sm:$0xff] %v6569_v5  ;;  %9408 = vst [vmem:[#allocation25_spill] sm:$0xff] %v6572_v7  ;;  %v6575_v9 = vld [vmem:[#allocation2 + $0x68] sm:$0xff]  ;;  %v6578_v11 = vld [vmem:[#allocation2 + $0x78] sm:$0xff] }
 0x48b   :  { %9409 = vst [vmem:[#allocation16_spill] sm:$0xff] %v6575_v9  ;;  %9410 = vst [vmem:[#allocation26_spill] sm:$0xff] %v6578_v11 }
 0x48c   :  { %v6430_v26 = vadd.f32 %v1742_v19, %v1741_v21  ;;  %v6584_v19 = vld [vmem:[#allocation2 + $0x70] sm:$0xff]  ;;  %v6587_v21 = vld [vmem:[#allocation2 + $0x48] sm:$0xff] }
 0x48d   :  { %9412 = vst [vmem:[#allocation27_spill] sm:$0xff] %v6584_v19  ;;  %9413 = vst [vmem:[#allocation18_spill] sm:$0xff] %v6587_v21 }
 0x48e   :  { %3791 = vtanh.f32 %v6430_v26 }
 0x49b   :  { %v3792_v4 = vpop.eup %3791 }
 0x49c   :  { %v1745_v61 = vmul.f32 %v3792_v4, %v3790_v49  ;;  %v6590_v49 = vld [vmem:[#allocation2 + $0x58] sm:$0xff]  ;;  %v6593_v4 = vld [vmem:[#allocation2 + $0x40] sm:$0xff] }
 0x49d   :  { %9414 = vst [vmem:[#allocation28_spill] sm:$0xff] %v6590_v49  ;;  %9415 = vst [vmem:[#allocation19_spill] sm:$0xff] %v6593_v4 }
 0x49e   :  { %v6433_v44 = vrot.slane %v1745_v61, 6  ;;  %v6596_v61 = vld [vmem:[#allocation2 + $0x50] sm:$0xff] }
 0x49f   :  { %9416 = vst [vmem:[#allocation29_spill] sm:$0xff] %v6596_v61 }
 0x4a0   :  { %1818 = vmatmul.mubr.f32.vlgmr.msra.gmra.mxu0 %v6433_v44  ;;  %1889 = vmatmul.mubr.f32.vlgmr.msra.gmra.mxu1 %v6433_v44 }
 0x4a1   :  { %1920 = vmatpush1.msra.mxu0 %v6437_v47  ;;  %1991 = vmatpush1.msra.mxu1 %v6440_v55 }
 0x4a2   :  { %1921 = vmatprep.subr.mxu0 %v6443_v17  ;;  %1992 = vmatprep.subr.mxu1 %v6446_v59 }
 0x4a3   :  { %1922 = vmatpush1.msra.mxu0 %v6449_v2  ;;  %1993 = vmatpush1.msra.mxu1 %v6452_v43 }
 0x4a4   :  { %1923 = vmatprep.subr.mxu0 %v6455_v30  ;;  %1994 = vmatprep.subr.mxu1 %v6458_v22 }
 0x4a5   :  { %1924 = vmatpush1.msra.mxu0 %v6461_v28  ;;  %1995 = vmatpush1.msra.mxu1 %v6464_v48 }
 0x4a6   :  { %1925 = vmatprep.subr.mxu0 %v6467_v38  ;;  %1996 = vmatprep.subr.mxu1 %v6470_v0 }
 0x4a7   :  { %1926 = vmatpush1.msra.mxu0 %v6473_v6  ;;  %1997 = vmatpush1.msra.mxu1 %v6476_v36 }
 0x4a8   :  { %1927 = vmatprep.subr.mxu0 %v6479_v8  ;;  %1998 = vmatprep.subr.mxu1 %v6482_v10 }
 0x4a9   :  { %1928 = vmatpush1.msra.mxu0 %v6485_v12  ;;  %1999 = vmatpush1.msra.mxu1 %v6488_v14 }
 0x4aa   :  { %1929 = vmatprep.subr.mxu0 %v6491_v16  ;;  %2000 = vmatprep.subr.mxu1 %v6494_v18 }
 0x4ab   :  { %1930 = vmatpush1.msra.mxu0 %v6497_v20  ;;  %2001 = vmatpush1.msra.mxu1 %v6500_v23 }
 0x4ac   :  { %1931 = vmatprep.subr.mxu0 %v6503_v25  ;;  %2002 = vmatprep.subr.mxu1 %v6506_v27 }
 0x4ad   :  { %1932 = vmatpush1.msra.mxu0 %v6509_v63  ;;  %2003 = vmatpush1.msra.mxu1 %v6512_v29 }
 0x4ae   :  { %1933 = vmatprep.subr.mxu0 %v6515_v35  ;;  %2004 = vmatprep.subr.mxu1 %v6518_v37 }
 0x4af   :  { %1934 = vmatpush1.msra.mxu0 %v6521_v39  ;;  %2005 = vmatpush1.msra.mxu1 %v6524_v31 }
 0x4b0   :  { %1935 = vmatprep.subr.mxu0 %v6527_v42  ;;  %2006 = vmatprep.subr.mxu1 %v6530_v45 }
 0x4b1   :  { %1936 = vmatpush1.msra.mxu0 %v6533_v46  ;;  %2007 = vmatpush1.msra.mxu1 %v6536_v52 }
 0x4b2   :  { %1937 = vmatprep.subr.mxu0 %v6539_v15  ;;  %2008 = vmatprep.subr.mxu1 %v6542_v53 }
 0x4b3   :  { %1938 = vmatpush1.msra.mxu0 %v6545_v54  ;;  %2009 = vmatpush1.msra.mxu1 %v6548_v51 }
 0x4b4   :  { %1939 = vmatprep.subr.mxu0 %v6551_v56  ;;  %2010 = vmatprep.subr.mxu1 %v6554_v58 }
 0x4b5   :  { %1940 = vmatpush1.msra.mxu0 %v6557_v60  ;;  %2011 = vmatpush1.msra.mxu1 %v6560_v62 }
 0x4b6   :  { %1941 = vmatprep.subr.mxu0 %v6563_v1  ;;  %2012 = vmatprep.subr.mxu1 %v6566_v41 }
 0x4b7   :  { %1942 = vmatpush1.msra.mxu0 %v6569_v5  ;;  %2013 = vmatpush1.msra.mxu1 %v6572_v7 }
 0x4b8   :  { %1943 = vmatprep.subr.mxu0 %v6575_v9  ;;  %2014 = vmatprep.subr.mxu1 %v6578_v11 }
 0x4b9   :  { %1944 = vmatpush1.msra.mxu0 %v6581_v13  ;;  %2015 = vmatpush1.msra.mxu1 %v6584_v19  ;;  %v6599_v13 = vld [vmem:[#allocation2 + $0x28] sm:$0xff]  ;;  %v6602_v19 = vld [vmem:[#allocation2 + $0x38] sm:$0xff] }
 0x4ba   :  { %1945 = vmatprep.subr.mxu0 %v6587_v21  ;;  %2016 = vmatprep.subr.mxu1 %v6590_v49  ;;  %9417 = vst [vmem:[#allocation20_spill] sm:$0xff] %v6599_v13  ;;  %9418 = vst [vmem:[#allocation30_spill] sm:$0xff] %v6602_v19  ;;  %v6605_v21 = vld [vmem:[#allocation2 + $0x20] sm:$0xff]  ;;  %v6608_v49 = vld [vmem:[#allocation2 + $0x30] sm:$0xff] }
 0x4bb   :  { %1946 = vmatpush1.msra.mxu0 %v6593_v4  ;;  %2017 = vmatpush1.msra.mxu1 %v6596_v61  ;;  %9419 = vst [vmem:[#allocation21_spill] sm:$0xff] %v6605_v21  ;;  %9420 = vst [vmem:[#allocation31_spill] sm:$0xff] %v6608_v49  ;;  %v6611_v4 = vld [vmem:[#allocation2 + $0x8] sm:$0xff]  ;;  %v6614_v61 = vld [vmem:[#allocation2 + $0x18] sm:$0xff] }
 0x4bc   :  { %1947 = vmatprep.subr.mxu0 %v6599_v13  ;;  %2018 = vmatprep.subr.mxu1 %v6602_v19  ;;  %9421 = vst [vmem:[#allocation32_spill] sm:$0xff] %v6611_v4  ;;  %9422 = vst [vmem:[#allocation33_spill] sm:$0xff] %v6614_v61  ;;  %v6617_v13 = vld [vmem:[#allocation2] sm:$0xff]  ;;  %v6621_v19 = vld [vmem:[#allocation2 + $0x10] sm:$0xff] }
 0x4bd   :  { %1948 = vmatpush1.msra.mxu0 %v6605_v21  ;;  %2019 = vmatpush1.msra.mxu1 %v6608_v49  ;;  %9423 = vst [vmem:[#allocation34_spill] sm:$0xff] %v6617_v13  ;;  %9424 = vst [vmem:[#allocation35_spill] sm:$0xff] %v6621_v19  ;;  %v6636_v49 = vld [vmem:[#allocation5 + $0x1f0] sm:$0xff] }
 0x4be   :  { %1949 = vmatprep.subr.mxu0 %v6611_v4  ;;  %2020 = vmatprep.subr.mxu1 %v6614_v61  ;;  %v6627_v4 = vld [vmem:[#allocation5 + $0x1e8] sm:$0xff]  ;;  %v6630_v61 = vld [vmem:[#allocation5 + $0x1f8] sm:$0xff]  ;;  %9428 = vst [vmem:[#allocation39_spill] sm:$0xff] %v6636_v49 }
 0x4bf   :  { %1950 = vmatpush1.msra.mxu0 %v6617_v13  ;;  %1983 = vmatprep.mubr.f32.mxu0 %v9271_v50  ;;  %9425 = vst [vmem:[#allocation36_spill] sm:$0xff] %v6627_v4  ;;  %9426 = vst [vmem:[#allocation37_spill] sm:$0xff] %v6630_v61  ;;  %v6633_v13 = vld [vmem:[#allocation5 + $0x1e0] sm:$0xff] }
 0x4c0   :  { %2021 = vmatpush1.msra.mxu1 %v6621_v19  ;;  %2054 = vmatprep.mubr.f32.mxu1 %v9271_v50  ;;  %9427 = vst [vmem:[#allocation38_spill] sm:$0xff] %v6633_v13  ;;  %v6639_v19 = vld [vmem:[#allocation5 + $0x1c8] sm:$0xff] }
 0x4c1   :  { %1984 = vmatmul.mubr.f32.vlgmr.msra.gmra.mxu0 %v6433_v44  ;;  %2055 = vmatmul.mubr.f32.vlgmr.msra.gmra.mxu1 %v6433_v44  ;;  %9429 = vst [vmem:[#allocation40_spill] sm:$0xff] %v6639_v19  ;;  %v6642_v44 = vld [vmem:[#allocation5 + $0x1d8] sm:$0xff] }
 0x4c2   :  { %2092 = vmatprep.subr.mxu0 %v6627_v4  ;;  %2163 = vmatprep.subr.mxu1 %v6630_v61  ;;  %9430 = vst [vmem:[#allocation41_spill] sm:$0xff] %v6642_v44  ;;  %v6645_v4 = vld [vmem:[#allocation5 + $0x1c0] sm:$0xff]  ;;  %v6648_v61 = vld [vmem:[#allocation5 + $0x1d0] sm:$0xff] }
 0x4c3   :  { %2093 = vmatpush1.msra.mxu0 %v6633_v13  ;;  %2164 = vmatpush1.msra.mxu1 %v6636_v49  ;;  %9431 = vst [vmem:[#allocation42_spill] sm:$0xff] %v6645_v4  ;;  %9432 = vst [vmem:[#allocation43_spill] sm:$0xff] %v6648_v61  ;;  %v6651_v13 = vld [vmem:[#allocation5 + $0x1a8] sm:$0xff]  ;;  %v6654_v49 = vld [vmem:[#allocation5 + $0x1b8] sm:$0xff] }
 0x4c4   :  { %2094 = vmatprep.subr.mxu0 %v6639_v19  ;;  %2165 = vmatprep.subr.mxu1 %v6642_v44  ;;  %9433 = vst [vmem:[#allocation44_spill] sm:$0xff] %v6651_v13  ;;  %9434 = vst [vmem:[#allocation45_spill] sm:$0xff] %v6654_v49  ;;  %v6657_v19 = vld [vmem:[#allocation5 + $0x1a0] sm:$0xff]  ;;  %v6660_v44 = vld [vmem:[#allocation5 + $0x1b0] sm:$0xff] }
 0x4c5   :  { %2095 = vmatpush1.msra.mxu0 %v6645_v4  ;;  %2166 = vmatpush1.msra.mxu1 %v6648_v61  ;;  %9435 = vst [vmem:[#allocation46_spill] sm:$0xff] %v6657_v19  ;;  %9436 = vst [vmem:[#allocation47_spill] sm:$0xff] %v6660_v44  ;;  %v6663_v4 = vld [vmem:[#allocation5 + $0x188] sm:$0xff]  ;;  %v6666_v61 = vld [vmem:[#allocation5 + $0x198] sm:$0xff] }
 0x4c6   :  { %2096 = vmatprep.subr.mxu0 %v6651_v13  ;;  %2167 = vmatprep.subr.mxu1 %v6654_v49  ;;  %9437 = vst [vmem:[#allocation48_spill] sm:$0xff] %v6663_v4  ;;  %9438 = vst [vmem:[#allocation49_spill] sm:$0xff] %v6666_v61  ;;  %v6669_v13 = vld [vmem:[#allocation5 + $0x180] sm:$0xff]  ;;  %v6672_v49 = vld [vmem:[#allocation5 + $0x190] sm:$0xff] }
 0x4c7   :  { %2097 = vmatpush1.msra.mxu0 %v6657_v19  ;;  %2168 = vmatpush1.msra.mxu1 %v6660_v44  ;;  %9439 = vst [vmem:[#allocation50_spill] sm:$0xff] %v6669_v13  ;;  %9440 = vst [vmem:[#allocation51_spill] sm:$0xff] %v6672_v49  ;;  %v6675_v19 = vld [vmem:[#allocation5 + $0x168] sm:$0xff]  ;;  %v6678_v44 = vld [vmem:[#allocation5 + $0x178] sm:$0xff] }
 0x4c8   :  { %2098 = vmatprep.subr.mxu0 %v6663_v4  ;;  %2169 = vmatprep.subr.mxu1 %v6666_v61  ;;  %9441 = vst [vmem:[#allocation52_spill] sm:$0xff] %v6675_v19  ;;  %9442 = vst [vmem:[#allocation53_spill] sm:$0xff] %v6678_v44  ;;  %v6681_v4 = vld [vmem:[#allocation5 + $0x160] sm:$0xff]  ;;  %v6684_v61 = vld [vmem:[#allocation5 + $0x170] sm:$0xff] }
 0x4c9   :  { %2099 = vmatpush1.msra.mxu0 %v6669_v13  ;;  %2170 = vmatpush1.msra.mxu1 %v6672_v49  ;;  %9443 = vst [vmem:[#allocation54_spill] sm:$0xff] %v6681_v4  ;;  %9444 = vst [vmem:[#allocation55_spill] sm:$0xff] %v6684_v61  ;;  %v6687_v13 = vld [vmem:[#allocation5 + $0x148] sm:$0xff]  ;;  %v6690_v49 = vld [vmem:[#allocation5 + $0x158] sm:$0xff] }
 0x4ca   :  { %2100 = vmatprep.subr.mxu0 %v6675_v19  ;;  %2171 = vmatprep.subr.mxu1 %v6678_v44  ;;  %9445 = vst [vmem:[#allocation56_spill] sm:$0xff] %v6687_v13  ;;  %9446 = vst [vmem:[#allocation57_spill] sm:$0xff] %v6690_v49  ;;  %v6693_v19 = vld [vmem:[#allocation5 + $0x140] sm:$0xff]  ;;  %v6696_v44 = vld [vmem:[#allocation5 + $0x150] sm:$0xff] }
 0x4cb   :  { %2101 = vmatpush1.msra.mxu0 %v6681_v4  ;;  %2172 = vmatpush1.msra.mxu1 %v6684_v61  ;;  %9447 = vst [vmem:[#allocation58_spill] sm:$0xff] %v6693_v19  ;;  %9448 = vst [vmem:[#allocation59_spill] sm:$0xff] %v6696_v44  ;;  %v6699_v4 = vld [vmem:[#allocation5 + $0x128] sm:$0xff]  ;;  %v6702_v61 = vld [vmem:[#allocation5 + $0x138] sm:$0xff] }
 0x4cc   :  { %2102 = vmatprep.subr.mxu0 %v6687_v13  ;;  %2173 = vmatprep.subr.mxu1 %v6690_v49  ;;  %9449 = vst [vmem:[#allocation60_spill] sm:$0xff] %v6699_v4  ;;  %9450 = vst [vmem:[#allocation61_spill] sm:$0xff] %v6702_v61  ;;  %v6705_v13 = vld [vmem:[#allocation5 + $0x120] sm:$0xff]  ;;  %v6708_v49 = vld [vmem:[#allocation5 + $0x130] sm:$0xff] }
 0x4cd   :  { %2103 = vmatpush1.msra.mxu0 %v6693_v19  ;;  %2174 = vmatpush1.msra.mxu1 %v6696_v44  ;;  %9451 = vst [vmem:[#allocation62_spill] sm:$0xff] %v6705_v13  ;;  %9452 = vst [vmem:[#allocation63_spill] sm:$0xff] %v6708_v49  ;;  %v6711_v19 = vld [vmem:[#allocation5 + $0x108] sm:$0xff]  ;;  %v6714_v44 = vld [vmem:[#allocation5 + $0x118] sm:$0xff] }
 0x4ce   :  { %2104 = vmatprep.subr.mxu0 %v6699_v4  ;;  %2175 = vmatprep.subr.mxu1 %v6702_v61  ;;  %9453 = vst [vmem:[#allocation64_spill] sm:$0xff] %v6711_v19  ;;  %9454 = vst [vmem:[#allocation65_spill] sm:$0xff] %v6714_v44  ;;  %v6717_v4 = vld [vmem:[#allocation5 + $0x100] sm:$0xff]  ;;  %v6720_v61 = vld [vmem:[#allocation5 + $0x110] sm:$0xff] }
 0x4cf   :  { %2105 = vmatpush1.msra.mxu0 %v6705_v13  ;;  %2176 = vmatpush1.msra.mxu1 %v6708_v49  ;;  %9455 = vst [vmem:[#allocation66_spill] sm:$0xff] %v6717_v4  ;;  %9456 = vst [vmem:[#allocation67_spill] sm:$0xff] %v6720_v61  ;;  %v6723_v13 = vld [vmem:[#allocation5 + $0xe8] sm:$0xff]  ;;  %v6726_v49 = vld [vmem:[#allocation5 + $0xf8] sm:$0xff] }
 0x4d0   :  { %2106 = vmatprep.subr.mxu0 %v6711_v19  ;;  %2177 = vmatprep.subr.mxu1 %v6714_v44  ;;  %9457 = vst [vmem:[#allocation68_spill] sm:$0xff] %v6723_v13  ;;  %9458 = vst [vmem:[#allocation69_spill] sm:$0xff] %v6726_v49  ;;  %v6729_v19 = vld [vmem:[#allocation5 + $0xe0] sm:$0xff]  ;;  %v6732_v44 = vld [vmem:[#allocation5 + $0xf0] sm:$0xff] }
 0x4d1   :  { %2107 = vmatpush1.msra.mxu0 %v6717_v4  ;;  %2178 = vmatpush1.msra.mxu1 %v6720_v61  ;;  %9459 = vst [vmem:[#allocation70_spill] sm:$0xff] %v6729_v19  ;;  %9460 = vst [vmem:[#allocation71_spill] sm:$0xff] %v6732_v44  ;;  %v6735_v4 = vld [vmem:[#allocation5 + $0xc8] sm:$0xff]  ;;  %v6738_v61 = vld [vmem:[#allocation5 + $0xd8] sm:$0xff] }
 0x4d2   :  { %2108 = vmatprep.subr.mxu0 %v6723_v13  ;;  %2179 = vmatprep.subr.mxu1 %v6726_v49  ;;  %9461 = vst [vmem:[#allocation72_spill] sm:$0xff] %v6735_v4  ;;  %9462 = vst [vmem:[#allocation73_spill] sm:$0xff] %v6738_v61  ;;  %v6741_v13 = vld [vmem:[#allocation5 + $0xc0] sm:$0xff]  ;;  %v6744_v49 = vld [vmem:[#allocation5 + $0xd0] sm:$0xff] }
 0x4d3   :  { %2109 = vmatpush1.msra.mxu0 %v6729_v19  ;;  %2180 = vmatpush1.msra.mxu1 %v6732_v44  ;;  %9463 = vst [vmem:[#allocation74_spill] sm:$0xff] %v6741_v13  ;;  %9464 = vst [vmem:[#allocation75_spill] sm:$0xff] %v6744_v49  ;;  %v6747_v19 = vld [vmem:[#allocation5 + $0xa8] sm:$0xff]  ;;  %v6750_v44 = vld [vmem:[#allocation5 + $0xb8] sm:$0xff] }
 0x4d4   :  { %2110 = vmatprep.subr.mxu0 %v6735_v4  ;;  %2181 = vmatprep.subr.mxu1 %v6738_v61  ;;  %9465 = vst [vmem:[#allocation76_spill] sm:$0xff] %v6747_v19  ;;  %9466 = vst [vmem:[#allocation77_spill] sm:$0xff] %v6750_v44  ;;  %v6753_v4 = vld [vmem:[#allocation5 + $0xa0] sm:$0xff]  ;;  %v6756_v61 = vld [vmem:[#allocation5 + $0xb0] sm:$0xff] }
 0x4d5   :  { %2111 = vmatpush1.msra.mxu0 %v6741_v13  ;;  %2182 = vmatpush1.msra.mxu1 %v6744_v49  ;;  %9467 = vst [vmem:[#allocation78_spill] sm:$0xff] %v6753_v4  ;;  %9468 = vst [vmem:[#allocation79_spill] sm:$0xff] %v6756_v61  ;;  %v6759_v13 = vld [vmem:[#allocation5 + $0x88] sm:$0xff]  ;;  %v6762_v49 = vld [vmem:[#allocation5 + $0x98] sm:$0xff] }
 0x4d6   :  { %2112 = vmatprep.subr.mxu0 %v6747_v19  ;;  %2183 = vmatprep.subr.mxu1 %v6750_v44  ;;  %9469 = vst [vmem:[#allocation80_spill] sm:$0xff] %v6759_v13  ;;  %9470 = vst [vmem:[#allocation81_spill] sm:$0xff] %v6762_v49  ;;  %v6765_v19 = vld [vmem:[#allocation5 + $0x80] sm:$0xff]  ;;  %v6768_v44 = vld [vmem:[#allocation5 + $0x90] sm:$0xff] }
 0x4d7   :  { %2113 = vmatpush1.msra.mxu0 %v6753_v4  ;;  %2184 = vmatpush1.msra.mxu1 %v6756_v61  ;;  %9471 = vst [vmem:[#allocation82_spill] sm:$0xff] %v6765_v19  ;;  %9472 = vst [vmem:[#allocation83_spill] sm:$0xff] %v6768_v44  ;;  %v6771_v4 = vld [vmem:[#allocation5 + $0x68] sm:$0xff]  ;;  %v6774_v61 = vld [vmem:[#allocation5 + $0x78] sm:$0xff] }
 0x4d8   :  { %2114 = vmatprep.subr.mxu0 %v6759_v13  ;;  %2185 = vmatprep.subr.mxu1 %v6762_v49  ;;  %9473 = vst [vmem:[#allocation84_spill] sm:$0xff] %v6771_v4  ;;  %9474 = vst [vmem:[#allocation85_spill] sm:$0xff] %v6774_v61  ;;  %v6777_v13 = vld [vmem:[#allocation5 + $0x60] sm:$0xff]  ;;  %v6780_v49 = vld [vmem:[#allocation5 + $0x70] sm:$0xff] }
 0x4d9   :  { %2115 = vmatpush1.msra.mxu0 %v6765_v19  ;;  %2186 = vmatpush1.msra.mxu1 %v6768_v44  ;;  %9475 = vst [vmem:[#allocation86_spill] sm:$0xff] %v6777_v13  ;;  %9476 = vst [vmem:[#allocation87_spill] sm:$0xff] %v6780_v49  ;;  %v6783_v19 = vld [vmem:[#allocation5 + $0x48] sm:$0xff]  ;;  %v6786_v44 = vld [vmem:[#allocation5 + $0x58] sm:$0xff] }
 0x4da   :  { %2116 = vmatprep.subr.mxu0 %v6771_v4  ;;  %2187 = vmatprep.subr.mxu1 %v6774_v61  ;;  %9477 = vst [vmem:[#allocation88_spill] sm:$0xff] %v6783_v19  ;;  %9478 = vst [vmem:[#allocation89_spill] sm:$0xff] %v6786_v44  ;;  %v6789_v4 = vld [vmem:[#allocation5 + $0x40] sm:$0xff]  ;;  %v6792_v61 = vld [vmem:[#allocation5 + $0x50] sm:$0xff] }
 0x4db   :  { %2117 = vmatpush1.msra.mxu0 %v6777_v13  ;;  %2188 = vmatpush1.msra.mxu1 %v6780_v49  ;;  %9479 = vst [vmem:[#allocation90_spill] sm:$0xff] %v6789_v4  ;;  %9480 = vst [vmem:[#allocation91_spill] sm:$0xff] %v6792_v61  ;;  %v6795_v13 = vld [vmem:[#allocation5 + $0x28] sm:$0xff]  ;;  %v6798_v49 = vld [vmem:[#allocation5 + $0x38] sm:$0xff] }
 0x4dc   :  { %2118 = vmatprep.subr.mxu0 %v6783_v19  ;;  %2189 = vmatprep.subr.mxu1 %v6786_v44  ;;  %9481 = vst [vmem:[#allocation92_spill] sm:$0xff] %v6795_v13  ;;  %9482 = vst [vmem:[#allocation93_spill] sm:$0xff] %v6798_v49  ;;  %v6801_v19 = vld [vmem:[#allocation5 + $0x20] sm:$0xff]  ;;  %v6804_v44 = vld [vmem:[#allocation5 + $0x30] sm:$0xff] }
 0x4dd   :  { %2119 = vmatpush1.msra.mxu0 %v6789_v4  ;;  %2190 = vmatpush1.msra.mxu1 %v6792_v61  ;;  %9483 = vst [vmem:[#allocation94_spill] sm:$0xff] %v6801_v19  ;;  %9484 = vst [vmem:[#allocation95_spill] sm:$0xff] %v6804_v44  ;;  %v6807_v4 = vld [vmem:[#allocation5 + $0x8] sm:$0xff]  ;;  %v6810_v61 = vld [vmem:[#allocation5 + $0x18] sm:$0xff] }
 0x4de   :  { %2120 = vmatprep.subr.mxu0 %v6795_v13  ;;  %2191 = vmatprep.subr.mxu1 %v6798_v49  ;;  %9485 = vst [vmem:[#allocation96_spill] sm:$0xff] %v6807_v4  ;;  %9486 = vst [vmem:[#allocation97_spill] sm:$0xff] %v6810_v61  ;;  %v6813_v13 = vld [vmem:[#allocation5] sm:$0xff]  ;;  %v6816_v49 = vld [vmem:[#allocation5 + $0x10] sm:$0xff] }
 0x4df   :  { %2121 = vmatpush1.msra.mxu0 %v6801_v19  ;;  %2192 = vmatpush1.msra.mxu1 %v6804_v44  ;;  %9487 = vst [vmem:[#allocation98_spill] sm:$0xff] %v6813_v13  ;;  %9488 = vst [vmem:[#allocation99_spill] sm:$0xff] %v6816_v49  ;;  %v6819_v19 = vld [vmem:[#allocation5 + $0x3e8] sm:$0xff]  ;;  %v6822_v44 = vld [vmem:[#allocation5 + $0x3f8] sm:$0xff] }
 0x4e0   :  { %2122 = vmatprep.subr.mxu0 %v6807_v4  ;;  %2193 = vmatprep.subr.mxu1 %v6810_v61  ;;  %9489 = vst [vmem:[#allocation100_spill] sm:$0xff] %v6819_v19  ;;  %9490 = vst [vmem:[#allocation101_spill] sm:$0xff] %v6822_v44  ;;  %v6825_v4 = vld [vmem:[#allocation5 + $0x3e0] sm:$0xff]  ;;  %v6828_v61 = vld [vmem:[#allocation5 + $0x3f0] sm:$0xff] }
 0x4e1   :  { %2123 = vmatpush1.msra.mxu0 %v6813_v13  ;;  %2194 = vmatpush1.msra.mxu1 %v6816_v49  ;;  %9491 = vst [vmem:[#allocation102_spill] sm:$0xff] %v6825_v4  ;;  %9492 = vst [vmem:[#allocation103_spill] sm:$0xff] %v6828_v61  ;;  %v6831_v13 = vld [vmem:[#allocation5 + $0x3c8] sm:$0xff]  ;;  %v6834_v49 = vld [vmem:[#allocation5 + $0x3d8] sm:$0xff] }
 0x4e2   :  { %2124 = vmatprep.subr.mxu0 %v6819_v19  ;;  %2195 = vmatprep.subr.mxu1 %v6822_v44  ;;  %9493 = vst [vmem:[#allocation104_spill] sm:$0xff] %v6831_v13  ;;  %9494 = vst [vmem:[#allocation105_spill] sm:$0xff] %v6834_v49  ;;  %v6837_v19 = vld [vmem:[#allocation5 + $0x3c0] sm:$0xff]  ;;  %v6840_v44 = vld [vmem:[#allocation5 + $0x3d0] sm:$0xff] }
 0x4e3   :  { %2125 = vmatpush2.msra.mxu0 %v6825_v4  ;;  %2196 = vmatpush2.msra.mxu1 %v6828_v61  ;;  %9495 = vst [vmem:[#allocation106_spill] sm:$0xff] %v6837_v19  ;;  %9496 = vst [vmem:[#allocation107_spill] sm:$0xff] %v6840_v44  ;;  %v6843_v4 = vld [vmem:[#allocation5 + $0x3a8] sm:$0xff]  ;;  %v6846_v61 = vld [vmem:[#allocation5 + $0x3b8] sm:$0xff] }
 0x4e4   :  { %2126 = vmatprep.subr.mxu0 %v6831_v13  ;;  %2197 = vmatprep.subr.mxu1 %v6834_v49  ;;  %9497 = vst [vmem:[#allocation108_spill] sm:$0xff] %v6843_v4  ;;  %9498 = vst [vmem:[#allocation109_spill] sm:$0xff] %v6846_v61  ;;  %v6849_v13 = vld [vmem:[#allocation5 + $0x3a0] sm:$0xff]  ;;  %v6852_v49 = vld [vmem:[#allocation5 + $0x3b0] sm:$0xff] }
 0x4e5   :  { %2127 = vmatpush2.msra.mxu0 %v6837_v19  ;;  %2198 = vmatpush2.msra.mxu1 %v6840_v44  ;;  %9499 = vst [vmem:[#allocation110_spill] sm:$0xff] %v6849_v13  ;;  %9500 = vst [vmem:[#allocation111_spill] sm:$0xff] %v6852_v49  ;;  %v6855_v19 = vld [vmem:[#allocation5 + $0x388] sm:$0xff]  ;;  %v6858_v44 = vld [vmem:[#allocation5 + $0x398] sm:$0xff] }
 0x4e6   :  { %2128 = vmatprep.subr.mxu0 %v6843_v4  ;;  %2199 = vmatprep.subr.mxu1 %v6846_v61  ;;  %9501 = vst [vmem:[#allocation112_spill] sm:$0xff] %v6855_v19  ;;  %9502 = vst [vmem:[#allocation113_spill] sm:$0xff] %v6858_v44  ;;  %v6861_v4 = vld [vmem:[#allocation5 + $0x380] sm:$0xff]  ;;  %v6864_v61 = vld [vmem:[#allocation5 + $0x390] sm:$0xff] }
 0x4e7   :  { %2129 = vmatpush2.msra.mxu0 %v6849_v13  ;;  %2200 = vmatpush2.msra.mxu1 %v6852_v49  ;;  %9503 = vst [vmem:[#allocation114_spill] sm:$0xff] %v6861_v4  ;;  %9504 = vst [vmem:[#allocation115_spill] sm:$0xff] %v6864_v61  ;;  %v6867_v13 = vld [vmem:[#allocation5 + $0x368] sm:$0xff]  ;;  %v6870_v49 = vld [vmem:[#allocation5 + $0x378] sm:$0xff] }
 0x4e8   :  { %2130 = vmatprep.subr.mxu0 %v6855_v19  ;;  %2201 = vmatprep.subr.mxu1 %v6858_v44  ;;  %9505 = vst [vmem:[#allocation116_spill] sm:$0xff] %v6867_v13  ;;  %9506 = vst [vmem:[#allocation117_spill] sm:$0xff] %v6870_v49  ;;  %v6873_v19 = vld [vmem:[#allocation5 + $0x360] sm:$0xff]  ;;  %v6876_v44 = vld [vmem:[#allocation5 + $0x370] sm:$0xff] }
 0x4e9   :  { %2131 = vmatpush2.msra.mxu0 %v6861_v4  ;;  %2202 = vmatpush2.msra.mxu1 %v6864_v61  ;;  %9507 = vst [vmem:[#allocation118_spill] sm:$0xff] %v6873_v19  ;;  %9508 = vst [vmem:[#allocation119_spill] sm:$0xff] %v6876_v44  ;;  %v6879_v4 = vld [vmem:[#allocation5 + $0x348] sm:$0xff]  ;;  %v6882_v61 = vld [vmem:[#allocation5 + $0x358] sm:$0xff] }
 0x4ea   :  { %2132 = vmatprep.subr.mxu0 %v6867_v13  ;;  %2203 = vmatprep.subr.mxu1 %v6870_v49  ;;  %9509 = vst [vmem:[#allocation120_spill] sm:$0xff] %v6879_v4  ;;  %9510 = vst [vmem:[#allocation121_spill] sm:$0xff] %v6882_v61  ;;  %v6885_v13 = vld [vmem:[#allocation5 + $0x340] sm:$0xff]  ;;  %v6888_v49 = vld [vmem:[#allocation5 + $0x350] sm:$0xff] }
 0x4eb   :  { %2133 = vmatpush2.msra.mxu0 %v6873_v19  ;;  %2204 = vmatpush2.msra.mxu1 %v6876_v44  ;;  %9511 = vst [vmem:[#allocation122_spill] sm:$0xff] %v6885_v13  ;;  %9512 = vst [vmem:[#allocation123_spill] sm:$0xff] %v6888_v49  ;;  %v6891_v19 = vld [vmem:[#allocation5 + $0x328] sm:$0xff]  ;;  %v6894_v44 = vld [vmem:[#allocation5 + $0x338] sm:$0xff] }
 0x4ec   :  { %2134 = vmatprep.subr.mxu0 %v6879_v4  ;;  %2205 = vmatprep.subr.mxu1 %v6882_v61  ;;  %9513 = vst [vmem:[#allocation124_spill] sm:$0xff] %v6891_v19  ;;  %9514 = vst [vmem:[#allocation125_spill] sm:$0xff] %v6894_v44  ;;  %v6897_v4 = vld [vmem:[#allocation5 + $0x320] sm:$0xff]  ;;  %v6900_v61 = vld [vmem:[#allocation5 + $0x330] sm:$0xff] }
 0x4ed   :  { %2135 = vmatpush2.msra.mxu0 %v6885_v13  ;;  %2206 = vmatpush2.msra.mxu1 %v6888_v49  ;;  %9515 = vst [vmem:[#allocation126_spill] sm:$0xff] %v6897_v4  ;;  %9516 = vst [vmem:[#allocation127_spill] sm:$0xff] %v6900_v61  ;;  %v6903_v13 = vld [vmem:[#allocation5 + $0x308] sm:$0xff]  ;;  %v6906_v49 = vld [vmem:[#allocation5 + $0x318] sm:$0xff] }
 0x4ee   :  { %2136 = vmatprep.subr.mxu0 %v6891_v19  ;;  %2207 = vmatprep.subr.mxu1 %v6894_v44  ;;  %9517 = vst [vmem:[#allocation128_spill] sm:$0xff] %v6903_v13  ;;  %9518 = vst [vmem:[#allocation129_spill] sm:$0xff] %v6906_v49  ;;  %v6909_v19 = vld [vmem:[#allocation5 + $0x300] sm:$0xff]  ;;  %v6912_v44 = vld [vmem:[#allocation5 + $0x310] sm:$0xff] }
 0x4ef   :  { %2137 = vmatpush2.msra.mxu0 %v6897_v4  ;;  %2208 = vmatpush2.msra.mxu1 %v6900_v61  ;;  %9519 = vst [vmem:[#allocation130_spill] sm:$0xff] %v6909_v19  ;;  %9520 = vst [vmem:[#allocation131_spill] sm:$0xff] %v6912_v44  ;;  %v6915_v4 = vld [vmem:[#allocation5 + $0x2e8] sm:$0xff]  ;;  %v6918_v61 = vld [vmem:[#allocation5 + $0x2f8] sm:$0xff] }
 0x4f0   :  { %2138 = vmatprep.subr.mxu0 %v6903_v13  ;;  %2209 = vmatprep.subr.mxu1 %v6906_v49  ;;  %9521 = vst [vmem:[#allocation132_spill] sm:$0xff] %v6915_v4  ;;  %9522 = vst [vmem:[#allocation133_spill] sm:$0xff] %v6918_v61  ;;  %v6921_v13 = vld [vmem:[#allocation5 + $0x2e0] sm:$0xff]  ;;  %v6924_v49 = vld [vmem:[#allocation5 + $0x2f0] sm:$0xff] }
 0x4f1   :  { %2139 = vmatpush2.msra.mxu0 %v6909_v19  ;;  %2210 = vmatpush2.msra.mxu1 %v6912_v44  ;;  %9523 = vst [vmem:[#allocation134_spill] sm:$0xff] %v6921_v13  ;;  %9524 = vst [vmem:[#allocation135_spill] sm:$0xff] %v6924_v49  ;;  %v6927_v19 = vld [vmem:[#allocation5 + $0x2c8] sm:$0xff]  ;;  %v6930_v44 = vld [vmem:[#allocation5 + $0x2d8] sm:$0xff] }
 0x4f2   :  { %2140 = vmatprep.subr.mxu0 %v6915_v4  ;;  %2211 = vmatprep.subr.mxu1 %v6918_v61  ;;  %9525 = vst [vmem:[#allocation136_spill] sm:$0xff] %v6927_v19  ;;  %9526 = vst [vmem:[#allocation137_spill] sm:$0xff] %v6930_v44  ;;  %v6933_v4 = vld [vmem:[#allocation5 + $0x2c0] sm:$0xff]  ;;  %v6936_v61 = vld [vmem:[#allocation5 + $0x2d0] sm:$0xff] }
 0x4f3   :  { %2141 = vmatpush2.msra.mxu0 %v6921_v13  ;;  %2212 = vmatpush2.msra.mxu1 %v6924_v49  ;;  %9527 = vst [vmem:[#allocation138_spill] sm:$0xff] %v6933_v4  ;;  %9528 = vst [vmem:[#allocation139_spill] sm:$0xff] %v6936_v61  ;;  %v6939_v13 = vld [vmem:[#allocation5 + $0x2a8] sm:$0xff]  ;;  %v6942_v49 = vld [vmem:[#allocation5 + $0x2b8] sm:$0xff] }
 0x4f4   :  { %2142 = vmatprep.subr.mxu0 %v6927_v19  ;;  %2213 = vmatprep.subr.mxu1 %v6930_v44  ;;  %9529 = vst [vmem:[#allocation140_spill] sm:$0xff] %v6939_v13  ;;  %9530 = vst [vmem:[#allocation141_spill] sm:$0xff] %v6942_v49  ;;  %v6945_v19 = vld [vmem:[#allocation5 + $0x2a0] sm:$0xff]  ;;  %v6948_v44 = vld [vmem:[#allocation5 + $0x2b0] sm:$0xff] }
 0x4f5   :  { %2143 = vmatpush2.msra.mxu0 %v6933_v4  ;;  %2214 = vmatpush2.msra.mxu1 %v6936_v61  ;;  %9531 = vst [vmem:[#allocation142_spill] sm:$0xff] %v6945_v19  ;;  %9532 = vst [vmem:[#allocation143_spill] sm:$0xff] %v6948_v44  ;;  %v6951_v4 = vld [vmem:[#allocation5 + $0x288] sm:$0xff]  ;;  %v6954_v61 = vld [vmem:[#allocation5 + $0x298] sm:$0xff] }
 0x4f6   :  { %2144 = vmatprep.subr.mxu0 %v6939_v13  ;;  %2215 = vmatprep.subr.mxu1 %v6942_v49  ;;  %9533 = vst [vmem:[#allocation144_spill] sm:$0xff] %v6951_v4  ;;  %9534 = vst [vmem:[#allocation145_spill] sm:$0xff] %v6954_v61  ;;  %v6957_v13 = vld [vmem:[#allocation5 + $0x280] sm:$0xff]  ;;  %v6960_v49 = vld [vmem:[#allocation5 + $0x290] sm:$0xff] }
 0x4f7   :  { %2145 = vmatpush2.msra.mxu0 %v6945_v19  ;;  %2216 = vmatpush2.msra.mxu1 %v6948_v44  ;;  %9535 = vst [vmem:[#allocation146_spill] sm:$0xff] %v6957_v13  ;;  %9536 = vst [vmem:[#allocation147_spill] sm:$0xff] %v6960_v49  ;;  %v6963_v19 = vld [vmem:[#allocation5 + $0x268] sm:$0xff]  ;;  %v6966_v44 = vld [vmem:[#allocation5 + $0x278] sm:$0xff] }
 0x4f8   :  { %2146 = vmatprep.subr.mxu0 %v6951_v4  ;;  %2217 = vmatprep.subr.mxu1 %v6954_v61  ;;  %9537 = vst [vmem:[#allocation148_spill] sm:$0xff] %v6963_v19  ;;  %9538 = vst [vmem:[#allocation149_spill] sm:$0xff] %v6966_v44  ;;  %v6969_v4 = vld [vmem:[#allocation5 + $0x260] sm:$0xff]  ;;  %v6972_v61 = vld [vmem:[#allocation5 + $0x270] sm:$0xff] }
 0x4f9   :  { %2147 = vmatpush2.msra.mxu0 %v6957_v13  ;;  %2218 = vmatpush2.msra.mxu1 %v6960_v49  ;;  %9539 = vst [vmem:[#allocation150_spill] sm:$0xff] %v6969_v4  ;;  %9540 = vst [vmem:[#allocation151_spill] sm:$0xff] %v6972_v61  ;;  %v6975_v13 = vld [vmem:[#allocation5 + $0x248] sm:$0xff]  ;;  %v6978_v49 = vld [vmem:[#allocation5 + $0x258] sm:$0xff] }
 0x4fa   :  { %2148 = vmatprep.subr.mxu0 %v6963_v19  ;;  %2219 = vmatprep.subr.mxu1 %v6966_v44  ;;  %9541 = vst [vmem:[#allocation152_spill] sm:$0xff] %v6975_v13  ;;  %9542 = vst [vmem:[#allocation153_spill] sm:$0xff] %v6978_v49  ;;  %v6981_v19 = vld [vmem:[#allocation5 + $0x240] sm:$0xff]  ;;  %v6984_v44 = vld [vmem:[#allocation5 + $0x250] sm:$0xff] }
 0x4fb   :  { %2149 = vmatpush2.msra.mxu0 %v6969_v4  ;;  %2220 = vmatpush2.msra.mxu1 %v6972_v61  ;;  %9543 = vst [vmem:[#allocation154_spill] sm:$0xff] %v6981_v19  ;;  %9544 = vst [vmem:[#allocation155_spill] sm:$0xff] %v6984_v44  ;;  %v6987_v4 = vld [vmem:[#allocation5 + $0x228] sm:$0xff]  ;;  %v6990_v61 = vld [vmem:[#allocation5 + $0x238] sm:$0xff] }
 0x4fc   :  { %2150 = vmatprep.subr.mxu0 %v6975_v13  ;;  %2221 = vmatprep.subr.mxu1 %v6978_v49  ;;  %9545 = vst [vmem:[#allocation156_spill] sm:$0xff] %v6987_v4  ;;  %9546 = vst [vmem:[#allocation157_spill] sm:$0xff] %v6990_v61  ;;  %v6993_v13 = vld [vmem:[#allocation5 + $0x220] sm:$0xff]  ;;  %v6996_v49 = vld [vmem:[#allocation5 + $0x230] sm:$0xff] }
 0x4fd   :  { %2151 = vmatpush2.msra.mxu0 %v6981_v19  ;;  %2222 = vmatpush2.msra.mxu1 %v6984_v44  ;;  %9547 = vst [vmem:[#allocation158_spill] sm:$0xff] %v6993_v13  ;;  %9548 = vst [vmem:[#allocation159_spill] sm:$0xff] %v6996_v49  ;;  %v6999_v19 = vld [vmem:[#allocation5 + $0x208] sm:$0xff]  ;;  %v7002_v44 = vld [vmem:[#allocation5 + $0x218] sm:$0xff] }
 0x4fe   :  { %2152 = vmatprep.subr.mxu0 %v6987_v4  ;;  %2223 = vmatprep.subr.mxu1 %v6990_v61  ;;  %9549 = vst [vmem:[#allocation162_spill] sm:$0xff] %v6999_v19  ;;  %9550 = vst [vmem:[#allocation166_spill] sm:$0xff] %v7002_v44  ;;  %v7005_v4 = vld [vmem:[#allocation5 + $0x200] sm:$0xff]  ;;  %v7008_v61 = vld [vmem:[#allocation5 + $0x210] sm:$0xff] }
 0x4ff   :  { %2153 = vmatpush2.msra.mxu0 %v6993_v13  ;;  %2224 = vmatpush2.msra.mxu1 %v6996_v49  ;;  %9551 = vst [vmem:[#allocation167_spill] sm:$0xff] %v7005_v4  ;;  %9552 = vst [vmem:[#allocation168_spill] sm:$0xff] %v7008_v61 }
 0x500   :  { %2154 = vmatprep.subr.mxu0 %v6999_v19  ;;  %2225 = vmatprep.subr.mxu1 %v7002_v44 }
 0x501   :  { %2155 = vmatpush2.msra.mxu0 %v7005_v4  ;;  %2226 = vmatpush2.msra.mxu1 %v7008_v61 }
 0x502   :  { %2258 = vmatprep.subr.mxu0 %v6411_v24  ;;  %2329 = vmatprep.subr.mxu1 %v6414_v57 }
 0x560   :  { %v1819_v49 = vpop.f32.mrf.mxu0  ;;  %v1890_v44 = vpop.f32.mrf.mxu1 }
 0x561   :  { %v1820_v13 = vadd.f32 %v1819_v49, %v9401_v40  ;;  %v1891_v24 = vadd.f32 %v1890_v44, %v5603_v3  ;;  %v9556_v3 = vld [vmem:[#allocation163_spill] sm:$0xff] }
 0x562   :  { %v1821_v19 = vpop.f32.mrf.mxu0  ;;  %v1892_v4 = vpop.f32.mrf.mxu1 }
 0x563   :  { %v3561_v50 = vmul.f32 -1.442695, %v1820_v13  ;;  %v1822_v21 = vadd.f32 %v1821_v19, %v9402_v32  ;;  %v1893_v9 = vadd.f32 %v1892_v4, %v9403_v34  ;;  %v9553_v32 = vld [vmem:[#allocation160_spill] sm:$0xff] }
 0x565   :  { %3793 = vpow2.f32 %v3561_v50  ;;  %v3562_v11 = vmul.f32 -1.442695, %v1822_v21  ;;  %v3563_v7 = vmul.f32 -1.442695, %v1893_v9  ;;  %v9554_v9 = vld [vmem:[#allocation161_spill] sm:$0xff] }
 0x567   :  { %3795 = vpow2.f32 %v3562_v11 }
 0x568   :  { %3797 = vpow2.f32 %v3563_v7 }
 0x572   :  { %v3794_v61 = vpop.eup %3793 }
 0x573   :  { %v1898_v5 = vadd.f32 1.0, %v3794_v61 }
 0x574   :  { %v3796_v57 = vpop.eup %3795 }
 0x575   :  { %3799 = vrcp.f32 %v1898_v5  ;;  %v1904_v49 = vadd.f32 1.0, %v3796_v57  ;;  %v3798_v13 = vpop.eup %3797 }
 0x576   :  { %3801 = vtanh.f32 %v1891_v24  ;;  %v1911_v44 = vadd.f32 1.0, %v3798_v13 }
 0x577   :  { %3803 = vrcp.f32 %v1904_v49  ;;  %v9555_v49 = vld [vmem:[#allocation164_spill] sm:$0xff] }
 0x581   :  { %v1985_v19 = vpop.f32.mrf.mxu0  ;;  %v2056_v5 = vpop.f32.mrf.mxu1 }
 0x582   :  { %v3800_v50 = vpop.eup %3799  ;;  %v2061_v21 = vadd.f32 %v1985_v19, %v9553_v32 }
 0x583   :  { %v3802_v11 = vpop.eup %3801  ;;  %v1987_v40 = vpop.f32.mrf.mxu0 }
 0x584   :  { %v3804_v41 = vpop.eup %3803  ;;  %v3564_v4 = vmul.f32 -1.442695, %v2061_v21  ;;  %v2062_v34 = vadd.f32 %v1987_v40, %v9554_v9  ;;  %v1915_v1 = vmul.f32 %v3802_v11, %v3800_v50  ;;  %v2058_v57 = vpop.f32.mrf.mxu1  ;;  %v2063_v40 = vadd.f32 %v2056_v5, %v9556_v3 }
 0x585   :  { %v1914_v61 = vmul.f32 %v3804_v41, %v6424_v33  ;;  %v2064_v19 = vadd.f32 %v2058_v57, %v9555_v49 }
 0x586   :  { %3805 = vpow2.f32 %v3564_v4  ;;  %v3565_v7 = vmul.f32 -1.442695, %v2062_v34 }
 0x587   :  { %v7020_v24 = vadd.f32 %v1915_v1, %v1914_v61  ;;  %v3566_v32 = vmul.f32 -1.442695, %v2064_v19 }
 0x588   :  { %3807 = vpow2.f32 %v3565_v7 }
 0x589   :  { %3809 = vrcp.f32 %v1911_v44  ;;  %v2085_v44 = vrot.slane %v6430_v26, 6  ;;  %v9557_v26 = vld [vmem:[#allocation14_spill] sm:$0xff] }
 0x58a   :  { %3811 = vtanh.f32 %v7020_v24 }
 0x58b   :  { %3813 = vpow2.f32 %v3566_v32 }
 0x593   :  { %v3806_v21 = vpop.eup %3805 }
 0x594   :  { %v2068_v50 = vadd.f32 1.0, %v3806_v21 }
 0x595   :  { %v3808_v11 = vpop.eup %3807 }
 0x596   :  { %v3810_v33 = vpop.eup %3809  ;;  %3815 = vrcp.f32 %v2068_v50  ;;  %v2074_v41 = vadd.f32 1.0, %v3808_v11  ;;  %v9600_v11 = vld [vmem:[#allocation58_spill] sm:$0xff] }
 0x597   :  { %v3812_v34 = vpop.eup %3811  ;;  %3817 = vtanh.f32 %v2063_v40 }
 0x598   :  { %3819 = vrcp.f32 %v2074_v41  ;;  %v1918_v1 = vmul.f32 %v3812_v34, %v3810_v33  ;;  %v3814_v13 = vpop.eup %3813  ;;  %v9601_v33 = vld [vmem:[#allocation59_spill] sm:$0xff]  ;;  %v9602_v41 = vld [vmem:[#allocation60_spill] sm:$0xff]  ;;  %v9603_v34 = vld [vmem:[#allocation61_spill] sm:$0xff] }
 0x599   :  { %v2081_v57 = vadd.f32 1.0, %v3814_v13  ;;  %v9605_v13 = vld [vmem:[#allocation63_spill] sm:$0xff] }
 0x59a   :  { %2156 = vmatprep.mubr.f32.mxu0 %v1918_v1  ;;  %2227 = vmatprep.mubr.f32.mxu1 %v1918_v1  ;;  %v9604_v1 = vld [vmem:[#allocation62_spill] sm:$0xff] }
 0x59b   :  { %3821 = vrcp.f32 %v2081_v57  ;;  %v9610_v57 = vld [vmem:[#allocation68_spill] sm:$0xff] }
 0x5a3   :  { %v3816_v4 = vpop.eup %3815 }
 0x5a4   :  { %v3818_v61 = vpop.eup %3817 }
 0x5a5   :  { %v3820_v7 = vpop.eup %3819  ;;  %v2088_v5 = vmul.f32 %v3818_v61, %v3816_v4  ;;  %v9606_v4 = vld [vmem:[#allocation64_spill] sm:$0xff]  ;;  %v9607_v61 = vld [vmem:[#allocation65_spill] sm:$0xff] }
 0x5a6   :  { %v2087_v19 = vmul.f32 %v3820_v7, %v2085_v44  ;;  %v9608_v44 = vld [vmem:[#allocation66_spill] sm:$0xff]  ;;  %v9609_v7 = vld [vmem:[#allocation67_spill] sm:$0xff] }
 0x5a8   :  { %v7026_v21 = vadd.f32 %v2088_v5, %v2087_v19  ;;  %v3822_v32 = vpop.eup %3821  ;;  %v9611_v5 = vld [vmem:[#allocation69_spill] sm:$0xff]  ;;  %v9612_v19 = vld [vmem:[#allocation70_spill] sm:$0xff] }
 0x5aa   :  { %3823 = vtanh.f32 %v7026_v21 }
 0x5b7   :  { %v3824_v40 = vpop.eup %3823 }
 0x5b8   :  { %v7029_v50 = vmul.f32 %v3824_v40, %v3822_v32  ;;  %v9613_v32 = vld [vmem:[#allocation71_spill] sm:$0xff]  ;;  %v9614_v40 = vld [vmem:[#allocation72_spill] sm:$0xff] }
 0x5ba   :  { %2157 = vmatmul.mubr.f32.vlgmr.msra.gmra.mxu0 %v7029_v50  ;;  %2228 = vmatmul.mubr.f32.vlgmr.msra.gmra.mxu1 %v7029_v50 }
 0x5bb   :  { %2259 = vmatpush1.msra.mxu0 %v6437_v47  ;;  %2330 = vmatpush1.msra.mxu1 %v6440_v55  ;;  %v9558_v47 = vld [vmem:[#allocation24_spill] sm:$0xff]  ;;  %v9559_v55 = vld [vmem:[#allocation15_spill] sm:$0xff] }
 0x5bc   :  { %2260 = vmatprep.subr.mxu0 %v6443_v17  ;;  %2331 = vmatprep.subr.mxu1 %v6446_v59  ;;  %v9560_v17 = vld [vmem:[#allocation25_spill] sm:$0xff]  ;;  %v9561_v59 = vld [vmem:[#allocation16_spill] sm:$0xff] }
 0x5bd   :  { %2261 = vmatpush1.msra.mxu0 %v6449_v2  ;;  %2332 = vmatpush1.msra.mxu1 %v6452_v43  ;;  %v9562_v2 = vld [vmem:[#allocation26_spill] sm:$0xff]  ;;  %v9563_v43 = vld [vmem:[#allocation17_spill] sm:$0xff] }
 0x5be   :  { %2262 = vmatprep.subr.mxu0 %v6455_v30  ;;  %2333 = vmatprep.subr.mxu1 %v6458_v22  ;;  %v9564_v30 = vld [vmem:[#allocation27_spill] sm:$0xff]  ;;  %v9565_v22 = vld [vmem:[#allocation18_spill] sm:$0xff] }
 0x5bf   :  { %2263 = vmatpush1.msra.mxu0 %v6461_v28  ;;  %2334 = vmatpush1.msra.mxu1 %v6464_v48  ;;  %v9566_v28 = vld [vmem:[#allocation28_spill] sm:$0xff]  ;;  %v9567_v48 = vld [vmem:[#allocation19_spill] sm:$0xff] }
 0x5c0   :  { %2264 = vmatprep.subr.mxu0 %v6467_v38  ;;  %2335 = vmatprep.subr.mxu1 %v6470_v0  ;;  %v9568_v38 = vld [vmem:[#allocation29_spill] sm:$0xff]  ;;  %v9569_v0 = vld [vmem:[#allocation20_spill] sm:$0xff] }
 0x5c1   :  { %2265 = vmatpush1.msra.mxu0 %v6473_v6  ;;  %2336 = vmatpush1.msra.mxu1 %v6476_v36  ;;  %v9570_v6 = vld [vmem:[#allocation30_spill] sm:$0xff]  ;;  %v9571_v36 = vld [vmem:[#allocation21_spill] sm:$0xff] }
 0x5c2   :  { %2266 = vmatprep.subr.mxu0 %v6479_v8  ;;  %2337 = vmatprep.subr.mxu1 %v6482_v10  ;;  %v9572_v8 = vld [vmem:[#allocation31_spill] sm:$0xff]  ;;  %v9573_v10 = vld [vmem:[#allocation32_spill] sm:$0xff] }
 0x5c3   :  { %2267 = vmatpush1.msra.mxu0 %v6485_v12  ;;  %2338 = vmatpush1.msra.mxu1 %v6488_v14  ;;  %v9574_v12 = vld [vmem:[#allocation33_spill] sm:$0xff]  ;;  %v9575_v14 = vld [vmem:[#allocation34_spill] sm:$0xff] }
 0x5c4   :  { %2268 = vmatprep.subr.mxu0 %v6491_v16  ;;  %2339 = vmatprep.subr.mxu1 %v6494_v18  ;;  %v9576_v16 = vmov 0.0   ;;  %v9577_v18 = vld [vmem:[#allocation35_spill] sm:$0xff] }
 0x5c5   :  { %2269 = vmatpush1.msra.mxu0 %v6497_v20  ;;  %2340 = vmatpush1.msra.mxu1 %v6500_v23  ;;  %v9578_v20 = vld [vmem:[#allocation36_spill] sm:$0xff]  ;;  %v9579_v23 = vld [vmem:[#allocation37_spill] sm:$0xff] }
 0x5c6   :  { %2270 = vmatprep.subr.mxu0 %v6503_v25  ;;  %2341 = vmatprep.subr.mxu1 %v6506_v27  ;;  %v9580_v25 = vld [vmem:[#allocation38_spill] sm:$0xff]  ;;  %v9581_v27 = vld [vmem:[#allocation39_spill] sm:$0xff] }
 0x5c7   :  { %2271 = vmatpush1.msra.mxu0 %v6509_v63  ;;  %2342 = vmatpush1.msra.mxu1 %v6512_v29  ;;  %v9582_v63 = vld [vmem:[#allocation40_spill] sm:$0xff]  ;;  %v9583_v29 = vld [vmem:[#allocation41_spill] sm:$0xff] }
 0x5c8   :  { %2272 = vmatprep.subr.mxu0 %v6515_v35  ;;  %2343 = vmatprep.subr.mxu1 %v6518_v37  ;;  %v9584_v35 = vld [vmem:[#allocation42_spill] sm:$0xff]  ;;  %v9585_v37 = vld [vmem:[#allocation43_spill] sm:$0xff] }
 0x5c9   :  { %2273 = vmatpush1.msra.mxu0 %v6521_v39  ;;  %2344 = vmatpush1.msra.mxu1 %v6524_v31  ;;  %v9586_v39 = vld [vmem:[#allocation44_spill] sm:$0xff]  ;;  %v9587_v31 = vld [vmem:[#allocation45_spill] sm:$0xff] }
 0x5ca   :  { %2274 = vmatprep.subr.mxu0 %v6527_v42  ;;  %2345 = vmatprep.subr.mxu1 %v6530_v45  ;;  %v9588_v42 = vld [vmem:[#allocation46_spill] sm:$0xff]  ;;  %v9589_v45 = vld [vmem:[#allocation47_spill] sm:$0xff] }
 0x5cb   :  { %2275 = vmatpush1.msra.mxu0 %v6533_v46  ;;  %2346 = vmatpush1.msra.mxu1 %v6536_v52  ;;  %v9590_v46 = vld [vmem:[#allocation48_spill] sm:$0xff]  ;;  %v9591_v52 = vld [vmem:[#allocation49_spill] sm:$0xff] }
 0x5cc   :  { %2276 = vmatprep.subr.mxu0 %v6539_v15  ;;  %2347 = vmatprep.subr.mxu1 %v6542_v53  ;;  %v9592_v15 = vld [vmem:[#allocation50_spill] sm:$0xff]  ;;  %v9593_v53 = vld [vmem:[#allocation51_spill] sm:$0xff] }
 0x5cd   :  { %2277 = vmatpush1.msra.mxu0 %v6545_v54  ;;  %2348 = vmatpush1.msra.mxu1 %v6548_v51  ;;  %v9594_v54 = vld [vmem:[#allocation52_spill] sm:$0xff]  ;;  %v9595_v51 = vld [vmem:[#allocation53_spill] sm:$0xff] }
 0x5ce   :  { %2278 = vmatprep.subr.mxu0 %v6551_v56  ;;  %2349 = vmatprep.subr.mxu1 %v6554_v58  ;;  %v9596_v56 = vld [vmem:[#allocation54_spill] sm:$0xff]  ;;  %v9597_v58 = vld [vmem:[#allocation55_spill] sm:$0xff] }
 0x5cf   :  { %2279 = vmatpush1.msra.mxu0 %v6557_v60  ;;  %2350 = vmatpush1.msra.mxu1 %v6560_v62  ;;  %v9598_v60 = vld [vmem:[#allocation56_spill] sm:$0xff]  ;;  %v9599_v62 = vld [vmem:[#allocation57_spill] sm:$0xff] }
 0x5d0   :  { %2280 = vmatprep.subr.mxu0 %v9557_v26  ;;  %2351 = vmatprep.subr.mxu1 %v9558_v47  ;;  %v9616_v26 = vld [vmem:[#allocation74_spill] sm:$0xff]  ;;  %v9617_v47 = vld [vmem:[#allocation75_spill] sm:$0xff] }
 0x5d1   :  { %2281 = vmatpush1.msra.mxu0 %v9559_v55  ;;  %2352 = vmatpush1.msra.mxu1 %v9560_v17  ;;  %v9618_v55 = vld [vmem:[#allocation76_spill] sm:$0xff]  ;;  %v9619_v17 = vld [vmem:[#allocation77_spill] sm:$0xff] }
 0x5d2   :  { %2282 = vmatprep.subr.mxu0 %v9561_v59  ;;  %2353 = vmatprep.subr.mxu1 %v9562_v2  ;;  %v9620_v59 = vld [vmem:[#allocation78_spill] sm:$0xff]  ;;  %v9621_v2 = vld [vmem:[#allocation79_spill] sm:$0xff] }
 0x5d3   :  { %2283 = vmatpush1.msra.mxu0 %v9563_v43  ;;  %2354 = vmatpush1.msra.mxu1 %v9564_v30  ;;  %v9622_v43 = vld [vmem:[#allocation80_spill] sm:$0xff]  ;;  %v9623_v30 = vld [vmem:[#allocation81_spill] sm:$0xff] }
 0x5d4   :  { %2284 = vmatprep.subr.mxu0 %v9565_v22  ;;  %2355 = vmatprep.subr.mxu1 %v9566_v28  ;;  %v9624_v22 = vld [vmem:[#allocation82_spill] sm:$0xff]  ;;  %v9625_v28 = vld [vmem:[#allocation83_spill] sm:$0xff] }
 0x5d5   :  { %2285 = vmatpush1.msra.mxu0 %v9567_v48  ;;  %2356 = vmatpush1.msra.mxu1 %v9568_v38  ;;  %v9626_v48 = vld [vmem:[#allocation84_spill] sm:$0xff]  ;;  %v9627_v38 = vld [vmem:[#allocation85_spill] sm:$0xff] }
 0x5d6   :  { %2286 = vmatprep.subr.mxu0 %v9569_v0  ;;  %2357 = vmatprep.subr.mxu1 %v9570_v6  ;;  %v9628_v0 = vld [vmem:[#allocation86_spill] sm:$0xff]  ;;  %v9629_v6 = vld [vmem:[#allocation87_spill] sm:$0xff] }
 0x5d7   :  { %2287 = vmatpush1.msra.mxu0 %v9571_v36  ;;  %2358 = vmatpush1.msra.mxu1 %v9572_v8  ;;  %v9630_v36 = vld [vmem:[#allocation88_spill] sm:$0xff]  ;;  %v9631_v8 = vld [vmem:[#allocation89_spill] sm:$0xff] }
 0x5d8   :  { %2288 = vmatprep.subr.mxu0 %v9573_v10  ;;  %2359 = vmatprep.subr.mxu1 %v9574_v12  ;;  %v9632_v10 = vld [vmem:[#allocation90_spill] sm:$0xff]  ;;  %v9633_v12 = vld [vmem:[#allocation91_spill] sm:$0xff] }
 0x5d9   :  { %2289 = vmatpush1.msra.mxu0 %v9575_v14  ;;  %2322 = vmatprep.mubr.f32.mxu0 %v9576_v16  ;;  %v9634_v14 = vld [vmem:[#allocation92_spill] sm:$0xff] }
 0x5da   :  { %2360 = vmatpush1.msra.mxu1 %v9577_v18  ;;  %2393 = vmatprep.mubr.f32.mxu1 %v9576_v16  ;;  %v9635_v18 = vld [vmem:[#allocation93_spill] sm:$0xff] }
 0x5db   :  { %2323 = vmatmul.mubr.f32.vlgmr.msra.gmra.mxu0 %v7029_v50  ;;  %2394 = vmatmul.mubr.f32.vlgmr.msra.gmra.mxu1 %v7029_v50  ;;  %v9615_v50 = vld [vmem:[#allocation73_spill] sm:$0xff] }
 0x5dc   :  { %2450 = vmatprep.subr.mxu0 %v9578_v20  ;;  %2521 = vmatprep.subr.mxu1 %v9579_v23  ;;  %v9636_v20 = vld [vmem:[#allocation94_spill] sm:$0xff]  ;;  %v9637_v23 = vld [vmem:[#allocation95_spill] sm:$0xff] }
 0x5dd   :  { %2451 = vmatpush1.msra.mxu0 %v9580_v25  ;;  %2522 = vmatpush1.msra.mxu1 %v9581_v27  ;;  %v9638_v25 = vld [vmem:[#allocation96_spill] sm:$0xff]  ;;  %v9639_v27 = vld [vmem:[#allocation97_spill] sm:$0xff] }
 0x5de   :  { %2452 = vmatprep.subr.mxu0 %v9582_v63  ;;  %2523 = vmatprep.subr.mxu1 %v9583_v29  ;;  %v9640_v63 = vld [vmem:[#allocation98_spill] sm:$0xff]  ;;  %v9641_v29 = vld [vmem:[#allocation99_spill] sm:$0xff] }
 0x5df   :  { %2453 = vmatpush1.msra.mxu0 %v9584_v35  ;;  %2524 = vmatpush1.msra.mxu1 %v9585_v37  ;;  %v9642_v35 = vld [vmem:[#allocation100_spill] sm:$0xff]  ;;  %v9643_v37 = vld [vmem:[#allocation101_spill] sm:$0xff] }
 0x5e0   :  { %2454 = vmatprep.subr.mxu0 %v9586_v39  ;;  %2525 = vmatprep.subr.mxu1 %v9587_v31  ;;  %v9644_v39 = vld [vmem:[#allocation102_spill] sm:$0xff]  ;;  %v9645_v31 = vld [vmem:[#allocation103_spill] sm:$0xff] }
 0x5e1   :  { %2455 = vmatpush1.msra.mxu0 %v9588_v42  ;;  %2526 = vmatpush1.msra.mxu1 %v9589_v45  ;;  %v9646_v42 = vld [vmem:[#allocation104_spill] sm:$0xff]  ;;  %v9647_v45 = vld [vmem:[#allocation105_spill] sm:$0xff] }
 0x5e2   :  { %2456 = vmatprep.subr.mxu0 %v9590_v46  ;;  %2527 = vmatprep.subr.mxu1 %v9591_v52  ;;  %v9648_v46 = vld [vmem:[#allocation106_spill] sm:$0xff]  ;;  %v9649_v52 = vld [vmem:[#allocation107_spill] sm:$0xff] }
 0x5e3   :  { %2457 = vmatpush1.msra.mxu0 %v9592_v15  ;;  %2528 = vmatpush1.msra.mxu1 %v9593_v53  ;;  %v9650_v15 = vld [vmem:[#allocation108_spill] sm:$0xff]  ;;  %v9651_v53 = vld [vmem:[#allocation109_spill] sm:$0xff] }
 0x5e4   :  { %2458 = vmatprep.subr.mxu0 %v9594_v54  ;;  %2529 = vmatprep.subr.mxu1 %v9595_v51  ;;  %v9652_v54 = vld [vmem:[#allocation110_spill] sm:$0xff]  ;;  %v9653_v51 = vld [vmem:[#allocation111_spill] sm:$0xff] }
 0x5e5   :  { %2459 = vmatpush1.msra.mxu0 %v9596_v56  ;;  %2530 = vmatpush1.msra.mxu1 %v9597_v58  ;;  %v9654_v56 = vld [vmem:[#allocation112_spill] sm:$0xff]  ;;  %v9655_v58 = vld [vmem:[#allocation113_spill] sm:$0xff] }
 0x5e6   :  { %2460 = vmatprep.subr.mxu0 %v9598_v60  ;;  %2531 = vmatprep.subr.mxu1 %v9599_v62  ;;  %v9656_v60 = vld [vmem:[#allocation114_spill] sm:$0xff]  ;;  %v9657_v62 = vld [vmem:[#allocation115_spill] sm:$0xff] }
 0x5e7   :  { %2461 = vmatpush1.msra.mxu0 %v9600_v11  ;;  %2532 = vmatpush1.msra.mxu1 %v9601_v33  ;;  %v9658_v11 = vld [vmem:[#allocation116_spill] sm:$0xff]  ;;  %v9659_v33 = vld [vmem:[#allocation117_spill] sm:$0xff] }
 0x5e8   :  { %2462 = vmatprep.subr.mxu0 %v9602_v41  ;;  %2533 = vmatprep.subr.mxu1 %v9603_v34  ;;  %v9660_v41 = vld [vmem:[#allocation118_spill] sm:$0xff]  ;;  %v9661_v34 = vld [vmem:[#allocation119_spill] sm:$0xff] }
 0x5e9   :  { %2463 = vmatpush1.msra.mxu0 %v9604_v1  ;;  %2534 = vmatpush1.msra.mxu1 %v9605_v13  ;;  %v9662_v1 = vld [vmem:[#allocation120_spill] sm:$0xff]  ;;  %v9663_v13 = vld [vmem:[#allocation121_spill] sm:$0xff] }
 0x5ea   :  { %2464 = vmatprep.subr.mxu0 %v9606_v4  ;;  %2535 = vmatprep.subr.mxu1 %v9607_v61  ;;  %v9664_v4 = vld [vmem:[#allocation122_spill] sm:$0xff]  ;;  %v9665_v61 = vld [vmem:[#allocation123_spill] sm:$0xff] }
 0x5eb   :  { %2465 = vmatpush1.msra.mxu0 %v9608_v44  ;;  %2536 = vmatpush1.msra.mxu1 %v9609_v7  ;;  %v9666_v44 = vld [vmem:[#allocation124_spill] sm:$0xff]  ;;  %v9667_v7 = vld [vmem:[#allocation125_spill] sm:$0xff] }
 0x5ec   :  { %2466 = vmatprep.subr.mxu0 %v9610_v57  ;;  %2537 = vmatprep.subr.mxu1 %v9611_v5  ;;  %v9668_v57 = vld [vmem:[#allocation126_spill] sm:$0xff]  ;;  %v9669_v5 = vld [vmem:[#allocation127_spill] sm:$0xff] }
 0x5ed   :  { %2467 = vmatpush1.msra.mxu0 %v9612_v19  ;;  %2538 = vmatpush1.msra.mxu1 %v9613_v32  ;;  %v9670_v19 = vld [vmem:[#allocation128_spill] sm:$0xff]  ;;  %v9671_v32 = vld [vmem:[#allocation129_spill] sm:$0xff] }
 0x5ee   :  { %2468 = vmatprep.subr.mxu0 %v9614_v40  ;;  %2539 = vmatprep.subr.mxu1 %v9615_v50  ;;  %v9672_v40 = vld [vmem:[#allocation130_spill] sm:$0xff]  ;;  %v9673_v50 = vld [vmem:[#allocation131_spill] sm:$0xff] }
 0x5ef   :  { %2469 = vmatpush1.msra.mxu0 %v9616_v26  ;;  %2540 = vmatpush1.msra.mxu1 %v9617_v47  ;;  %v9674_v26 = vld [vmem:[#allocation132_spill] sm:$0xff]  ;;  %v9675_v47 = vld [vmem:[#allocation133_spill] sm:$0xff] }
 0x5f0   :  { %2470 = vmatprep.subr.mxu0 %v9618_v55  ;;  %2541 = vmatprep.subr.mxu1 %v9619_v17  ;;  %v9676_v55 = vld [vmem:[#allocation134_spill] sm:$0xff]  ;;  %v9677_v17 = vld [vmem:[#allocation135_spill] sm:$0xff] }
 0x5f1   :  { %2471 = vmatpush1.msra.mxu0 %v9620_v59  ;;  %2542 = vmatpush1.msra.mxu1 %v9621_v2  ;;  %v9678_v59 = vld [vmem:[#allocation136_spill] sm:$0xff]  ;;  %v9679_v2 = vld [vmem:[#allocation137_spill] sm:$0xff] }
 0x5f2   :  { %2472 = vmatprep.subr.mxu0 %v9622_v43  ;;  %2543 = vmatprep.subr.mxu1 %v9623_v30  ;;  %v9680_v43 = vld [vmem:[#allocation138_spill] sm:$0xff]  ;;  %v9681_v30 = vld [vmem:[#allocation139_spill] sm:$0xff] }
 0x5f3   :  { %2473 = vmatpush1.msra.mxu0 %v9624_v22  ;;  %2544 = vmatpush1.msra.mxu1 %v9625_v28  ;;  %v9682_v22 = vld [vmem:[#allocation140_spill] sm:$0xff]  ;;  %v9683_v28 = vld [vmem:[#allocation141_spill] sm:$0xff] }
 0x5f4   :  { %2474 = vmatprep.subr.mxu0 %v9626_v48  ;;  %2545 = vmatprep.subr.mxu1 %v9627_v38  ;;  %v9684_v48 = vld [vmem:[#allocation142_spill] sm:$0xff]  ;;  %v9685_v38 = vld [vmem:[#allocation143_spill] sm:$0xff] }
 0x5f5   :  { %2475 = vmatpush1.msra.mxu0 %v9628_v0  ;;  %2546 = vmatpush1.msra.mxu1 %v9629_v6  ;;  %v9686_v0 = vld [vmem:[#allocation144_spill] sm:$0xff]  ;;  %v9687_v6 = vld [vmem:[#allocation145_spill] sm:$0xff] }
 0x5f6   :  { %2476 = vmatprep.subr.mxu0 %v9630_v36  ;;  %2547 = vmatprep.subr.mxu1 %v9631_v8  ;;  %v9688_v36 = vld [vmem:[#allocation146_spill] sm:$0xff]  ;;  %v9689_v8 = vld [vmem:[#allocation147_spill] sm:$0xff] }
 0x5f7   :  { %2477 = vmatpush1.msra.mxu0 %v9632_v10  ;;  %2548 = vmatpush1.msra.mxu1 %v9633_v12  ;;  %v9690_v10 = vld [vmem:[#allocation148_spill] sm:$0xff]  ;;  %v9691_v12 = vld [vmem:[#allocation149_spill] sm:$0xff] }
 0x5f8   :  { %2478 = vmatprep.subr.mxu0 %v9634_v14  ;;  %2549 = vmatprep.subr.mxu1 %v9635_v18  ;;  %v9692_v14 = vld [vmem:[#allocation150_spill] sm:$0xff]  ;;  %v9693_v18 = vld [vmem:[#allocation151_spill] sm:$0xff] }
 0x5f9   :  { %2479 = vmatpush1.msra.mxu0 %v9636_v20  ;;  %2550 = vmatpush1.msra.mxu1 %v9637_v23  ;;  %v9694_v20 = vld [vmem:[#allocation152_spill] sm:$0xff]  ;;  %v9695_v23 = vld [vmem:[#allocation153_spill] sm:$0xff] }
 0x5fa   :  { %2480 = vmatprep.subr.mxu0 %v9638_v25  ;;  %2551 = vmatprep.subr.mxu1 %v9639_v27  ;;  %v9696_v25 = vld [vmem:[#allocation154_spill] sm:$0xff]  ;;  %v9697_v27 = vld [vmem:[#allocation155_spill] sm:$0xff] }
 0x5fb   :  { %2481 = vmatpush1.msra.mxu0 %v9640_v63  ;;  %2552 = vmatpush1.msra.mxu1 %v9641_v29  ;;  %v9698_v63 = vld [vmem:[#allocation156_spill] sm:$0xff]  ;;  %v9699_v29 = vld [vmem:[#allocation157_spill] sm:$0xff] }
 0x5fc   :  { %2482 = vmatprep.subr.mxu0 %v9642_v35  ;;  %2553 = vmatprep.subr.mxu1 %v9643_v37  ;;  %v9700_v35 = vld [vmem:[#allocation158_spill] sm:$0xff]  ;;  %v9701_v37 = vld [vmem:[#allocation159_spill] sm:$0xff] }
 0x5fd   :  { %2483 = vmatpush2.msra.mxu0 %v9644_v39  ;;  %2554 = vmatpush2.msra.mxu1 %v9645_v31  ;;  %v9702_v39 = vld [vmem:[#allocation162_spill] sm:$0xff] }
 0x5fe   :  { %2484 = vmatprep.subr.mxu0 %v9646_v42  ;;  %2555 = vmatprep.subr.mxu1 %v9647_v45  ;;  %v9703_v31 = vld [vmem:[#allocation166_spill] sm:$0xff]  ;;  %v9704_v42 = vld [vmem:[#allocation167_spill] sm:$0xff]  ;;  %v9705_v45 = vld [vmem:[#allocation168_spill] sm:$0xff] }
 0x5ff   :  { %2485 = vmatpush2.msra.mxu0 %v9648_v46  ;;  %2556 = vmatpush2.msra.mxu1 %v9649_v52  ;;  %v7227_v46 = vld [vmem:[#allocation2 + $0x1e8] sm:$0xff]  ;;  %v7230_v52 = vld [vmem:[#allocation2 + $0x1f8] sm:$0xff] }
 0x600   :  { %2486 = vmatprep.subr.mxu0 %v9650_v15  ;;  %2557 = vmatprep.subr.mxu1 %v9651_v53  ;;  %v9706_v53 = vld [vmem:[#allocation12_spill] sm:$0xff] }
 0x601   :  { %2487 = vmatpush2.msra.mxu0 %v9652_v54  ;;  %2558 = vmatpush2.msra.mxu1 %v9653_v51 }
 0x602   :  { %2488 = vmatprep.subr.mxu0 %v9654_v56  ;;  %2559 = vmatprep.subr.mxu1 %v9655_v58  ;;  %v9707_v58 = vld [vmem:[#allocation22_spill] sm:$0xff] }
 0x603   :  { %2489 = vmatpush2.msra.mxu0 %v9656_v60  ;;  %2560 = vmatpush2.msra.mxu1 %v9657_v62 }
 0x604   :  { %2490 = vmatprep.subr.mxu0 %v9658_v11  ;;  %2561 = vmatprep.subr.mxu1 %v9659_v33 }
 0x605   :  { %2491 = vmatpush2.msra.mxu0 %v9660_v41  ;;  %2562 = vmatpush2.msra.mxu1 %v9661_v34  ;;  %v9708_v41 = vld [vmem:[#allocation13_spill] sm:$0xff] }
 0x606   :  { %2492 = vmatprep.subr.mxu0 %v9662_v1  ;;  %2563 = vmatprep.subr.mxu1 %v9663_v13 }
 0x607   :  { %2493 = vmatpush2.msra.mxu0 %v9664_v4  ;;  %2564 = vmatpush2.msra.mxu1 %v9665_v61  ;;  %v9709_v4 = vld [vmem:[#allocation23_spill] sm:$0xff] }
 0x608   :  { %2494 = vmatprep.subr.mxu0 %v9666_v44  ;;  %2565 = vmatprep.subr.mxu1 %v9667_v7 }
 0x609   :  { %2495 = vmatpush2.msra.mxu0 %v9668_v57  ;;  %2566 = vmatpush2.msra.mxu1 %v9669_v5 }
 0x60a   :  { %2496 = vmatprep.subr.mxu0 %v9670_v19  ;;  %2567 = vmatprep.subr.mxu1 %v9671_v32 }
 0x60b   :  { %2497 = vmatpush2.msra.mxu0 %v9672_v40  ;;  %2568 = vmatpush2.msra.mxu1 %v9673_v50 }
 0x60c   :  { %2498 = vmatprep.subr.mxu0 %v9674_v26  ;;  %2569 = vmatprep.subr.mxu1 %v9675_v47 }
 0x60d   :  { %2499 = vmatpush2.msra.mxu0 %v9676_v55  ;;  %2570 = vmatpush2.msra.mxu1 %v9677_v17  ;;  %v9710_v17 = vld [vmem:[#allocation160_spill] sm:$0xff] }
 0x60e   :  { %2500 = vmatprep.subr.mxu0 %v9678_v59  ;;  %2571 = vmatprep.subr.mxu1 %v9679_v2 }
 0x60f   :  { %2501 = vmatpush2.msra.mxu0 %v9680_v43  ;;  %2572 = vmatpush2.msra.mxu1 %v9681_v30 }
 0x610   :  { %2502 = vmatprep.subr.mxu0 %v9682_v22  ;;  %2573 = vmatprep.subr.mxu1 %v9683_v28 }
 0x611   :  { %2503 = vmatpush2.msra.mxu0 %v9684_v48  ;;  %2574 = vmatpush2.msra.mxu1 %v9685_v38 }
 0x612   :  { %2504 = vmatprep.subr.mxu0 %v9686_v0  ;;  %2575 = vmatprep.subr.mxu1 %v9687_v6 }
 0x613   :  { %2505 = vmatpush2.msra.mxu0 %v9688_v36  ;;  %2576 = vmatpush2.msra.mxu1 %v9689_v8 }
 0x614   :  { %2506 = vmatprep.subr.mxu0 %v9690_v10  ;;  %2577 = vmatprep.subr.mxu1 %v9691_v12 }
 0x615   :  { %2507 = vmatpush2.msra.mxu0 %v9692_v14  ;;  %2578 = vmatpush2.msra.mxu1 %v9693_v18 }
 0x616   :  { %2508 = vmatprep.subr.mxu0 %v9694_v20  ;;  %2579 = vmatprep.subr.mxu1 %v9695_v23 }
 0x617   :  { %2509 = vmatpush2.msra.mxu0 %v9696_v25  ;;  %2580 = vmatpush2.msra.mxu1 %v9697_v27 }
 0x618   :  { %2510 = vmatprep.subr.mxu0 %v9698_v63  ;;  %2581 = vmatprep.subr.mxu1 %v9699_v29 }
 0x619   :  { %2511 = vmatpush2.msra.mxu0 %v9700_v35  ;;  %2582 = vmatpush2.msra.mxu1 %v9701_v37 }
 0x61a   :  { %2512 = vmatprep.subr.mxu0 %v9702_v39  ;;  %2583 = vmatprep.subr.mxu1 %v9703_v31 }
 0x61b   :  { %2513 = vmatpush2.msra.mxu0 %v9704_v42  ;;  %2584 = vmatpush2.msra.mxu1 %v9705_v45  ;;  %v2436_v42 = vrot.slane %v7026_v21, 6  ;;  %v7256_v21 = vld [vmem:[#allocation2 + $0x1f0] sm:$0xff] }
 0x61c   :  { %2616 = vmatprep.subr.mxu0 %v7227_v46  ;;  %2687 = vmatprep.subr.mxu1 %v7230_v52 }
 0x67a   :  { %v2158_v15 = vpop.f32.mrf.mxu0  ;;  %v2229_v62 = vpop.f32.mrf.mxu1 }
 0x67b   :  { %v2159_v54 = vadd.f32 %v2158_v15, %v9706_v53  ;;  %v2230_v61 = vadd.f32 %v2229_v62, %v9709_v4 }
 0x67c   :  { %v2160_v51 = vpop.f32.mrf.mxu0  ;;  %v2231_v33 = vpop.f32.mrf.mxu1 }
 0x67d   :  { %v3567_v56 = vmul.f32 -1.442695, %v2159_v54  ;;  %v2161_v60 = vadd.f32 %v2160_v51, %v9707_v58  ;;  %v2232_v34 = vadd.f32 %v2231_v33, %v9708_v41 }
 0x67f   :  { %3825 = vpow2.f32 %v3567_v56  ;;  %v3568_v11 = vmul.f32 -1.442695, %v2161_v60  ;;  %v3569_v1 = vmul.f32 -1.442695, %v2232_v34  ;;  %v7253_v34 = vld [vmem:[#allocation2 + $0x1e0] sm:$0xff] }
 0x681   :  { %3827 = vpow2.f32 %v3568_v11 }
 0x682   :  { %3829 = vpow2.f32 %v3569_v1  ;;  %v7259_v1 = vld [vmem:[#allocation2 + $0x1c8] sm:$0xff] }
 0x68c   :  { %v3826_v13 = vpop.eup %3825 }
 0x68d   :  { %v2237_v44 = vadd.f32 1.0, %v3826_v13  ;;  %v7262_v13 = vld [vmem:[#allocation2 + $0x1d8] sm:$0xff] }
 0x68e   :  { %v3828_v7 = vpop.eup %3827 }
 0x68f   :  { %3831 = vrcp.f32 %v2237_v44  ;;  %v2243_v57 = vadd.f32 1.0, %v3828_v7  ;;  %v3830_v5 = vpop.eup %3829  ;;  %v7268_v44 = vld [vmem:[#allocation2 + $0x1d0] sm:$0xff]  ;;  %v7271_v7 = vld [vmem:[#allocation2 + $0x1a8] sm:$0xff] }
 0x690   :  { %3833 = vtanh.f32 %v2230_v61  ;;  %v2250_v26 = vadd.f32 1.0, %v3830_v5  ;;  %v7265_v61 = vld [vmem:[#allocation2 + $0x1c0] sm:$0xff] }
 0x691   :  { %3835 = vrcp.f32 %v2243_v57  ;;  %v7274_v57 = vld [vmem:[#allocation2 + $0x1b8] sm:$0xff]  ;;  %v7277_v5 = vld [vmem:[#allocation2 + $0x1a0] sm:$0xff] }
 0x692   :  { %3837 = vrcp.f32 %v2250_v26  ;;  %v7292_v26 = vld [vmem:[#allocation2 + $0x190] sm:$0xff] }
 0x69b   :  { %v2324_v19 = vpop.f32.mrf.mxu0  ;;  %v2395_v2 = vpop.f32.mrf.mxu1 }
 0x69c   :  { %v3832_v32 = vpop.eup %3831  ;;  %v2404_v40 = vrot.slane %v2324_v19, 6  ;;  %v2406_v10 = vrot.slane %v2395_v2, 6  ;;  %v7280_v19 = vld [vmem:[#allocation2 + $0x1b0] sm:$0xff] }
 0x69d   :  { %v3834_v50 = vpop.eup %3833  ;;  %v2326_v47 = vpop.f32.mrf.mxu0  ;;  %v7304_v2 = vld [vmem:[#allocation2 + $0x170] sm:$0xff] }
 0x69e   :  { %v3836_v55 = vpop.eup %3835  ;;  %v2412_v59 = vadd.f32 %v2404_v40, %v9710_v17  ;;  %v2405_v43 = vrot.slane %v2326_v47, 6  ;;  %v2254_v30 = vmul.f32 %v3834_v50, %v3832_v32  ;;  %v2397_v6 = vpop.f32.mrf.mxu1  ;;  %v7283_v32 = vld [vmem:[#allocation2 + $0x188] sm:$0xff]  ;;  %v7286_v40 = vld [vmem:[#allocation2 + $0x198] sm:$0xff]  ;;  %v7289_v50 = vld [vmem:[#allocation2 + $0x180] sm:$0xff] }
 0x69f   :  { %v2253_v22 = vmul.f32 %v3836_v55, %v7020_v24  ;;  %v2407_v36 = vrot.slane %v2397_v6, 6  ;;  %v3838_v14 = vpop.eup %3837  ;;  %v2414_v24 = vadd.f32 %v2406_v10, %v9556_v3  ;;  %v7295_v47 = vld [vmem:[#allocation2 + $0x168] sm:$0xff]  ;;  %v7298_v55 = vld [vmem:[#allocation2 + $0x178] sm:$0xff]  ;;  %v7325_v6 = vld [vmem:[#allocation2 + $0x120] sm:$0xff] }
 0x6a0   :  { %v3570_v28 = vmul.f32 -1.442695, %v2412_v59  ;;  %v2413_v48 = vadd.f32 %v2405_v43, %v9554_v9  ;;  %v7301_v59 = vld [vmem:[#allocation2 + $0x160] sm:$0xff]  ;;  %v7307_v43 = vld [vmem:[#allocation2 + $0x148] sm:$0xff]  ;;  %v7334_v10 = vld [vmem:[#allocation2 + $0x118] sm:$0xff] }
 0x6a1   :  { %v7240_v38 = vadd.f32 %v2254_v30, %v2253_v22  ;;  %v2415_v8 = vadd.f32 %v2407_v36, %v9555_v49  ;;  %v7310_v30 = vld [vmem:[#allocation2 + $0x158] sm:$0xff]  ;;  %v7313_v22 = vld [vmem:[#allocation2 + $0x140] sm:$0xff]  ;;  %v7328_v36 = vld [vmem:[#allocation2 + $0x130] sm:$0xff] }
 0x6a2   :  { %3839 = vpow2.f32 %v3570_v28  ;;  %v3571_v0 = vmul.f32 -1.442695, %v2413_v48  ;;  %v7316_v28 = vld [vmem:[#allocation2 + $0x150] sm:$0xff]  ;;  %v7319_v48 = vld [vmem:[#allocation2 + $0x128] sm:$0xff] }
 0x6a3   :  { %3841 = vtanh.f32 %v7240_v38  ;;  %v3572_v12 = vmul.f32 -1.442695, %v2415_v8  ;;  %v7331_v8 = vld [vmem:[#allocation2 + $0x108] sm:$0xff] }
 0x6a4   :  { %3843 = vpow2.f32 %v3571_v0  ;;  %v7322_v0 = vld [vmem:[#allocation2 + $0x138] sm:$0xff] }
 0x6a5   :  { %3845 = vpow2.f32 %v3572_v12  ;;  %v7337_v12 = vld [vmem:[#allocation2 + $0x100] sm:$0xff] }
 0x6af   :  { %v3840_v18 = vpop.eup %3839 }
 0x6b0   :  { %v3842_v20 = vpop.eup %3841  ;;  %v2419_v23 = vadd.f32 1.0, %v3840_v18  ;;  %v7343_v18 = vld [vmem:[#allocation2 + $0xe8] sm:$0xff] }
 0x6b1   :  { %v3844_v25 = vpop.eup %3843  ;;  %v2257_v27 = vmul.f32 %v3842_v20, %v3838_v14  ;;  %v7340_v14 = vld [vmem:[#allocation2 + $0x110] sm:$0xff]  ;;  %v7349_v20 = vld [vmem:[#allocation2 + $0xe0] sm:$0xff] }
 0x6b2   :  { %3847 = vrcp.f32 %v2419_v23  ;;  %v2425_v63 = vadd.f32 1.0, %v3844_v25  ;;  %v3846_v37 = vpop.eup %3845  ;;  %v7352_v23 = vld [vmem:[#allocation2 + $0xf0] sm:$0xff]  ;;  %v7355_v25 = vld [vmem:[#allocation2 + $0xc8] sm:$0xff] }
 0x6b3   :  { %3849 = vtanh.f32 %v2414_v24  ;;  %v2444_v29 = vrot.slane %v2257_v27, 6  ;;  %v2432_v15 = vadd.f32 1.0, %v3846_v37  ;;  %v7346_v24 = vld [vmem:[#allocation2 + $0xf8] sm:$0xff] }
 0x6b4   :  { %3851 = vrcp.f32 %v2425_v63  ;;  %v7358_v27 = vld [vmem:[#allocation2 + $0xd8] sm:$0xff]  ;;  %v7361_v63 = vld [vmem:[#allocation2 + $0xc0] sm:$0xff] }
 0x6b5   :  { %v2447_v35 = vrot.slane %v2444_v29, 2  ;;  %3853 = vrcp.f32 %v2432_v15  ;;  %v7364_v29 = vld [vmem:[#allocation2 + $0xd0] sm:$0xff]  ;;  %v7370_v37 = vld [vmem:[#allocation2 + $0xb8] sm:$0xff]  ;;  %v7385_v15 = vld [vmem:[#allocation2 + $0x80] sm:$0xff] }
 0x6b6   :  { %9711 = vst [vmem:[#allocation169_spill] sm:$0xff] %v7370_v37  ;;  %9716 = vst [vmem:[#allocation164_spill] sm:$0xff] %v7385_v15 }
 0x6b7   :  { %2514 = vmatprep.mubr.f32.mxu0 %v2447_v35  ;;  %2585 = vmatprep.mubr.f32.mxu1 %v2447_v35  ;;  %v7367_v35 = vld [vmem:[#allocation2 + $0xa8] sm:$0xff] }
 0x6bf   :  { %v3848_v39 = vpop.eup %3847 }
 0x6c0   :  { %v3850_v31 = vpop.eup %3849 }
 0x6c1   :  { %v3852_v45 = vpop.eup %3851  ;;  %v2439_v54 = vmul.f32 %v3850_v31, %v3848_v39  ;;  %v7373_v39 = vld [vmem:[#allocation2 + $0xa0] sm:$0xff]  ;;  %v7376_v31 = vld [vmem:[#allocation2 + $0xb0] sm:$0xff] }
 0x6c2   :  { %v2438_v51 = vmul.f32 %v3852_v45, %v2436_v42  ;;  %v3854_v60 = vpop.eup %3853  ;;  %9712 = vst [vmem:[#allocation170_spill] sm:$0xff] %v7373_v39  ;;  %9713 = vst [vmem:[#allocation171_spill] sm:$0xff] %v7376_v31  ;;  %v7379_v42 = vld [vmem:[#allocation2 + $0x88] sm:$0xff]  ;;  %v7382_v45 = vld [vmem:[#allocation2 + $0x98] sm:$0xff] }
 0x6c3   :  { %9714 = vst [vmem:[#allocation165_spill] sm:$0xff] %v7379_v42  ;;  %9715 = vst [vmem:[#allocation161_spill] sm:$0xff] %v7382_v45 }
 0x6c4   :  { %v7246_v56 = vadd.f32 %v2439_v54, %v2438_v51  ;;  %v7388_v54 = vld [vmem:[#allocation2 + $0x90] sm:$0xff]  ;;  %v7391_v51 = vld [vmem:[#allocation2 + $0x68] sm:$0xff] }
 0x6c5   :  { %9717 = vst [vmem:[#allocation14_spill] sm:$0xff] %v7388_v54  ;;  %9718 = vst [vmem:[#allocation24_spill] sm:$0xff] %v7391_v51 }
 0x6c6   :  { %3855 = vtanh.f32 %v7246_v56 }
 0x6d3   :  { %v3856_v62 = vpop.eup %3855 }
 0x6d4   :  { %v2442_v11 = vmul.f32 %v3856_v62, %v3854_v60  ;;  %v7394_v60 = vld [vmem:[#allocation2 + $0x78] sm:$0xff]  ;;  %v7397_v62 = vld [vmem:[#allocation2 + $0x60] sm:$0xff] }
 0x6d5   :  { %9719 = vst [vmem:[#allocation15_spill] sm:$0xff] %v7394_v60  ;;  %9720 = vst [vmem:[#allocation25_spill] sm:$0xff] %v7397_v62 }
 0x6d6   :  { %v7249_v33 = vrot.slane %v2442_v11, 2  ;;  %v7400_v11 = vld [vmem:[#allocation2 + $0x70] sm:$0xff] }
 0x6d7   :  { %9721 = vst [vmem:[#allocation16_spill] sm:$0xff] %v7400_v11 }
 0x6d8   :  { %2515 = vmatmul.mubr.f32.vlgmr.msra.gmra.mxu0 %v7249_v33  ;;  %2586 = vmatmul.mubr.f32.vlgmr.msra.gmra.mxu1 %v7249_v33 }
 0x6d9   :  { %2617 = vmatpush1.msra.mxu0 %v7253_v34  ;;  %2688 = vmatpush1.msra.mxu1 %v7256_v21 }
 0x6da   :  { %2618 = vmatprep.subr.mxu0 %v7259_v1  ;;  %2689 = vmatprep.subr.mxu1 %v7262_v13 }
 0x6db   :  { %2619 = vmatpush1.msra.mxu0 %v7265_v61  ;;  %2690 = vmatpush1.msra.mxu1 %v7268_v44 }
 0x6dc   :  { %2620 = vmatprep.subr.mxu0 %v7271_v7  ;;  %2691 = vmatprep.subr.mxu1 %v7274_v57 }
 0x6dd   :  { %2621 = vmatpush1.msra.mxu0 %v7277_v5  ;;  %2692 = vmatpush1.msra.mxu1 %v7280_v19 }
 0x6de   :  { %2622 = vmatprep.subr.mxu0 %v7283_v32  ;;  %2693 = vmatprep.subr.mxu1 %v7286_v40 }
 0x6df   :  { %2623 = vmatpush1.msra.mxu0 %v7289_v50  ;;  %2694 = vmatpush1.msra.mxu1 %v7292_v26 }
 0x6e0   :  { %2624 = vmatprep.subr.mxu0 %v7295_v47  ;;  %2695 = vmatprep.subr.mxu1 %v7298_v55 }
 0x6e1   :  { %2625 = vmatpush1.msra.mxu0 %v7301_v59  ;;  %2696 = vmatpush1.msra.mxu1 %v7304_v2 }
 0x6e2   :  { %2626 = vmatprep.subr.mxu0 %v7307_v43  ;;  %2697 = vmatprep.subr.mxu1 %v7310_v30 }
 0x6e3   :  { %2627 = vmatpush1.msra.mxu0 %v7313_v22  ;;  %2698 = vmatpush1.msra.mxu1 %v7316_v28 }
 0x6e4   :  { %2628 = vmatprep.subr.mxu0 %v7319_v48  ;;  %2699 = vmatprep.subr.mxu1 %v7322_v0 }
 0x6e5   :  { %2629 = vmatpush1.msra.mxu0 %v7325_v6  ;;  %2700 = vmatpush1.msra.mxu1 %v7328_v36 }
 0x6e6   :  { %2630 = vmatprep.subr.mxu0 %v7331_v8  ;;  %2701 = vmatprep.subr.mxu1 %v7334_v10 }
 0x6e7   :  { %2631 = vmatpush1.msra.mxu0 %v7337_v12  ;;  %2702 = vmatpush1.msra.mxu1 %v7340_v14 }
 0x6e8   :  { %2632 = vmatprep.subr.mxu0 %v7343_v18  ;;  %2703 = vmatprep.subr.mxu1 %v7346_v24 }
 0x6e9   :  { %2633 = vmatpush1.msra.mxu0 %v7349_v20  ;;  %2704 = vmatpush1.msra.mxu1 %v7352_v23 }
 0x6ea   :  { %2634 = vmatprep.subr.mxu0 %v7355_v25  ;;  %2705 = vmatprep.subr.mxu1 %v7358_v27 }
 0x6eb   :  { %2635 = vmatpush1.msra.mxu0 %v7361_v63  ;;  %2706 = vmatpush1.msra.mxu1 %v7364_v29 }
 0x6ec   :  { %2636 = vmatprep.subr.mxu0 %v7367_v35  ;;  %2707 = vmatprep.subr.mxu1 %v7370_v37 }
 0x6ed   :  { %2637 = vmatpush1.msra.mxu0 %v7373_v39  ;;  %2708 = vmatpush1.msra.mxu1 %v7376_v31 }
 0x6ee   :  { %2638 = vmatprep.subr.mxu0 %v7379_v42  ;;  %2709 = vmatprep.subr.mxu1 %v7382_v45 }
 0x6ef   :  { %2639 = vmatpush1.msra.mxu0 %v7385_v15  ;;  %2710 = vmatpush1.msra.mxu1 %v7388_v54  ;;  %v7403_v15 = vld [vmem:[#allocation2 + $0x48] sm:$0xff]  ;;  %v7406_v54 = vld [vmem:[#allocation2 + $0x58] sm:$0xff] }
 0x6f0   :  { %2640 = vmatprep.subr.mxu0 %v7391_v51  ;;  %2711 = vmatprep.subr.mxu1 %v7394_v60  ;;  %9722 = vst [vmem:[#allocation26_spill] sm:$0xff] %v7403_v15  ;;  %9723 = vst [vmem:[#allocation17_spill] sm:$0xff] %v7406_v54  ;;  %v7409_v51 = vld [vmem:[#allocation2 + $0x40] sm:$0xff]  ;;  %v7412_v60 = vld [vmem:[#allocation2 + $0x50] sm:$0xff] }
 0x6f1   :  { %2641 = vmatpush1.msra.mxu0 %v7397_v62  ;;  %2712 = vmatpush1.msra.mxu1 %v7400_v11  ;;  %9724 = vst [vmem:[#allocation27_spill] sm:$0xff] %v7409_v51  ;;  %9725 = vst [vmem:[#allocation18_spill] sm:$0xff] %v7412_v60  ;;  %v7415_v62 = vld [vmem:[#allocation2 + $0x28] sm:$0xff]  ;;  %v7418_v11 = vld [vmem:[#allocation2 + $0x38] sm:$0xff] }
 0x6f2   :  { %2642 = vmatprep.subr.mxu0 %v7403_v15  ;;  %2713 = vmatprep.subr.mxu1 %v7406_v54  ;;  %9726 = vst [vmem:[#allocation28_spill] sm:$0xff] %v7415_v62  ;;  %9727 = vst [vmem:[#allocation19_spill] sm:$0xff] %v7418_v11  ;;  %v7421_v15 = vld [vmem:[#allocation2 + $0x20] sm:$0xff]  ;;  %v7424_v54 = vld [vmem:[#allocation2 + $0x30] sm:$0xff] }
 0x6f3   :  { %2643 = vmatpush1.msra.mxu0 %v7409_v51  ;;  %2714 = vmatpush1.msra.mxu1 %v7412_v60  ;;  %9728 = vst [vmem:[#allocation29_spill] sm:$0xff] %v7421_v15  ;;  %9729 = vst [vmem:[#allocation20_spill] sm:$0xff] %v7424_v54  ;;  %v7427_v51 = vld [vmem:[#allocation2 + $0x8] sm:$0xff]  ;;  %v7430_v60 = vld [vmem:[#allocation2 + $0x18] sm:$0xff] }
 0x6f4   :  { %2644 = vmatprep.subr.mxu0 %v7415_v62  ;;  %2715 = vmatprep.subr.mxu1 %v7418_v11  ;;  %9730 = vst [vmem:[#allocation30_spill] sm:$0xff] %v7427_v51  ;;  %9731 = vst [vmem:[#allocation21_spill] sm:$0xff] %v7430_v60  ;;  %v7433_v62 = vld [vmem:[#allocation2] sm:$0xff]  ;;  %v7437_v11 = vld [vmem:[#allocation2 + $0x10] sm:$0xff] }
 0x6f5   :  { %2645 = vmatpush1.msra.mxu0 %v7421_v15  ;;  %2716 = vmatpush1.msra.mxu1 %v7424_v54  ;;  %9732 = vst [vmem:[#allocation31_spill] sm:$0xff] %v7433_v62  ;;  %9733 = vst [vmem:[#allocation32_spill] sm:$0xff] %v7437_v11  ;;  %v7452_v54 = vld [vmem:[#allocation5 + $0x1f0] sm:$0xff] }
 0x6f6   :  { %2646 = vmatprep.subr.mxu0 %v7427_v51  ;;  %2717 = vmatprep.subr.mxu1 %v7430_v60  ;;  %v7443_v51 = vld [vmem:[#allocation5 + $0x1e8] sm:$0xff]  ;;  %v7446_v60 = vld [vmem:[#allocation5 + $0x1f8] sm:$0xff]  ;;  %9737 = vst [vmem:[#allocation36_spill] sm:$0xff] %v7452_v54 }
 0x6f7   :  { %2647 = vmatpush1.msra.mxu0 %v7433_v62  ;;  %2680 = vmatprep.mubr.f32.mxu0 %v9576_v16  ;;  %9734 = vst [vmem:[#allocation33_spill] sm:$0xff] %v7443_v51  ;;  %9735 = vst [vmem:[#allocation34_spill] sm:$0xff] %v7446_v60  ;;  %v7449_v62 = vld [vmem:[#allocation5 + $0x1e0] sm:$0xff] }
 0x6f8   :  { %2718 = vmatpush1.msra.mxu1 %v7437_v11  ;;  %2751 = vmatprep.mubr.f32.mxu1 %v9576_v16  ;;  %9736 = vst [vmem:[#allocation35_spill] sm:$0xff] %v7449_v62  ;;  %v7455_v11 = vld [vmem:[#allocation5 + $0x1c8] sm:$0xff] }
 0x6f9   :  { %2681 = vmatmul.mubr.f32.vlgmr.msra.gmra.mxu0 %v7249_v33  ;;  %2752 = vmatmul.mubr.f32.vlgmr.msra.gmra.mxu1 %v7249_v33  ;;  %9738 = vst [vmem:[#allocation37_spill] sm:$0xff] %v7455_v11  ;;  %v7458_v33 = vld [vmem:[#allocation5 + $0x1d8] sm:$0xff] }
 0x6fa   :  { %2808 = vmatprep.subr.mxu0 %v7443_v51  ;;  %2879 = vmatprep.subr.mxu1 %v7446_v60  ;;  %9739 = vst [vmem:[#allocation38_spill] sm:$0xff] %v7458_v33  ;;  %v7461_v51 = vld [vmem:[#allocation5 + $0x1c0] sm:$0xff]  ;;  %v7464_v60 = vld [vmem:[#allocation5 + $0x1d0] sm:$0xff] }
 0x6fb   :  { %2809 = vmatpush1.msra.mxu0 %v7449_v62  ;;  %2880 = vmatpush1.msra.mxu1 %v7452_v54  ;;  %9740 = vst [vmem:[#allocation39_spill] sm:$0xff] %v7461_v51  ;;  %9741 = vst [vmem:[#allocation40_spill] sm:$0xff] %v7464_v60  ;;  %v7467_v62 = vld [vmem:[#allocation5 + $0x1a8] sm:$0xff]  ;;  %v7470_v54 = vld [vmem:[#allocation5 + $0x1b8] sm:$0xff] }
 0x6fc   :  { %2810 = vmatprep.subr.mxu0 %v7455_v11  ;;  %2881 = vmatprep.subr.mxu1 %v7458_v33  ;;  %9742 = vst [vmem:[#allocation41_spill] sm:$0xff] %v7467_v62  ;;  %9743 = vst [vmem:[#allocation42_spill] sm:$0xff] %v7470_v54  ;;  %v7473_v11 = vld [vmem:[#allocation5 + $0x1a0] sm:$0xff]  ;;  %v7476_v33 = vld [vmem:[#allocation5 + $0x1b0] sm:$0xff] }
 0x6fd   :  { %2811 = vmatpush1.msra.mxu0 %v7461_v51  ;;  %2882 = vmatpush1.msra.mxu1 %v7464_v60  ;;  %9744 = vst [vmem:[#allocation43_spill] sm:$0xff] %v7473_v11  ;;  %9745 = vst [vmem:[#allocation44_spill] sm:$0xff] %v7476_v33  ;;  %v7479_v51 = vld [vmem:[#allocation5 + $0x188] sm:$0xff]  ;;  %v7482_v60 = vld [vmem:[#allocation5 + $0x198] sm:$0xff] }
 0x6fe   :  { %2812 = vmatprep.subr.mxu0 %v7467_v62  ;;  %2883 = vmatprep.subr.mxu1 %v7470_v54  ;;  %9746 = vst [vmem:[#allocation45_spill] sm:$0xff] %v7479_v51  ;;  %9747 = vst [vmem:[#allocation46_spill] sm:$0xff] %v7482_v60  ;;  %v7485_v62 = vld [vmem:[#allocation5 + $0x180] sm:$0xff]  ;;  %v7488_v54 = vld [vmem:[#allocation5 + $0x190] sm:$0xff] }
 0x6ff   :  { %2813 = vmatpush1.msra.mxu0 %v7473_v11  ;;  %2884 = vmatpush1.msra.mxu1 %v7476_v33  ;;  %9748 = vst [vmem:[#allocation47_spill] sm:$0xff] %v7485_v62  ;;  %9749 = vst [vmem:[#allocation48_spill] sm:$0xff] %v7488_v54  ;;  %v7491_v11 = vld [vmem:[#allocation5 + $0x168] sm:$0xff]  ;;  %v7494_v33 = vld [vmem:[#allocation5 + $0x178] sm:$0xff] }
 0x700   :  { %2814 = vmatprep.subr.mxu0 %v7479_v51  ;;  %2885 = vmatprep.subr.mxu1 %v7482_v60  ;;  %9750 = vst [vmem:[#allocation49_spill] sm:$0xff] %v7491_v11  ;;  %9751 = vst [vmem:[#allocation50_spill] sm:$0xff] %v7494_v33  ;;  %v7497_v51 = vld [vmem:[#allocation5 + $0x160] sm:$0xff]  ;;  %v7500_v60 = vld [vmem:[#allocation5 + $0x170] sm:$0xff] }
 0x701   :  { %2815 = vmatpush1.msra.mxu0 %v7485_v62  ;;  %2886 = vmatpush1.msra.mxu1 %v7488_v54  ;;  %9752 = vst [vmem:[#allocation51_spill] sm:$0xff] %v7497_v51  ;;  %9753 = vst [vmem:[#allocation52_spill] sm:$0xff] %v7500_v60  ;;  %v7503_v62 = vld [vmem:[#allocation5 + $0x148] sm:$0xff]  ;;  %v7506_v54 = vld [vmem:[#allocation5 + $0x158] sm:$0xff] }
 0x702   :  { %2816 = vmatprep.subr.mxu0 %v7491_v11  ;;  %2887 = vmatprep.subr.mxu1 %v7494_v33  ;;  %9754 = vst [vmem:[#allocation53_spill] sm:$0xff] %v7503_v62  ;;  %9755 = vst [vmem:[#allocation54_spill] sm:$0xff] %v7506_v54  ;;  %v7509_v11 = vld [vmem:[#allocation5 + $0x140] sm:$0xff]  ;;  %v7512_v33 = vld [vmem:[#allocation5 + $0x150] sm:$0xff] }
 0x703   :  { %2817 = vmatpush1.msra.mxu0 %v7497_v51  ;;  %2888 = vmatpush1.msra.mxu1 %v7500_v60  ;;  %9756 = vst [vmem:[#allocation55_spill] sm:$0xff] %v7509_v11  ;;  %9757 = vst [vmem:[#allocation56_spill] sm:$0xff] %v7512_v33  ;;  %v7515_v51 = vld [vmem:[#allocation5 + $0x128] sm:$0xff]  ;;  %v7518_v60 = vld [vmem:[#allocation5 + $0x138] sm:$0xff] }
 0x704   :  { %2818 = vmatprep.subr.mxu0 %v7503_v62  ;;  %2889 = vmatprep.subr.mxu1 %v7506_v54  ;;  %9758 = vst [vmem:[#allocation57_spill] sm:$0xff] %v7515_v51  ;;  %9759 = vst [vmem:[#allocation58_spill] sm:$0xff] %v7518_v60  ;;  %v7521_v62 = vld [vmem:[#allocation5 + $0x120] sm:$0xff]  ;;  %v7524_v54 = vld [vmem:[#allocation5 + $0x130] sm:$0xff] }
 0x705   :  { %2819 = vmatpush1.msra.mxu0 %v7509_v11  ;;  %2890 = vmatpush1.msra.mxu1 %v7512_v33  ;;  %9760 = vst [vmem:[#allocation59_spill] sm:$0xff] %v7521_v62  ;;  %9761 = vst [vmem:[#allocation60_spill] sm:$0xff] %v7524_v54  ;;  %v7527_v11 = vld [vmem:[#allocation5 + $0x108] sm:$0xff]  ;;  %v7530_v33 = vld [vmem:[#allocation5 + $0x118] sm:$0xff] }
 0x706   :  { %2820 = vmatprep.subr.mxu0 %v7515_v51  ;;  %2891 = vmatprep.subr.mxu1 %v7518_v60  ;;  %9762 = vst [vmem:[#allocation61_spill] sm:$0xff] %v7527_v11  ;;  %9763 = vst [vmem:[#allocation62_spill] sm:$0xff] %v7530_v33  ;;  %v7533_v51 = vld [vmem:[#allocation5 + $0x100] sm:$0xff]  ;;  %v7536_v60 = vld [vmem:[#allocation5 + $0x110] sm:$0xff] }
 0x707   :  { %2821 = vmatpush1.msra.mxu0 %v7521_v62  ;;  %2892 = vmatpush1.msra.mxu1 %v7524_v54  ;;  %9764 = vst [vmem:[#allocation63_spill] sm:$0xff] %v7533_v51  ;;  %9765 = vst [vmem:[#allocation64_spill] sm:$0xff] %v7536_v60  ;;  %v7539_v62 = vld [vmem:[#allocation5 + $0xe8] sm:$0xff]  ;;  %v7542_v54 = vld [vmem:[#allocation5 + $0xf8] sm:$0xff] }
 0x708   :  { %2822 = vmatprep.subr.mxu0 %v7527_v11  ;;  %2893 = vmatprep.subr.mxu1 %v7530_v33  ;;  %9766 = vst [vmem:[#allocation65_spill] sm:$0xff] %v7539_v62  ;;  %9767 = vst [vmem:[#allocation66_spill] sm:$0xff] %v7542_v54  ;;  %v7545_v11 = vld [vmem:[#allocation5 + $0xe0] sm:$0xff]  ;;  %v7548_v33 = vld [vmem:[#allocation5 + $0xf0] sm:$0xff] }
 0x709   :  { %2823 = vmatpush1.msra.mxu0 %v7533_v51  ;;  %2894 = vmatpush1.msra.mxu1 %v7536_v60  ;;  %9768 = vst [vmem:[#allocation67_spill] sm:$0xff] %v7545_v11  ;;  %9769 = vst [vmem:[#allocation68_spill] sm:$0xff] %v7548_v33  ;;  %v7551_v51 = vld [vmem:[#allocation5 + $0xc8] sm:$0xff]  ;;  %v7554_v60 = vld [vmem:[#allocation5 + $0xd8] sm:$0xff] }
 0x70a   :  { %2824 = vmatprep.subr.mxu0 %v7539_v62  ;;  %2895 = vmatprep.subr.mxu1 %v7542_v54  ;;  %9770 = vst [vmem:[#allocation69_spill] sm:$0xff] %v7551_v51  ;;  %9771 = vst [vmem:[#allocation70_spill] sm:$0xff] %v7554_v60  ;;  %v7557_v62 = vld [vmem:[#allocation5 + $0xc0] sm:$0xff]  ;;  %v7560_v54 = vld [vmem:[#allocation5 + $0xd0] sm:$0xff] }
 0x70b   :  { %2825 = vmatpush1.msra.mxu0 %v7545_v11  ;;  %2896 = vmatpush1.msra.mxu1 %v7548_v33  ;;  %9772 = vst [vmem:[#allocation71_spill] sm:$0xff] %v7557_v62  ;;  %9773 = vst [vmem:[#allocation72_spill] sm:$0xff] %v7560_v54  ;;  %v7563_v11 = vld [vmem:[#allocation5 + $0xa8] sm:$0xff]  ;;  %v7566_v33 = vld [vmem:[#allocation5 + $0xb8] sm:$0xff] }
 0x70c   :  { %2826 = vmatprep.subr.mxu0 %v7551_v51  ;;  %2897 = vmatprep.subr.mxu1 %v7554_v60  ;;  %9774 = vst [vmem:[#allocation73_spill] sm:$0xff] %v7563_v11  ;;  %9775 = vst [vmem:[#allocation74_spill] sm:$0xff] %v7566_v33  ;;  %v7569_v51 = vld [vmem:[#allocation5 + $0xa0] sm:$0xff]  ;;  %v7572_v60 = vld [vmem:[#allocation5 + $0xb0] sm:$0xff] }
 0x70d   :  { %2827 = vmatpush1.msra.mxu0 %v7557_v62  ;;  %2898 = vmatpush1.msra.mxu1 %v7560_v54  ;;  %9776 = vst [vmem:[#allocation75_spill] sm:$0xff] %v7569_v51  ;;  %9777 = vst [vmem:[#allocation76_spill] sm:$0xff] %v7572_v60  ;;  %v7575_v62 = vld [vmem:[#allocation5 + $0x88] sm:$0xff]  ;;  %v7578_v54 = vld [vmem:[#allocation5 + $0x98] sm:$0xff] }
 0x70e   :  { %2828 = vmatprep.subr.mxu0 %v7563_v11  ;;  %2899 = vmatprep.subr.mxu1 %v7566_v33  ;;  %9778 = vst [vmem:[#allocation77_spill] sm:$0xff] %v7575_v62  ;;  %9779 = vst [vmem:[#allocation78_spill] sm:$0xff] %v7578_v54  ;;  %v7581_v11 = vld [vmem:[#allocation5 + $0x80] sm:$0xff]  ;;  %v7584_v33 = vld [vmem:[#allocation5 + $0x90] sm:$0xff] }
 0x70f   :  { %2829 = vmatpush1.msra.mxu0 %v7569_v51  ;;  %2900 = vmatpush1.msra.mxu1 %v7572_v60  ;;  %9780 = vst [vmem:[#allocation79_spill] sm:$0xff] %v7581_v11  ;;  %9781 = vst [vmem:[#allocation80_spill] sm:$0xff] %v7584_v33  ;;  %v7587_v51 = vld [vmem:[#allocation5 + $0x68] sm:$0xff]  ;;  %v7590_v60 = vld [vmem:[#allocation5 + $0x78] sm:$0xff] }
 0x710   :  { %2830 = vmatprep.subr.mxu0 %v7575_v62  ;;  %2901 = vmatprep.subr.mxu1 %v7578_v54  ;;  %9782 = vst [vmem:[#allocation81_spill] sm:$0xff] %v7587_v51  ;;  %9783 = vst [vmem:[#allocation82_spill] sm:$0xff] %v7590_v60  ;;  %v7593_v62 = vld [vmem:[#allocation5 + $0x60] sm:$0xff]  ;;  %v7596_v54 = vld [vmem:[#allocation5 + $0x70] sm:$0xff] }
 0x711   :  { %2831 = vmatpush1.msra.mxu0 %v7581_v11  ;;  %2902 = vmatpush1.msra.mxu1 %v7584_v33  ;;  %9784 = vst [vmem:[#allocation83_spill] sm:$0xff] %v7593_v62  ;;  %9785 = vst [vmem:[#allocation84_spill] sm:$0xff] %v7596_v54  ;;  %v7599_v11 = vld [vmem:[#allocation5 + $0x48] sm:$0xff]  ;;  %v7602_v33 = vld [vmem:[#allocation5 + $0x58] sm:$0xff] }
 0x712   :  { %2832 = vmatprep.subr.mxu0 %v7587_v51  ;;  %2903 = vmatprep.subr.mxu1 %v7590_v60  ;;  %9786 = vst [vmem:[#allocation85_spill] sm:$0xff] %v7599_v11  ;;  %9787 = vst [vmem:[#allocation86_spill] sm:$0xff] %v7602_v33  ;;  %v7605_v51 = vld [vmem:[#allocation5 + $0x40] sm:$0xff]  ;;  %v7608_v60 = vld [vmem:[#allocation5 + $0x50] sm:$0xff] }
 0x713   :  { %2833 = vmatpush1.msra.mxu0 %v7593_v62  ;;  %2904 = vmatpush1.msra.mxu1 %v7596_v54  ;;  %9788 = vst [vmem:[#allocation87_spill] sm:$0xff] %v7605_v51  ;;  %9789 = vst [vmem:[#allocation88_spill] sm:$0xff] %v7608_v60  ;;  %v7611_v62 = vld [vmem:[#allocation5 + $0x28] sm:$0xff]  ;;  %v7614_v54 = vld [vmem:[#allocation5 + $0x38] sm:$0xff] }
 0x714   :  { %2834 = vmatprep.subr.mxu0 %v7599_v11  ;;  %2905 = vmatprep.subr.mxu1 %v7602_v33  ;;  %9790 = vst [vmem:[#allocation89_spill] sm:$0xff] %v7611_v62  ;;  %9791 = vst [vmem:[#allocation90_spill] sm:$0xff] %v7614_v54  ;;  %v7617_v11 = vld [vmem:[#allocation5 + $0x20] sm:$0xff]  ;;  %v7620_v33 = vld [vmem:[#allocation5 + $0x30] sm:$0xff] }
 0x715   :  { %2835 = vmatpush1.msra.mxu0 %v7605_v51  ;;  %2906 = vmatpush1.msra.mxu1 %v7608_v60  ;;  %9792 = vst [vmem:[#allocation91_spill] sm:$0xff] %v7617_v11  ;;  %9793 = vst [vmem:[#allocation92_spill] sm:$0xff] %v7620_v33  ;;  %v7623_v51 = vld [vmem:[#allocation5 + $0x8] sm:$0xff]  ;;  %v7626_v60 = vld [vmem:[#allocation5 + $0x18] sm:$0xff] }
 0x716   :  { %2836 = vmatprep.subr.mxu0 %v7611_v62  ;;  %2907 = vmatprep.subr.mxu1 %v7614_v54  ;;  %9794 = vst [vmem:[#allocation93_spill] sm:$0xff] %v7623_v51  ;;  %9795 = vst [vmem:[#allocation94_spill] sm:$0xff] %v7626_v60  ;;  %v7629_v62 = vld [vmem:[#allocation5] sm:$0xff]  ;;  %v7632_v54 = vld [vmem:[#allocation5 + $0x10] sm:$0xff] }
 0x717   :  { %2837 = vmatpush1.msra.mxu0 %v7617_v11  ;;  %2908 = vmatpush1.msra.mxu1 %v7620_v33  ;;  %9796 = vst [vmem:[#allocation95_spill] sm:$0xff] %v7629_v62  ;;  %9797 = vst [vmem:[#allocation96_spill] sm:$0xff] %v7632_v54  ;;  %v7635_v11 = vld [vmem:[#allocation5 + $0x3e8] sm:$0xff]  ;;  %v7638_v33 = vld [vmem:[#allocation5 + $0x3f8] sm:$0xff] }
 0x718   :  { %2838 = vmatprep.subr.mxu0 %v7623_v51  ;;  %2909 = vmatprep.subr.mxu1 %v7626_v60  ;;  %9798 = vst [vmem:[#allocation97_spill] sm:$0xff] %v7635_v11  ;;  %9799 = vst [vmem:[#allocation98_spill] sm:$0xff] %v7638_v33  ;;  %v7641_v51 = vld [vmem:[#allocation5 + $0x3e0] sm:$0xff]  ;;  %v7644_v60 = vld [vmem:[#allocation5 + $0x3f0] sm:$0xff] }
 0x719   :  { %2839 = vmatpush1.msra.mxu0 %v7629_v62  ;;  %2910 = vmatpush1.msra.mxu1 %v7632_v54  ;;  %9800 = vst [vmem:[#allocation99_spill] sm:$0xff] %v7641_v51  ;;  %9801 = vst [vmem:[#allocation100_spill] sm:$0xff] %v7644_v60  ;;  %v7647_v62 = vld [vmem:[#allocation5 + $0x3c8] sm:$0xff]  ;;  %v7650_v54 = vld [vmem:[#allocation5 + $0x3d8] sm:$0xff] }
 0x71a   :  { %2840 = vmatprep.subr.mxu0 %v7635_v11  ;;  %2911 = vmatprep.subr.mxu1 %v7638_v33  ;;  %9802 = vst [vmem:[#allocation101_spill] sm:$0xff] %v7647_v62  ;;  %9803 = vst [vmem:[#allocation102_spill] sm:$0xff] %v7650_v54  ;;  %v7653_v11 = vld [vmem:[#allocation5 + $0x3c0] sm:$0xff]  ;;  %v7656_v33 = vld [vmem:[#allocation5 + $0x3d0] sm:$0xff] }
 0x71b   :  { %2841 = vmatpush2.msra.mxu0 %v7641_v51  ;;  %2912 = vmatpush2.msra.mxu1 %v7644_v60  ;;  %9804 = vst [vmem:[#allocation103_spill] sm:$0xff] %v7653_v11  ;;  %9805 = vst [vmem:[#allocation104_spill] sm:$0xff] %v7656_v33  ;;  %v7659_v51 = vld [vmem:[#allocation5 + $0x3a8] sm:$0xff]  ;;  %v7662_v60 = vld [vmem:[#allocation5 + $0x3b8] sm:$0xff] }
 0x71c   :  { %2842 = vmatprep.subr.mxu0 %v7647_v62  ;;  %2913 = vmatprep.subr.mxu1 %v7650_v54  ;;  %9806 = vst [vmem:[#allocation105_spill] sm:$0xff] %v7659_v51  ;;  %9807 = vst [vmem:[#allocation106_spill] sm:$0xff] %v7662_v60  ;;  %v7665_v62 = vld [vmem:[#allocation5 + $0x3a0] sm:$0xff]  ;;  %v7668_v54 = vld [vmem:[#allocation5 + $0x3b0] sm:$0xff] }
 0x71d   :  { %2843 = vmatpush2.msra.mxu0 %v7653_v11  ;;  %2914 = vmatpush2.msra.mxu1 %v7656_v33  ;;  %9808 = vst [vmem:[#allocation107_spill] sm:$0xff] %v7665_v62  ;;  %9809 = vst [vmem:[#allocation108_spill] sm:$0xff] %v7668_v54  ;;  %v7671_v11 = vld [vmem:[#allocation5 + $0x388] sm:$0xff]  ;;  %v7674_v33 = vld [vmem:[#allocation5 + $0x398] sm:$0xff] }
 0x71e   :  { %2844 = vmatprep.subr.mxu0 %v7659_v51  ;;  %2915 = vmatprep.subr.mxu1 %v7662_v60  ;;  %9810 = vst [vmem:[#allocation109_spill] sm:$0xff] %v7671_v11  ;;  %9811 = vst [vmem:[#allocation110_spill] sm:$0xff] %v7674_v33  ;;  %v7677_v51 = vld [vmem:[#allocation5 + $0x380] sm:$0xff]  ;;  %v7680_v60 = vld [vmem:[#allocation5 + $0x390] sm:$0xff] }
 0x71f   :  { %2845 = vmatpush2.msra.mxu0 %v7665_v62  ;;  %2916 = vmatpush2.msra.mxu1 %v7668_v54  ;;  %9812 = vst [vmem:[#allocation111_spill] sm:$0xff] %v7677_v51  ;;  %9813 = vst [vmem:[#allocation112_spill] sm:$0xff] %v7680_v60  ;;  %v7683_v62 = vld [vmem:[#allocation5 + $0x368] sm:$0xff]  ;;  %v7686_v54 = vld [vmem:[#allocation5 + $0x378] sm:$0xff] }
 0x720   :  { %2846 = vmatprep.subr.mxu0 %v7671_v11  ;;  %2917 = vmatprep.subr.mxu1 %v7674_v33  ;;  %9814 = vst [vmem:[#allocation113_spill] sm:$0xff] %v7683_v62  ;;  %9815 = vst [vmem:[#allocation114_spill] sm:$0xff] %v7686_v54  ;;  %v7689_v11 = vld [vmem:[#allocation5 + $0x360] sm:$0xff]  ;;  %v7692_v33 = vld [vmem:[#allocation5 + $0x370] sm:$0xff] }
 0x721   :  { %2847 = vmatpush2.msra.mxu0 %v7677_v51  ;;  %2918 = vmatpush2.msra.mxu1 %v7680_v60  ;;  %9816 = vst [vmem:[#allocation115_spill] sm:$0xff] %v7689_v11  ;;  %9817 = vst [vmem:[#allocation116_spill] sm:$0xff] %v7692_v33  ;;  %v7695_v51 = vld [vmem:[#allocation5 + $0x348] sm:$0xff]  ;;  %v7698_v60 = vld [vmem:[#allocation5 + $0x358] sm:$0xff] }
 0x722   :  { %2848 = vmatprep.subr.mxu0 %v7683_v62  ;;  %2919 = vmatprep.subr.mxu1 %v7686_v54  ;;  %9818 = vst [vmem:[#allocation117_spill] sm:$0xff] %v7695_v51  ;;  %9819 = vst [vmem:[#allocation118_spill] sm:$0xff] %v7698_v60  ;;  %v7701_v62 = vld [vmem:[#allocation5 + $0x340] sm:$0xff]  ;;  %v7704_v54 = vld [vmem:[#allocation5 + $0x350] sm:$0xff] }
 0x723   :  { %2849 = vmatpush2.msra.mxu0 %v7689_v11  ;;  %2920 = vmatpush2.msra.mxu1 %v7692_v33  ;;  %9820 = vst [vmem:[#allocation119_spill] sm:$0xff] %v7701_v62  ;;  %9821 = vst [vmem:[#allocation120_spill] sm:$0xff] %v7704_v54  ;;  %v7707_v11 = vld [vmem:[#allocation5 + $0x328] sm:$0xff]  ;;  %v7710_v33 = vld [vmem:[#allocation5 + $0x338] sm:$0xff] }
 0x724   :  { %2850 = vmatprep.subr.mxu0 %v7695_v51  ;;  %2921 = vmatprep.subr.mxu1 %v7698_v60  ;;  %9822 = vst [vmem:[#allocation121_spill] sm:$0xff] %v7707_v11  ;;  %9823 = vst [vmem:[#allocation122_spill] sm:$0xff] %v7710_v33  ;;  %v7713_v51 = vld [vmem:[#allocation5 + $0x320] sm:$0xff]  ;;  %v7716_v60 = vld [vmem:[#allocation5 + $0x330] sm:$0xff] }
 0x725   :  { %2851 = vmatpush2.msra.mxu0 %v7701_v62  ;;  %2922 = vmatpush2.msra.mxu1 %v7704_v54  ;;  %9824 = vst [vmem:[#allocation123_spill] sm:$0xff] %v7713_v51  ;;  %9825 = vst [vmem:[#allocation124_spill] sm:$0xff] %v7716_v60  ;;  %v7719_v62 = vld [vmem:[#allocation5 + $0x308] sm:$0xff]  ;;  %v7722_v54 = vld [vmem:[#allocation5 + $0x318] sm:$0xff] }
 0x726   :  { %2852 = vmatprep.subr.mxu0 %v7707_v11  ;;  %2923 = vmatprep.subr.mxu1 %v7710_v33  ;;  %9826 = vst [vmem:[#allocation125_spill] sm:$0xff] %v7719_v62  ;;  %9827 = vst [vmem:[#allocation126_spill] sm:$0xff] %v7722_v54  ;;  %v7725_v11 = vld [vmem:[#allocation5 + $0x300] sm:$0xff]  ;;  %v7728_v33 = vld [vmem:[#allocation5 + $0x310] sm:$0xff] }
 0x727   :  { %2853 = vmatpush2.msra.mxu0 %v7713_v51  ;;  %2924 = vmatpush2.msra.mxu1 %v7716_v60  ;;  %9828 = vst [vmem:[#allocation127_spill] sm:$0xff] %v7725_v11  ;;  %9829 = vst [vmem:[#allocation128_spill] sm:$0xff] %v7728_v33  ;;  %v7731_v51 = vld [vmem:[#allocation5 + $0x2e8] sm:$0xff]  ;;  %v7734_v60 = vld [vmem:[#allocation5 + $0x2f8] sm:$0xff] }
 0x728   :  { %2854 = vmatprep.subr.mxu0 %v7719_v62  ;;  %2925 = vmatprep.subr.mxu1 %v7722_v54  ;;  %9830 = vst [vmem:[#allocation129_spill] sm:$0xff] %v7731_v51  ;;  %9831 = vst [vmem:[#allocation130_spill] sm:$0xff] %v7734_v60  ;;  %v7737_v62 = vld [vmem:[#allocation5 + $0x2e0] sm:$0xff]  ;;  %v7740_v54 = vld [vmem:[#allocation5 + $0x2f0] sm:$0xff] }
 0x729   :  { %2855 = vmatpush2.msra.mxu0 %v7725_v11  ;;  %2926 = vmatpush2.msra.mxu1 %v7728_v33  ;;  %9832 = vst [vmem:[#allocation131_spill] sm:$0xff] %v7737_v62  ;;  %9833 = vst [vmem:[#allocation132_spill] sm:$0xff] %v7740_v54  ;;  %v7743_v11 = vld [vmem:[#allocation5 + $0x2c8] sm:$0xff]  ;;  %v7746_v33 = vld [vmem:[#allocation5 + $0x2d8] sm:$0xff] }
 0x72a   :  { %2856 = vmatprep.subr.mxu0 %v7731_v51  ;;  %2927 = vmatprep.subr.mxu1 %v7734_v60  ;;  %9834 = vst [vmem:[#allocation133_spill] sm:$0xff] %v7743_v11  ;;  %9835 = vst [vmem:[#allocation134_spill] sm:$0xff] %v7746_v33  ;;  %v7749_v51 = vld [vmem:[#allocation5 + $0x2c0] sm:$0xff]  ;;  %v7752_v60 = vld [vmem:[#allocation5 + $0x2d0] sm:$0xff] }
 0x72b   :  { %2857 = vmatpush2.msra.mxu0 %v7737_v62  ;;  %2928 = vmatpush2.msra.mxu1 %v7740_v54  ;;  %9836 = vst [vmem:[#allocation135_spill] sm:$0xff] %v7749_v51  ;;  %9837 = vst [vmem:[#allocation136_spill] sm:$0xff] %v7752_v60  ;;  %v7755_v62 = vld [vmem:[#allocation5 + $0x2a8] sm:$0xff]  ;;  %v7758_v54 = vld [vmem:[#allocation5 + $0x2b8] sm:$0xff] }
 0x72c   :  { %2858 = vmatprep.subr.mxu0 %v7743_v11  ;;  %2929 = vmatprep.subr.mxu1 %v7746_v33  ;;  %9838 = vst [vmem:[#allocation137_spill] sm:$0xff] %v7755_v62  ;;  %9839 = vst [vmem:[#allocation138_spill] sm:$0xff] %v7758_v54  ;;  %v7761_v11 = vld [vmem:[#allocation5 + $0x2a0] sm:$0xff]  ;;  %v7764_v33 = vld [vmem:[#allocation5 + $0x2b0] sm:$0xff] }
 0x72d   :  { %2859 = vmatpush2.msra.mxu0 %v7749_v51  ;;  %2930 = vmatpush2.msra.mxu1 %v7752_v60  ;;  %9840 = vst [vmem:[#allocation139_spill] sm:$0xff] %v7761_v11  ;;  %9841 = vst [vmem:[#allocation140_spill] sm:$0xff] %v7764_v33  ;;  %v7767_v51 = vld [vmem:[#allocation5 + $0x288] sm:$0xff]  ;;  %v7770_v60 = vld [vmem:[#allocation5 + $0x298] sm:$0xff] }
 0x72e   :  { %2860 = vmatprep.subr.mxu0 %v7755_v62  ;;  %2931 = vmatprep.subr.mxu1 %v7758_v54  ;;  %9842 = vst [vmem:[#allocation141_spill] sm:$0xff] %v7767_v51  ;;  %9843 = vst [vmem:[#allocation142_spill] sm:$0xff] %v7770_v60  ;;  %v7773_v62 = vld [vmem:[#allocation5 + $0x280] sm:$0xff]  ;;  %v7776_v54 = vld [vmem:[#allocation5 + $0x290] sm:$0xff] }
 0x72f   :  { %2861 = vmatpush2.msra.mxu0 %v7761_v11  ;;  %2932 = vmatpush2.msra.mxu1 %v7764_v33  ;;  %9844 = vst [vmem:[#allocation143_spill] sm:$0xff] %v7773_v62  ;;  %9845 = vst [vmem:[#allocation144_spill] sm:$0xff] %v7776_v54  ;;  %v7779_v11 = vld [vmem:[#allocation5 + $0x268] sm:$0xff]  ;;  %v7782_v33 = vld [vmem:[#allocation5 + $0x278] sm:$0xff] }
 0x730   :  { %2862 = vmatprep.subr.mxu0 %v7767_v51  ;;  %2933 = vmatprep.subr.mxu1 %v7770_v60  ;;  %9846 = vst [vmem:[#allocation145_spill] sm:$0xff] %v7779_v11  ;;  %9847 = vst [vmem:[#allocation146_spill] sm:$0xff] %v7782_v33  ;;  %v7785_v51 = vld [vmem:[#allocation5 + $0x260] sm:$0xff]  ;;  %v7788_v60 = vld [vmem:[#allocation5 + $0x270] sm:$0xff] }
 0x731   :  { %2863 = vmatpush2.msra.mxu0 %v7773_v62  ;;  %2934 = vmatpush2.msra.mxu1 %v7776_v54  ;;  %9848 = vst [vmem:[#allocation147_spill] sm:$0xff] %v7785_v51  ;;  %9849 = vst [vmem:[#allocation148_spill] sm:$0xff] %v7788_v60  ;;  %v7791_v62 = vld [vmem:[#allocation5 + $0x248] sm:$0xff]  ;;  %v7794_v54 = vld [vmem:[#allocation5 + $0x258] sm:$0xff] }
 0x732   :  { %2864 = vmatprep.subr.mxu0 %v7779_v11  ;;  %2935 = vmatprep.subr.mxu1 %v7782_v33  ;;  %9850 = vst [vmem:[#allocation149_spill] sm:$0xff] %v7791_v62  ;;  %9851 = vst [vmem:[#allocation150_spill] sm:$0xff] %v7794_v54  ;;  %v7797_v11 = vld [vmem:[#allocation5 + $0x240] sm:$0xff]  ;;  %v7800_v33 = vld [vmem:[#allocation5 + $0x250] sm:$0xff] }
 0x733   :  { %2865 = vmatpush2.msra.mxu0 %v7785_v51  ;;  %2936 = vmatpush2.msra.mxu1 %v7788_v60  ;;  %9852 = vst [vmem:[#allocation151_spill] sm:$0xff] %v7797_v11  ;;  %9853 = vst [vmem:[#allocation152_spill] sm:$0xff] %v7800_v33  ;;  %v7803_v51 = vld [vmem:[#allocation5 + $0x228] sm:$0xff]  ;;  %v7806_v60 = vld [vmem:[#allocation5 + $0x238] sm:$0xff] }
 0x734   :  { %2866 = vmatprep.subr.mxu0 %v7791_v62  ;;  %2937 = vmatprep.subr.mxu1 %v7794_v54  ;;  %9854 = vst [vmem:[#allocation153_spill] sm:$0xff] %v7803_v51  ;;  %9855 = vst [vmem:[#allocation154_spill] sm:$0xff] %v7806_v60  ;;  %v7809_v62 = vld [vmem:[#allocation5 + $0x220] sm:$0xff]  ;;  %v7812_v54 = vld [vmem:[#allocation5 + $0x230] sm:$0xff] }
 0x735   :  { %2867 = vmatpush2.msra.mxu0 %v7797_v11  ;;  %2938 = vmatpush2.msra.mxu1 %v7800_v33  ;;  %9856 = vst [vmem:[#allocation155_spill] sm:$0xff] %v7809_v62  ;;  %9857 = vst [vmem:[#allocation156_spill] sm:$0xff] %v7812_v54  ;;  %v7815_v11 = vld [vmem:[#allocation5 + $0x208] sm:$0xff]  ;;  %v7818_v33 = vld [vmem:[#allocation5 + $0x218] sm:$0xff] }
 0x736   :  { %2868 = vmatprep.subr.mxu0 %v7803_v51  ;;  %2939 = vmatprep.subr.mxu1 %v7806_v60  ;;  %9858 = vst [vmem:[#allocation157_spill] sm:$0xff] %v7815_v11  ;;  %9859 = vst [vmem:[#allocation158_spill] sm:$0xff] %v7818_v33  ;;  %v7821_v51 = vld [vmem:[#allocation5 + $0x200] sm:$0xff]  ;;  %v7824_v60 = vld [vmem:[#allocation5 + $0x210] sm:$0xff] }
 0x737   :  { %2869 = vmatpush2.msra.mxu0 %v7809_v62  ;;  %2940 = vmatpush2.msra.mxu1 %v7812_v54  ;;  %9860 = vst [vmem:[#allocation159_spill] sm:$0xff] %v7821_v51  ;;  %9861 = vst [vmem:[#allocation162_spill] sm:$0xff] %v7824_v60 }
 0x738   :  { %2870 = vmatprep.subr.mxu0 %v7815_v11  ;;  %2941 = vmatprep.subr.mxu1 %v7818_v33 }
 0x739   :  { %2871 = vmatpush2.msra.mxu0 %v7821_v51  ;;  %2942 = vmatpush2.msra.mxu1 %v7824_v60 }
 0x73a   :  { %2974 = vmatprep.subr.mxu0 %v7227_v46  ;;  %3045 = vmatprep.subr.mxu1 %v7230_v52 }
 0x798   :  { %v2516_v54 = vpop.f32.mrf.mxu0  ;;  %v2587_v33 = vpop.f32.mrf.mxu1 }
 0x799   :  { %v2517_v62 = vadd.f32 %v2516_v54, %v9706_v53  ;;  %v2588_v46 = vadd.f32 %v2587_v33, %v9709_v4 }
 0x79a   :  { %v2518_v11 = vpop.f32.mrf.mxu0  ;;  %v2589_v51 = vpop.f32.mrf.mxu1 }
 0x79b   :  { %v3573_v16 = vmul.f32 -1.442695, %v2517_v62  ;;  %v2519_v15 = vadd.f32 %v2518_v11, %v9707_v58  ;;  %v2590_v42 = vadd.f32 %v2589_v51, %v9708_v41 }
 0x79d   :  { %3857 = vpow2.f32 %v3573_v16  ;;  %v3574_v45 = vmul.f32 -1.442695, %v2519_v15  ;;  %v3575_v31 = vmul.f32 -1.442695, %v2590_v42 }
 0x79f   :  { %3859 = vpow2.f32 %v3574_v45 }
 0x7a0   :  { %3861 = vpow2.f32 %v3575_v31 }
 0x7aa   :  { %v3858_v60 = vpop.eup %3857 }
 0x7ab   :  { %v2595_v39 = vadd.f32 1.0, %v3858_v60 }
 0x7ac   :  { %v3860_v52 = vpop.eup %3859 }
 0x7ad   :  { %3863 = vrcp.f32 %v2595_v39  ;;  %v2601_v54 = vadd.f32 1.0, %v3860_v52  ;;  %v3862_v62 = vpop.eup %3861 }
 0x7ae   :  { %3865 = vtanh.f32 %v2588_v46  ;;  %v2608_v45 = vadd.f32 1.0, %v3862_v62 }
 0x7af   :  { %3867 = vrcp.f32 %v2601_v54 }
 0x7b0   :  { %3869 = vrcp.f32 %v2608_v45 }
 0x7b9   :  { %v2682_v11 = vpop.f32.mrf.mxu0  ;;  %v2753_v51 = vpop.f32.mrf.mxu1 }
 0x7ba   :  { %v3864_v58 = vpop.eup %3863  ;;  %v2762_v16 = vrot.slane %v2682_v11, 4 }
 0x7bb   :  { %v3866_v15 = vpop.eup %3865  ;;  %v2684_v53 = vpop.f32.mrf.mxu0 }
 0x7bc   :  { %v3868_v37 = vpop.eup %3867  ;;  %v2770_v42 = vadd.f32 %v2762_v16, %v9710_v17  ;;  %v2763_v41 = vrot.slane %v2684_v53, 4  ;;  %v2612_v33 = vmul.f32 %v3866_v15, %v3864_v58  ;;  %v2755_v54 = vpop.f32.mrf.mxu1  ;;  %v2764_v16 = vrot.slane %v2753_v51, 4 }
 0x7bd   :  { %v2611_v31 = vmul.f32 %v3868_v37, %v7240_v38  ;;  %v2765_v62 = vrot.slane %v2755_v54, 4  ;;  %v3870_v58 = vpop.eup %3869  ;;  %v2794_v54 = vrot.slane %v7246_v56, 6  ;;  %v9862_v56 = vld [vmem:[#allocation169_spill] sm:$0xff] }
 0x7be   :  { %v3576_v60 = vmul.f32 -1.442695, %v2770_v42  ;;  %v2771_v39 = vadd.f32 %v2763_v41, %v9554_v9  ;;  %v2772_v38 = vadd.f32 %v2764_v16, %v9556_v3 }
 0x7bf   :  { %v7836_v46 = vadd.f32 %v2612_v33, %v2611_v31  ;;  %v2773_v11 = vadd.f32 %v2765_v62, %v9555_v49 }
 0x7c0   :  { %3871 = vpow2.f32 %v3576_v60  ;;  %v3577_v52 = vmul.f32 -1.442695, %v2771_v39 }
 0x7c1   :  { %3873 = vtanh.f32 %v7836_v46  ;;  %v3578_v53 = vmul.f32 -1.442695, %v2773_v11 }
 0x7c2   :  { %3875 = vpow2.f32 %v3577_v52 }
 0x7c3   :  { %3877 = vpow2.f32 %v3578_v53 }
 0x7cd   :  { %v3872_v15 = vpop.eup %3871 }
 0x7ce   :  { %v3874_v37 = vpop.eup %3873  ;;  %v2777_v41 = vadd.f32 1.0, %v3872_v15 }
 0x7cf   :  { %v3876_v45 = vpop.eup %3875  ;;  %v2615_v42 = vmul.f32 %v3874_v37, %v3870_v58 }
 0x7d0   :  { %3879 = vrcp.f32 %v2777_v41  ;;  %v2783_v33 = vadd.f32 1.0, %v3876_v45  ;;  %v3878_v39 = vpop.eup %3877  ;;  %v9902_v41 = vld [vmem:[#allocation49_spill] sm:$0xff]  ;;  %v9903_v45 = vld [vmem:[#allocation50_spill] sm:$0xff] }
 0x7d1   :  { %3881 = vtanh.f32 %v2772_v38  ;;  %v2802_v31 = vrot.slane %v2615_v42, 4  ;;  %v2790_v11 = vadd.f32 1.0, %v3878_v39  ;;  %v9904_v42 = vld [vmem:[#allocation51_spill] sm:$0xff] }
 0x7d2   :  { %3883 = vrcp.f32 %v2783_v33  ;;  %v9905_v33 = vld [vmem:[#allocation52_spill] sm:$0xff]  ;;  %v9908_v39 = vld [vmem:[#allocation55_spill] sm:$0xff] }
 0x7d3   :  { %v2805_v60 = vrot.slane %v2802_v31, 4  ;;  %3885 = vrcp.f32 %v2790_v11  ;;  %v9906_v31 = vld [vmem:[#allocation53_spill] sm:$0xff]  ;;  %v9913_v11 = vld [vmem:[#allocation60_spill] sm:$0xff] }
 0x7d5   :  { %2872 = vmatprep.mubr.f32.mxu0 %v2805_v60  ;;  %2943 = vmatprep.mubr.f32.mxu1 %v2805_v60  ;;  %v9907_v60 = vld [vmem:[#allocation54_spill] sm:$0xff] }
 0x7dd   :  { %v3880_v51 = vpop.eup %3879 }
 0x7de   :  { %v3882_v52 = vpop.eup %3881 }
 0x7df   :  { %v3884_v62 = vpop.eup %3883  ;;  %v2797_v16 = vmul.f32 %v3882_v52, %v3880_v51  ;;  %v9909_v51 = vld [vmem:[#allocation56_spill] sm:$0xff]  ;;  %v9910_v52 = vld [vmem:[#allocation57_spill] sm:$0xff] }
 0x7e0   :  { %v2796_v15 = vmul.f32 %v3884_v62, %v2794_v54  ;;  %v3886_v53 = vpop.eup %3885  ;;  %v9911_v54 = vld [vmem:[#allocation58_spill] sm:$0xff]  ;;  %v9912_v62 = vld [vmem:[#allocation59_spill] sm:$0xff] }
 0x7e2   :  { %v7842_v3 = vadd.f32 %v2797_v16, %v2796_v15  ;;  %v9914_v16 = vld [vmem:[#allocation61_spill] sm:$0xff]  ;;  %v9915_v15 = vld [vmem:[#allocation62_spill] sm:$0xff] }
 0x7e4   :  { %3887 = vtanh.f32 %v7842_v3 }
 0x7f1   :  { %v3888_v58 = vpop.eup %3887 }
 0x7f2   :  { %v2800_v38 = vmul.f32 %v3888_v58, %v3886_v53  ;;  %v9916_v53 = vld [vmem:[#allocation63_spill] sm:$0xff]  ;;  %v9917_v58 = vld [vmem:[#allocation64_spill] sm:$0xff] }
 0x7f4   :  { %v7845_v37 = vrot.slane %v2800_v38, 4  ;;  %v9918_v38 = vld [vmem:[#allocation65_spill] sm:$0xff] }
 0x7f6   :  { %2873 = vmatmul.mubr.f32.vlgmr.msra.gmra.mxu0 %v7845_v37  ;;  %2944 = vmatmul.mubr.f32.vlgmr.msra.gmra.mxu1 %v7845_v37 }
 0x7f7   :  { %2975 = vmatpush1.msra.mxu0 %v7253_v34  ;;  %3046 = vmatpush1.msra.mxu1 %v7256_v21  ;;  %v9863_v34 = vld [vmem:[#allocation170_spill] sm:$0xff]  ;;  %v9864_v21 = vld [vmem:[#allocation171_spill] sm:$0xff] }
 0x7f8   :  { %2976 = vmatprep.subr.mxu0 %v7259_v1  ;;  %3047 = vmatprep.subr.mxu1 %v7262_v13  ;;  %v9865_v1 = vld [vmem:[#allocation165_spill] sm:$0xff] }
 0x7f9   :  { %2977 = vmatpush1.msra.mxu0 %v7265_v61  ;;  %3048 = vmatpush1.msra.mxu1 %v7268_v44  ;;  %v9866_v13 = vld [vmem:[#allocation161_spill] sm:$0xff]  ;;  %v9867_v61 = vld [vmem:[#allocation164_spill] sm:$0xff]  ;;  %v9868_v44 = vld [vmem:[#allocation14_spill] sm:$0xff] }
 0x7fa   :  { %2978 = vmatprep.subr.mxu0 %v7271_v7  ;;  %3049 = vmatprep.subr.mxu1 %v7274_v57  ;;  %v9869_v7 = vld [vmem:[#allocation24_spill] sm:$0xff]  ;;  %v9870_v57 = vld [vmem:[#allocation15_spill] sm:$0xff] }
 0x7fb   :  { %2979 = vmatpush1.msra.mxu0 %v7277_v5  ;;  %3050 = vmatpush1.msra.mxu1 %v7280_v19  ;;  %v9871_v5 = vld [vmem:[#allocation25_spill] sm:$0xff]  ;;  %v9872_v19 = vld [vmem:[#allocation16_spill] sm:$0xff] }
 0x7fc   :  { %2980 = vmatprep.subr.mxu0 %v7283_v32  ;;  %3051 = vmatprep.subr.mxu1 %v7286_v40  ;;  %v9873_v32 = vld [vmem:[#allocation26_spill] sm:$0xff]  ;;  %v9874_v40 = vld [vmem:[#allocation17_spill] sm:$0xff] }
 0x7fd   :  { %2981 = vmatpush1.msra.mxu0 %v7289_v50  ;;  %3052 = vmatpush1.msra.mxu1 %v7292_v26  ;;  %v9875_v50 = vld [vmem:[#allocation27_spill] sm:$0xff]  ;;  %v9876_v26 = vld [vmem:[#allocation18_spill] sm:$0xff] }
 0x7fe   :  { %2982 = vmatprep.subr.mxu0 %v7295_v47  ;;  %3053 = vmatprep.subr.mxu1 %v7298_v55  ;;  %v9877_v47 = vld [vmem:[#allocation28_spill] sm:$0xff]  ;;  %v9878_v55 = vld [vmem:[#allocation19_spill] sm:$0xff] }
 0x7ff   :  { %2983 = vmatpush1.msra.mxu0 %v7301_v59  ;;  %3054 = vmatpush1.msra.mxu1 %v7304_v2  ;;  %v9879_v59 = vld [vmem:[#allocation29_spill] sm:$0xff]  ;;  %v9880_v2 = vld [vmem:[#allocation20_spill] sm:$0xff] }
 0x800   :  { %2984 = vmatprep.subr.mxu0 %v7307_v43  ;;  %3055 = vmatprep.subr.mxu1 %v7310_v30  ;;  %v9881_v43 = vld [vmem:[#allocation30_spill] sm:$0xff]  ;;  %v9882_v30 = vld [vmem:[#allocation21_spill] sm:$0xff] }
 0x801   :  { %2985 = vmatpush1.msra.mxu0 %v7313_v22  ;;  %3056 = vmatpush1.msra.mxu1 %v7316_v28  ;;  %v9883_v22 = vld [vmem:[#allocation31_spill] sm:$0xff]  ;;  %v9884_v28 = vmov 0.0  }
 0x802   :  { %2986 = vmatprep.subr.mxu0 %v7319_v48  ;;  %3057 = vmatprep.subr.mxu1 %v7322_v0  ;;  %v9885_v48 = vld [vmem:[#allocation32_spill] sm:$0xff]  ;;  %v9886_v0 = vld [vmem:[#allocation33_spill] sm:$0xff] }
 0x803   :  { %2987 = vmatpush1.msra.mxu0 %v7325_v6  ;;  %3058 = vmatpush1.msra.mxu1 %v7328_v36  ;;  %v9887_v6 = vld [vmem:[#allocation34_spill] sm:$0xff]  ;;  %v9888_v36 = vld [vmem:[#allocation35_spill] sm:$0xff] }
 0x804   :  { %2988 = vmatprep.subr.mxu0 %v7331_v8  ;;  %3059 = vmatprep.subr.mxu1 %v7334_v10  ;;  %v9889_v8 = vld [vmem:[#allocation36_spill] sm:$0xff]  ;;  %v9890_v10 = vld [vmem:[#allocation37_spill] sm:$0xff] }
 0x805   :  { %2989 = vmatpush1.msra.mxu0 %v7337_v12  ;;  %3060 = vmatpush1.msra.mxu1 %v7340_v14  ;;  %v9891_v12 = vld [vmem:[#allocation38_spill] sm:$0xff]  ;;  %v9892_v14 = vld [vmem:[#allocation39_spill] sm:$0xff] }
 0x806   :  { %2990 = vmatprep.subr.mxu0 %v7343_v18  ;;  %3061 = vmatprep.subr.mxu1 %v7346_v24  ;;  %v9893_v18 = vld [vmem:[#allocation40_spill] sm:$0xff]  ;;  %v9894_v24 = vld [vmem:[#allocation41_spill] sm:$0xff] }
 0x807   :  { %2991 = vmatpush1.msra.mxu0 %v7349_v20  ;;  %3062 = vmatpush1.msra.mxu1 %v7352_v23  ;;  %v9895_v20 = vld [vmem:[#allocation42_spill] sm:$0xff]  ;;  %v9896_v23 = vld [vmem:[#allocation43_spill] sm:$0xff] }
 0x808   :  { %2992 = vmatprep.subr.mxu0 %v7355_v25  ;;  %3063 = vmatprep.subr.mxu1 %v7358_v27  ;;  %v9897_v25 = vld [vmem:[#allocation44_spill] sm:$0xff]  ;;  %v9898_v27 = vld [vmem:[#allocation45_spill] sm:$0xff] }
 0x809   :  { %2993 = vmatpush1.msra.mxu0 %v7361_v63  ;;  %3064 = vmatpush1.msra.mxu1 %v7364_v29  ;;  %v9899_v63 = vld [vmem:[#allocation46_spill] sm:$0xff]  ;;  %v9900_v29 = vld [vmem:[#allocation47_spill] sm:$0xff] }
 0x80a   :  { %2994 = vmatprep.subr.mxu0 %v7367_v35  ;;  %3065 = vmatprep.subr.mxu1 %v9862_v56  ;;  %v9901_v35 = vld [vmem:[#allocation48_spill] sm:$0xff]  ;;  %v9920_v56 = vld [vmem:[#allocation67_spill] sm:$0xff] }
 0x80b   :  { %2995 = vmatpush1.msra.mxu0 %v9863_v34  ;;  %3066 = vmatpush1.msra.mxu1 %v9864_v21  ;;  %v9921_v34 = vld [vmem:[#allocation68_spill] sm:$0xff]  ;;  %v9922_v21 = vld [vmem:[#allocation69_spill] sm:$0xff] }
 0x80c   :  { %2996 = vmatprep.subr.mxu0 %v9865_v1  ;;  %3067 = vmatprep.subr.mxu1 %v9866_v13  ;;  %v9923_v1 = vld [vmem:[#allocation70_spill] sm:$0xff]  ;;  %v9924_v13 = vld [vmem:[#allocation71_spill] sm:$0xff] }
 0x80d   :  { %2997 = vmatpush1.msra.mxu0 %v9867_v61  ;;  %3068 = vmatpush1.msra.mxu1 %v9868_v44  ;;  %v9925_v61 = vld [vmem:[#allocation72_spill] sm:$0xff]  ;;  %v9926_v44 = vld [vmem:[#allocation73_spill] sm:$0xff] }
 0x80e   :  { %2998 = vmatprep.subr.mxu0 %v9869_v7  ;;  %3069 = vmatprep.subr.mxu1 %v9870_v57  ;;  %v9927_v7 = vld [vmem:[#allocation74_spill] sm:$0xff]  ;;  %v9928_v57 = vld [vmem:[#allocation75_spill] sm:$0xff] }
 0x80f   :  { %2999 = vmatpush1.msra.mxu0 %v9871_v5  ;;  %3070 = vmatpush1.msra.mxu1 %v9872_v19  ;;  %v9929_v5 = vld [vmem:[#allocation76_spill] sm:$0xff]  ;;  %v9930_v19 = vld [vmem:[#allocation77_spill] sm:$0xff] }
 0x810   :  { %3000 = vmatprep.subr.mxu0 %v9873_v32  ;;  %3071 = vmatprep.subr.mxu1 %v9874_v40  ;;  %v9931_v32 = vld [vmem:[#allocation78_spill] sm:$0xff]  ;;  %v9932_v40 = vld [vmem:[#allocation79_spill] sm:$0xff] }
 0x811   :  { %3001 = vmatpush1.msra.mxu0 %v9875_v50  ;;  %3072 = vmatpush1.msra.mxu1 %v9876_v26  ;;  %v9933_v50 = vld [vmem:[#allocation80_spill] sm:$0xff]  ;;  %v9934_v26 = vld [vmem:[#allocation81_spill] sm:$0xff] }
 0x812   :  { %3002 = vmatprep.subr.mxu0 %v9877_v47  ;;  %3073 = vmatprep.subr.mxu1 %v9878_v55  ;;  %v9935_v47 = vld [vmem:[#allocation82_spill] sm:$0xff]  ;;  %v9936_v55 = vld [vmem:[#allocation83_spill] sm:$0xff] }
 0x813   :  { %3003 = vmatpush1.msra.mxu0 %v9879_v59  ;;  %3074 = vmatpush1.msra.mxu1 %v9880_v2  ;;  %v9937_v59 = vld [vmem:[#allocation84_spill] sm:$0xff]  ;;  %v9938_v2 = vld [vmem:[#allocation85_spill] sm:$0xff] }
 0x814   :  { %3004 = vmatprep.subr.mxu0 %v9881_v43  ;;  %3075 = vmatprep.subr.mxu1 %v9882_v30  ;;  %v9939_v43 = vld [vmem:[#allocation86_spill] sm:$0xff]  ;;  %v9940_v30 = vld [vmem:[#allocation87_spill] sm:$0xff] }
 0x815   :  { %3005 = vmatpush1.msra.mxu0 %v9883_v22  ;;  %3038 = vmatprep.mubr.f32.mxu0 %v9884_v28  ;;  %v9941_v22 = vld [vmem:[#allocation88_spill] sm:$0xff] }
 0x816   :  { %3076 = vmatpush1.msra.mxu1 %v9885_v48  ;;  %3109 = vmatprep.mubr.f32.mxu1 %v9884_v28  ;;  %v9942_v48 = vld [vmem:[#allocation89_spill] sm:$0xff] }
 0x817   :  { %3039 = vmatmul.mubr.f32.vlgmr.msra.gmra.mxu0 %v7845_v37  ;;  %3110 = vmatmul.mubr.f32.vlgmr.msra.gmra.mxu1 %v7845_v37  ;;  %v9919_v37 = vld [vmem:[#allocation66_spill] sm:$0xff] }
 0x818   :  { %3166 = vmatprep.subr.mxu0 %v9886_v0  ;;  %3237 = vmatprep.subr.mxu1 %v9887_v6  ;;  %v9943_v0 = vld [vmem:[#allocation90_spill] sm:$0xff]  ;;  %v9944_v6 = vld [vmem:[#allocation91_spill] sm:$0xff] }
 0x819   :  { %3167 = vmatpush1.msra.mxu0 %v9888_v36  ;;  %3238 = vmatpush1.msra.mxu1 %v9889_v8  ;;  %v9945_v36 = vld [vmem:[#allocation92_spill] sm:$0xff]  ;;  %v9946_v8 = vld [vmem:[#allocation93_spill] sm:$0xff] }
 0x81a   :  { %3168 = vmatprep.subr.mxu0 %v9890_v10  ;;  %3239 = vmatprep.subr.mxu1 %v9891_v12  ;;  %v9947_v10 = vld [vmem:[#allocation94_spill] sm:$0xff]  ;;  %v9948_v12 = vld [vmem:[#allocation95_spill] sm:$0xff] }
 0x81b   :  { %3169 = vmatpush1.msra.mxu0 %v9892_v14  ;;  %3240 = vmatpush1.msra.mxu1 %v9893_v18  ;;  %v9949_v14 = vld [vmem:[#allocation96_spill] sm:$0xff]  ;;  %v9950_v18 = vld [vmem:[#allocation97_spill] sm:$0xff] }
 0x81c   :  { %3170 = vmatprep.subr.mxu0 %v9894_v24  ;;  %3241 = vmatprep.subr.mxu1 %v9895_v20  ;;  %v9951_v24 = vld [vmem:[#allocation98_spill] sm:$0xff]  ;;  %v9952_v20 = vld [vmem:[#allocation99_spill] sm:$0xff] }
 0x81d   :  { %3171 = vmatpush1.msra.mxu0 %v9896_v23  ;;  %3242 = vmatpush1.msra.mxu1 %v9897_v25  ;;  %v9953_v23 = vld [vmem:[#allocation100_spill] sm:$0xff]  ;;  %v9954_v25 = vld [vmem:[#allocation101_spill] sm:$0xff] }
 0x81e   :  { %3172 = vmatprep.subr.mxu0 %v9898_v27  ;;  %3243 = vmatprep.subr.mxu1 %v9899_v63  ;;  %v9955_v27 = vld [vmem:[#allocation102_spill] sm:$0xff]  ;;  %v9956_v63 = vld [vmem:[#allocation103_spill] sm:$0xff] }
 0x81f   :  { %3173 = vmatpush1.msra.mxu0 %v9900_v29  ;;  %3244 = vmatpush1.msra.mxu1 %v9901_v35  ;;  %v9957_v29 = vld [vmem:[#allocation104_spill] sm:$0xff]  ;;  %v9958_v35 = vld [vmem:[#allocation105_spill] sm:$0xff] }
 0x820   :  { %3174 = vmatprep.subr.mxu0 %v9902_v41  ;;  %3245 = vmatprep.subr.mxu1 %v9903_v45  ;;  %v9959_v41 = vld [vmem:[#allocation106_spill] sm:$0xff]  ;;  %v9960_v45 = vld [vmem:[#allocation107_spill] sm:$0xff] }
 0x821   :  { %3175 = vmatpush1.msra.mxu0 %v9904_v42  ;;  %3246 = vmatpush1.msra.mxu1 %v9905_v33  ;;  %v9961_v42 = vld [vmem:[#allocation108_spill] sm:$0xff]  ;;  %v9962_v33 = vld [vmem:[#allocation109_spill] sm:$0xff] }
 0x822   :  { %3176 = vmatprep.subr.mxu0 %v9906_v31  ;;  %3247 = vmatprep.subr.mxu1 %v9907_v60  ;;  %v9963_v31 = vld [vmem:[#allocation110_spill] sm:$0xff]  ;;  %v9964_v60 = vld [vmem:[#allocation111_spill] sm:$0xff] }
 0x823   :  { %3177 = vmatpush1.msra.mxu0 %v9908_v39  ;;  %3248 = vmatpush1.msra.mxu1 %v9909_v51  ;;  %v9965_v39 = vld [vmem:[#allocation112_spill] sm:$0xff]  ;;  %v9966_v51 = vld [vmem:[#allocation113_spill] sm:$0xff] }
 0x824   :  { %3178 = vmatprep.subr.mxu0 %v9910_v52  ;;  %3249 = vmatprep.subr.mxu1 %v9911_v54  ;;  %v9967_v52 = vld [vmem:[#allocation114_spill] sm:$0xff]  ;;  %v9968_v54 = vld [vmem:[#allocation115_spill] sm:$0xff] }
 0x825   :  { %3179 = vmatpush1.msra.mxu0 %v9912_v62  ;;  %3250 = vmatpush1.msra.mxu1 %v9913_v11  ;;  %v9969_v62 = vld [vmem:[#allocation116_spill] sm:$0xff]  ;;  %v9970_v11 = vld [vmem:[#allocation117_spill] sm:$0xff] }
 0x826   :  { %3180 = vmatprep.subr.mxu0 %v9914_v16  ;;  %3251 = vmatprep.subr.mxu1 %v9915_v15  ;;  %v9971_v16 = vld [vmem:[#allocation118_spill] sm:$0xff]  ;;  %v9972_v15 = vld [vmem:[#allocation119_spill] sm:$0xff] }
 0x827   :  { %3181 = vmatpush1.msra.mxu0 %v9916_v53  ;;  %3252 = vmatpush1.msra.mxu1 %v9917_v58  ;;  %v9973_v53 = vld [vmem:[#allocation120_spill] sm:$0xff]  ;;  %v9974_v58 = vld [vmem:[#allocation121_spill] sm:$0xff] }
 0x828   :  { %3182 = vmatprep.subr.mxu0 %v9918_v38  ;;  %3253 = vmatprep.subr.mxu1 %v9919_v37  ;;  %v9975_v38 = vld [vmem:[#allocation122_spill] sm:$0xff]  ;;  %v9976_v37 = vld [vmem:[#allocation123_spill] sm:$0xff] }
 0x829   :  { %3183 = vmatpush1.msra.mxu0 %v9920_v56  ;;  %3254 = vmatpush1.msra.mxu1 %v9921_v34  ;;  %v9977_v56 = vld [vmem:[#allocation124_spill] sm:$0xff]  ;;  %v9978_v34 = vld [vmem:[#allocation125_spill] sm:$0xff] }
 0x82a   :  { %3184 = vmatprep.subr.mxu0 %v9922_v21  ;;  %3255 = vmatprep.subr.mxu1 %v9923_v1  ;;  %v9979_v21 = vld [vmem:[#allocation126_spill] sm:$0xff]  ;;  %v9980_v1 = vld [vmem:[#allocation127_spill] sm:$0xff] }
 0x82b   :  { %3185 = vmatpush1.msra.mxu0 %v9924_v13  ;;  %3256 = vmatpush1.msra.mxu1 %v9925_v61  ;;  %v9981_v13 = vld [vmem:[#allocation128_spill] sm:$0xff]  ;;  %v9982_v61 = vld [vmem:[#allocation129_spill] sm:$0xff] }
 0x82c   :  { %3186 = vmatprep.subr.mxu0 %v9926_v44  ;;  %3257 = vmatprep.subr.mxu1 %v9927_v7  ;;  %v9983_v44 = vld [vmem:[#allocation130_spill] sm:$0xff]  ;;  %v9984_v7 = vld [vmem:[#allocation131_spill] sm:$0xff] }
 0x82d   :  { %3187 = vmatpush1.msra.mxu0 %v9928_v57  ;;  %3258 = vmatpush1.msra.mxu1 %v9929_v5  ;;  %v9985_v57 = vld [vmem:[#allocation132_spill] sm:$0xff]  ;;  %v9986_v5 = vld [vmem:[#allocation133_spill] sm:$0xff] }
 0x82e   :  { %3188 = vmatprep.subr.mxu0 %v9930_v19  ;;  %3259 = vmatprep.subr.mxu1 %v9931_v32  ;;  %v9987_v19 = vld [vmem:[#allocation134_spill] sm:$0xff]  ;;  %v9988_v32 = vld [vmem:[#allocation135_spill] sm:$0xff] }
 0x82f   :  { %3189 = vmatpush1.msra.mxu0 %v9932_v40  ;;  %3260 = vmatpush1.msra.mxu1 %v9933_v50  ;;  %v9989_v40 = vld [vmem:[#allocation136_spill] sm:$0xff]  ;;  %v9990_v50 = vld [vmem:[#allocation137_spill] sm:$0xff] }
 0x830   :  { %3190 = vmatprep.subr.mxu0 %v9934_v26  ;;  %3261 = vmatprep.subr.mxu1 %v9935_v47  ;;  %v9991_v26 = vld [vmem:[#allocation138_spill] sm:$0xff]  ;;  %v9992_v47 = vld [vmem:[#allocation139_spill] sm:$0xff] }
 0x831   :  { %3191 = vmatpush1.msra.mxu0 %v9936_v55  ;;  %3262 = vmatpush1.msra.mxu1 %v9937_v59  ;;  %v9993_v55 = vld [vmem:[#allocation140_spill] sm:$0xff]  ;;  %v9994_v59 = vld [vmem:[#allocation141_spill] sm:$0xff] }
 0x832   :  { %3192 = vmatprep.subr.mxu0 %v9938_v2  ;;  %3263 = vmatprep.subr.mxu1 %v9939_v43  ;;  %v9995_v2 = vld [vmem:[#allocation142_spill] sm:$0xff]  ;;  %v9996_v43 = vld [vmem:[#allocation143_spill] sm:$0xff] }
 0x833   :  { %3193 = vmatpush1.msra.mxu0 %v9940_v30  ;;  %3264 = vmatpush1.msra.mxu1 %v9941_v22  ;;  %v9997_v30 = vld [vmem:[#allocation144_spill] sm:$0xff]  ;;  %v9998_v22 = vld [vmem:[#allocation145_spill] sm:$0xff] }
 0x834   :  { %3194 = vmatprep.subr.mxu0 %v9942_v48  ;;  %3265 = vmatprep.subr.mxu1 %v9943_v0  ;;  %v9999_v48 = vld [vmem:[#allocation146_spill] sm:$0xff]  ;;  %v10000_v0 = vld [vmem:[#allocation147_spill] sm:$0xff] }
 0x835   :  { %3195 = vmatpush1.msra.mxu0 %v9944_v6  ;;  %3266 = vmatpush1.msra.mxu1 %v9945_v36  ;;  %v10001_v6 = vld [vmem:[#allocation148_spill] sm:$0xff]  ;;  %v10002_v36 = vld [vmem:[#allocation149_spill] sm:$0xff] }
 0x836   :  { %3196 = vmatprep.subr.mxu0 %v9946_v8  ;;  %3267 = vmatprep.subr.mxu1 %v9947_v10  ;;  %v10003_v8 = vld [vmem:[#allocation150_spill] sm:$0xff]  ;;  %v10004_v10 = vld [vmem:[#allocation151_spill] sm:$0xff] }
 0x837   :  { %3197 = vmatpush1.msra.mxu0 %v9948_v12  ;;  %3268 = vmatpush1.msra.mxu1 %v9949_v14  ;;  %v10005_v12 = vld [vmem:[#allocation152_spill] sm:$0xff]  ;;  %v10006_v14 = vld [vmem:[#allocation153_spill] sm:$0xff] }
 0x838   :  { %3198 = vmatprep.subr.mxu0 %v9950_v18  ;;  %3269 = vmatprep.subr.mxu1 %v9951_v24  ;;  %v10007_v18 = vld [vmem:[#allocation154_spill] sm:$0xff]  ;;  %v10008_v24 = vld [vmem:[#allocation155_spill] sm:$0xff] }
 0x839   :  { %3199 = vmatpush2.msra.mxu0 %v9952_v20  ;;  %3270 = vmatpush2.msra.mxu1 %v9953_v23  ;;  %v10009_v20 = vld [vmem:[#allocation156_spill] sm:$0xff]  ;;  %v10010_v23 = vld [vmem:[#allocation157_spill] sm:$0xff] }
 0x83a   :  { %3200 = vmatprep.subr.mxu0 %v9954_v25  ;;  %3271 = vmatprep.subr.mxu1 %v9955_v27  ;;  %v10011_v25 = vld [vmem:[#allocation158_spill] sm:$0xff]  ;;  %v10012_v27 = vld [vmem:[#allocation159_spill] sm:$0xff] }
 0x83b   :  { %3201 = vmatpush2.msra.mxu0 %v9956_v63  ;;  %3272 = vmatpush2.msra.mxu1 %v9957_v29  ;;  %v10013_v63 = vld [vmem:[#allocation162_spill] sm:$0xff] }
 0x83c   :  { %3202 = vmatprep.subr.mxu0 %v9958_v35  ;;  %3273 = vmatprep.subr.mxu1 %v9959_v41  ;;  %v10014_v35 = vld [vmem:[#allocation12_spill] sm:$0xff] }
 0x83d   :  { %3203 = vmatpush2.msra.mxu0 %v9960_v45  ;;  %3274 = vmatpush2.msra.mxu1 %v9961_v42 }
 0x83e   :  { %3204 = vmatprep.subr.mxu0 %v9962_v33  ;;  %3275 = vmatprep.subr.mxu1 %v9963_v31  ;;  %v10015_v33 = vld [vmem:[#allocation22_spill] sm:$0xff] }
 0x83f   :  { %3205 = vmatpush2.msra.mxu0 %v9964_v60  ;;  %3276 = vmatpush2.msra.mxu1 %v9965_v39 }
 0x840   :  { %3206 = vmatprep.subr.mxu0 %v9966_v51  ;;  %3277 = vmatprep.subr.mxu1 %v9967_v52  ;;  %v10016_v52 = vld [vmem:[#allocation13_spill] sm:$0xff] }
 0x841   :  { %3207 = vmatpush2.msra.mxu0 %v9968_v54  ;;  %3278 = vmatpush2.msra.mxu1 %v9969_v62 }
 0x842   :  { %3208 = vmatprep.subr.mxu0 %v9970_v11  ;;  %3279 = vmatprep.subr.mxu1 %v9971_v16 }
 0x843   :  { %3209 = vmatpush2.msra.mxu0 %v9972_v15  ;;  %3280 = vmatpush2.msra.mxu1 %v9973_v53 }
 0x844   :  { %3210 = vmatprep.subr.mxu0 %v9974_v58  ;;  %3281 = vmatprep.subr.mxu1 %v9975_v38 }
 0x845   :  { %3211 = vmatpush2.msra.mxu0 %v9976_v37  ;;  %3282 = vmatpush2.msra.mxu1 %v9977_v56 }
 0x846   :  { %3212 = vmatprep.subr.mxu0 %v9978_v34  ;;  %3283 = vmatprep.subr.mxu1 %v9979_v21 }
 0x847   :  { %3213 = vmatpush2.msra.mxu0 %v9980_v1  ;;  %3284 = vmatpush2.msra.mxu1 %v9981_v13 }
 0x848   :  { %3214 = vmatprep.subr.mxu0 %v9982_v61  ;;  %3285 = vmatprep.subr.mxu1 %v9983_v44 }
 0x849   :  { %3215 = vmatpush2.msra.mxu0 %v9984_v7  ;;  %3286 = vmatpush2.msra.mxu1 %v9985_v57 }
 0x84a   :  { %3216 = vmatprep.subr.mxu0 %v9986_v5  ;;  %3287 = vmatprep.subr.mxu1 %v9987_v19 }
 0x84b   :  { %3217 = vmatpush2.msra.mxu0 %v9988_v32  ;;  %3288 = vmatpush2.msra.mxu1 %v9989_v40 }
 0x84c   :  { %3218 = vmatprep.subr.mxu0 %v9990_v50  ;;  %3289 = vmatprep.subr.mxu1 %v9991_v26 }
 0x84d   :  { %3219 = vmatpush2.msra.mxu0 %v9992_v47  ;;  %3290 = vmatpush2.msra.mxu1 %v9993_v55 }
 0x84e   :  { %3220 = vmatprep.subr.mxu0 %v9994_v59  ;;  %3291 = vmatprep.subr.mxu1 %v9995_v2 }
 0x84f   :  { %3221 = vmatpush2.msra.mxu0 %v9996_v43  ;;  %3292 = vmatpush2.msra.mxu1 %v9997_v30 }
 0x850   :  { %3222 = vmatprep.subr.mxu0 %v9998_v22  ;;  %3293 = vmatprep.subr.mxu1 %v9999_v48 }
 0x851   :  { %3223 = vmatpush2.msra.mxu0 %v10000_v0  ;;  %3294 = vmatpush2.msra.mxu1 %v10001_v6 }
 0x852   :  { %3224 = vmatprep.subr.mxu0 %v10002_v36  ;;  %3295 = vmatprep.subr.mxu1 %v10003_v8 }
 0x853   :  { %3225 = vmatpush2.msra.mxu0 %v10004_v10  ;;  %3296 = vmatpush2.msra.mxu1 %v10005_v12 }
 0x854   :  { %3226 = vmatprep.subr.mxu0 %v10006_v14  ;;  %3297 = vmatprep.subr.mxu1 %v10007_v18  ;;  %v3152_v18 = vrot.slane %v7842_v3, 6  ;;  %v3346_v3 = vld [vmem:[%s8150_s6 + $0x70] sm:$0xff] }
 0x855   :  { %3227 = vmatpush2.msra.mxu0 %v10008_v24  ;;  %3298 = vmatpush2.msra.mxu1 %v10009_v20 }
 0x856   :  { %3228 = vmatprep.subr.mxu0 %v10010_v23  ;;  %3299 = vmatprep.subr.mxu1 %v10011_v25 }
 0x857   :  { %3229 = vmatpush2.msra.mxu0 %v10012_v27  ;;  %3300 = vmatpush2.msra.mxu1 %v10013_v63 }
 0x858   :  { %3617 = vmatprep.subr.mxu0 %v9884_v28  ;;  %3652 = vmatprep.subr.mxu1 %v9884_v28 }
 0x8b6   :  { %v2874_v29 = vpop.f32.mrf.mxu0  ;;  %v2945_v60 = vpop.f32.mrf.mxu1 }
 0x8b7   :  { %v2875_v41 = vadd.f32 %v2874_v29, %v10014_v35  ;;  %v2946_v16 = vadd.f32 %v2945_v60, %v9709_v4  ;;  %v3344_v60 = vld [vmem:[%s8150_s6 + $0x60] sm:$0xff] }
 0x8b8   :  { %v2876_v45 = vpop.f32.mrf.mxu0  ;;  %v2947_v51 = vpop.f32.mrf.mxu1 }
 0x8b9   :  { %v3579_v42 = vmul.f32 -1.442695, %v2875_v41  ;;  %v2877_v31 = vadd.f32 %v2876_v45, %v10015_v33  ;;  %v2948_v54 = vadd.f32 %v2947_v51, %v10016_v52  ;;  %v3342_v51 = vld [vmem:[%s8150_s6 + $0x50] sm:$0xff] }
 0x8bb   :  { %3889 = vpow2.f32 %v3579_v42  ;;  %v3580_v39 = vmul.f32 -1.442695, %v2877_v31  ;;  %v3581_v62 = vmul.f32 -1.442695, %v2948_v54  ;;  %v3347_v42 = vld [vmem:[%s8150_s6 + $0x78] sm:$0xff]  ;;  %v3345_v31 = vld [vmem:[%s8150_s6 + $0x68] sm:$0xff] }
 0x8bc   :  { %v3341_v54 = vld [vmem:[%s8150_s6 + $0x48] sm:$0xff] }
 0x8bd   :  { %3891 = vpow2.f32 %v3580_v39  ;;  %v3343_v39 = vld [vmem:[%s8150_s6 + $0x58] sm:$0xff] }
 0x8be   :  { %3893 = vpow2.f32 %v3581_v62  ;;  %v3340_v62 = vld [vmem:[%s8150_s6 + $0x40] sm:$0xff] }
 0x8c8   :  { %v3890_v11 = vpop.eup %3889 }
 0x8c9   :  { %v2953_v15 = vadd.f32 1.0, %v3890_v11  ;;  %v3339_v11 = vld [vmem:[%s8150_s6 + $0x38] sm:$0xff] }
 0x8ca   :  { %v3892_v53 = vpop.eup %3891 }
 0x8cb   :  { %3895 = vrcp.f32 %v2953_v15  ;;  %v2959_v58 = vadd.f32 1.0, %v3892_v53  ;;  %v3894_v38 = vpop.eup %3893  ;;  %v3337_v15 = vld [vmem:[%s8150_s6 + $0x28] sm:$0xff]  ;;  %v3336_v53 = vld [vmem:[%s8150_s6 + $0x20] sm:$0xff] }
 0x8cc   :  { %3897 = vtanh.f32 %v2946_v16  ;;  %v2966_v1 = vadd.f32 1.0, %v3894_v38  ;;  %v3338_v16 = vld [vmem:[%s8150_s6 + $0x30] sm:$0xff] }
 0x8cd   :  { %3899 = vrcp.f32 %v2959_v58  ;;  %v3335_v58 = vld [vmem:[%s8150_s6 + $0x18] sm:$0xff]  ;;  %v3334_v38 = vld [vmem:[%s8150_s6 + $0x10] sm:$0xff] }
 0x8ce   :  { %3901 = vrcp.f32 %v2966_v1  ;;  %v3431_v1 = vld [vmem:[#allocation7 + $0x28] sm:$0xff] }
 0x8d7   :  { %v3040_v37 = vpop.f32.mrf.mxu0  ;;  %v3111_v7 = vpop.f32.mrf.mxu1 }
 0x8d8   :  { %v3896_v56 = vpop.eup %3895  ;;  %v3120_v34 = vrot.slane %v3040_v37, 2  ;;  %v3122_v59 = vrot.slane %v3111_v7, 2  ;;  %v3333_v37 = vld [vmem:[%s8150_s6 + $0x8] sm:$0xff] }
 0x8d9   :  { %v3898_v21 = vpop.eup %3897  ;;  %v3042_v13 = vpop.f32.mrf.mxu0 }
 0x8da   :  { %v3900_v61 = vpop.eup %3899  ;;  %v3128_v44 = vadd.f32 %v3120_v34, %v9710_v17  ;;  %v3121_v57 = vrot.slane %v3042_v13, 2  ;;  %v2970_v5 = vmul.f32 %v3898_v21, %v3896_v56  ;;  %v3113_v47 = vpop.f32.mrf.mxu1  ;;  %v3332_v56 = vld [vmem:[%s8150_s6] sm:$0xff]  ;;  %v3433_v34 = vld [vmem:[#allocation7 + $0x38] sm:$0xff]  ;;  %v3432_v21 = vld [vmem:[#allocation7 + $0x30] sm:$0xff] }
 0x8db   :  { %v2969_v19 = vmul.f32 %v3900_v61, %v7836_v46  ;;  %v3123_v55 = vrot.slane %v3113_v47, 2  ;;  %v3902_v43 = vpop.eup %3901  ;;  %v10017_v46 = vld [vmem:[#allocation163_spill] sm:$0xff] }
 0x8dc   :  { %v3582_v32 = vmul.f32 -1.442695, %v3128_v44  ;;  %v3129_v40 = vadd.f32 %v3121_v57, %v9554_v9  ;;  %v3130_v22 = vadd.f32 %v3122_v59, %v10017_v46  ;;  %v3430_v13 = vld [vmem:[#allocation7 + $0x20] sm:$0xff]  ;;  %v3429_v61 = vld [vmem:[#allocation7 + $0x18] sm:$0xff] }
 0x8dd   :  { %v8052_v50 = vadd.f32 %v2970_v5, %v2969_v19  ;;  %v3131_v17 = vadd.f32 %v3123_v55, %v9555_v49 }
 0x8de   :  { %3903 = vpow2.f32 %v3582_v32  ;;  %v3583_v26 = vmul.f32 -1.442695, %v3129_v40 }
 0x8df   :  { %3905 = vtanh.f32 %v8052_v50  ;;  %v3584_v2 = vmul.f32 -1.442695, %v3131_v17 }
 0x8e0   :  { %3907 = vpow2.f32 %v3583_v26 }
 0x8e1   :  { %3909 = vpow2.f32 %v3584_v2 }
 0x8eb   :  { %v3904_v30 = vpop.eup %3903 }
 0x8ec   :  { %v3906_v48 = vpop.eup %3905  ;;  %v3135_v9 = vadd.f32 1.0, %v3904_v30 }
 0x8ed   :  { %v3908_v0 = vpop.eup %3907  ;;  %v2973_v6 = vmul.f32 %v3906_v48, %v3902_v43 }
 0x8ee   :  { %3911 = vrcp.f32 %v3135_v9  ;;  %v3141_v36 = vadd.f32 1.0, %v3908_v0  ;;  %v3910_v49 = vpop.eup %3909 }
 0x8ef   :  { %3913 = vtanh.f32 %v3130_v22  ;;  %v3160_v8 = vrot.slane %v2973_v6, 2  ;;  %v3148_v20 = vadd.f32 1.0, %v3910_v49  ;;  %v3426_v49 = vld [vmem:[#allocation7] sm:$0xff] }
 0x8f0   :  { %3915 = vrcp.f32 %v3141_v36 }
 0x8f1   :  { %v3163_v10 = vrot.slane %v3160_v8, 6  ;;  %3917 = vrcp.f32 %v3148_v20  ;;  %v3428_v8 = vld [vmem:[#allocation7 + $0x10] sm:$0xff]  ;;  %v3589_v20 = vld [vmem:[%s8153_s9] ss:$0 sm:$0xff] }
 0x8f3   :  { %3230 = vmatprep.mubr.f32.mxu0 %v3163_v10  ;;  %3301 = vmatprep.mubr.f32.mxu1 %v3163_v10  ;;  %v3427_v10 = vld [vmem:[#allocation7 + $0x8] sm:$0xff] }
 0x8fb   :  { %v3912_v12 = vpop.eup %3911 }
 0x8fc   :  { %v3914_v14 = vpop.eup %3913 }
 0x8fd   :  { %v3916_v24 = vpop.eup %3915  ;;  %v3155_v23 = vmul.f32 %v3914_v14, %v3912_v12 }
 0x8fe   :  { %v3154_v25 = vmul.f32 %v3916_v24, %v3152_v18  ;;  %v3918_v63 = vpop.eup %3917 }
 0x900   :  { %v3156_v27 = vadd.f32 %v3155_v23, %v3154_v25 }
 0x902   :  { %3919 = vtanh.f32 %v3156_v27 }
 0x90f   :  { %v3920_v29 = vpop.eup %3919 }
 0x910   :  { %v3158_v41 = vmul.f32 %v3920_v29, %v3918_v63 }
 0x912   :  { %v3162_v45 = vrot.slane %v3158_v41, 6 }
 0x914   :  { %3231 = vmatmul.mubr.f32.vlgmr.msra.gmra.mxu0 %v3162_v45  ;;  %3302 = vmatmul.mubr.f32.vlgmr.msra.gmra.mxu1 %v3162_v45 }
 0x915   :  { %3618 = vmatpush3.msra.mxu0 %v3347_v42  ;;  %3649 = vmatprep.mubr.msk.f32.mxu0 %vm4607_vm2, %v9884_v28 }
 0x916   :  { %3619 = vmatprep.subr.mxu0 %v9884_v28  ;;  %3668 = vmatprep.mubr.msk.f32.mxu1 %vm4607_vm2, %v9884_v28 }
 0x917   :  { %3620 = vmatpush3.msra.mxu0 %v3346_v3  ;;  %3653 = vmatpush3.msra.mxu1 %v3433_v34 }
 0x918   :  { %3621 = vmatprep.subr.mxu0 %v9884_v28  ;;  %3654 = vmatprep.subr.mxu1 %v9884_v28 }
 0x919   :  { %3622 = vmatpush3.msra.mxu0 %v3345_v31  ;;  %3655 = vmatpush3.msra.mxu1 %v3432_v21 }
 0x91a   :  { %3623 = vmatprep.subr.mxu0 %v9884_v28  ;;  %3656 = vmatprep.subr.mxu1 %v9884_v28 }
 0x91b   :  { %3624 = vmatpush3.msra.mxu0 %v3344_v60  ;;  %3657 = vmatpush3.msra.mxu1 %v3431_v1 }
 0x91c   :  { %3625 = vmatprep.subr.mxu0 %v9884_v28  ;;  %3658 = vmatprep.subr.mxu1 %v9884_v28 }
 0x91d   :  { %3626 = vmatpush3.msra.mxu0 %v3343_v39  ;;  %3659 = vmatpush3.msra.mxu1 %v3430_v13 }
 0x91e   :  { %3627 = vmatprep.subr.mxu0 %v9884_v28  ;;  %3660 = vmatprep.subr.mxu1 %v9884_v28 }
 0x91f   :  { %3628 = vmatpush3.msra.mxu0 %v3342_v51  ;;  %3661 = vmatpush3.msra.mxu1 %v3429_v61 }
 0x920   :  { %3629 = vmatprep.subr.mxu0 %v9884_v28  ;;  %3662 = vmatprep.subr.mxu1 %v9884_v28 }
 0x921   :  { %3630 = vmatpush3.msra.mxu0 %v3341_v54  ;;  %3663 = vmatpush3.msra.mxu1 %v3428_v8 }
 0x922   :  { %3631 = vmatprep.subr.mxu0 %v9884_v28  ;;  %3664 = vmatprep.subr.mxu1 %v9884_v28 }
 0x923   :  { %3632 = vmatpush3.msra.mxu0 %v3340_v62  ;;  %3665 = vmatpush3.msra.mxu1 %v3427_v10 }
 0x924   :  { %3633 = vmatprep.subr.mxu0 %v9884_v28  ;;  %3666 = vmatprep.subr.mxu1 %v9884_v28 }
 0x925   :  { %3634 = vmatpush3.msra.mxu0 %v3339_v11  ;;  %3667 = vmatpush3.msra.mxu1 %v3426_v49 }
 0x926   :  { %3635 = vmatprep.subr.mxu0 %v9884_v28 }
 0x927   :  { %3636 = vmatpush3.msra.mxu0 %v3338_v16 }
 0x928   :  { %3637 = vmatprep.subr.mxu0 %v9884_v28 }
 0x929   :  { %3638 = vmatpush3.msra.mxu0 %v3337_v15 }
 0x92a   :  { %3639 = vmatprep.subr.mxu0 %v9884_v28 }
 0x92b   :  { %3640 = vmatpush3.msra.mxu0 %v3336_v53 }
 0x92c   :  { %3641 = vmatprep.subr.mxu0 %v9884_v28 }
 0x92d   :  { %3642 = vmatpush3.msra.mxu0 %v3335_v58 }
 0x92e   :  { %3643 = vmatprep.subr.mxu0 %v9884_v28 }
 0x92f   :  { %3644 = vmatpush3.msra.mxu0 %v3334_v38 }
 0x930   :  { %3645 = vmatprep.subr.mxu0 %v9884_v28 }
 0x931   :  { %3646 = vmatpush3.msra.mxu0 %v3333_v37 }
 0x932   :  { %3647 = vmatprep.subr.mxu0 %v9884_v28 }
 0x933   :  { %3648 = vmatpush3.msra.mxu0 %v3332_v56 }
 0x9d4   :  { %v3232_v44 = vpop.f32.mrf.mxu0  ;;  %v3303_v32 = vpop.f32.mrf.mxu1 }
 0x9d5   :  { %v3233_v7 = vadd.f32 %v3232_v44, %v10014_v35  ;;  %v3304_v59 = vadd.f32 %v3303_v32, %v9709_v4 }
 0x9d6   :  { %v3234_v57 = vpop.f32.mrf.mxu0  ;;  %v3305_v26 = vpop.f32.mrf.mxu1 }
 0x9d7   :  { %v3585_v5 = vmul.f32 -1.442695, %v3233_v7  ;;  %v3235_v19 = vadd.f32 %v3234_v57, %v10015_v33  ;;  %v3306_v47 = vadd.f32 %v3305_v26, %v10016_v52 }
 0x9d9   :  { %3921 = vpow2.f32 %v3585_v5  ;;  %v3586_v40 = vmul.f32 -1.442695, %v3235_v19  ;;  %v3587_v55 = vmul.f32 -1.442695, %v3306_v47 }
 0x9db   :  { %3923 = vpow2.f32 %v3586_v40 }
 0x9dc   :  { %3925 = vpow2.f32 %v3587_v55 }
 0x9e6   :  { %v3922_v17 = vpop.eup %3921 }
 0x9e7   :  { %v3311_v2 = vadd.f32 1.0, %v3922_v17 }
 0x9e8   :  { %v3924_v43 = vpop.eup %3923 }
 0x9e9   :  { %3927 = vrcp.f32 %v3311_v2  ;;  %v3317_v35 = vadd.f32 1.0, %v3924_v43  ;;  %v3926_v30 = vpop.eup %3925 }
 0x9ea   :  { %3929 = vtanh.f32 %v3304_v59  ;;  %v3324_v48 = vadd.f32 1.0, %v3926_v30 }
 0x9eb   :  { %3931 = vrcp.f32 %v3317_v35 }
 0x9ec   :  { %3933 = vrcp.f32 %v3324_v48 }
 0x9f6   :  { %v3928_v33 = vpop.eup %3927 }
 0x9f7   :  { %v3930_v46 = vpop.eup %3929 }
 0x9f8   :  { %v3932_v22 = vpop.eup %3931  ;;  %v3328_v9 = vmul.f32 %v3930_v46, %v3928_v33 }
 0x9f9   :  { %v3327_v0 = vmul.f32 %v3932_v22, %v8052_v50  ;;  %v3934_v6 = vpop.eup %3933  ;;  %v3588_v50 = vld [vmem:[%s8151_s7] ss:$0 sm:$0xff] }
 0x9fb   :  { %v3329_v52 = vadd.f32 %v3328_v9, %v3327_v0 }
 0x9fd   :  { %3935 = vtanh.f32 %v3329_v52 }
 0xa0a   :  { %v3936_v4 = vpop.eup %3935 }
 0xa0b   :  { %v3331_v36 = vmul.f32 %v3936_v4, %v3934_v6 }
 0xa0d   :  { %3650 = vmatmul.mubr.f32.vlgmr.msra.gmra.mxu0 %v3331_v36 }
 0xacd   :  { %v3421_v12 = vpop.f32.mrf.mxu0 }
 0xace   :  { %v3422_v14 = vadd.f32 %v3588_v50, %v3421_v12 }
 0xacf   :  { %v3651_v18 = vpop.f32.mrf.mxu0 }
 0xad0   :  { %v3425_v24 = vmax.f32 %v3422_v14, 0.0 }
 0xad2   :  { %3669 = vmatmul.mubr.msk.f32.vlgmr.msra.gmra.mxu1 %vm3441_vm3, %v3425_v24 }
 0xb92   :  { %v3511_v23 = vpop.f32.mrf.mxu1 }
 0xb93   :  { %v3512_v25 = vadd.f32 %v3589_v20, %v3511_v23 }
 0xb94   :  { %v3670_v28 = vpop.f32.mrf.mxu1 }
 0xb95   :  { %3515 = vst [vmem:[#allocation8] sm:$0x3] %v3512_v25 }
 0xb96   :  { %4584 = shalt.err (!%p4581_p5)
}
 0xb97   :  { %3525 = dma.vmem_to_hbm [thread:$0]  %s3523_s16, 32, %s8154_s10, [#allocation4]  }
 0xb98   :  { %4597 = dma.done.wait [#allocation4], 32  }
 0xb99   :  { %4598 = vsyncadd [#allocation4], 4294967264 }
 0xb9a   :  { %3529 = vsyncpa [#allocation3], 1 }
 0xb9b   :  { %3530 = vsyncpa [#allocation6], 1 }
 0xb9c   :  { %3531 = vsyncpa [#allocation4], 1 }

</bundles_post_ra>
